<compile_context>
chip_gen: v7x
topology: tpu7x:2x2x1
jax: 0.10.0
libtpu: 0.0.40
codegen_flags: <defaults>
</compile_context>

<pallas_src>
import jax
import jax.numpy as jnp
from jax.experimental import pallas as pl
from jax.experimental.pallas import tpu as pltpu


# ---------------------------------------------------------------------------
# Mini CLIP ViT configuration (synthetic deterministic weights).
# ---------------------------------------------------------------------------
IMG = 32          # image spatial size
PATCH = 16        # patch size -> 2x2 grid, 4 patches
IN_CH = 3
WIDTH = 32        # transformer width
HEADS = 4
HEAD_DIM = WIDTH // HEADS
LAYERS = 2
MLP_DIM = 4 * WIDTH
EMBED = 16        # output (projection) dim
N_PATCH = (IMG // PATCH) ** 2
SEQ = N_PATCH + 1                  # +1 class token
PATCH_DIM = IN_CH * PATCH * PATCH  # flattened conv1 receptive field
LN_EPS = 1e-5
ATTN_SCALE = 1.0 / float(HEAD_DIM) ** 0.5

TILE_B = 16                        # images per grid step (multiple of 8; ROWS % 16 == 0)
ROWS = TILE_B * SEQ                # flattened token rows per grid step


# ---------------------------------------------------------------------------
# In-kernel helpers (operate on VMEM-loaded values).
# ---------------------------------------------------------------------------
def _ln(x, g, b):
    mu = jnp.mean(x, axis=-1, keepdims=True)
    var = jnp.mean((x - mu) ** 2, axis=-1, keepdims=True)
    return (x - mu) * jax.lax.rsqrt(var + LN_EPS) * g + b


def _mm(x, w, b=None):
    # Weights are pre-cast to bf16 outside the kernel; only the f32 activation is cast
    # here.  MXU accumulates in f32; VPU/EUP math elsewhere stays f32.
    y = jnp.dot(x.astype(jnp.bfloat16), w, preferred_element_type=jnp.float32)
    if b is not None:
        y = y + b
    return y


# ---------------------------------------------------------------------------
# Single fused encoder kernel (one grid step == TILE_B images, ROWS token rows).
# ---------------------------------------------------------------------------
def _clip_encoder_kernel(
    patches_ref,                    # (ROWS, PATCH_DIM) bf16; cls rows are zeros
    patch_w_ref,                    # (PATCH_DIM, WIDTH) bf16
    emb_ref,                        # (ROWS, WIDTH) bf16  = tiled [cls+pos0 ; pos1..]
    attn_bias_ref,                  # (ROWS, ROWS) f32 block-diagonal additive mask
    cls_sel_ref,                    # (TILE_B, ROWS) f32 one-hot class-token selector
    ln_pre_g_ref, ln_pre_b_ref,     # (1, WIDTH) f32
    ln1_g_ref, ln1_b_ref,           # (LAYERS, 1, WIDTH) f32
    qkv_w_ref, qkv_b_ref,           # (LAYERS, WIDTH, 3W) bf16 / (LAYERS, 1, 3W) f32
    out_w_ref, out_b_ref,           # (LAYERS, WIDTH, WIDTH) bf16 / (LAYERS, 1, WIDTH) f32
    ln2_g_ref, ln2_b_ref,           # (LAYERS, 1, WIDTH) f32
    fc1_w_ref, fc1_b_ref,           # (LAYERS, WIDTH, MLP) bf16 / (LAYERS, 1, MLP) f32
    fc2_w_ref, fc2_b_ref,           # (LAYERS, MLP, WIDTH) bf16 / (LAYERS, 1, WIDTH) f32
    ln_post_g_ref, ln_post_b_ref,   # (1, WIDTH) f32
    proj_ref,                       # (WIDTH, EMBED) bf16
    o_ref,                          # (TILE_B, EMBED) f32
):
    # --- patch embedding (stride=kernel conv == per-patch linear, bias-free) ---
    x = _mm(patches_ref[...], patch_w_ref[...])               # (ROWS, WIDTH) f32
    # --- class token + positional embedding (pre-folded & pre-tiled), ln_pre ---
    x = x + emb_ref[...].astype(jnp.float32)
    x = _ln(x, ln_pre_g_ref[...], ln_pre_b_ref[...])

    bias = attn_bias_ref[...]                                  # per-image block mask

    # --- transformer residual attention blocks (static loop: LAYERS is tiny) ---
    for l in range(LAYERS):
        # attention branch (flattened batch rows; cross-image attention masked out)
        h = _ln(x, ln1_g_ref[l], ln1_b_ref[l])
        qkv = _mm(h, qkv_w_ref[l], qkv_b_ref[l])               # (ROWS, 3*WIDTH) f32
        heads = []
        for hd in range(HEADS):
            lo = hd * HEAD_DIM
            q = qkv[:, lo:lo + HEAD_DIM].astype(jnp.bfloat16)                    # (ROWS, Dh)
            k = qkv[:, WIDTH + lo:WIDTH + lo + HEAD_DIM].astype(jnp.bfloat16)
            v = qkv[:, 2 * WIDTH + lo:2 * WIDTH + lo + HEAD_DIM].astype(jnp.bfloat16)
            s = jax.lax.dot_general(                           # q @ k^T, bf16 MXU, f32 acc
                q, k, (((1,), (1,)), ((), ())),
                preferred_element_type=jnp.float32)
            s = s * ATTN_SCALE + bias
            s = s - jnp.max(s, axis=-1, keepdims=True)
            p = jnp.exp(s)
            p = p * pl.reciprocal(jnp.sum(p, axis=-1, keepdims=True), approx=True)
            heads.append(jnp.dot(p.astype(jnp.bfloat16), v,
                                 preferred_element_type=jnp.float32))            # (ROWS, Dh)
        # lane-concat all heads and do ONE output-projection matmul + bias add.
        attn = jnp.concatenate(heads, axis=-1)                 # (ROWS, WIDTH)
        x = x + _mm(attn, out_w_ref[l], out_b_ref[l])

        # MLP branch (QuickGELU, as in CLIP)
        h = _ln(x, ln2_g_ref[l], ln2_b_ref[l])
        h = _mm(h, fc1_w_ref[l], fc1_b_ref[l])
        h = h * jax.nn.sigmoid(1.702 * h)
        x = x + _mm(h, fc2_w_ref[l], fc2_b_ref[l])

    # --- class tokens -> ln_post -> projection -> L2 normalize (all fused) ---
    # Exact f32 one-hot selection matmul gathers the TILE_B class-token rows.
    cls_tok = jnp.dot(cls_sel_ref[...], x, preferred_element_type=jnp.float32)   # (TILE_B, WIDTH)
    cls_tok = _ln(cls_tok, ln_post_g_ref[...], ln_post_b_ref[...])
    feat = _mm(cls_tok, proj_ref[...])                                           # (TILE_B, EMBED)
    inv = jax.lax.rsqrt(jnp.sum(feat * feat, axis=-1, keepdims=True) + 1e-12)
    o_ref[...] = (feat * inv).astype(o_ref.dtype)


# ---------------------------------------------------------------------------
# Deterministic synthetic parameters (matmul weights pre-cast to bf16).
# ---------------------------------------------------------------------------
def init_params(key):
    ks = iter(jax.random.split(key, 16))

    def nrm(shape, std=0.02, dtype=jnp.bfloat16):
        return (std * jax.random.normal(next(ks), shape)).astype(dtype)

    return {
        "patch_w": nrm((PATCH_DIM, WIDTH)),                    # conv1 (bias=False), bf16
        "cls": nrm((1, WIDTH), dtype=jnp.float32),
        "pos": nrm((SEQ, WIDTH), dtype=jnp.float32),
        "ln_pre_g": jnp.ones((1, WIDTH), jnp.float32),
        "ln_pre_b": jnp.zeros((1, WIDTH), jnp.float32),
        "ln1_g": jnp.ones((LAYERS, 1, WIDTH), jnp.float32),
        "ln1_b": jnp.zeros((LAYERS, 1, WIDTH), jnp.float32),
        "qkv_w": nrm((LAYERS, WIDTH, 3 * WIDTH)),
        "qkv_b": jnp.zeros((LAYERS, 1, 3 * WIDTH), jnp.float32),
        "out_w": nrm((LAYERS, WIDTH, WIDTH)),
        "out_b": jnp.zeros((LAYERS, 1, WIDTH), jnp.float32),
        "ln2_g": jnp.ones((LAYERS, 1, WIDTH), jnp.float32),
        "ln2_b": jnp.zeros((LAYERS, 1, WIDTH), jnp.float32),
        "fc1_w": nrm((LAYERS, WIDTH, MLP_DIM)),
        "fc1_b": jnp.zeros((LAYERS, 1, MLP_DIM), jnp.float32),
        "fc2_w": nrm((LAYERS, MLP_DIM, WIDTH)),
        "fc2_b": jnp.zeros((LAYERS, 1, WIDTH), jnp.float32),
        "ln_post_g": jnp.ones((1, WIDTH), jnp.float32),
        "ln_post_b": jnp.zeros((1, WIDTH), jnp.float32),
        "proj": nrm((WIDTH, EMBED)),
    }


# ---------------------------------------------------------------------------
# Forward pass: layout glue in the wrapper, everything else in one pallas_call.
# ---------------------------------------------------------------------------
@jax.jit
def clip_extractor_forward(params, im):
    """im: (B, 3, H, W) NCHW float32 -> (B, EMBED) L2-normalized features."""
    B = im.shape[0]
    gsz = IMG // PATCH
    n_blk = -(-B // TILE_B)                     # ceil(B / TILE_B) grid steps
    b_pad = n_blk * TILE_B

    # stride=kernel conv patches, flattened in PyTorch Conv2d (C, kh, kw) order.
    patches = im.reshape(B, IN_CH, gsz, PATCH, gsz, PATCH)
    patches = patches.transpose(0, 2, 4, 1, 3, 5).reshape(B, N_PATCH, PATCH_DIM)
    # Prepend a zero row per image (bias-free patch-embed -> 0; class token is folded
    # into the combined embedding), pad the batch to a TILE_B multiple, flatten rows.
    patches = jnp.pad(patches, ((0, b_pad - B), (1, 0), (0, 0)))     # (b_pad, SEQ, PATCH_DIM)
    patches = patches.reshape(b_pad * SEQ, PATCH_DIM).astype(jnp.bfloat16)

    # Combined cls+pos embedding, pre-tiled across the TILE_B images of one step.
    emb = jnp.concatenate([params["cls"] + params["pos"][:1], params["pos"][1:]], axis=0)
    emb_tiled = jnp.tile(emb, (TILE_B, 1)).astype(jnp.bfloat16)      # (ROWS, WIDTH)

    # Block-diagonal additive attention bias: tokens only attend within their own image.
    img_id = jnp.arange(ROWS, dtype=jnp.int32) // SEQ
    attn_bias = jnp.where(img_id[:, None] == img_id[None, :], 0.0, -1e30).astype(jnp.float32)

    # One-hot selector for the class-token row of each image in the step.
    cls_sel = (jnp.arange(ROWS)[None, :] ==
               (jnp.arange(TILE_B) * SEQ)[:, None]).astype(jnp.float32)   # (TILE_B, ROWS)

    operands = [
        patches, params["patch_w"], emb_tiled, attn_bias, cls_sel,
        params["ln_pre_g"], params["ln_pre_b"],
        params["ln1_g"], params["ln1_b"], params["qkv_w"], params["qkv_b"],
        params["out_w"], params["out_b"],
        params["ln2_g"], params["ln2_b"], params["fc1_w"], params["fc1_b"],
        params["fc2_w"], params["fc2_b"],
        params["ln_post_g"], params["ln_post_b"], params["proj"],
    ]

    def _resident(a):  # full-array VMEM block, identical for every grid step
        return pl.BlockSpec(a.shape, lambda b, _nd=a.ndim: (0,) * _nd)

    in_specs = [pl.BlockSpec((ROWS, PATCH_DIM), lambda b: (b, 0))]
    in_specs += [_resident(a) for a in operands[1:]]

    feats = pl.pallas_call(
        _clip_encoder_kernel,
        out_shape=jax.ShapeDtypeStruct((b_pad, EMBED), jnp.float32),
        grid=(n_blk,),
        in_specs=in_specs,
        out_specs=pl.BlockSpec((TILE_B, EMBED), lambda b: (b, 0)),
        compiler_params=pltpu.CompilerParams(
            # batch-block axis is embarrassingly parallel: sharded across both
            # TensorCores on v7x, plain sequential loop on v5e/v6e.
            dimension_semantics=("parallel",),
        ),
    )(*operands)
    return feats[:B]


# TODO(synk): pretrained ViT-L/14 weights and the PIL-based `preprocess` transform
# pipeline have no Pallas equivalent; a synthetic mini-ViT with the same forward
# structure is used instead.


if __name__ == "__main__":
    key = jax.random.PRNGKey(0)
    pkey, xkey = jax.random.split(key)
    params = init_params(pkey)

    # small deterministic NCHW image batch: 2 grid steps of TILE_B images each
    B = 2 * TILE_B
    im = jax.random.normal(xkey, (B, IN_CH, IMG, IMG), dtype=jnp.float32)

    feats = clip_extractor_forward(params, im)
    feats = jax.block_until_ready(feats)

    assert feats.shape == (B, EMBED)
    # features are L2-normalized along dim=1
    norms = jnp.linalg.norm(feats, axis=1)
    assert jnp.allclose(norms, 1.0, atol=1e-4)

    print("KERNEL_OK")
</pallas_src>

<mosaic_0001>
module attributes {stable_mosaic.version = 11 : i64} {
  func.func @_clip_encoder_kernel(%arg0: i32, %arg1: memref<80x768xbf16, #tpu.memory_space<vmem>>, %arg2: memref<768x32xbf16, #tpu.memory_space<vmem>>, %arg3: memref<80x32xbf16, #tpu.memory_space<vmem>>, %arg4: memref<80x80xf32, #tpu.memory_space<vmem>>, %arg5: memref<16x80xf32, #tpu.memory_space<vmem>>, %arg6: memref<1x32xf32, #tpu.memory_space<vmem>>, %arg7: memref<1x32xf32, #tpu.memory_space<vmem>>, %arg8: memref<2x1x32xf32, #tpu.memory_space<vmem>>, %arg9: memref<2x1x32xf32, #tpu.memory_space<vmem>>, %arg10: memref<2x32x96xbf16, #tpu.memory_space<vmem>>, %arg11: memref<2x1x96xf32, #tpu.memory_space<vmem>>, %arg12: memref<2x32x32xbf16, #tpu.memory_space<vmem>>, %arg13: memref<2x1x32xf32, #tpu.memory_space<vmem>>, %arg14: memref<2x1x32xf32, #tpu.memory_space<vmem>>, %arg15: memref<2x1x32xf32, #tpu.memory_space<vmem>>, %arg16: memref<2x32x128xbf16, #tpu.memory_space<vmem>>, %arg17: memref<2x1x128xf32, #tpu.memory_space<vmem>>, %arg18: memref<2x128x32xbf16, #tpu.memory_space<vmem>>, %arg19: memref<2x1x32xf32, #tpu.memory_space<vmem>>, %arg20: memref<1x32xf32, #tpu.memory_space<vmem>>, %arg21: memref<1x32xf32, #tpu.memory_space<vmem>>, %arg22: memref<32x16xbf16, #tpu.memory_space<vmem>>, %arg23: memref<16x16xf32, #tpu.memory_space<vmem>>) attributes {dimension_semantics = [#tpu.dimension_semantics<parallel>], iteration_bounds = array<i64: 2>, scalar_prefetch = 0 : i64, scratch_operands = 0 : i64, tpu.core_type = #tpu.core_type<tc>, window_params = [{transform_indices = @transform_0, window_bounds = array<i64: 80, 768>}, {pipeline_mode = #tpu.pipeline_mode<synchronous>, transform_indices = @transform_1, window_bounds = array<i64: 768, 32>}, {pipeline_mode = #tpu.pipeline_mode<synchronous>, transform_indices = @transform_2, window_bounds = array<i64: 80, 32>}, {pipeline_mode = #tpu.pipeline_mode<synchronous>, transform_indices = @transform_3, window_bounds = array<i64: 80, 80>}, {pipeline_mode = #tpu.pipeline_mode<synchronous>, transform_indices = @transform_4, window_bounds = array<i64: 16, 80>}, {pipeline_mode = #tpu.pipeline_mode<synchronous>, transform_indices = @transform_5, window_bounds = array<i64: 1, 32>}, {pipeline_mode = #tpu.pipeline_mode<synchronous>, transform_indices = @transform_6, window_bounds = array<i64: 1, 32>}, {pipeline_mode = #tpu.pipeline_mode<synchronous>, transform_indices = @transform_7, window_bounds = array<i64: 2, 1, 32>}, {pipeline_mode = #tpu.pipeline_mode<synchronous>, transform_indices = @transform_8, window_bounds = array<i64: 2, 1, 32>}, {pipeline_mode = #tpu.pipeline_mode<synchronous>, transform_indices = @transform_9, window_bounds = array<i64: 2, 32, 96>}, {pipeline_mode = #tpu.pipeline_mode<synchronous>, transform_indices = @transform_10, window_bounds = array<i64: 2, 1, 96>}, {pipeline_mode = #tpu.pipeline_mode<synchronous>, transform_indices = @transform_11, window_bounds = array<i64: 2, 32, 32>}, {pipeline_mode = #tpu.pipeline_mode<synchronous>, transform_indices = @transform_12, window_bounds = array<i64: 2, 1, 32>}, {pipeline_mode = #tpu.pipeline_mode<synchronous>, transform_indices = @transform_13, window_bounds = array<i64: 2, 1, 32>}, {pipeline_mode = #tpu.pipeline_mode<synchronous>, transform_indices = @transform_14, window_bounds = array<i64: 2, 1, 32>}, {pipeline_mode = #tpu.pipeline_mode<synchronous>, transform_indices = @transform_15, window_bounds = array<i64: 2, 32, 128>}, {pipeline_mode = #tpu.pipeline_mode<synchronous>, transform_indices = @transform_16, window_bounds = array<i64: 2, 1, 128>}, {pipeline_mode = #tpu.pipeline_mode<synchronous>, transform_indices = @transform_17, window_bounds = array<i64: 2, 128, 32>}, {pipeline_mode = #tpu.pipeline_mode<synchronous>, transform_indices = @transform_18, window_bounds = array<i64: 2, 1, 32>}, {pipeline_mode = #tpu.pipeline_mode<synchronous>, transform_indices = @transform_19, window_bounds = array<i64: 1, 32>}, {pipeline_mode = #tpu.pipeline_mode<synchronous>, transform_indices = @transform_20, window_bounds = array<i64: 1, 32>}, {pipeline_mode = #tpu.pipeline_mode<synchronous>, transform_indices = @transform_21, window_bounds = array<i64: 32, 16>}, {transform_indices = @transform_22, window_bounds = array<i64: 16, 16>}]} {
    %c0 = arith.constant 0 : index
    %c0_0 = arith.constant 0 : index
    %0 = vector.load %arg1[%c0, %c0_0] : memref<80x768xbf16, #tpu.memory_space<vmem>>, vector<80x768xbf16>
    %c0_1 = arith.constant 0 : index
    %c0_2 = arith.constant 0 : index
    %1 = vector.load %arg2[%c0_1, %c0_2] : memref<768x32xbf16, #tpu.memory_space<vmem>>, vector<768x32xbf16>
    %cst = arith.constant dense<0.000000e+00> : vector<80x32xf32>
    %2 = tpu.matmul %0, %1, %cst {dimension_numbers = #tpu.dot_dimension_numbers<[1], [0], [0], [1], [0, 0, 1, 1], [], []>} : vector<80x768xbf16>, vector<768x32xbf16>, vector<80x32xf32> -> vector<80x32xf32>
    %c0_3 = arith.constant 0 : index
    %c0_4 = arith.constant 0 : index
    %3 = vector.load %arg3[%c0_3, %c0_4] : memref<80x32xbf16, #tpu.memory_space<vmem>>, vector<80x32xbf16>
    %4 = arith.extf %3 : vector<80x32xbf16> to vector<80x32xf32>
    %5 = arith.addf %2, %4 : vector<80x32xf32>
    %c0_5 = arith.constant 0 : index
    %c0_6 = arith.constant 0 : index
    %6 = vector.load %arg6[%c0_5, %c0_6] : memref<1x32xf32, #tpu.memory_space<vmem>>, vector<1x32xf32>
    %c0_7 = arith.constant 0 : index
    %c0_8 = arith.constant 0 : index
    %7 = vector.load %arg7[%c0_7, %c0_8] : memref<1x32xf32, #tpu.memory_space<vmem>>, vector<1x32xf32>
    %cst_9 = arith.constant dense<0.000000e+00> : vector<80xf32>
    %8 = vector.multi_reduction <add>, %5, %cst_9 [1] : vector<80x32xf32> to vector<80xf32>
    %9 = vector.shape_cast %8 : vector<80xf32> to vector<80x1xf32>
    %cst_10 = arith.constant 3.200000e+01 : f32
    %10 = vector.broadcast %cst_10 : f32 to vector<80x1xf32>
    %11 = arith.divf %9, %10 : vector<80x1xf32>
    %12 = vector.broadcast %11 : vector<80x1xf32> to vector<80x32xf32>
    %13 = arith.subf %5, %12 : vector<80x32xf32>
    %14 = arith.mulf %13, %13 : vector<80x32xf32>
    %cst_11 = arith.constant dense<0.000000e+00> : vector<80xf32>
    %15 = vector.multi_reduction <add>, %14, %cst_11 [1] : vector<80x32xf32> to vector<80xf32>
    %16 = vector.shape_cast %15 : vector<80xf32> to vector<80x1xf32>
    %cst_12 = arith.constant 3.200000e+01 : f32
    %17 = vector.broadcast %cst_12 : f32 to vector<80x1xf32>
    %18 = arith.divf %16, %17 : vector<80x1xf32>
    %19 = vector.broadcast %11 : vector<80x1xf32> to vector<80x32xf32>
    %20 = arith.subf %5, %19 : vector<80x32xf32>
    %cst_13 = arith.constant 9.99999974E-6 : f32
    %21 = vector.broadcast %cst_13 : f32 to vector<80x1xf32>
    %22 = arith.addf %18, %21 : vector<80x1xf32>
    %23 = math.rsqrt %22 : vector<80x1xf32>
    %24 = vector.broadcast %23 : vector<80x1xf32> to vector<80x32xf32>
    %25 = arith.mulf %20, %24 : vector<80x32xf32>
    %26 = vector.broadcast %6 : vector<1x32xf32> to vector<80x32xf32>
    %27 = arith.mulf %25, %26 : vector<80x32xf32>
    %28 = vector.broadcast %7 : vector<1x32xf32> to vector<80x32xf32>
    %29 = arith.addf %27, %28 : vector<80x32xf32>
    %c0_14 = arith.constant 0 : index
    %c0_15 = arith.constant 0 : index
    %30 = vector.load %arg4[%c0_14, %c0_15] : memref<80x80xf32, #tpu.memory_space<vmem>>, vector<80x80xf32>
    %c0_16 = arith.constant 0 : index
    %c0_17 = arith.constant 0 : index
    %c0_18 = arith.constant 0 : index
    %31 = vector.load %arg8[%c0_16, %c0_17, %c0_18] : memref<2x1x32xf32, #tpu.memory_space<vmem>>, vector<1x1x32xf32>
    %32 = vector.shape_cast %31 : vector<1x1x32xf32> to vector<1x32xf32>
    %c0_19 = arith.constant 0 : index
    %c0_20 = arith.constant 0 : index
    %c0_21 = arith.constant 0 : index
    %33 = vector.load %arg9[%c0_19, %c0_20, %c0_21] : memref<2x1x32xf32, #tpu.memory_space<vmem>>, vector<1x1x32xf32>
    %34 = vector.shape_cast %33 : vector<1x1x32xf32> to vector<1x32xf32>
    %cst_22 = arith.constant dense<0.000000e+00> : vector<80xf32>
    %35 = vector.multi_reduction <add>, %29, %cst_22 [1] : vector<80x32xf32> to vector<80xf32>
    %36 = vector.shape_cast %35 : vector<80xf32> to vector<80x1xf32>
    %cst_23 = arith.constant 3.200000e+01 : f32
    %37 = vector.broadcast %cst_23 : f32 to vector<80x1xf32>
    %38 = arith.divf %36, %37 : vector<80x1xf32>
    %39 = vector.broadcast %38 : vector<80x1xf32> to vector<80x32xf32>
    %40 = arith.subf %29, %39 : vector<80x32xf32>
    %41 = arith.mulf %40, %40 : vector<80x32xf32>
    %cst_24 = arith.constant dense<0.000000e+00> : vector<80xf32>
    %42 = vector.multi_reduction <add>, %41, %cst_24 [1] : vector<80x32xf32> to vector<80xf32>
    %43 = vector.shape_cast %42 : vector<80xf32> to vector<80x1xf32>
    %cst_25 = arith.constant 3.200000e+01 : f32
    %44 = vector.broadcast %cst_25 : f32 to vector<80x1xf32>
    %45 = arith.divf %43, %44 : vector<80x1xf32>
    %46 = vector.broadcast %38 : vector<80x1xf32> to vector<80x32xf32>
    %47 = arith.subf %29, %46 : vector<80x32xf32>
    %cst_26 = arith.constant 9.99999974E-6 : f32
    %48 = vector.broadcast %cst_26 : f32 to vector<80x1xf32>
    %49 = arith.addf %45, %48 : vector<80x1xf32>
    %50 = math.rsqrt %49 : vector<80x1xf32>
    %51 = vector.broadcast %50 : vector<80x1xf32> to vector<80x32xf32>
    %52 = arith.mulf %47, %51 : vector<80x32xf32>
    %53 = vector.broadcast %32 : vector<1x32xf32> to vector<80x32xf32>
    %54 = arith.mulf %52, %53 : vector<80x32xf32>
    %55 = vector.broadcast %34 : vector<1x32xf32> to vector<80x32xf32>
    %56 = arith.addf %54, %55 : vector<80x32xf32>
    %c0_27 = arith.constant 0 : index
    %c0_28 = arith.constant 0 : index
    %c0_29 = arith.constant 0 : index
    %57 = vector.load %arg10[%c0_27, %c0_28, %c0_29] : memref<2x32x96xbf16, #tpu.memory_space<vmem>>, vector<1x32x96xbf16>
    %58 = vector.shape_cast %57 : vector<1x32x96xbf16> to vector<32x96xbf16>
    %c0_30 = arith.constant 0 : index
    %c0_31 = arith.constant 0 : index
    %c0_32 = arith.constant 0 : index
    %59 = vector.load %arg11[%c0_30, %c0_31, %c0_32] : memref<2x1x96xf32, #tpu.memory_space<vmem>>, vector<1x1x96xf32>
    %60 = vector.shape_cast %59 : vector<1x1x96xf32> to vector<1x96xf32>
    %61 = arith.truncf %56 : vector<80x32xf32> to vector<80x32xbf16>
    %cst_33 = arith.constant dense<0.000000e+00> : vector<80x96xf32>
    %62 = tpu.matmul %61, %58, %cst_33 {dimension_numbers = #tpu.dot_dimension_numbers<[1], [0], [0], [1], [0, 0, 1, 1], [], []>} : vector<80x32xbf16>, vector<32x96xbf16>, vector<80x96xf32> -> vector<80x96xf32>
    %63 = vector.broadcast %60 : vector<1x96xf32> to vector<80x96xf32>
    %64 = arith.addf %62, %63 : vector<80x96xf32>
    %65 = vector.extract_strided_slice %64 {offsets = [0, 0], sizes = [80, 8], strides = [1, 1]} : vector<80x96xf32> to vector<80x8xf32>
    %66 = arith.truncf %65 : vector<80x8xf32> to vector<80x8xbf16>
    %67 = vector.extract_strided_slice %64 {offsets = [0, 32], sizes = [80, 8], strides = [1, 1]} : vector<80x96xf32> to vector<80x8xf32>
    %68 = arith.truncf %67 : vector<80x8xf32> to vector<80x8xbf16>
    %69 = vector.extract_strided_slice %64 {offsets = [0, 64], sizes = [80, 8], strides = [1, 1]} : vector<80x96xf32> to vector<80x8xf32>
    %70 = arith.truncf %69 : vector<80x8xf32> to vector<80x8xbf16>
    %cst_34 = arith.constant dense<0.000000e+00> : vector<80x80xf32>
    %71 = tpu.matmul %66, %68, %cst_34 {dimension_numbers = #tpu.dot_dimension_numbers<[1], [1], [0], [0], [0, 0, 1, 0], [], []>} : vector<80x8xbf16>, vector<80x8xbf16>, vector<80x80xf32> -> vector<80x80xf32>
    %cst_35 = arith.constant 0.353553385 : f32
    %72 = vector.broadcast %cst_35 : f32 to vector<80x80xf32>
    %73 = arith.mulf %71, %72 : vector<80x80xf32>
    %74 = arith.addf %73, %30 : vector<80x80xf32>
    %cst_36 = arith.constant dense<0xFF800000> : vector<80xf32>
    %75 = vector.multi_reduction <maximumf>, %74, %cst_36 [1] : vector<80x80xf32> to vector<80xf32>
    %76 = vector.shape_cast %75 : vector<80xf32> to vector<80x1xf32>
    %77 = vector.broadcast %76 : vector<80x1xf32> to vector<80x80xf32>
    %78 = arith.subf %74, %77 : vector<80x80xf32>
    %79 = math.exp %78 : vector<80x80xf32>
    %cst_37 = arith.constant dense<0.000000e+00> : vector<80xf32>
    %80 = vector.multi_reduction <add>, %79, %cst_37 [1] : vector<80x80xf32> to vector<80xf32>
    %81 = vector.shape_cast %80 : vector<80xf32> to vector<80x1xf32>
    %82 = tpu.reciprocal %81 {approx = true} : vector<80x1xf32> -> vector<80x1xf32>
    %83 = vector.broadcast %82 : vector<80x1xf32> to vector<80x80xf32>
    %84 = arith.mulf %79, %83 : vector<80x80xf32>
    %85 = arith.truncf %84 : vector<80x80xf32> to vector<80x80xbf16>
    %cst_38 = arith.constant dense<0.000000e+00> : vector<80x8xf32>
    %86 = tpu.matmul %85, %70, %cst_38 {dimension_numbers = #tpu.dot_dimension_numbers<[1], [0], [0], [1], [0, 0, 1, 1], [], []>} : vector<80x80xbf16>, vector<80x8xbf16>, vector<80x8xf32> -> vector<80x8xf32>
    %87 = vector.extract_strided_slice %64 {offsets = [0, 8], sizes = [80, 8], strides = [1, 1]} : vector<80x96xf32> to vector<80x8xf32>
    %88 = arith.truncf %87 : vector<80x8xf32> to vector<80x8xbf16>
    %89 = vector.extract_strided_slice %64 {offsets = [0, 40], sizes = [80, 8], strides = [1, 1]} : vector<80x96xf32> to vector<80x8xf32>
    %90 = arith.truncf %89 : vector<80x8xf32> to vector<80x8xbf16>
    %91 = vector.extract_strided_slice %64 {offsets = [0, 72], sizes = [80, 8], strides = [1, 1]} : vector<80x96xf32> to vector<80x8xf32>
    %92 = arith.truncf %91 : vector<80x8xf32> to vector<80x8xbf16>
    %cst_39 = arith.constant dense<0.000000e+00> : vector<80x80xf32>
    %93 = tpu.matmul %88, %90, %cst_39 {dimension_numbers = #tpu.dot_dimension_numbers<[1], [1], [0], [0], [0, 0, 1, 0], [], []>} : vector<80x8xbf16>, vector<80x8xbf16>, vector<80x80xf32> -> vector<80x80xf32>
    %cst_40 = arith.constant 0.353553385 : f32
    %94 = vector.broadcast %cst_40 : f32 to vector<80x80xf32>
    %95 = arith.mulf %93, %94 : vector<80x80xf32>
    %96 = arith.addf %95, %30 : vector<80x80xf32>
    %cst_41 = arith.constant dense<0xFF800000> : vector<80xf32>
    %97 = vector.multi_reduction <maximumf>, %96, %cst_41 [1] : vector<80x80xf32> to vector<80xf32>
    %98 = vector.shape_cast %97 : vector<80xf32> to vector<80x1xf32>
    %99 = vector.broadcast %98 : vector<80x1xf32> to vector<80x80xf32>
    %100 = arith.subf %96, %99 : vector<80x80xf32>
    %101 = math.exp %100 : vector<80x80xf32>
    %cst_42 = arith.constant dense<0.000000e+00> : vector<80xf32>
    %102 = vector.multi_reduction <add>, %101, %cst_42 [1] : vector<80x80xf32> to vector<80xf32>
    %103 = vector.shape_cast %102 : vector<80xf32> to vector<80x1xf32>
    %104 = tpu.reciprocal %103 {approx = true} : vector<80x1xf32> -> vector<80x1xf32>
    %105 = vector.broadcast %104 : vector<80x1xf32> to vector<80x80xf32>
    %106 = arith.mulf %101, %105 : vector<80x80xf32>
    %107 = arith.truncf %106 : vector<80x80xf32> to vector<80x80xbf16>
    %cst_43 = arith.constant dense<0.000000e+00> : vector<80x8xf32>
    %108 = tpu.matmul %107, %92, %cst_43 {dimension_numbers = #tpu.dot_dimension_numbers<[1], [0], [0], [1], [0, 0, 1, 1], [], []>} : vector<80x80xbf16>, vector<80x8xbf16>, vector<80x8xf32> -> vector<80x8xf32>
    %109 = vector.extract_strided_slice %64 {offsets = [0, 16], sizes = [80, 8], strides = [1, 1]} : vector<80x96xf32> to vector<80x8xf32>
    %110 = arith.truncf %109 : vector<80x8xf32> to vector<80x8xbf16>
    %111 = vector.extract_strided_slice %64 {offsets = [0, 48], sizes = [80, 8], strides = [1, 1]} : vector<80x96xf32> to vector<80x8xf32>
    %112 = arith.truncf %111 : vector<80x8xf32> to vector<80x8xbf16>
    %113 = vector.extract_strided_slice %64 {offsets = [0, 80], sizes = [80, 8], strides = [1, 1]} : vector<80x96xf32> to vector<80x8xf32>
    %114 = arith.truncf %113 : vector<80x8xf32> to vector<80x8xbf16>
    %cst_44 = arith.constant dense<0.000000e+00> : vector<80x80xf32>
    %115 = tpu.matmul %110, %112, %cst_44 {dimension_numbers = #tpu.dot_dimension_numbers<[1], [1], [0], [0], [0, 0, 1, 0], [], []>} : vector<80x8xbf16>, vector<80x8xbf16>, vector<80x80xf32> -> vector<80x80xf32>
    %cst_45 = arith.constant 0.353553385 : f32
    %116 = vector.broadcast %cst_45 : f32 to vector<80x80xf32>
    %117 = arith.mulf %115, %116 : vector<80x80xf32>
    %118 = arith.addf %117, %30 : vector<80x80xf32>
    %cst_46 = arith.constant dense<0xFF800000> : vector<80xf32>
    %119 = vector.multi_reduction <maximumf>, %118, %cst_46 [1] : vector<80x80xf32> to vector<80xf32>
    %120 = vector.shape_cast %119 : vector<80xf32> to vector<80x1xf32>
    %121 = vector.broadcast %120 : vector<80x1xf32> to vector<80x80xf32>
    %122 = arith.subf %118, %121 : vector<80x80xf32>
    %123 = math.exp %122 : vector<80x80xf32>
    %cst_47 = arith.constant dense<0.000000e+00> : vector<80xf32>
    %124 = vector.multi_reduction <add>, %123, %cst_47 [1] : vector<80x80xf32> to vector<80xf32>
    %125 = vector.shape_cast %124 : vector<80xf32> to vector<80x1xf32>
    %126 = tpu.reciprocal %125 {approx = true} : vector<80x1xf32> -> vector<80x1xf32>
    %127 = vector.broadcast %126 : vector<80x1xf32> to vector<80x80xf32>
    %128 = arith.mulf %123, %127 : vector<80x80xf32>
    %129 = arith.truncf %128 : vector<80x80xf32> to vector<80x80xbf16>
    %cst_48 = arith.constant dense<0.000000e+00> : vector<80x8xf32>
    %130 = tpu.matmul %129, %114, %cst_48 {dimension_numbers = #tpu.dot_dimension_numbers<[1], [0], [0], [1], [0, 0, 1, 1], [], []>} : vector<80x80xbf16>, vector<80x8xbf16>, vector<80x8xf32> -> vector<80x8xf32>
    %131 = vector.extract_strided_slice %64 {offsets = [0, 24], sizes = [80, 8], strides = [1, 1]} : vector<80x96xf32> to vector<80x8xf32>
    %132 = arith.truncf %131 : vector<80x8xf32> to vector<80x8xbf16>
    %133 = vector.extract_strided_slice %64 {offsets = [0, 56], sizes = [80, 8], strides = [1, 1]} : vector<80x96xf32> to vector<80x8xf32>
    %134 = arith.truncf %133 : vector<80x8xf32> to vector<80x8xbf16>
    %135 = vector.extract_strided_slice %64 {offsets = [0, 88], sizes = [80, 8], strides = [1, 1]} : vector<80x96xf32> to vector<80x8xf32>
    %136 = arith.truncf %135 : vector<80x8xf32> to vector<80x8xbf16>
    %cst_49 = arith.constant dense<0.000000e+00> : vector<80x80xf32>
    %137 = tpu.matmul %132, %134, %cst_49 {dimension_numbers = #tpu.dot_dimension_numbers<[1], [1], [0], [0], [0, 0, 1, 0], [], []>} : vector<80x8xbf16>, vector<80x8xbf16>, vector<80x80xf32> -> vector<80x80xf32>
    %cst_50 = arith.constant 0.353553385 : f32
    %138 = vector.broadcast %cst_50 : f32 to vector<80x80xf32>
    %139 = arith.mulf %137, %138 : vector<80x80xf32>
    %140 = arith.addf %139, %30 : vector<80x80xf32>
    %cst_51 = arith.constant dense<0xFF800000> : vector<80xf32>
    %141 = vector.multi_reduction <maximumf>, %140, %cst_51 [1] : vector<80x80xf32> to vector<80xf32>
    %142 = vector.shape_cast %141 : vector<80xf32> to vector<80x1xf32>
    %143 = vector.broadcast %142 : vector<80x1xf32> to vector<80x80xf32>
    %144 = arith.subf %140, %143 : vector<80x80xf32>
    %145 = math.exp %144 : vector<80x80xf32>
    %cst_52 = arith.constant dense<0.000000e+00> : vector<80xf32>
    %146 = vector.multi_reduction <add>, %145, %cst_52 [1] : vector<80x80xf32> to vector<80xf32>
    %147 = vector.shape_cast %146 : vector<80xf32> to vector<80x1xf32>
    %148 = tpu.reciprocal %147 {approx = true} : vector<80x1xf32> -> vector<80x1xf32>
    %149 = vector.broadcast %148 : vector<80x1xf32> to vector<80x80xf32>
    %150 = arith.mulf %145, %149 : vector<80x80xf32>
    %151 = arith.truncf %150 : vector<80x80xf32> to vector<80x80xbf16>
    %cst_53 = arith.constant dense<0.000000e+00> : vector<80x8xf32>
    %152 = tpu.matmul %151, %136, %cst_53 {dimension_numbers = #tpu.dot_dimension_numbers<[1], [0], [0], [1], [0, 0, 1, 1], [], []>} : vector<80x80xbf16>, vector<80x8xbf16>, vector<80x8xf32> -> vector<80x8xf32>
    %153 = tpu.concatenate %86, %108, %130, %152 in 1 : vector<80x8xf32>, vector<80x8xf32>, vector<80x8xf32>, vector<80x8xf32> -> vector<80x32xf32>
    %c0_54 = arith.constant 0 : index
    %c0_55 = arith.constant 0 : index
    %c0_56 = arith.constant 0 : index
    %154 = vector.load %arg12[%c0_54, %c0_55, %c0_56] : memref<2x32x32xbf16, #tpu.memory_space<vmem>>, vector<1x32x32xbf16>
    %155 = vector.shape_cast %154 : vector<1x32x32xbf16> to vector<32x32xbf16>
    %c0_57 = arith.constant 0 : index
    %c0_58 = arith.constant 0 : index
    %c0_59 = arith.constant 0 : index
    %156 = vector.load %arg13[%c0_57, %c0_58, %c0_59] : memref<2x1x32xf32, #tpu.memory_space<vmem>>, vector<1x1x32xf32>
    %157 = vector.shape_cast %156 : vector<1x1x32xf32> to vector<1x32xf32>
    %158 = arith.truncf %153 : vector<80x32xf32> to vector<80x32xbf16>
    %cst_60 = arith.constant dense<0.000000e+00> : vector<80x32xf32>
    %159 = tpu.matmul %158, %155, %cst_60 {dimension_numbers = #tpu.dot_dimension_numbers<[1], [0], [0], [1], [0, 0, 1, 1], [], []>} : vector<80x32xbf16>, vector<32x32xbf16>, vector<80x32xf32> -> vector<80x32xf32>
    %160 = vector.broadcast %157 : vector<1x32xf32> to vector<80x32xf32>
    %161 = arith.addf %159, %160 : vector<80x32xf32>
    %162 = arith.addf %29, %161 : vector<80x32xf32>
    %c0_61 = arith.constant 0 : index
    %c0_62 = arith.constant 0 : index
    %c0_63 = arith.constant 0 : index
    %163 = vector.load %arg14[%c0_61, %c0_62, %c0_63] : memref<2x1x32xf32, #tpu.memory_space<vmem>>, vector<1x1x32xf32>
    %164 = vector.shape_cast %163 : vector<1x1x32xf32> to vector<1x32xf32>
    %c0_64 = arith.constant 0 : index
    %c0_65 = arith.constant 0 : index
    %c0_66 = arith.constant 0 : index
    %165 = vector.load %arg15[%c0_64, %c0_65, %c0_66] : memref<2x1x32xf32, #tpu.memory_space<vmem>>, vector<1x1x32xf32>
    %166 = vector.shape_cast %165 : vector<1x1x32xf32> to vector<1x32xf32>
    %cst_67 = arith.constant dense<0.000000e+00> : vector<80xf32>
    %167 = vector.multi_reduction <add>, %162, %cst_67 [1] : vector<80x32xf32> to vector<80xf32>
    %168 = vector.shape_cast %167 : vector<80xf32> to vector<80x1xf32>
    %cst_68 = arith.constant 3.200000e+01 : f32
    %169 = vector.broadcast %cst_68 : f32 to vector<80x1xf32>
    %170 = arith.divf %168, %169 : vector<80x1xf32>
    %171 = vector.broadcast %170 : vector<80x1xf32> to vector<80x32xf32>
    %172 = arith.subf %162, %171 : vector<80x32xf32>
    %173 = arith.mulf %172, %172 : vector<80x32xf32>
    %cst_69 = arith.constant dense<0.000000e+00> : vector<80xf32>
    %174 = vector.multi_reduction <add>, %173, %cst_69 [1] : vector<80x32xf32> to vector<80xf32>
    %175 = vector.shape_cast %174 : vector<80xf32> to vector<80x1xf32>
    %cst_70 = arith.constant 3.200000e+01 : f32
    %176 = vector.broadcast %cst_70 : f32 to vector<80x1xf32>
    %177 = arith.divf %175, %176 : vector<80x1xf32>
    %178 = vector.broadcast %170 : vector<80x1xf32> to vector<80x32xf32>
    %179 = arith.subf %162, %178 : vector<80x32xf32>
    %cst_71 = arith.constant 9.99999974E-6 : f32
    %180 = vector.broadcast %cst_71 : f32 to vector<80x1xf32>
    %181 = arith.addf %177, %180 : vector<80x1xf32>
    %182 = math.rsqrt %181 : vector<80x1xf32>
    %183 = vector.broadcast %182 : vector<80x1xf32> to vector<80x32xf32>
    %184 = arith.mulf %179, %183 : vector<80x32xf32>
    %185 = vector.broadcast %164 : vector<1x32xf32> to vector<80x32xf32>
    %186 = arith.mulf %184, %185 : vector<80x32xf32>
    %187 = vector.broadcast %166 : vector<1x32xf32> to vector<80x32xf32>
    %188 = arith.addf %186, %187 : vector<80x32xf32>
    %c0_72 = arith.constant 0 : index
    %c0_73 = arith.constant 0 : index
    %c0_74 = arith.constant 0 : index
    %189 = vector.load %arg16[%c0_72, %c0_73, %c0_74] : memref<2x32x128xbf16, #tpu.memory_space<vmem>>, vector<1x32x128xbf16>
    %190 = vector.shape_cast %189 : vector<1x32x128xbf16> to vector<32x128xbf16>
    %c0_75 = arith.constant 0 : index
    %c0_76 = arith.constant 0 : index
    %c0_77 = arith.constant 0 : index
    %191 = vector.load %arg17[%c0_75, %c0_76, %c0_77] : memref<2x1x128xf32, #tpu.memory_space<vmem>>, vector<1x1x128xf32>
    %192 = vector.shape_cast %191 : vector<1x1x128xf32> to vector<1x128xf32>
    %193 = arith.truncf %188 : vector<80x32xf32> to vector<80x32xbf16>
    %cst_78 = arith.constant dense<0.000000e+00> : vector<80x128xf32>
    %194 = tpu.matmul %193, %190, %cst_78 {dimension_numbers = #tpu.dot_dimension_numbers<[1], [0], [0], [1], [0, 0, 1, 1], [], []>} : vector<80x32xbf16>, vector<32x128xbf16>, vector<80x128xf32> -> vector<80x128xf32>
    %195 = vector.broadcast %192 : vector<1x128xf32> to vector<80x128xf32>
    %196 = arith.addf %194, %195 : vector<80x128xf32>
    %cst_79 = arith.constant 1.702000e+00 : f32
    %197 = vector.broadcast %cst_79 : f32 to vector<80x128xf32>
    %198 = arith.mulf %197, %196 : vector<80x128xf32>
    %199 = arith.negf %198 : vector<80x128xf32>
    %200 = math.exp %199 : vector<80x128xf32>
    %cst_80 = arith.constant 1.000000e+00 : f32
    %201 = vector.broadcast %cst_80 : f32 to vector<80x128xf32>
    %202 = arith.addf %201, %200 : vector<80x128xf32>
    %203 = arith.divf %201, %202 : vector<80x128xf32>
    %204 = arith.mulf %196, %203 : vector<80x128xf32>
    %c0_81 = arith.constant 0 : index
    %c0_82 = arith.constant 0 : index
    %c0_83 = arith.constant 0 : index
    %205 = vector.load %arg18[%c0_81, %c0_82, %c0_83] : memref<2x128x32xbf16, #tpu.memory_space<vmem>>, vector<1x128x32xbf16>
    %206 = vector.shape_cast %205 : vector<1x128x32xbf16> to vector<128x32xbf16>
    %c0_84 = arith.constant 0 : index
    %c0_85 = arith.constant 0 : index
    %c0_86 = arith.constant 0 : index
    %207 = vector.load %arg19[%c0_84, %c0_85, %c0_86] : memref<2x1x32xf32, #tpu.memory_space<vmem>>, vector<1x1x32xf32>
    %208 = vector.shape_cast %207 : vector<1x1x32xf32> to vector<1x32xf32>
    %209 = arith.truncf %204 : vector<80x128xf32> to vector<80x128xbf16>
    %cst_87 = arith.constant dense<0.000000e+00> : vector<80x32xf32>
    %210 = tpu.matmul %209, %206, %cst_87 {dimension_numbers = #tpu.dot_dimension_numbers<[1], [0], [0], [1], [0, 0, 1, 1], [], []>} : vector<80x128xbf16>, vector<128x32xbf16>, vector<80x32xf32> -> vector<80x32xf32>
    %211 = vector.broadcast %208 : vector<1x32xf32> to vector<80x32xf32>
    %212 = arith.addf %210, %211 : vector<80x32xf32>
    %213 = arith.addf %162, %212 : vector<80x32xf32>
    %c1 = arith.constant 1 : index
    %c0_88 = arith.constant 0 : index
    %c0_89 = arith.constant 0 : index
    %214 = vector.load %arg8[%c1, %c0_88, %c0_89] : memref<2x1x32xf32, #tpu.memory_space<vmem>>, vector<1x1x32xf32>
    %215 = vector.shape_cast %214 : vector<1x1x32xf32> to vector<1x32xf32>
    %c1_90 = arith.constant 1 : index
    %c0_91 = arith.constant 0 : index
    %c0_92 = arith.constant 0 : index
    %216 = vector.load %arg9[%c1_90, %c0_91, %c0_92] : memref<2x1x32xf32, #tpu.memory_space<vmem>>, vector<1x1x32xf32>
    %217 = vector.shape_cast %216 : vector<1x1x32xf32> to vector<1x32xf32>
    %cst_93 = arith.constant dense<0.000000e+00> : vector<80xf32>
    %218 = vector.multi_reduction <add>, %213, %cst_93 [1] : vector<80x32xf32> to vector<80xf32>
    %219 = vector.shape_cast %218 : vector<80xf32> to vector<80x1xf32>
    %cst_94 = arith.constant 3.200000e+01 : f32
    %220 = vector.broadcast %cst_94 : f32 to vector<80x1xf32>
    %221 = arith.divf %219, %220 : vector<80x1xf32>
    %222 = vector.broadcast %221 : vector<80x1xf32> to vector<80x32xf32>
    %223 = arith.subf %213, %222 : vector<80x32xf32>
    %224 = arith.mulf %223, %223 : vector<80x32xf32>
    %cst_95 = arith.constant dense<0.000000e+00> : vector<80xf32>
    %225 = vector.multi_reduction <add>, %224, %cst_95 [1] : vector<80x32xf32> to vector<80xf32>
    %226 = vector.shape_cast %225 : vector<80xf32> to vector<80x1xf32>
    %cst_96 = arith.constant 3.200000e+01 : f32
    %227 = vector.broadcast %cst_96 : f32 to vector<80x1xf32>
    %228 = arith.divf %226, %227 : vector<80x1xf32>
    %229 = vector.broadcast %221 : vector<80x1xf32> to vector<80x32xf32>
    %230 = arith.subf %213, %229 : vector<80x32xf32>
    %cst_97 = arith.constant 9.99999974E-6 : f32
    %231 = vector.broadcast %cst_97 : f32 to vector<80x1xf32>
    %232 = arith.addf %228, %231 : vector<80x1xf32>
    %233 = math.rsqrt %232 : vector<80x1xf32>
    %234 = vector.broadcast %233 : vector<80x1xf32> to vector<80x32xf32>
    %235 = arith.mulf %230, %234 : vector<80x32xf32>
    %236 = vector.broadcast %215 : vector<1x32xf32> to vector<80x32xf32>
    %237 = arith.mulf %235, %236 : vector<80x32xf32>
    %238 = vector.broadcast %217 : vector<1x32xf32> to vector<80x32xf32>
    %239 = arith.addf %237, %238 : vector<80x32xf32>
    %c1_98 = arith.constant 1 : index
    %c0_99 = arith.constant 0 : index
    %c0_100 = arith.constant 0 : index
    %240 = vector.load %arg10[%c1_98, %c0_99, %c0_100] : memref<2x32x96xbf16, #tpu.memory_space<vmem>>, vector<1x32x96xbf16>
    %241 = vector.shape_cast %240 : vector<1x32x96xbf16> to vector<32x96xbf16>
    %c1_101 = arith.constant 1 : index
    %c0_102 = arith.constant 0 : index
    %c0_103 = arith.constant 0 : index
    %242 = vector.load %arg11[%c1_101, %c0_102, %c0_103] : memref<2x1x96xf32, #tpu.memory_space<vmem>>, vector<1x1x96xf32>
    %243 = vector.shape_cast %242 : vector<1x1x96xf32> to vector<1x96xf32>
    %244 = arith.truncf %239 : vector<80x32xf32> to vector<80x32xbf16>
    %cst_104 = arith.constant dense<0.000000e+00> : vector<80x96xf32>
    %245 = tpu.matmul %244, %241, %cst_104 {dimension_numbers = #tpu.dot_dimension_numbers<[1], [0], [0], [1], [0, 0, 1, 1], [], []>} : vector<80x32xbf16>, vector<32x96xbf16>, vector<80x96xf32> -> vector<80x96xf32>
    %246 = vector.broadcast %243 : vector<1x96xf32> to vector<80x96xf32>
    %247 = arith.addf %245, %246 : vector<80x96xf32>
    %248 = vector.extract_strided_slice %247 {offsets = [0, 0], sizes = [80, 8], strides = [1, 1]} : vector<80x96xf32> to vector<80x8xf32>
    %249 = arith.truncf %248 : vector<80x8xf32> to vector<80x8xbf16>
    %250 = vector.extract_strided_slice %247 {offsets = [0, 32], sizes = [80, 8], strides = [1, 1]} : vector<80x96xf32> to vector<80x8xf32>
    %251 = arith.truncf %250 : vector<80x8xf32> to vector<80x8xbf16>
    %252 = vector.extract_strided_slice %247 {offsets = [0, 64], sizes = [80, 8], strides = [1, 1]} : vector<80x96xf32> to vector<80x8xf32>
    %253 = arith.truncf %252 : vector<80x8xf32> to vector<80x8xbf16>
    %cst_105 = arith.constant dense<0.000000e+00> : vector<80x80xf32>
    %254 = tpu.matmul %249, %251, %cst_105 {dimension_numbers = #tpu.dot_dimension_numbers<[1], [1], [0], [0], [0, 0, 1, 0], [], []>} : vector<80x8xbf16>, vector<80x8xbf16>, vector<80x80xf32> -> vector<80x80xf32>
    %cst_106 = arith.constant 0.353553385 : f32
    %255 = vector.broadcast %cst_106 : f32 to vector<80x80xf32>
    %256 = arith.mulf %254, %255 : vector<80x80xf32>
    %257 = arith.addf %256, %30 : vector<80x80xf32>
    %cst_107 = arith.constant dense<0xFF800000> : vector<80xf32>
    %258 = vector.multi_reduction <maximumf>, %257, %cst_107 [1] : vector<80x80xf32> to vector<80xf32>
    %259 = vector.shape_cast %258 : vector<80xf32> to vector<80x1xf32>
    %260 = vector.broadcast %259 : vector<80x1xf32> to vector<80x80xf32>
    %261 = arith.subf %257, %260 : vector<80x80xf32>
    %262 = math.exp %261 : vector<80x80xf32>
    %cst_108 = arith.constant dense<0.000000e+00> : vector<80xf32>
    %263 = vector.multi_reduction <add>, %262, %cst_108 [1] : vector<80x80xf32> to vector<80xf32>
    %264 = vector.shape_cast %263 : vector<80xf32> to vector<80x1xf32>
    %265 = tpu.reciprocal %264 {approx = true} : vector<80x1xf32> -> vector<80x1xf32>
    %266 = vector.broadcast %265 : vector<80x1xf32> to vector<80x80xf32>
    %267 = arith.mulf %262, %266 : vector<80x80xf32>
    %268 = arith.truncf %267 : vector<80x80xf32> to vector<80x80xbf16>
    %cst_109 = arith.constant dense<0.000000e+00> : vector<80x8xf32>
    %269 = tpu.matmul %268, %253, %cst_109 {dimension_numbers = #tpu.dot_dimension_numbers<[1], [0], [0], [1], [0, 0, 1, 1], [], []>} : vector<80x80xbf16>, vector<80x8xbf16>, vector<80x8xf32> -> vector<80x8xf32>
    %270 = vector.extract_strided_slice %247 {offsets = [0, 8], sizes = [80, 8], strides = [1, 1]} : vector<80x96xf32> to vector<80x8xf32>
    %271 = arith.truncf %270 : vector<80x8xf32> to vector<80x8xbf16>
    %272 = vector.extract_strided_slice %247 {offsets = [0, 40], sizes = [80, 8], strides = [1, 1]} : vector<80x96xf32> to vector<80x8xf32>
    %273 = arith.truncf %272 : vector<80x8xf32> to vector<80x8xbf16>
    %274 = vector.extract_strided_slice %247 {offsets = [0, 72], sizes = [80, 8], strides = [1, 1]} : vector<80x96xf32> to vector<80x8xf32>
    %275 = arith.truncf %274 : vector<80x8xf32> to vector<80x8xbf16>
    %cst_110 = arith.constant dense<0.000000e+00> : vector<80x80xf32>
    %276 = tpu.matmul %271, %273, %cst_110 {dimension_numbers = #tpu.dot_dimension_numbers<[1], [1], [0], [0], [0, 0, 1, 0], [], []>} : vector<80x8xbf16>, vector<80x8xbf16>, vector<80x80xf32> -> vector<80x80xf32>
    %cst_111 = arith.constant 0.353553385 : f32
    %277 = vector.broadcast %cst_111 : f32 to vector<80x80xf32>
    %278 = arith.mulf %276, %277 : vector<80x80xf32>
    %279 = arith.addf %278, %30 : vector<80x80xf32>
    %cst_112 = arith.constant dense<0xFF800000> : vector<80xf32>
    %280 = vector.multi_reduction <maximumf>, %279, %cst_112 [1] : vector<80x80xf32> to vector<80xf32>
    %281 = vector.shape_cast %280 : vector<80xf32> to vector<80x1xf32>
    %282 = vector.broadcast %281 : vector<80x1xf32> to vector<80x80xf32>
    %283 = arith.subf %279, %282 : vector<80x80xf32>
    %284 = math.exp %283 : vector<80x80xf32>
    %cst_113 = arith.constant dense<0.000000e+00> : vector<80xf32>
    %285 = vector.multi_reduction <add>, %284, %cst_113 [1] : vector<80x80xf32> to vector<80xf32>
    %286 = vector.shape_cast %285 : vector<80xf32> to vector<80x1xf32>
    %287 = tpu.reciprocal %286 {approx = true} : vector<80x1xf32> -> vector<80x1xf32>
    %288 = vector.broadcast %287 : vector<80x1xf32> to vector<80x80xf32>
    %289 = arith.mulf %284, %288 : vector<80x80xf32>
    %290 = arith.truncf %289 : vector<80x80xf32> to vector<80x80xbf16>
    %cst_114 = arith.constant dense<0.000000e+00> : vector<80x8xf32>
    %291 = tpu.matmul %290, %275, %cst_114 {dimension_numbers = #tpu.dot_dimension_numbers<[1], [0], [0], [1], [0, 0, 1, 1], [], []>} : vector<80x80xbf16>, vector<80x8xbf16>, vector<80x8xf32> -> vector<80x8xf32>
    %292 = vector.extract_strided_slice %247 {offsets = [0, 16], sizes = [80, 8], strides = [1, 1]} : vector<80x96xf32> to vector<80x8xf32>
    %293 = arith.truncf %292 : vector<80x8xf32> to vector<80x8xbf16>
    %294 = vector.extract_strided_slice %247 {offsets = [0, 48], sizes = [80, 8], strides = [1, 1]} : vector<80x96xf32> to vector<80x8xf32>
    %295 = arith.truncf %294 : vector<80x8xf32> to vector<80x8xbf16>
    %296 = vector.extract_strided_slice %247 {offsets = [0, 80], sizes = [80, 8], strides = [1, 1]} : vector<80x96xf32> to vector<80x8xf32>
    %297 = arith.truncf %296 : vector<80x8xf32> to vector<80x8xbf16>
    %cst_115 = arith.constant dense<0.000000e+00> : vector<80x80xf32>
    %298 = tpu.matmul %293, %295, %cst_115 {dimension_numbers = #tpu.dot_dimension_numbers<[1], [1], [0], [0], [0, 0, 1, 0], [], []>} : vector<80x8xbf16>, vector<80x8xbf16>, vector<80x80xf32> -> vector<80x80xf32>
    %cst_116 = arith.constant 0.353553385 : f32
    %299 = vector.broadcast %cst_116 : f32 to vector<80x80xf32>
    %300 = arith.mulf %298, %299 : vector<80x80xf32>
    %301 = arith.addf %300, %30 : vector<80x80xf32>
    %cst_117 = arith.constant dense<0xFF800000> : vector<80xf32>
    %302 = vector.multi_reduction <maximumf>, %301, %cst_117 [1] : vector<80x80xf32> to vector<80xf32>
    %303 = vector.shape_cast %302 : vector<80xf32> to vector<80x1xf32>
    %304 = vector.broadcast %303 : vector<80x1xf32> to vector<80x80xf32>
    %305 = arith.subf %301, %304 : vector<80x80xf32>
    %306 = math.exp %305 : vector<80x80xf32>
    %cst_118 = arith.constant dense<0.000000e+00> : vector<80xf32>
    %307 = vector.multi_reduction <add>, %306, %cst_118 [1] : vector<80x80xf32> to vector<80xf32>
    %308 = vector.shape_cast %307 : vector<80xf32> to vector<80x1xf32>
    %309 = tpu.reciprocal %308 {approx = true} : vector<80x1xf32> -> vector<80x1xf32>
    %310 = vector.broadcast %309 : vector<80x1xf32> to vector<80x80xf32>
    %311 = arith.mulf %306, %310 : vector<80x80xf32>
    %312 = arith.truncf %311 : vector<80x80xf32> to vector<80x80xbf16>
    %cst_119 = arith.constant dense<0.000000e+00> : vector<80x8xf32>
    %313 = tpu.matmul %312, %297, %cst_119 {dimension_numbers = #tpu.dot_dimension_numbers<[1], [0], [0], [1], [0, 0, 1, 1], [], []>} : vector<80x80xbf16>, vector<80x8xbf16>, vector<80x8xf32> -> vector<80x8xf32>
    %314 = vector.extract_strided_slice %247 {offsets = [0, 24], sizes = [80, 8], strides = [1, 1]} : vector<80x96xf32> to vector<80x8xf32>
    %315 = arith.truncf %314 : vector<80x8xf32> to vector<80x8xbf16>
    %316 = vector.extract_strided_slice %247 {offsets = [0, 56], sizes = [80, 8], strides = [1, 1]} : vector<80x96xf32> to vector<80x8xf32>
    %317 = arith.truncf %316 : vector<80x8xf32> to vector<80x8xbf16>
    %318 = vector.extract_strided_slice %247 {offsets = [0, 88], sizes = [80, 8], strides = [1, 1]} : vector<80x96xf32> to vector<80x8xf32>
    %319 = arith.truncf %318 : vector<80x8xf32> to vector<80x8xbf16>
    %cst_120 = arith.constant dense<0.000000e+00> : vector<80x80xf32>
    %320 = tpu.matmul %315, %317, %cst_120 {dimension_numbers = #tpu.dot_dimension_numbers<[1], [1], [0], [0], [0, 0, 1, 0], [], []>} : vector<80x8xbf16>, vector<80x8xbf16>, vector<80x80xf32> -> vector<80x80xf32>
    %cst_121 = arith.constant 0.353553385 : f32
    %321 = vector.broadcast %cst_121 : f32 to vector<80x80xf32>
    %322 = arith.mulf %320, %321 : vector<80x80xf32>
    %323 = arith.addf %322, %30 : vector<80x80xf32>
    %cst_122 = arith.constant dense<0xFF800000> : vector<80xf32>
    %324 = vector.multi_reduction <maximumf>, %323, %cst_122 [1] : vector<80x80xf32> to vector<80xf32>
    %325 = vector.shape_cast %324 : vector<80xf32> to vector<80x1xf32>
    %326 = vector.broadcast %325 : vector<80x1xf32> to vector<80x80xf32>
    %327 = arith.subf %323, %326 : vector<80x80xf32>
    %328 = math.exp %327 : vector<80x80xf32>
    %cst_123 = arith.constant dense<0.000000e+00> : vector<80xf32>
    %329 = vector.multi_reduction <add>, %328, %cst_123 [1] : vector<80x80xf32> to vector<80xf32>
    %330 = vector.shape_cast %329 : vector<80xf32> to vector<80x1xf32>
    %331 = tpu.reciprocal %330 {approx = true} : vector<80x1xf32> -> vector<80x1xf32>
    %332 = vector.broadcast %331 : vector<80x1xf32> to vector<80x80xf32>
    %333 = arith.mulf %328, %332 : vector<80x80xf32>
    %334 = arith.truncf %333 : vector<80x80xf32> to vector<80x80xbf16>
    %cst_124 = arith.constant dense<0.000000e+00> : vector<80x8xf32>
    %335 = tpu.matmul %334, %319, %cst_124 {dimension_numbers = #tpu.dot_dimension_numbers<[1], [0], [0], [1], [0, 0, 1, 1], [], []>} : vector<80x80xbf16>, vector<80x8xbf16>, vector<80x8xf32> -> vector<80x8xf32>
    %336 = tpu.concatenate %269, %291, %313, %335 in 1 : vector<80x8xf32>, vector<80x8xf32>, vector<80x8xf32>, vector<80x8xf32> -> vector<80x32xf32>
    %c1_125 = arith.constant 1 : index
    %c0_126 = arith.constant 0 : index
    %c0_127 = arith.constant 0 : index
    %337 = vector.load %arg12[%c1_125, %c0_126, %c0_127] : memref<2x32x32xbf16, #tpu.memory_space<vmem>>, vector<1x32x32xbf16>
    %338 = vector.shape_cast %337 : vector<1x32x32xbf16> to vector<32x32xbf16>
    %c1_128 = arith.constant 1 : index
    %c0_129 = arith.constant 0 : index
    %c0_130 = arith.constant 0 : index
    %339 = vector.load %arg13[%c1_128, %c0_129, %c0_130] : memref<2x1x32xf32, #tpu.memory_space<vmem>>, vector<1x1x32xf32>
    %340 = vector.shape_cast %339 : vector<1x1x32xf32> to vector<1x32xf32>
    %341 = arith.truncf %336 : vector<80x32xf32> to vector<80x32xbf16>
    %cst_131 = arith.constant dense<0.000000e+00> : vector<80x32xf32>
    %342 = tpu.matmul %341, %338, %cst_131 {dimension_numbers = #tpu.dot_dimension_numbers<[1], [0], [0], [1], [0, 0, 1, 1], [], []>} : vector<80x32xbf16>, vector<32x32xbf16>, vector<80x32xf32> -> vector<80x32xf32>
    %343 = vector.broadcast %340 : vector<1x32xf32> to vector<80x32xf32>
    %344 = arith.addf %342, %343 : vector<80x32xf32>
    %345 = arith.addf %213, %344 : vector<80x32xf32>
    %c1_132 = arith.constant 1 : index
    %c0_133 = arith.constant 0 : index
    %c0_134 = arith.constant 0 : index
    %346 = vector.load %arg14[%c1_132, %c0_133, %c0_134] : memref<2x1x32xf32, #tpu.memory_space<vmem>>, vector<1x1x32xf32>
    %347 = vector.shape_cast %346 : vector<1x1x32xf32> to vector<1x32xf32>
    %c1_135 = arith.constant 1 : index
    %c0_136 = arith.constant 0 : index
    %c0_137 = arith.constant 0 : index
    %348 = vector.load %arg15[%c1_135, %c0_136, %c0_137] : memref<2x1x32xf32, #tpu.memory_space<vmem>>, vector<1x1x32xf32>
    %349 = vector.shape_cast %348 : vector<1x1x32xf32> to vector<1x32xf32>
    %cst_138 = arith.constant dense<0.000000e+00> : vector<80xf32>
    %350 = vector.multi_reduction <add>, %345, %cst_138 [1] : vector<80x32xf32> to vector<80xf32>
    %351 = vector.shape_cast %350 : vector<80xf32> to vector<80x1xf32>
    %cst_139 = arith.constant 3.200000e+01 : f32
    %352 = vector.broadcast %cst_139 : f32 to vector<80x1xf32>
    %353 = arith.divf %351, %352 : vector<80x1xf32>
    %354 = vector.broadcast %353 : vector<80x1xf32> to vector<80x32xf32>
    %355 = arith.subf %345, %354 : vector<80x32xf32>
    %356 = arith.mulf %355, %355 : vector<80x32xf32>
    %cst_140 = arith.constant dense<0.000000e+00> : vector<80xf32>
    %357 = vector.multi_reduction <add>, %356, %cst_140 [1] : vector<80x32xf32> to vector<80xf32>
    %358 = vector.shape_cast %357 : vector<80xf32> to vector<80x1xf32>
    %cst_141 = arith.constant 3.200000e+01 : f32
    %359 = vector.broadcast %cst_141 : f32 to vector<80x1xf32>
    %360 = arith.divf %358, %359 : vector<80x1xf32>
    %361 = vector.broadcast %353 : vector<80x1xf32> to vector<80x32xf32>
    %362 = arith.subf %345, %361 : vector<80x32xf32>
    %cst_142 = arith.constant 9.99999974E-6 : f32
    %363 = vector.broadcast %cst_142 : f32 to vector<80x1xf32>
    %364 = arith.addf %360, %363 : vector<80x1xf32>
    %365 = math.rsqrt %364 : vector<80x1xf32>
    %366 = vector.broadcast %365 : vector<80x1xf32> to vector<80x32xf32>
    %367 = arith.mulf %362, %366 : vector<80x32xf32>
    %368 = vector.broadcast %347 : vector<1x32xf32> to vector<80x32xf32>
    %369 = arith.mulf %367, %368 : vector<80x32xf32>
    %370 = vector.broadcast %349 : vector<1x32xf32> to vector<80x32xf32>
    %371 = arith.addf %369, %370 : vector<80x32xf32>
    %c1_143 = arith.constant 1 : index
    %c0_144 = arith.constant 0 : index
    %c0_145 = arith.constant 0 : index
    %372 = vector.load %arg16[%c1_143, %c0_144, %c0_145] : memref<2x32x128xbf16, #tpu.memory_space<vmem>>, vector<1x32x128xbf16>
    %373 = vector.shape_cast %372 : vector<1x32x128xbf16> to vector<32x128xbf16>
    %c1_146 = arith.constant 1 : index
    %c0_147 = arith.constant 0 : index
    %c0_148 = arith.constant 0 : index
    %374 = vector.load %arg17[%c1_146, %c0_147, %c0_148] : memref<2x1x128xf32, #tpu.memory_space<vmem>>, vector<1x1x128xf32>
    %375 = vector.shape_cast %374 : vector<1x1x128xf32> to vector<1x128xf32>
    %376 = arith.truncf %371 : vector<80x32xf32> to vector<80x32xbf16>
    %cst_149 = arith.constant dense<0.000000e+00> : vector<80x128xf32>
    %377 = tpu.matmul %376, %373, %cst_149 {dimension_numbers = #tpu.dot_dimension_numbers<[1], [0], [0], [1], [0, 0, 1, 1], [], []>} : vector<80x32xbf16>, vector<32x128xbf16>, vector<80x128xf32> -> vector<80x128xf32>
    %378 = vector.broadcast %375 : vector<1x128xf32> to vector<80x128xf32>
    %379 = arith.addf %377, %378 : vector<80x128xf32>
    %cst_150 = arith.constant 1.702000e+00 : f32
    %380 = vector.broadcast %cst_150 : f32 to vector<80x128xf32>
    %381 = arith.mulf %380, %379 : vector<80x128xf32>
    %382 = arith.negf %381 : vector<80x128xf32>
    %383 = math.exp %382 : vector<80x128xf32>
    %cst_151 = arith.constant 1.000000e+00 : f32
    %384 = vector.broadcast %cst_151 : f32 to vector<80x128xf32>
    %385 = arith.addf %384, %383 : vector<80x128xf32>
    %386 = arith.divf %384, %385 : vector<80x128xf32>
    %387 = arith.mulf %379, %386 : vector<80x128xf32>
    %c1_152 = arith.constant 1 : index
    %c0_153 = arith.constant 0 : index
    %c0_154 = arith.constant 0 : index
    %388 = vector.load %arg18[%c1_152, %c0_153, %c0_154] : memref<2x128x32xbf16, #tpu.memory_space<vmem>>, vector<1x128x32xbf16>
    %389 = vector.shape_cast %388 : vector<1x128x32xbf16> to vector<128x32xbf16>
    %c1_155 = arith.constant 1 : index
    %c0_156 = arith.constant 0 : index
    %c0_157 = arith.constant 0 : index
    %390 = vector.load %arg19[%c1_155, %c0_156, %c0_157] : memref<2x1x32xf32, #tpu.memory_space<vmem>>, vector<1x1x32xf32>
    %391 = vector.shape_cast %390 : vector<1x1x32xf32> to vector<1x32xf32>
    %392 = arith.truncf %387 : vector<80x128xf32> to vector<80x128xbf16>
    %cst_158 = arith.constant dense<0.000000e+00> : vector<80x32xf32>
    %393 = tpu.matmul %392, %389, %cst_158 {dimension_numbers = #tpu.dot_dimension_numbers<[1], [0], [0], [1], [0, 0, 1, 1], [], []>} : vector<80x128xbf16>, vector<128x32xbf16>, vector<80x32xf32> -> vector<80x32xf32>
    %394 = vector.broadcast %391 : vector<1x32xf32> to vector<80x32xf32>
    %395 = arith.addf %393, %394 : vector<80x32xf32>
    %396 = arith.addf %345, %395 : vector<80x32xf32>
    %c0_159 = arith.constant 0 : index
    %c0_160 = arith.constant 0 : index
    %397 = vector.load %arg5[%c0_159, %c0_160] : memref<16x80xf32, #tpu.memory_space<vmem>>, vector<16x80xf32>
    %cst_161 = arith.constant dense<0.000000e+00> : vector<16x32xf32>
    %398 = tpu.matmul %397, %396, %cst_161 {dimension_numbers = #tpu.dot_dimension_numbers<[1], [0], [0], [1], [0, 0, 1, 1], [], []>} : vector<16x80xf32>, vector<80x32xf32>, vector<16x32xf32> -> vector<16x32xf32>
    %c0_162 = arith.constant 0 : index
    %c0_163 = arith.constant 0 : index
    %399 = vector.load %arg20[%c0_162, %c0_163] : memref<1x32xf32, #tpu.memory_space<vmem>>, vector<1x32xf32>
    %c0_164 = arith.constant 0 : index
    %c0_165 = arith.constant 0 : index
    %400 = vector.load %arg21[%c0_164, %c0_165] : memref<1x32xf32, #tpu.memory_space<vmem>>, vector<1x32xf32>
    %cst_166 = arith.constant dense<0.000000e+00> : vector<16xf32>
    %401 = vector.multi_reduction <add>, %398, %cst_166 [1] : vector<16x32xf32> to vector<16xf32>
    %402 = vector.shape_cast %401 : vector<16xf32> to vector<16x1xf32>
    %cst_167 = arith.constant 3.200000e+01 : f32
    %403 = vector.broadcast %cst_167 : f32 to vector<16x1xf32>
    %404 = arith.divf %402, %403 : vector<16x1xf32>
    %405 = vector.broadcast %404 : vector<16x1xf32> to vector<16x32xf32>
    %406 = arith.subf %398, %405 : vector<16x32xf32>
    %407 = arith.mulf %406, %406 : vector<16x32xf32>
    %cst_168 = arith.constant dense<0.000000e+00> : vector<16xf32>
    %408 = vector.multi_reduction <add>, %407, %cst_168 [1] : vector<16x32xf32> to vector<16xf32>
    %409 = vector.shape_cast %408 : vector<16xf32> to vector<16x1xf32>
    %cst_169 = arith.constant 3.200000e+01 : f32
    %410 = vector.broadcast %cst_169 : f32 to vector<16x1xf32>
    %411 = arith.divf %409, %410 : vector<16x1xf32>
    %412 = vector.broadcast %404 : vector<16x1xf32> to vector<16x32xf32>
    %413 = arith.subf %398, %412 : vector<16x32xf32>
    %cst_170 = arith.constant 9.99999974E-6 : f32
    %414 = vector.broadcast %cst_170 : f32 to vector<16x1xf32>
    %415 = arith.addf %411, %414 : vector<16x1xf32>
    %416 = math.rsqrt %415 : vector<16x1xf32>
    %417 = vector.broadcast %416 : vector<16x1xf32> to vector<16x32xf32>
    %418 = arith.mulf %413, %417 : vector<16x32xf32>
    %419 = vector.broadcast %399 : vector<1x32xf32> to vector<16x32xf32>
    %420 = arith.mulf %418, %419 : vector<16x32xf32>
    %421 = vector.broadcast %400 : vector<1x32xf32> to vector<16x32xf32>
    %422 = arith.addf %420, %421 : vector<16x32xf32>
    %c0_171 = arith.constant 0 : index
    %c0_172 = arith.constant 0 : index
    %423 = vector.load %arg22[%c0_171, %c0_172] : memref<32x16xbf16, #tpu.memory_space<vmem>>, vector<32x16xbf16>
    %424 = arith.truncf %422 : vector<16x32xf32> to vector<16x32xbf16>
    %cst_173 = arith.constant dense<0.000000e+00> : vector<16x16xf32>
    %425 = tpu.matmul %424, %423, %cst_173 {dimension_numbers = #tpu.dot_dimension_numbers<[1], [0], [0], [1], [0, 0, 1, 1], [], []>} : vector<16x32xbf16>, vector<32x16xbf16>, vector<16x16xf32> -> vector<16x16xf32>
    %426 = arith.mulf %425, %425 : vector<16x16xf32>
    %cst_174 = arith.constant dense<0.000000e+00> : vector<16xf32>
    %427 = vector.multi_reduction <add>, %426, %cst_174 [1] : vector<16x16xf32> to vector<16xf32>
    %428 = vector.shape_cast %427 : vector<16xf32> to vector<16x1xf32>
    %cst_175 = arith.constant 9.99999996E-13 : f32
    %429 = vector.broadcast %cst_175 : f32 to vector<16x1xf32>
    %430 = arith.addf %428, %429 : vector<16x1xf32>
    %431 = math.rsqrt %430 : vector<16x1xf32>
    %432 = vector.broadcast %431 : vector<16x1xf32> to vector<16x16xf32>
    %433 = arith.mulf %425, %432 : vector<16x16xf32>
    %c0_176 = arith.constant 0 : index
    %c0_177 = arith.constant 0 : index
    %434 = vector.load %arg23[%c0_176, %c0_177] : memref<16x16xf32, #tpu.memory_space<vmem>>, vector<16x16xf32>
    tpu.vector_store %arg23[%c0_176, %c0_177], %433 {strides = array<i32>} : memref<16x16xf32, #tpu.memory_space<vmem>>, vector<16x16xf32>,
    return
  }
  func.func @transform_0(%arg0: i32) -> (i32, i32) {
    %c0_i32 = arith.constant 0 : i32
    %c0_i32_0 = arith.constant 0 : i32
    return %arg0, %c0_i32 : i32, i32
  }
  func.func @transform_1(%arg0: i32) -> (i32, i32) {
    %c0_i32 = arith.constant 0 : i32
    %c0_i32_0 = arith.constant 0 : i32
    %c0_i32_1 = arith.constant 0 : i32
    return %c0_i32, %c0_i32_0 : i32, i32
  }
  func.func @transform_2(%arg0: i32) -> (i32, i32) {
    %c0_i32 = arith.constant 0 : i32
    %c0_i32_0 = arith.constant 0 : i32
    %c0_i32_1 = arith.constant 0 : i32
    return %c0_i32, %c0_i32_0 : i32, i32
  }
  func.func @transform_3(%arg0: i32) -> (i32, i32) {
    %c0_i32 = arith.constant 0 : i32
    %c0_i32_0 = arith.constant 0 : i32
    %c0_i32_1 = arith.constant 0 : i32
    return %c0_i32, %c0_i32_0 : i32, i32
  }
  func.func @transform_4(%arg0: i32) -> (i32, i32) {
    %c0_i32 = arith.constant 0 : i32
    %c0_i32_0 = arith.constant 0 : i32
    %c0_i32_1 = arith.constant 0 : i32
    return %c0_i32, %c0_i32_0 : i32, i32
  }
  func.func @transform_5(%arg0: i32) -> (i32, i32) {
    %c0_i32 = arith.constant 0 : i32
    %c0_i32_0 = arith.constant 0 : i32
    %c0_i32_1 = arith.constant 0 : i32
    return %c0_i32, %c0_i32_0 : i32, i32
  }
  func.func @transform_6(%arg0: i32) -> (i32, i32) {
    %c0_i32 = arith.constant 0 : i32
    %c0_i32_0 = arith.constant 0 : i32
    %c0_i32_1 = arith.constant 0 : i32
    return %c0_i32, %c0_i32_0 : i32, i32
  }
  func.func @transform_7(%arg0: i32) -> (i32, i32, i32) {
    %c0_i32 = arith.constant 0 : i32
    %c0_i32_0 = arith.constant 0 : i32
    %c0_i32_1 = arith.constant 0 : i32
    %c0_i32_2 = arith.constant 0 : i32
    return %c0_i32, %c0_i32_0, %c0_i32_1 : i32, i32, i32
  }
  func.func @transform_8(%arg0: i32) -> (i32, i32, i32) {
    %c0_i32 = arith.constant 0 : i32
    %c0_i32_0 = arith.constant 0 : i32
    %c0_i32_1 = arith.constant 0 : i32
    %c0_i32_2 = arith.constant 0 : i32
    return %c0_i32, %c0_i32_0, %c0_i32_1 : i32, i32, i32
  }
  func.func @transform_9(%arg0: i32) -> (i32, i32, i32) {
    %c0_i32 = arith.constant 0 : i32
    %c0_i32_0 = arith.constant 0 : i32
    %c0_i32_1 = arith.constant 0 : i32
    %c0_i32_2 = arith.constant 0 : i32
    return %c0_i32, %c0_i32_0, %c0_i32_1 : i32, i32, i32
  }
  func.func @transform_10(%arg0: i32) -> (i32, i32, i32) {
    %c0_i32 = arith.constant 0 : i32
    %c0_i32_0 = arith.constant 0 : i32
    %c0_i32_1 = arith.constant 0 : i32
    %c0_i32_2 = arith.constant 0 : i32
    return %c0_i32, %c0_i32_0, %c0_i32_1 : i32, i32, i32
  }
  func.func @transform_11(%arg0: i32) -> (i32, i32, i32) {
    %c0_i32 = arith.constant 0 : i32
    %c0_i32_0 = arith.constant 0 : i32
    %c0_i32_1 = arith.constant 0 : i32
    %c0_i32_2 = arith.constant 0 : i32
    return %c0_i32, %c0_i32_0, %c0_i32_1 : i32, i32, i32
  }
  func.func @transform_12(%arg0: i32) -> (i32, i32, i32) {
    %c0_i32 = arith.constant 0 : i32
    %c0_i32_0 = arith.constant 0 : i32
    %c0_i32_1 = arith.constant 0 : i32
    %c0_i32_2 = arith.constant 0 : i32
    return %c0_i32, %c0_i32_0, %c0_i32_1 : i32, i32, i32
  }
  func.func @transform_13(%arg0: i32) -> (i32, i32, i32) {
    %c0_i32 = arith.constant 0 : i32
    %c0_i32_0 = arith.constant 0 : i32
    %c0_i32_1 = arith.constant 0 : i32
    %c0_i32_2 = arith.constant 0 : i32
    return %c0_i32, %c0_i32_0, %c0_i32_1 : i32, i32, i32
  }
  func.func @transform_14(%arg0: i32) -> (i32, i32, i32) {
    %c0_i32 = arith.constant 0 : i32
    %c0_i32_0 = arith.constant 0 : i32
    %c0_i32_1 = arith.constant 0 : i32
    %c0_i32_2 = arith.constant 0 : i32
    return %c0_i32, %c0_i32_0, %c0_i32_1 : i32, i32, i32
  }
  func.func @transform_15(%arg0: i32) -> (i32, i32, i32) {
    %c0_i32 = arith.constant 0 : i32
    %c0_i32_0 = arith.constant 0 : i32
    %c0_i32_1 = arith.constant 0 : i32
    %c0_i32_2 = arith.constant 0 : i32
    return %c0_i32, %c0_i32_0, %c0_i32_1 : i32, i32, i32
  }
  func.func @transform_16(%arg0: i32) -> (i32, i32, i32) {
    %c0_i32 = arith.constant 0 : i32
    %c0_i32_0 = arith.constant 0 : i32
    %c0_i32_1 = arith.constant 0 : i32
    %c0_i32_2 = arith.constant 0 : i32
    return %c0_i32, %c0_i32_0, %c0_i32_1 : i32, i32, i32
  }
  func.func @transform_17(%arg0: i32) -> (i32, i32, i32) {
    %c0_i32 = arith.constant 0 : i32
    %c0_i32_0 = arith.constant 0 : i32
    %c0_i32_1 = arith.constant 0 : i32
    %c0_i32_2 = arith.constant 0 : i32
    return %c0_i32, %c0_i32_0, %c0_i32_1 : i32, i32, i32
  }
  func.func @transform_18(%arg0: i32) -> (i32, i32, i32) {
    %c0_i32 = arith.constant 0 : i32
    %c0_i32_0 = arith.constant 0 : i32
    %c0_i32_1 = arith.constant 0 : i32
    %c0_i32_2 = arith.constant 0 : i32
    return %c0_i32, %c0_i32_0, %c0_i32_1 : i32, i32, i32
  }
  func.func @transform_19(%arg0: i32) -> (i32, i32) {
    %c0_i32 = arith.constant 0 : i32
    %c0_i32_0 = arith.constant 0 : i32
    %c0_i32_1 = arith.constant 0 : i32
    return %c0_i32, %c0_i32_0 : i32, i32
  }
  func.func @transform_20(%arg0: i32) -> (i32, i32) {
    %c0_i32 = arith.constant 0 : i32
    %c0_i32_0 = arith.constant 0 : i32
    %c0_i32_1 = arith.constant 0 : i32
    return %c0_i32, %c0_i32_0 : i32, i32
  }
  func.func @transform_21(%arg0: i32) -> (i32, i32) {
    %c0_i32 = arith.constant 0 : i32
    %c0_i32_0 = arith.constant 0 : i32
    %c0_i32_1 = arith.constant 0 : i32
    return %c0_i32, %c0_i32_0 : i32, i32
  }
  func.func @transform_22(%arg0: i32) -> (i32, i32) {
    %c0_i32 = arith.constant 0 : i32
    %c0_i32_0 = arith.constant 0 : i32
    return %arg0, %c0_i32 : i32, i32
  }
}

</mosaic_0001>

<bundles_post_ra>
// kernel: clip_extractor_forward.1
= control target key start
LH: loop header
LB: loop body
LE: loop exit
PB: predicated region body
PF: predicated region fallthrough
CT: control target
= control target key end

     0   :  { %s12721_s0 = inlined_call_operand.vmem [shape: bf16[160,768], index: 0, kind: input, shape index: {}]   ;;  %s12722_s1 = inlined_call_operand.vmem [shape: bf16[768,32], index: 1, kind: input, shape index: {}]   ;;  %s12723_s2 = inlined_call_operand.vmem [shape: bf16[80,32], index: 2, kind: input, shape index: {}]   ;;  %s12724_s3 = inlined_call_operand.vmem [shape: f32[80,80], index: 3, kind: input, shape index: {}]   ;;  %s12725_s4 = inlined_call_operand.vmem [shape: f32[16,80], index: 4, kind: input, shape index: {}]   ;;  %s12726_s5 = inlined_call_operand.vmem [shape: f32[1,32], index: 5, kind: input, shape index: {}]   ;;  %s12727_s6 = inlined_call_operand.vmem [shape: f32[1,32], index: 6, kind: input, shape index: {}]   ;;  %s12728_s7 = inlined_call_operand.vmem [shape: f32[2,1,32], index: 7, kind: input, shape index: {}]   ;;  %s12729_s8 = inlined_call_operand.vmem [shape: f32[2,1,32], index: 8, kind: input, shape index: {}]   ;;  %s12730_s9 = inlined_call_operand.vmem [shape: bf16[2,32,96], index: 9, kind: input, shape index: {}]   ;;  %s12731_s10 = inlined_call_operand.vmem [shape: f32[2,1,96], index: 10, kind: input, shape index: {}]   ;;  %s12732_s11 = inlined_call_operand.vmem [shape: bf16[2,32,32], index: 11, kind: input, shape index: {}]   ;;  %s12733_s12 = inlined_call_operand.vmem [shape: f32[2,1,32], index: 12, kind: input, shape index: {}]   ;;  %s12734_s13 = inlined_call_operand.vmem [shape: f32[2,1,32], index: 13, kind: input, shape index: {}]   ;;  %s12735_s14 = inlined_call_operand.vmem [shape: f32[2,1,32], index: 14, kind: input, shape index: {}]   ;;  %s12736_s15 = inlined_call_operand.vmem [shape: bf16[2,32,128], index: 15, kind: input, shape index: {}]   ;;  %s12737_s16 = inlined_call_operand.vmem [shape: f32[2,1,128], index: 16, kind: input, shape index: {}]   ;;  %s12738_s17 = inlined_call_operand.vmem [shape: bf16[2,128,32], index: 17, kind: input, shape index: {}]   ;;  %s12739_s18 = inlined_call_operand.vmem [shape: f32[2,1,32], index: 18, kind: input, shape index: {}]   ;;  %s12740_s19 = inlined_call_operand.vmem [shape: f32[1,32], index: 19, kind: input, shape index: {}]   ;;  %s12741_s20 = inlined_call_operand.vmem [shape: f32[1,32], index: 20, kind: input, shape index: {}]   ;;  %s12742_s21 = inlined_call_operand.vmem [shape: bf16[32,16], index: 21, kind: input, shape index: {}]   ;;  %s12743_s22 = inlined_call_operand.vmem [shape: f32[32,16], index: 22, kind: output, shape index: {}]  }
   0x1   :  { %12802 = sst [smem:[#allocation22_spill]] %s12721_s0 }
   0x2   :  { %12803 = sst [smem:[#allocation23_spill]] %s12722_s1 }
   0x3   :  { %12804 = sst [smem:[#allocation24_spill]] %s12723_s2 }
   0x4   :  { %12805 = sst [smem:[#allocation25_spill]] %s12724_s3  ;;  %s9402_s3 = smov 0  }
   0x5   :  { %12806 = sst [smem:[#allocation26_spill]] %s12725_s4 }
   0x6   :  { %12807 = sst [smem:[#allocation27_spill]] %s12726_s5 }
   0x7   :  { %12808 = sst [smem:[#allocation28_spill]] %s12727_s6 }
   0x8 LB: > { %s12748_s28 = sadd.s32 4294967295, %s9269_s3   ;;  %p6988_p0 = scmp.ge.s32.totalorder %s9269_s3, 1  ;;  %s9269_s3 = sphi %s9402_s3, %s32_s3  }
   0x9   : > { %p614_p1 = scmp.lt.s32.totalorder %s9269_s3, 3 }
   0xb   : > { %p615_p2 = pnand %p6988_p0, %p614_p1 }
   0xd   : > { %618 = sbr.rel (%p615_p2) target bundleno = 7077 (0x1ba5), region = 108 }
  0x14   : > { %s12809_s4 = sld [smem:[#allocation23_spill]]  ;;  %s677_s0 = smul.u32 10, %s12748_s28  ;;  %vm1496_vm0 = vcmask 261120   ;;  %vm9272_vm1 = vmmov 0   ;;  %vm1970_vm2 = vcmask 64512   ;;  %vm2094_vm3 = vcmask 654336  }
  0x15   : > { %s12810_s1 = sld [smem:[#allocation22_spill]]  ;;  %s12811_s30 = sld [smem:[#allocation24_spill]]  ;;  %vm3526_vm4 = vcmask 130048   ;;  %vm3537_vm5 = vcmask 195584  }
  0x16   : > { %p678_p3 = scmp.lt.s32.totalorder %s677_s0, 19  ;;  %s12812_s29 = sld [smem:[#allocation27_spill]] }
  0x17   : > { %s12813_s23 = sld [smem:[#allocation28_spill]]  ;;  %s9275_s6 = smov 80  }
  0x18   : > { %s12907_s0 = smov (!%p678_p3, %s677_s0), 19  ;;  %s9276_s25 = smov 120  }
  0x19   : > { %s8447_s5 = smul.u32 24, %s12907_s0  ;;  %s12784_s26 = smov 72  }
  0x1a   : > { %v8622_v0 = vld [vmem:[%s12809_s4 + $0x40] sm:$0xff]   ;;  %v8626_v4 = vld [vmem:[%s12809_s4 + $0x48] sm:$0xff]   ;;  %v8630_v8 = vld [vmem:[%s12809_s4 + $0x50] sm:$0xff]   ;;  %s12782_s2 = smov 112   ;;  %s12753_s27 = smov 64  }
  0x1b   : > { %v8623_v1 = vld [vmem:[%s12809_s4] sm:$0xff]   ;;  %7315 = vmatprep.subr.bf16.mxu0 %v8622_v0  ;;  %v8627_v5 = vld [vmem:[%s12809_s4 + $0x8] sm:$0xff]   ;;  %v8631_v9 = vld [vmem:[%s12809_s4 + $0x10] sm:$0xff]   ;;  %s9502_s24 = scalar_lea.vmem %s12810_s1, %s8447_s5  ;;  %s9274_s1 = smov 88  }
  0x1c   : > { %v8624_v2 = vld [vmem:[%s12809_s4 + $0xc0] sm:$0xff]   ;;  %7316 = vmatpush3.bf16.msra.mxu0 %v8623_v1  ;;  %v8628_v6 = vld [vmem:[%s12809_s4 + $0xc8] sm:$0xff]   ;;  %v8632_v10 = vld [vmem:[%s12809_s4 + $0xd0] sm:$0xff]   ;;  %s12774_s5 = smov 104   ;;  %s12749_s0 = smov 48  }
  0x1d   : > { %v8625_v3 = vld [vmem:[%s12809_s4 + $0x80] sm:$0xff]   ;;  %7361 = vmatprep.subr.bf16.mxu1 %v8624_v2  ;;  %7317 = vmatprep.subr.bf16.mxu0 %v8626_v4  ;;  %v8629_v7 = vld [vmem:[%s12809_s4 + $0x88] sm:$0xff]   ;;  %v8633_v11 = vld [vmem:[%s12809_s4 + $0x90] sm:$0xff]   ;;  %s12772_s28 = smov 40  }
  0x1e   : > { %7362 = vmatpush3.bf16.msra.mxu1 %v8625_v3  ;;  %v8634_v12 = vld [vmem:[%s12809_s4 + $0x58] sm:$0xff]   ;;  %v8638_v16 = vld [vmem:[%s12809_s4 + $0x60] sm:$0xff]   ;;  %v8642_v20 = vld [vmem:[%s12809_s4 + $0x68] sm:$0xff]  }
  0x1f   : > { %7363 = vmatprep.subr.bf16.mxu1 %v8628_v6  ;;  %v8635_v13 = vld [vmem:[%s12809_s4 + $0x18] sm:$0xff]   ;;  %v8639_v17 = vld [vmem:[%s12809_s4 + $0x20] sm:$0xff]   ;;  %v8643_v21 = vld [vmem:[%s12809_s4 + $0x28] sm:$0xff]  }
  0x20   : > { %7318 = vmatpush3.bf16.msra.mxu0 %v8627_v5  ;;  %v8636_v14 = vld [vmem:[%s12809_s4 + $0xd8] sm:$0xff]   ;;  %v8640_v18 = vld [vmem:[%s12809_s4 + $0xe0] sm:$0xff]   ;;  %v8644_v22 = vld [vmem:[%s12809_s4 + $0xe8] sm:$0xff]  }
  0x21   : > { %7319 = vmatprep.subr.bf16.mxu0 %v8630_v8  ;;  %v8637_v15 = vld [vmem:[%s12809_s4 + $0x98] sm:$0xff]   ;;  %v8641_v19 = vld [vmem:[%s12809_s4 + $0xa0] sm:$0xff]   ;;  %v8645_v23 = vld [vmem:[%s12809_s4 + $0xa8] sm:$0xff]  }
  0x22   : > { %7364 = vmatpush3.bf16.msra.mxu1 %v8629_v7  ;;  %v8646_v24 = vld [vmem:[%s12809_s4 + $0x70] sm:$0xff]   ;;  %v8650_v28 = vld [vmem:[%s12809_s4 + $0x78] sm:$0xff]   ;;  %v8657_v34 = vld [vmem:[%s9502_s24 + $0x8] ss:$24 sps:$4 sm:$0xff]  }
  0x23   : > { %7365 = vmatprep.subr.bf16.mxu1 %v8632_v10  ;;  %v8647_v25 = vld [vmem:[%s12809_s4 + $0x30] sm:$0xff]   ;;  %v8651_v29 = vld [vmem:[%s12809_s4 + $0x38] sm:$0xff]   ;;  %v8659_v35 = vld [vmem:[%s9502_s24 + $0xc] ss:$24 sps:$4 sm:$0xff]  }
  0x24   : > { %7320 = vmatpush3.bf16.msra.mxu0 %v8631_v9  ;;  %v8648_v26 = vld [vmem:[%s12809_s4 + $0xf0] sm:$0xff]   ;;  %v8652_v30 = vld [vmem:[%s12809_s4 + $0xf8] sm:$0xff]   ;;  %v8660_v36 = vld [vmem:[%s12809_s4 + $0x140] sm:$0xff]   ;;  %1380 = vmatprep.mubr.bf16.mxu1 %v8659_v35 }
  0x25   : > { %7321 = vmatprep.subr.bf16.mxu0 %v8634_v12  ;;  %v8649_v27 = vld [vmem:[%s12809_s4 + $0xb0] sm:$0xff]   ;;  %v8653_v31 = vld [vmem:[%s9502_s24] ss:$24 sps:$4 sm:$0xff]   ;;  %v8655_v32 = vld [vmem:[%s9502_s24 + $0x4] ss:$24 sps:$4 sm:$0xff]  }
  0x26   : > { %7366 = vmatpush3.bf16.msra.mxu1 %v8633_v11  ;;  %v8656_v33 = vld [vmem:[%s12809_s4 + $0xb8] sm:$0xff]   ;;  %1307 = vmatprep.mubr.bf16.mxu0 %v8655_v32  ;;  %v8661_v37 = vld [vmem:[%s12809_s4 + $0x100] sm:$0xff]   ;;  %v8662_v38 = vld [vmem:[%s9502_s24 + $0x34] ss:$24 sps:$4 sm:$0xff]  }
  0x27   : > { %7367 = vmatprep.subr.bf16.mxu1 %v8636_v14  ;;  %v8664_v39 = vld [vmem:[%s9502_s24 + $0x30] ss:$24 sps:$4 sm:$0xff]   ;;  %v8665_v40 = vld [vmem:[%s9502_s24 + $0x3c] ss:$24 sps:$4 sm:$0xff]   ;;  %v8674_v47 = vld [vmem:[%s9502_s24 + $0x60] ss:$24 sps:$4 sm:$0xff]  }
  0x28   : > { %7322 = vmatpush3.bf16.msra.mxu0 %v8635_v13  ;;  %v8667_v41 = vld [vmem:[%s12809_s4 + $0x148] sm:$0xff]   ;;  %v8668_v42 = vld [vmem:[%s9502_s24 + $0x38] ss:$24 sps:$4 sm:$0xff]   ;;  %v8671_v45 = vld [vmem:[%s9502_s24 + $0x64] ss:$24 sps:$4 sm:$0xff]  }
  0x29   : > { %7323 = vmatprep.subr.bf16.mxu0 %v8638_v16  ;;  %v8669_v43 = vld [vmem:[%s12809_s4 + $0x108] sm:$0xff]   ;;  %v8670_v44 = vld [vmem:[%s12809_s4 + $0x150] sm:$0xff]   ;;  %v8678_v49 = vld [vmem:[%s12809_s4 + $0x158] sm:$0xff]  }
  0x2a   : > { %7368 = vmatpush3.bf16.msra.mxu1 %v8637_v15  ;;  %v8673_v46 = vld [vmem:[%s12809_s4 + $0x110] sm:$0xff]   ;;  %v8675_v48 = vld [vmem:[%s9502_s24 + $0x6c] ss:$24 sps:$4 sm:$0xff]   ;;  %v8679_v50 = vld [vmem:[%s12809_s4 + $0x118] sm:$0xff]  }
  0x2b   : > { %7369 = vmatprep.subr.bf16.mxu1 %v8640_v18  ;;  %v8680_v51 = vld [vmem:[%s9502_s24 + $0x94] ss:$24 sps:$4 sm:$0xff]   ;;  %v8677_v52 = vld [vmem:[%s9502_s24 + $0x68] ss:$24 sps:$4 sm:$0xff]   ;;  %v8690_v59 = vld [vmem:[%s9502_s24 + $0xc4] ss:$24 sps:$4 sm:$0xff]  }
  0x2c   : > { %7324 = vmatpush3.bf16.msra.mxu0 %v8639_v17  ;;  %v8683_v53 = vld [vmem:[%s12809_s4 + $0x160] sm:$0xff]   ;;  %v8684_v54 = vld [vmem:[%s9502_s24 + $0x9c] ss:$24 sps:$4 sm:$0xff]   ;;  %v8688_v56 = vld [vmem:[%s12809_s4 + $0x168] sm:$0xff]  }
  0x2d   : > { %7325 = vmatprep.subr.bf16.mxu0 %v8642_v20  ;;  %v8686_v55 = vld [vmem:[%s12809_s4 + $0x120] sm:$0xff]   ;;  %v8682_v57 = vld [vmem:[%s9502_s24 + $0x90] ss:$24 sps:$4 sm:$0xff]   ;;  %v8698_v0 = vld [vmem:[%s12809_s4 + $0x178] sm:$0xff]  }
  0x2e   : > { %7370 = vmatpush3.bf16.msra.mxu1 %v8641_v19  ;;  %v8689_v58 = vld [vmem:[%s12809_s4 + $0x128] sm:$0xff]   ;;  %v8693_v60 = vld [vmem:[%s12809_s4 + $0x170] sm:$0xff]   ;;  %v8692_v1 = vld [vmem:[%s9502_s24 + $0xc0] ss:$24 sps:$4 sm:$0xff]  }
  0x2f   : > { %7371 = vmatprep.subr.bf16.mxu1 %v8644_v22  ;;  %v8687_v61 = vld [vmem:[%s9502_s24 + $0x98] ss:$24 sps:$4 sm:$0xff]   ;;  %v8694_v62 = vld [vmem:[%s9502_s24 + $0xcc] ss:$24 sps:$4 sm:$0xff]   ;;  %v8697_v4 = vld [vmem:[%s9502_s24 + $0xc8] ss:$24 sps:$4 sm:$0xff]  }
  0x30   : > { %7326 = vmatpush3.bf16.msra.mxu0 %v8643_v21  ;;  %v8696_v63 = vld [vmem:[%s12809_s4 + $0x130] sm:$0xff]   ;;  %v8699_v2 = vld [vmem:[%s12809_s4 + $0x138] sm:$0xff]   ;;  %v7292_v14 = vld [vmem:[%s12811_s30] sm:$0xff]  }
  0x31   : > { %7327 = vmatprep.subr.bf16.mxu0 %v8646_v24  ;;  %v8702_v3 = vld [vmem:[%s9502_s24 + $0x14] ss:$24 sps:$4 sm:$0xff]   ;;  %v8700_v5 = vld [vmem:[%s9502_s24 + $0x10] ss:$24 sps:$4 sm:$0xff]   ;;  %v8703_v6 = vld [vmem:[%s9502_s24 + $0x44] ss:$24 sps:$4 sm:$0xff]   ;;  %v7293_v16 = vunpack.c.l.bf16 %v7292_v14  ;;  %v7294_v20 = vunpack.c.h.bf16 %v7292_v14 }
  0x32   : > { %7372 = vmatpush3.bf16.msra.mxu1 %v8645_v23  ;;  %v8705_v7 = vld [vmem:[%s9502_s24 + $0x40] ss:$24 sps:$4 sm:$0xff]   ;;  %v8706_v8 = vld [vmem:[%s9502_s24 + $0x74] ss:$24 sps:$4 sm:$0xff]   ;;  %v8708_v9 = vld [vmem:[%s9502_s24 + $0x70] ss:$24 sps:$4 sm:$0xff]  }
  0x33   : > { %7373 = vmatprep.subr.bf16.mxu1 %v8648_v26  ;;  %v8709_v10 = vld [vmem:[%s9502_s24 + $0xa4] ss:$24 sps:$4 sm:$0xff]   ;;  %v8711_v11 = vld [vmem:[%s9502_s24 + $0xa0] ss:$24 sps:$4 sm:$0xff]   ;;  %v8712_v12 = vld [vmem:[%s9502_s24 + $0xd4] ss:$24 sps:$4 sm:$0xff]  }
  0x34   : > { %7328 = vmatpush3.bf16.msra.mxu0 %v8647_v25  ;;  %v8714_v13 = vld [vmem:[%s9502_s24 + $0xd0] ss:$24 sps:$4 sm:$0xff]   ;;  %s12904_s24 = sld [smem:[#allocation26_spill]] }
  0x35   : > { %7329 = vmatprep.subr.bf16.mxu0 %v8650_v28  ;;  %v7311_v28 = vld [vmem:[%s12811_s30 + $0x8] sm:$0xff]  }
  0x36   : > { %7374 = vmatpush3.bf16.msra.mxu1 %v8649_v27 }
  0x37   : > { %7375 = vmatprep.subr.bf16.mxu1 %v8652_v30 }
  0x38   : > { %7330 = vmatpush3.bf16.msra.mxu0 %v8651_v29 }
  0x39   : > { %7407 = vmatprep.subr.bf16.mxu0 %v8660_v36 }
  0x3a   : > { %7376 = vmatpush3.bf16.msra.mxu1 %v8656_v33 }
  0x3b   : > { %1308 = vmatmul.mubr.bf16.vlgmr.msra.gmra.mrb[0].mxu0 %v8653_v31 }
  0x3c   : > { %7408 = vmatpush3.bf16.msra.mxu0 %v8661_v37  ;;  %1315 = vmatprep.mubr.bf16.mxu0 %v8662_v38 }
  0x3d   : > { %1381 = vmatmul.mubr.bf16.vlgmr.msra.gmra.mrb[0].mxu1 %v8657_v34  ;;  %7409 = vmatprep.subr.bf16.mxu0 %v8667_v41  ;;  %v7297_v34 = vunpack.c.l.bf16 %v7311_v28 }
  0x3e   : > { %1388 = vmatprep.mubr.bf16.mxu1 %v8665_v40 }
  0x40   : > { %7410 = vmatpush3.bf16.msra.mxu0 %v8669_v43 }
  0x41   : > { %7411 = vmatprep.subr.bf16.mxu0 %v8670_v44 }
  0x43   : > { %1316 = vmatmul.mubr.bf16.gmra.mrb[4].mxu0 %v8664_v39  ;;  %v7298_v39 = vunpack.c.h.bf16 %v7311_v28 }
  0x44   : > { %1323 = vmatprep.mubr.bf16.mxu0 %v8671_v45  ;;  %7412 = vmatpush3.bf16.msra.mxu0 %v8673_v46 }
  0x45   : > { %1389 = vmatmul.mubr.bf16.gmra.mrb[4].mxu1 %v8668_v42  ;;  %7413 = vmatprep.subr.bf16.mxu0 %v8678_v49 }
  0x46   : > { %1396 = vmatprep.mubr.bf16.mxu1 %v8675_v48 }
  0x48   : > { %7414 = vmatpush3.bf16.msra.mxu0 %v8679_v50 }
  0x49   : > { %7415 = vmatprep.subr.bf16.mxu0 %v8683_v53 }
  0x4b   : > { %1324 = vmatmul.mubr.bf16.gmra.mrb[8].mxu0 %v8674_v47  ;;  %v7312_v47 = vld [vmem:[%s12811_s30 + $0x10] sm:$0xff]  }
  0x4c   : > { %1331 = vmatprep.mubr.bf16.mxu0 %v8680_v51  ;;  %7416 = vmatpush3.bf16.msra.mxu0 %v8686_v55  ;;  %v7301_v53 = vunpack.c.l.bf16 %v7312_v47 }
  0x4d   : > { %1397 = vmatmul.mubr.bf16.gmra.mrb[8].mxu1 %v8677_v52  ;;  %7417 = vmatprep.subr.bf16.mxu0 %v8688_v56 }
  0x4e   : > { %1404 = vmatprep.mubr.bf16.mxu1 %v8684_v54 }
  0x50   : > { %7418 = vmatpush3.bf16.msra.mxu0 %v8689_v58  ;;  %v7302_v58 = vunpack.c.h.bf16 %v7312_v47 }
  0x51   : > { %7419 = vmatprep.subr.bf16.mxu0 %v8693_v60 }
  0x53   : > { %1332 = vmatmul.mubr.bf16.gmra.mrb[12].mxu0 %v8682_v57 }
  0x54   : > { %1339 = vmatprep.mubr.bf16.mxu0 %v8690_v59  ;;  %7420 = vmatpush3.bf16.msra.mxu0 %v8696_v63 }
  0x55   : > { %1405 = vmatmul.mubr.bf16.gmra.mrb[12].mxu1 %v8687_v61  ;;  %7421 = vmatprep.subr.bf16.mxu0 %v8698_v0 }
  0x56   : > { %1412 = vmatprep.mubr.bf16.mxu1 %v8694_v62 }
  0x58   : > { %7422 = vmatpush3.bf16.msra.mxu0 %v8699_v2  ;;  %v7313_v2 = vld [vmem:[%s12811_s30 + $0x18] sm:$0xff]  }
  0x5b   : > { %1340 = vmatmul.mubr.bf16.gmra.mrb[16].mxu0 %v8692_v1 }
  0x5c   : > { %1453 = vmatprep.mubr.bf16.mxu0 %v8702_v3 }
  0x5d   : > { %1413 = vmatmul.mubr.bf16.gmra.mrb[16].mxu1 %v8697_v4 }
  0x63   : > { %1454 = vmatmul.mubr.bf16.vlgmr.msra.gmra.mrb[20].mxu0 %v8700_v5 }
  0x64   : > { %1461 = vmatprep.mubr.bf16.mxu0 %v8703_v6 }
  0x6b   : > { %1462 = vmatmul.mubr.bf16.gmra.mrb[24].mxu0 %v8705_v7 }
  0x6c   : > { %1469 = vmatprep.mubr.bf16.mxu0 %v8706_v8  ;;  %v7305_v8 = vunpack.c.l.bf16 %v7313_v2 }
  0x73   : > { %1470 = vmatmul.mubr.bf16.gmra.mrb[28].mxu0 %v8708_v9 }
  0x74   : > { %1477 = vmatprep.mubr.bf16.mxu0 %v8709_v10 }
  0x7b   : > { %1478 = vmatmul.mubr.bf16.gmra.mrb[32].mxu0 %v8711_v11 }
  0x7c   : > { %1485 = vmatprep.mubr.bf16.mxu0 %v8712_v12 }
  0x83   : > { %1486 = vmatmul.mubr.bf16.gmra.mrb[36].mxu0 %v8714_v13  ;;  %v7306_v13 = vunpack.c.h.bf16 %v7313_v2 }
 0x10e   : > { %v7331_v15 = vpop.f32.mrb[0].mxu0 }
 0x10f   : > { %v7332_v17 = vpop.f32.mrb[1].mxu0 }
 0x110   : > { %v7333_v18 = vadd.f32 %v7332_v17, %v7331_v15  ;;  %v7334_v19 = vpop.f32.mrb[2].mxu0  ;;  %v7377_v21 = vpop.f32.mrb[0].mxu1 }
 0x111   : > { %v7335_v22 = vpop.f32.mrb[3].mxu0  ;;  %v7378_v25 = vpop.f32.mrb[1].mxu1 }
 0x112   : > { %v1310_v23 = vadd.f32 %v7333_v18, %v7293_v16  ;;  %v7336_v24 = vadd.f32 %v7335_v22, %v7334_v19  ;;  %v7379_v26 = vadd.f32 %v7378_v25, %v7377_v21  ;;  %v7380_v27 = vpop.f32.mrb[2].mxu1  ;;  %v7314_v21 = vld [vmem:[%s12811_s30 + $0x20] sm:$0xff]  }
 0x113   : > { %v7381_v30 = vpop.f32.mrb[3].mxu1 }
 0x114   : > { %v1313_v29 = vadd.f32 %v7336_v24, %v7294_v20  ;;  %v7382_v31 = vadd.f32 %v7381_v30, %v7380_v27  ;;  %v9597_v32 = vadd.f32 %v7379_v26, %v1310_v23  ;;  %v7309_v27 = vunpack.c.l.bf16 %v7314_v21 }
 0x116   : > { %v7337_v33 = vpop.f32.mrb[4].mxu0  ;;  %v9599_v36 = vadd.f32 %v7382_v31, %v1313_v29 }
 0x117   : > { %v7338_v35 = vpop.f32.mrb[5].mxu0 }
 0x118   : > { %v7339_v37 = vadd.f32 %v7338_v35, %v7337_v33  ;;  %v7340_v38 = vpop.f32.mrb[6].mxu0  ;;  %v7383_v40 = vpop.f32.mrb[4].mxu1  ;;  %v7310_v33 = vunpack.c.h.bf16 %v7314_v21 }
 0x119   : > { %v7341_v41 = vpop.f32.mrb[7].mxu0  ;;  %v7384_v44 = vpop.f32.mrb[5].mxu1 }
 0x11a   : > { %v1318_v42 = vadd.f32 %v7339_v37, %v7297_v34  ;;  %v7342_v43 = vadd.f32 %v7341_v41, %v7340_v38  ;;  %v7385_v45 = vadd.f32 %v7384_v44, %v7383_v40  ;;  %v7386_v46 = vpop.f32.mrb[6].mxu1 }
 0x11b   : > { %v7387_v49 = vpop.f32.mrb[7].mxu1 }
 0x11c   : > { %v1321_v48 = vadd.f32 %v7342_v43, %v7298_v39  ;;  %v7388_v50 = vadd.f32 %v7387_v49, %v7386_v46  ;;  %v9604_v51 = vadd.f32 %v7385_v45, %v1318_v42 }
 0x11e   : > { %v7343_v52 = vpop.f32.mrb[8].mxu0  ;;  %v9606_v55 = vadd.f32 %v7388_v50, %v1321_v48 }
 0x11f   : > { %v7344_v54 = vpop.f32.mrb[9].mxu0 }
 0x120   : > { %v7345_v56 = vadd.f32 %v7344_v54, %v7343_v52  ;;  %v7346_v57 = vpop.f32.mrb[10].mxu0  ;;  %v7389_v59 = vpop.f32.mrb[8].mxu1 }
 0x121   : > { %v7347_v60 = vpop.f32.mrb[11].mxu0  ;;  %v7390_v63 = vpop.f32.mrb[9].mxu1 }
 0x122   : > { %v1326_v61 = vadd.f32 %v7345_v56, %v7301_v53  ;;  %v7348_v62 = vadd.f32 %v7347_v60, %v7346_v57  ;;  %v7391_v0 = vadd.f32 %v7390_v63, %v7389_v59  ;;  %v7392_v1 = vpop.f32.mrb[10].mxu1 }
 0x123   : > { %v7393_v4 = vpop.f32.mrb[11].mxu1 }
 0x124   : > { %v1329_v3 = vadd.f32 %v7348_v62, %v7302_v58  ;;  %v7394_v5 = vadd.f32 %v7393_v4, %v7392_v1  ;;  %v9611_v6 = vadd.f32 %v7391_v0, %v1326_v61 }
 0x126   : > { %v7349_v7 = vpop.f32.mrb[12].mxu0  ;;  %v9613_v9 = vadd.f32 %v7394_v5, %v1329_v3 }
 0x127   : > { %v7350_v10 = vpop.f32.mrb[13].mxu0 }
 0x128   : > { %v7351_v11 = vadd.f32 %v7350_v10, %v7349_v7  ;;  %v7352_v12 = vpop.f32.mrb[14].mxu0  ;;  %v7395_v14 = vpop.f32.mrb[12].mxu1 }
 0x129   : > { %v7353_v15 = vpop.f32.mrb[15].mxu0  ;;  %v7396_v18 = vpop.f32.mrb[13].mxu1 }
 0x12a   : > { %v1334_v16 = vadd.f32 %v7351_v11, %v7305_v8  ;;  %v7354_v17 = vadd.f32 %v7353_v15, %v7352_v12  ;;  %v7397_v19 = vadd.f32 %v7396_v18, %v7395_v14  ;;  %v7398_v20 = vpop.f32.mrb[14].mxu1 }
 0x12b   : > { %v7399_v23 = vpop.f32.mrb[15].mxu1 }
 0x12c   : > { %v1337_v22 = vadd.f32 %v7354_v17, %v7306_v13  ;;  %v7400_v24 = vadd.f32 %v7399_v23, %v7398_v20  ;;  %v9618_v25 = vadd.f32 %v7397_v19, %v1334_v16 }
 0x12e   : > { %v7355_v26 = vpop.f32.mrb[16].mxu0  ;;  %v1410_v29 = vadd.f32 %v7400_v24, %v1337_v22 }
 0x12f   : > { %v7356_v28 = vpop.f32.mrb[17].mxu0 }
 0x130   : > { %v7357_v30 = vadd.f32 %v7356_v28, %v7355_v26  ;;  %v7358_v31 = vpop.f32.mrb[18].mxu0  ;;  %v7401_v34 = vpop.f32.mrb[16].mxu1 }
 0x131   : > { %v7359_v35 = vpop.f32.mrb[19].mxu0  ;;  %v7402_v39 = vpop.f32.mrb[17].mxu1 }
 0x132   : > { %v7360_v37 = vadd.f32 %v7359_v35, %v7358_v31  ;;  %v1342_v38 = vadd.f32 %v7357_v30, %v7309_v27  ;;  %v7403_v40 = vadd.f32 %v7402_v39, %v7401_v34  ;;  %v7404_v41 = vpop.f32.mrb[18].mxu1 }
 0x133   : > { %v7405_v43 = vpop.f32.mrb[19].mxu1 }
 0x134   : > { %v1345_v42 = vadd.f32 %v7360_v37, %v7310_v33  ;;  %v1415_v44 = vadd.f32 %v7403_v40, %v1342_v38  ;;  %v7406_v45 = vadd.f32 %v7405_v43, %v7404_v41 }
 0x136   : > { %v7423_v46 = vpop.f32.mrb[20].mxu0  ;;  %v1418_v47 = vadd.f32 %v7406_v45, %v1345_v42 }
 0x137   : > { %v7424_v48 = vpop.f32.mrb[21].mxu0 }
 0x138   : > { %v7425_v49 = vadd.f32 %v7424_v48, %v7423_v46  ;;  %v7426_v50 = vpop.f32.mrb[22].mxu0 }
 0x139   : > { %v7427_v52 = vpop.f32.mrb[23].mxu0 }
 0x13a   : > { %v7428_v53 = vadd.f32 %v7427_v52, %v7426_v50  ;;  %v1456_v54 = vadd.f32 %v7425_v49, %v9597_v32 }
 0x13c   : > { %v1497_v56 = vsel %vm1496_vm0, %v1456_v54, 0.0  ;;  %v1459_v57 = vadd.f32 %v7428_v53, %v9599_v36 }
 0x13d   : > { %1498 = vadd.xlane.f32.xlu0 %v1497_v56 }
 0x13e   : > { %v7429_v58 = vpop.f32.mrb[24].mxu0  ;;  %v1500_v62 = vsel %vm1496_vm0, %v1459_v57, 0.0 }
 0x13f   : > { %v7430_v59 = vpop.f32.mrb[25].mxu0 }
 0x140   : > { %v7431_v60 = vadd.f32 %v7430_v59, %v7429_v58  ;;  %v7432_v61 = vpop.f32.mrb[26].mxu0 }
 0x141   : > { %v7433_v63 = vpop.f32.mrb[27].mxu0  ;;  %1501 = vadd.xlane.f32.xlu0 %v1500_v62 }
 0x142   : > { %v7434_v0 = vadd.f32 %v7433_v63, %v7432_v61  ;;  %v1464_v1 = vadd.f32 %v7431_v60, %v9604_v51 }
 0x144   : > { %v1503_v2 = vsel %vm1496_vm0, %v1464_v1, 0.0  ;;  %v1467_v32 = vadd.f32 %v7434_v0, %v9606_v55 }
 0x145   : > { %1504 = vadd.xlane.f32.xlu1 %v1503_v2 }
 0x146   : > { %v7435_v3 = vpop.f32.mrb[28].mxu0  ;;  %v1506_v7 = vsel %vm1496_vm0, %v1467_v32, 0.0 }
 0x147   : > { %v7436_v4 = vpop.f32.mrb[29].mxu0 }
 0x148   : > { %v7437_v36 = vadd.f32 %v7436_v4, %v7435_v3  ;;  %v7438_v5 = vpop.f32.mrb[30].mxu0 }
 0x149   : > { %v7439_v8 = vpop.f32.mrb[31].mxu0  ;;  %1507 = vadd.xlane.f32.xlu1 %v1506_v7 }
 0x14a   : > { %v7440_v10 = vadd.f32 %v7439_v8, %v7438_v5  ;;  %v1472_v11 = vadd.f32 %v7437_v36, %v9611_v6 }
 0x14c   : > { %v1509_v12 = vsel %vm1496_vm0, %v1472_v11, 0.0  ;;  %v1475_v51 = vadd.f32 %v7440_v10, %v9613_v9 }
 0x14d   : > { %1510 = vadd.xlane.f32.xlu0 %v1509_v12 }
 0x14e   : > { %v7441_v13 = vpop.f32.mrb[32].mxu0  ;;  %v1512_v55 = vsel %vm1496_vm0, %v1475_v51, 0.0 }
 0x14f   : > { %v7442_v14 = vpop.f32.mrb[33].mxu0  ;;  %1513 = vadd.xlane.f32.xlu1 %v1512_v55 }
 0x150   : > { %v7443_v15 = vadd.f32 %v7442_v14, %v7441_v13  ;;  %v7444_v16 = vpop.f32.mrb[34].mxu0 }
 0x151   : > { %v7445_v17 = vpop.f32.mrb[35].mxu0 }
 0x152   : > { %v7446_v18 = vadd.f32 %v7445_v17, %v7444_v16  ;;  %v1480_v19 = vadd.f32 %v7443_v15, %v9618_v25 }
 0x154   : > { %v1515_v20 = vsel %vm1496_vm0, %v1480_v19, 0.0  ;;  %v1483_v21 = vadd.f32 %v7446_v18, %v1410_v29 }
 0x155   : > { %1516 = vadd.xlane.f32.xlu0 %v1515_v20 }
 0x156   : > { %v7447_v6 = vpop.f32.mrb[36].mxu0  ;;  %v1518_v22 = vsel %vm1496_vm0, %v1483_v21, 0.0 }
 0x157   : > { %v7448_v9 = vpop.f32.mrb[37].mxu0  ;;  %1519 = vadd.xlane.f32.xlu1 %v1518_v22 }
 0x158   : > { %v7449_v23 = vadd.f32 %v7448_v9, %v7447_v6  ;;  %v7450_v24 = vpop.f32.mrb[38].mxu0 }
 0x159   : > { %v7451_v26 = vpop.f32.mrb[39].mxu0 }
 0x15a   : > { %v7452_v27 = vadd.f32 %v7451_v26, %v7450_v24  ;;  %v1488_v28 = vadd.f32 %v7449_v23, %v1415_v44 }
 0x15c   : > { %v1521_v30 = vsel %vm1496_vm0, %v1488_v28, 0.0  ;;  %v1491_v31 = vadd.f32 %v7452_v27, %v1418_v47 }
 0x15d   : > { %1522 = vadd.xlane.f32.xlu0 %v1521_v30 }
 0x15e   : > { %v1524_v25 = vsel %vm1496_vm0, %v1491_v31, 0.0 }
 0x15f   : > { %1525 = vadd.xlane.f32.xlu1 %v1524_v25  ;;  %v9690_v25 = vld [vmem:[%s12812_s29] ss:$0 sm:$0xff]  ;;  %s12751_s29 = smov 56  }
 0x1ca   : > { %v1499_v33 = vpop.xlane.xlu0 %1498 }
 0x1cb   : > { %v1528_v29 = vmul.f32 0.03125, %v1499_v33 }
 0x1cd   : > { %v9637_v34 = vsub.f32 %v1456_v54, %v1528_v29 }
 0x1ce   : > { %v1502_v35 = vpop.xlane.xlu0 %1501 }
 0x1cf   : > { %v1529_v37 = vmul.f32 0.03125, %v1502_v35  ;;  %v1548_v38 = vmul.f32 %v9637_v34, %v9637_v34 }
 0x1d1   : > { %v9641_v39 = vsub.f32 %v1459_v57, %v1529_v37  ;;  %v1558_v40 = vsel %vm1496_vm0, %v1548_v38, 0.0  ;;  %v9696_v37 = vld [vmem:[%s12813_s23] ss:$0 sm:$0xff]  ;;  %s9273_s23 = smov 96  }
 0x1d2   : > { %v1505_v41 = vpop.xlane.xlu1 %1504  ;;  %1559 = vadd.xlane.f32.xlu0 %v1558_v40 }
 0x1d3   : > { %v1530_v42 = vmul.f32 0.03125, %v1505_v41  ;;  %v1549_v43 = vmul.f32 %v9641_v39, %v9641_v39 }
 0x1d5   : > { %v9646_v44 = vsub.f32 %v1464_v1, %v1530_v42  ;;  %v1561_v45 = vsel %vm1496_vm0, %v1549_v43, 0.0 }
 0x1d6   : > { %v1508_v46 = vpop.xlane.xlu1 %1507  ;;  %1562 = vadd.xlane.f32.xlu1 %v1561_v45 }
 0x1d7   : > { %v1531_v47 = vmul.f32 0.03125, %v1508_v46  ;;  %v1550_v48 = vmul.f32 %v9646_v44, %v9646_v44 }
 0x1d9   : > { %v9651_v49 = vsub.f32 %v1467_v32, %v1531_v47  ;;  %v1564_v50 = vsel %vm1496_vm0, %v1550_v48, 0.0 }
 0x1da   : > { %1565 = vadd.xlane.f32.xlu0 %v1564_v50  ;;  %v1511_v52 = vpop.xlane.xlu0 %1510 }
 0x1db   : > { %v1532_v53 = vmul.f32 0.03125, %v1511_v52  ;;  %v1551_v54 = vmul.f32 %v9651_v49, %v9651_v49 }
 0x1dc   : > { %v1514_v56 = vpop.xlane.xlu1 %1513 }
 0x1dd   : > { %v9656_v57 = vsub.f32 %v1472_v11, %v1532_v53  ;;  %v1533_v58 = vmul.f32 0.03125, %v1514_v56  ;;  %v1567_v59 = vsel %vm1496_vm0, %v1551_v54, 0.0 }
 0x1de   : > { %1568 = vadd.xlane.f32.xlu1 %v1567_v59 }
 0x1df   : > { %v9659_v60 = vsub.f32 %v1475_v51, %v1533_v58  ;;  %v1552_v61 = vmul.f32 %v9656_v57, %v9656_v57 }
 0x1e1   : > { %v1570_v62 = vsel %vm1496_vm0, %v1552_v61, 0.0  ;;  %v1553_v63 = vmul.f32 %v9659_v60, %v9659_v60 }
 0x1e2   : > { %1571 = vadd.xlane.f32.xlu0 %v1570_v62  ;;  %v1517_v0 = vpop.xlane.xlu0 %1516 }
 0x1e3   : > { %v1534_v1 = vmul.f32 0.03125, %v1517_v0  ;;  %v1573_v2 = vsel %vm1496_vm0, %v1553_v63, 0.0 }
 0x1e4   : > { %v1520_v32 = vpop.xlane.xlu1 %1519  ;;  %1574 = vadd.xlane.f32.xlu1 %v1573_v2 }
 0x1e5   : > { %v9667_v3 = vsub.f32 %v1480_v19, %v1534_v1  ;;  %v1535_v4 = vmul.f32 0.03125, %v1520_v32 }
 0x1e7   : > { %v9669_v36 = vsub.f32 %v1483_v21, %v1535_v4  ;;  %v1554_v5 = vmul.f32 %v9667_v3, %v9667_v3 }
 0x1e9   : > { %v1576_v7 = vsel %vm1496_vm0, %v1554_v5, 0.0  ;;  %v1555_v8 = vmul.f32 %v9669_v36, %v9669_v36 }
 0x1ea   : > { %1577 = vadd.xlane.f32.xlu0 %v1576_v7  ;;  %v1523_v10 = vpop.xlane.xlu0 %1522 }
 0x1eb   : > { %v1536_v11 = vmul.f32 0.03125, %v1523_v10  ;;  %v1579_v12 = vsel %vm1496_vm0, %v1555_v8, 0.0 }
 0x1ec   : > { %v1526_v51 = vpop.xlane.xlu1 %1525  ;;  %1580 = vadd.xlane.f32.xlu1 %v1579_v12 }
 0x1ed   : > { %v9677_v13 = vsub.f32 %v1488_v28, %v1536_v11  ;;  %v1537_v55 = vmul.f32 0.03125, %v1526_v51 }
 0x1ef   : > { %v9679_v14 = vsub.f32 %v1491_v31, %v1537_v55  ;;  %v1556_v15 = vmul.f32 %v9677_v13, %v9677_v13 }
 0x1f1   : > { %v1582_v16 = vsel %vm1496_vm0, %v1556_v15, 0.0  ;;  %v1557_v17 = vmul.f32 %v9679_v14, %v9679_v14 }
 0x1f2   : > { %1583 = vadd.xlane.f32.xlu0 %v1582_v16 }
 0x1f3   : > { %v1585_v18 = vsel %vm1496_vm0, %v1557_v17, 0.0 }
 0x1f4   : > { %1586 = vadd.xlane.f32.xlu1 %v1585_v18 }
 0x25f   : > { %v1560_v19 = vpop.xlane.xlu0 %1559 }
 0x260   : > { %v1588_v20 = vmul.f32 0.03125, %v1560_v19 }
 0x262   : > { %v1598_v21 = vadd.f32 1e-05, %v1588_v20 }
 0x263   : > { %v1563_v6 = vpop.xlane.xlu1 %1562 }
 0x264   : > { %8745 = vrsqrt.f32 %v1598_v21  ;;  %v1589_v22 = vmul.f32 0.03125, %v1563_v6 }
 0x266   : > { %v1599_v9 = vadd.f32 1e-05, %v1589_v22 }
 0x267   : > { %v1566_v23 = vpop.xlane.xlu0 %1565 }
 0x268   : > { %8747 = vrsqrt.f32 %v1599_v9  ;;  %v1590_v24 = vmul.f32 0.03125, %v1566_v23 }
 0x26a   : > { %v1600_v26 = vadd.f32 1e-05, %v1590_v24 }
 0x26b   : > { %v1569_v27 = vpop.xlane.xlu1 %1568 }
 0x26c   : > { %8749 = vrsqrt.f32 %v1600_v26  ;;  %v1591_v28 = vmul.f32 0.03125, %v1569_v27 }
 0x26e   : > { %v8746_v30 = vpop.eup %8745  ;;  %v1601_v31 = vadd.f32 1e-05, %v1591_v28 }
 0x26f   : > { %v1572_v33 = vpop.xlane.xlu0 %1571  ;;  %v1618_v29 = vmul.f32 %v8746_v30, %v9637_v34 }
 0x270   : > { %8751 = vrsqrt.f32 %v1601_v31  ;;  %v1592_v35 = vmul.f32 0.03125, %v1572_v33 }
 0x271   : > { %v1575_v38 = vpop.xlane.xlu1 %1574  ;;  %v1634_v40 = vmul.f32 %v9690_v25, %v1618_v29 }
 0x272   : > { %v8748_v41 = vpop.eup %8747  ;;  %v1602_v42 = vadd.f32 1e-05, %v1592_v35  ;;  %v1593_v43 = vmul.f32 0.03125, %v1575_v38 }
 0x273   : > { %v9700_v45 = vadd.f32 %v9696_v37, %v1634_v40  ;;  %v1619_v46 = vmul.f32 %v8748_v41, %v9641_v39 }
 0x274   : > { %8753 = vrsqrt.f32 %v1602_v42  ;;  %v1603_v34 = vadd.f32 1e-05, %v1593_v43  ;;  %v12755_v42 = vmov 0.0  }
 0x275   : > { %12814 = vst [vmem:[#allocation2_spill] sm:$0xff] %v9700_v45  ;;  %v1672_v47 = vsel %vm1496_vm0, %v9700_v45, 0.0  ;;  %v1635_v48 = vmul.f32 %v9690_v25, %v1619_v46  ;;  %7696 = vmatprep.subr.bf16.mxu1 %v12755_v42  ;;  %7720 = vmatprep.subr.bf16.mxu0 %v12755_v42 }
 0x276   : > { %v8750_v50 = vpop.eup %8749  ;;  %8755 = vrsqrt.f32 %v1603_v34  ;;  %1673 = vadd.xlane.f32.xlu0 %v1672_v47  ;;  %7700 = vmatprep.mubr.msk.bf16.mxu1 %vm9272_vm1, %v12755_v42 }
 0x277   : > { %v1578_v52 = vpop.xlane.xlu0 %1577  ;;  %v9707_v53 = vadd.f32 %v9696_v37, %v1635_v48  ;;  %v1620_v54 = vmul.f32 %v8750_v50, %v9646_v44  ;;  %7730 = vmatprep.mubr.msk.bf16.mxu0 %vm9272_vm1, %v12755_v42 }
 0x278   : > { %v1594_v56 = vmul.f32 0.03125, %v1578_v52 }
 0x279   : > { %12815 = vst [vmem:[#allocation3_spill] sm:$0xff] %v9707_v53  ;;  %v1581_v58 = vpop.xlane.xlu1 %1580  ;;  %v1675_v39 = vsel %vm1496_vm0, %v9707_v53, 0.0  ;;  %v1636_v59 = vmul.f32 %v9690_v25, %v1620_v54 }
 0x27a   : > { %v8752_v61 = vpop.eup %8751  ;;  %v1604_v62 = vadd.f32 1e-05, %v1594_v56  ;;  %v1595_v63 = vmul.f32 0.03125, %v1581_v58  ;;  %1676 = vadd.xlane.f32.xlu1 %v1675_v39 }
 0x27b   : > { %v9714_v0 = vadd.f32 %v9696_v37, %v1636_v59  ;;  %v1621_v1 = vmul.f32 %v8752_v61, %v9651_v49 }
 0x27c   : > { %8757 = vrsqrt.f32 %v1604_v62  ;;  %v1605_v2 = vadd.f32 1e-05, %v1595_v63 }
 0x27d   : > { %12816 = vst [vmem:[#allocation4_spill] sm:$0xff] %v9714_v0  ;;  %v1678_v44 = vsel %vm1496_vm0, %v9714_v0, 0.0  ;;  %v1637_v32 = vmul.f32 %v9690_v25, %v1621_v1 }
 0x27e   : > { %v8754_v4 = vpop.eup %8753  ;;  %8759 = vrsqrt.f32 %v1605_v2  ;;  %1679 = vadd.xlane.f32.xlu0 %v1678_v44 }
 0x27f   : > { %v1584_v5 = vpop.xlane.xlu0 %1583  ;;  %v9721_v7 = vadd.f32 %v9696_v37, %v1637_v32  ;;  %v1622_v8 = vmul.f32 %v8754_v4, %v9656_v57 }
 0x280   : > { %v8756_v10 = vpop.eup %8755  ;;  %v1596_v11 = vmul.f32 0.03125, %v1584_v5 }
 0x281   : > { %12817 = vst [vmem:[#allocation5_spill] sm:$0xff] %v9721_v7  ;;  %v1587_v12 = vpop.xlane.xlu1 %1586  ;;  %v1681_v49 = vsel %vm1496_vm0, %v9721_v7, 0.0  ;;  %v1638_v51 = vmul.f32 %v9690_v25, %v1622_v8  ;;  %v1623_v55 = vmul.f32 %v8756_v10, %v9659_v60 }
 0x282   : > { %v1606_v15 = vadd.f32 1e-05, %v1596_v11  ;;  %v1597_v16 = vmul.f32 0.03125, %v1587_v12  ;;  %1682 = vadd.xlane.f32.xlu1 %v1681_v49 }
 0x283   : > { %v9729_v17 = vadd.f32 %v9696_v37, %v1638_v51  ;;  %v1639_v18 = vmul.f32 %v9690_v25, %v1623_v55 }
 0x284   : > { %8761 = vrsqrt.f32 %v1606_v15  ;;  %v1607_v57 = vadd.f32 1e-05, %v1597_v16 }
 0x285   : > { %12818 = vst [vmem:[#allocation6_spill] sm:$0xff] %v9729_v17  ;;  %v1684_v19 = vsel %vm1496_vm0, %v9729_v17, 0.0  ;;  %v9735_v20 = vadd.f32 %v9696_v37, %v1639_v18 }
 0x286   : > { %v8758_v21 = vpop.eup %8757  ;;  %8763 = vrsqrt.f32 %v1607_v57  ;;  %1685 = vadd.xlane.f32.xlu0 %v1684_v19 }
 0x287   : > { %12819 = vst [vmem:[#allocation7_spill] sm:$0xff] %v9735_v20  ;;  %v1687_v60 = vsel %vm1496_vm0, %v9735_v20, 0.0  ;;  %v1624_v6 = vmul.f32 %v8758_v21, %v9667_v3 }
 0x288   : > { %v8760_v22 = vpop.eup %8759  ;;  %1688 = vadd.xlane.f32.xlu1 %v1687_v60 }
 0x289   : > { %v1640_v9 = vmul.f32 %v9690_v25, %v1624_v6  ;;  %v1625_v23 = vmul.f32 %v8760_v22, %v9669_v36 }
 0x28b   : > { %v9743_v24 = vadd.f32 %v9696_v37, %v1640_v9  ;;  %v1641_v26 = vmul.f32 %v9690_v25, %v1625_v23 }
 0x28d   : > { %12820 = vst [vmem:[#allocation8_spill] sm:$0xff] %v9743_v24  ;;  %v1690_v27 = vsel %vm1496_vm0, %v9743_v24, 0.0  ;;  %v9749_v28 = vadd.f32 %v9696_v37, %v1641_v26 }
 0x28e   : > { %v8762_v30 = vpop.eup %8761  ;;  %1691 = vadd.xlane.f32.xlu0 %v1690_v27 }
 0x28f   : > { %12821 = vst [vmem:[#allocation9_spill] sm:$0xff] %v9749_v28  ;;  %v1693_v3 = vsel %vm1496_vm0, %v9749_v28, 0.0  ;;  %v1626_v31 = vmul.f32 %v8762_v30, %v9677_v13 }
 0x290   : > { %v8764_v33 = vpop.eup %8763  ;;  %1694 = vadd.xlane.f32.xlu1 %v1693_v3 }
 0x291   : > { %v1642_v36 = vmul.f32 %v9690_v25, %v1626_v31  ;;  %v1627_v29 = vmul.f32 %v8764_v33, %v9679_v14  ;;  %v8715_v14 = vld [vmem:[%s12730_s9] sm:$0xff]  }
 0x292   : > { %7697 = vmatpush3.bf16.msra.mxu1 %v8715_v14 }
 0x293   : > { %v9757_v35 = vadd.f32 %v9696_v37, %v1642_v36  ;;  %v1643_v38 = vmul.f32 %v9690_v25, %v1627_v29  ;;  %7698 = vmatprep.subr.bf16.mxu1 %v12755_v42 }
 0x295   : > { %12822 = vst [vmem:[#allocation10_spill] sm:$0xff] %v9757_v35  ;;  %v1696_v40 = vsel %vm1496_vm0, %v9757_v35, 0.0  ;;  %v9763_v41 = vadd.f32 %v9696_v37, %v1643_v38 }
 0x296   : > { %1697 = vadd.xlane.f32.xlu0 %v1696_v40  ;;  %v8716_v40 = vld [vmem:[%s12730_s9 + $0x8] sm:$0xff]  }
 0x297   : > { %12823 = vst [vmem:[#allocation11_spill] sm:$0xff] %v9763_v41  ;;  %v1699_v13 = vsel %vm1496_vm0, %v9763_v41, 0.0  ;;  %7699 = vmatpush3.bf16.msra.mxu1 %v8716_v40 }
 0x298   : > { %1700 = vadd.xlane.f32.xlu1 %v1699_v13  ;;  %7750 = vmatprep.subr.bf16.mxu1 %v12755_v42 }
 0x303   : > { %v1674_v25 = vpop.xlane.xlu0 %1673 }
 0x304   : > { %v1702_v37 = vmul.f32 0.03125, %v1674_v25 }
 0x306   : > { %v9774_v43 = vsub.f32 %v9700_v45, %v1702_v37 }
 0x307   : > { %v1677_v46 = vpop.xlane.xlu1 %1676 }
 0x308   : > { %v1703_v34 = vmul.f32 0.03125, %v1677_v46  ;;  %v1722_v47 = vmul.f32 %v9774_v43, %v9774_v43 }
 0x30a   : > { %v9779_v48 = vsub.f32 %v9707_v53, %v1703_v34  ;;  %v1732_v50 = vsel %vm1496_vm0, %v1722_v47, 0.0 }
 0x30b   : > { %1733 = vadd.xlane.f32.xlu0 %v1732_v50  ;;  %v1680_v52 = vpop.xlane.xlu0 %1679 }
 0x30c   : > { %v1704_v54 = vmul.f32 0.03125, %v1680_v52  ;;  %v1723_v56 = vmul.f32 %v9779_v48, %v9779_v48 }
 0x30e   : > { %v9785_v58 = vsub.f32 %v9714_v0, %v1704_v54  ;;  %v1735_v39 = vsel %vm1496_vm0, %v1723_v56, 0.0 }
 0x30f   : > { %1736 = vadd.xlane.f32.xlu1 %v1735_v39  ;;  %v1683_v59 = vpop.xlane.xlu1 %1682 }
 0x310   : > { %v1705_v61 = vmul.f32 0.03125, %v1683_v59  ;;  %v1724_v62 = vmul.f32 %v9785_v58, %v9785_v58 }
 0x312   : > { %v9791_v63 = vsub.f32 %v9721_v7, %v1705_v61  ;;  %v1738_v1 = vsel %vm1496_vm0, %v1724_v62, 0.0 }
 0x313   : > { %1739 = vadd.xlane.f32.xlu0 %v1738_v1  ;;  %v1686_v2 = vpop.xlane.xlu0 %1685  ;;  %v9845_v1 = vld [vmem:[%s12728_s7] ss:$0 sm:$0xff] }
 0x314   : > { %v1706_v44 = vmul.f32 0.03125, %v1686_v2  ;;  %v1725_v32 = vmul.f32 %v9791_v63, %v9791_v63 }
 0x315   : > { %v1689_v4 = vpop.xlane.xlu1 %1688 }
 0x316   : > { %v9797_v5 = vsub.f32 %v9729_v17, %v1706_v44  ;;  %v1707_v8 = vmul.f32 0.03125, %v1689_v4  ;;  %v1741_v10 = vsel %vm1496_vm0, %v1725_v32, 0.0 }
 0x317   : > { %1742 = vadd.xlane.f32.xlu1 %v1741_v10 }
 0x318   : > { %v9801_v11 = vsub.f32 %v9735_v20, %v1707_v8  ;;  %v1726_v12 = vmul.f32 %v9797_v5, %v9797_v5 }
 0x31a   : > { %v1744_v49 = vsel %vm1496_vm0, %v1726_v12, 0.0  ;;  %v1727_v51 = vmul.f32 %v9801_v11, %v9801_v11 }
 0x31b   : > { %1745 = vadd.xlane.f32.xlu0 %v1744_v49  ;;  %v1692_v55 = vpop.xlane.xlu0 %1691 }
 0x31c   : > { %v1708_v15 = vmul.f32 0.03125, %v1692_v55  ;;  %v1747_v16 = vsel %vm1496_vm0, %v1727_v51, 0.0 }
 0x31d   : > { %1748 = vadd.xlane.f32.xlu1 %v1747_v16  ;;  %v1695_v18 = vpop.xlane.xlu1 %1694 }
 0x31e   : > { %v9810_v57 = vsub.f32 %v9743_v24, %v1708_v15  ;;  %v1709_v19 = vmul.f32 0.03125, %v1695_v18 }
 0x320   : > { %v9813_v21 = vsub.f32 %v9749_v28, %v1709_v19  ;;  %v1728_v60 = vmul.f32 %v9810_v57, %v9810_v57 }
 0x322   : > { %v1750_v6 = vsel %vm1496_vm0, %v1728_v60, 0.0  ;;  %v1729_v22 = vmul.f32 %v9813_v21, %v9813_v21 }
 0x323   : > { %1751 = vadd.xlane.f32.xlu0 %v1750_v6  ;;  %v1698_v9 = vpop.xlane.xlu0 %1697 }
 0x324   : > { %v1710_v23 = vmul.f32 0.03125, %v1698_v9  ;;  %v1753_v26 = vsel %vm1496_vm0, %v1729_v22, 0.0 }
 0x325   : > { %1754 = vadd.xlane.f32.xlu1 %v1753_v26  ;;  %v1701_v27 = vpop.xlane.xlu1 %1700 }
 0x326   : > { %v9822_v30 = vsub.f32 %v9757_v35, %v1710_v23  ;;  %v1711_v3 = vmul.f32 0.03125, %v1701_v27 }
 0x328   : > { %v9825_v31 = vsub.f32 %v9763_v41, %v1711_v3  ;;  %v1730_v33 = vmul.f32 %v9822_v30, %v9822_v30 }
 0x32a   : > { %v1756_v36 = vsel %vm1496_vm0, %v1730_v33, 0.0  ;;  %v1731_v29 = vmul.f32 %v9825_v31, %v9825_v31 }
 0x32b   : > { %1757 = vadd.xlane.f32.xlu0 %v1756_v36 }
 0x32c   : > { %v1759_v38 = vsel %vm1496_vm0, %v1731_v29, 0.0 }
 0x32d   : > { %1760 = vadd.xlane.f32.xlu1 %v1759_v38 }
 0x398   : > { %v1734_v13 = vpop.xlane.xlu0 %1733 }
 0x399   : > { %v1762_v14 = vmul.f32 0.03125, %v1734_v13 }
 0x39b   : > { %v1772_v25 = vadd.f32 1e-05, %v1762_v14 }
 0x39c   : > { %v1737_v37 = vpop.xlane.xlu1 %1736 }
 0x39d   : > { %8765 = vrsqrt.f32 %v1772_v25  ;;  %v1763_v46 = vmul.f32 0.03125, %v1737_v37 }
 0x39f   : > { %v1773_v34 = vadd.f32 1e-05, %v1763_v46 }
 0x3a0   : > { %v1740_v47 = vpop.xlane.xlu0 %1739 }
 0x3a1   : > { %8767 = vrsqrt.f32 %v1773_v34  ;;  %v1764_v50 = vmul.f32 0.03125, %v1740_v47 }
 0x3a3   : > { %v1774_v52 = vadd.f32 1e-05, %v1764_v50 }
 0x3a4   : > { %v1743_v54 = vpop.xlane.xlu1 %1742 }
 0x3a5   : > { %8769 = vrsqrt.f32 %v1774_v52  ;;  %v1765_v56 = vmul.f32 0.03125, %v1743_v54 }
 0x3a7   : > { %v8766_v39 = vpop.eup %8765  ;;  %v1775_v59 = vadd.f32 1e-05, %v1765_v56 }
 0x3a8   : > { %v1792_v61 = vmul.f32 %v8766_v39, %v9774_v43  ;;  %v1746_v62 = vpop.xlane.xlu0 %1745  ;;  %v9852_v43 = vld [vmem:[%s12729_s8] ss:$0 sm:$0xff] }
 0x3a9   : > { %8771 = vrsqrt.f32 %v1775_v59  ;;  %v1766_v2 = vmul.f32 0.03125, %v1746_v62 }
 0x3aa   : > { %v1749_v44 = vpop.xlane.xlu1 %1748  ;;  %v1808_v10 = vmul.f32 %v9845_v1, %v1792_v61 }
 0x3ab   : > { %v8768_v32 = vpop.eup %8767  ;;  %v1776_v4 = vadd.f32 1e-05, %v1766_v2  ;;  %v1767_v8 = vmul.f32 0.03125, %v1749_v44 }
 0x3ac   : > { %v1793_v12 = vmul.f32 %v8768_v32, %v9779_v48  ;;  %v1824_v15 = vadd.f32 %v9852_v43, %v1808_v10 }
 0x3ad   : > { %8773 = vrsqrt.f32 %v1776_v4  ;;  %v1777_v49 = vadd.f32 1e-05, %v1767_v8 }
 0x3ae   : > { %v1809_v51 = vmul.f32 %v9845_v1, %v1793_v12 }
 0x3af   : > { %v8770_v55 = vpop.eup %8769  ;;  %8775 = vrsqrt.f32 %v1777_v49 }
 0x3b0   : > { %v1825_v16 = vadd.f32 %v9852_v43, %v1809_v51  ;;  %v1752_v18 = vpop.xlane.xlu0 %1751  ;;  %v1794_v19 = vmul.f32 %v8770_v55, %v9785_v58 }
 0x3b1   : > { %v1768_v60 = vmul.f32 0.03125, %v1752_v18 }
 0x3b2   : > { %v1755_v48 = vpop.xlane.xlu1 %1754  ;;  %v1839_v6 = vpack.c.bf16 %v1825_v16, %v1824_v15  ;;  %v1810_v27 = vmul.f32 %v9845_v1, %v1794_v19 }
 0x3b3   : > { %v8772_v22 = vpop.eup %8771  ;;  %v1778_v9 = vadd.f32 1e-05, %v1768_v60  ;;  %v1769_v23 = vmul.f32 0.03125, %v1755_v48 }
 0x3b4   : > { %7701 = vmatmul.mubr.msk.bf16.vlgmr.msra.gmra.mrb[20].mxu1 %vm1496_vm0, %v1839_v6  ;;  %v1795_v26 = vmul.f32 %v8772_v22, %v9791_v63  ;;  %v1826_v29 = vadd.f32 %v9852_v43, %v1810_v27 }
 0x3b5   : > { %8777 = vrsqrt.f32 %v1778_v9  ;;  %v1779_v3 = vadd.f32 1e-05, %v1769_v23  ;;  %7704 = vmatprep.mubr.msk.bf16.mxu1 %vm9272_vm1, %v12755_v42 }
 0x3b6   : > { %v1811_v33 = vmul.f32 %v9845_v1, %v1795_v26 }
 0x3b7   : > { %v8774_v58 = vpop.eup %8773  ;;  %8779 = vrsqrt.f32 %v1779_v3 }
 0x3b8   : > { %v1758_v36 = vpop.xlane.xlu0 %1757  ;;  %v1827_v38 = vadd.f32 %v9852_v43, %v1811_v33  ;;  %v1796_v40 = vmul.f32 %v8774_v58, %v9797_v5 }
 0x3b9   : > { %v8776_v13 = vpop.eup %8775  ;;  %v1770_v63 = vmul.f32 0.03125, %v1758_v36 }
 0x3ba   : > { %v1761_v14 = vpop.xlane.xlu1 %1760  ;;  %v1840_v25 = vpack.c.bf16 %v1827_v38, %v1826_v29  ;;  %v1797_v37 = vmul.f32 %v8776_v13, %v9801_v11  ;;  %v1812_v47 = vmul.f32 %v9845_v1, %v1796_v40 }
 0x3bb   : > { %v1780_v46 = vadd.f32 1e-05, %v1770_v63  ;;  %v1771_v34 = vmul.f32 0.03125, %v1761_v14 }
 0x3bc   : > { %7705 = vmatmul.mubr.msk.bf16.gmra.mrb[24].mxu1 %vm1496_vm0, %v1840_v25  ;;  %v1813_v50 = vmul.f32 %v9845_v1, %v1797_v37  ;;  %v1828_v56 = vadd.f32 %v9852_v43, %v1812_v47 }
 0x3bd   : > { %8781 = vrsqrt.f32 %v1780_v46  ;;  %v1781_v52 = vadd.f32 1e-05, %v1771_v34  ;;  %7708 = vmatprep.mubr.msk.bf16.mxu1 %vm9272_vm1, %v12755_v42 }
 0x3be   : > { %v1829_v5 = vadd.f32 %v9852_v43, %v1813_v50 }
 0x3bf   : > { %v8778_v54 = vpop.eup %8777  ;;  %8783 = vrsqrt.f32 %v1781_v52 }
 0x3c0   : > { %v1798_v11 = vmul.f32 %v8778_v54, %v9810_v57  ;;  %v1841_v59 = vpack.c.bf16 %v1829_v5, %v1828_v56 }
 0x3c1   : > { %v8780_v39 = vpop.eup %8779 }
 0x3c2   : > { %v1799_v61 = vmul.f32 %v8780_v39, %v9813_v21  ;;  %v1814_v62 = vmul.f32 %v9845_v1, %v1798_v11 }
 0x3c4   : > { %7709 = vmatmul.mubr.msk.bf16.gmra.mrb[28].mxu1 %vm1496_vm0, %v1841_v59  ;;  %v1815_v2 = vmul.f32 %v9845_v1, %v1799_v61  ;;  %v1830_v4 = vadd.f32 %v9852_v43, %v1814_v62 }
 0x3c5   : > { %7712 = vmatprep.mubr.msk.bf16.mxu1 %vm9272_vm1, %v12755_v42 }
 0x3c6   : > { %v1831_v44 = vadd.f32 %v9852_v43, %v1815_v2 }
 0x3c7   : > { %v8782_v32 = vpop.eup %8781 }
 0x3c8   : > { %v1800_v57 = vmul.f32 %v8782_v32, %v9822_v30  ;;  %v1842_v10 = vpack.c.bf16 %v1831_v44, %v1830_v4  ;;  %v7074_v30 = vld [vmem:[%s12731_s10] ss:$0 sm:$0xff] }
 0x3c9   : > { %v8784_v8 = vpop.eup %8783 }
 0x3ca   : > { %v1801_v21 = vmul.f32 %v8784_v8, %v9825_v31  ;;  %v1816_v12 = vmul.f32 %v9845_v1, %v1800_v57 }
 0x3cc   : > { %7713 = vmatmul.mubr.msk.bf16.gmra.mrb[32].mxu1 %vm1496_vm0, %v1842_v10  ;;  %v1817_v49 = vmul.f32 %v9845_v1, %v1801_v21  ;;  %v1832_v55 = vadd.f32 %v9852_v43, %v1816_v12 }
 0x3cd   : > { %7716 = vmatprep.mubr.msk.bf16.mxu1 %vm9272_vm1, %v12755_v42 }
 0x3ce   : > { %v1833_v51 = vadd.f32 %v9852_v43, %v1817_v49 }
 0x3d0   : > { %v1843_v15 = vpack.c.bf16 %v1833_v51, %v1832_v55 }
 0x3d4   : > { %7717 = vmatmul.mubr.msk.bf16.gmra.mrb[36].mxu1 %vm1496_vm0, %v1843_v15 }
 0x3d5   : > { %7760 = vmatprep.mubr.msk.bf16.mxu1 %vm9272_vm1, %v12755_v42 }
 0x487   : > { %v1911_v31 = vpop.f32.mrb[20].mxu1 }
 0x488   : > { %v7702_v16 = vpop.f32.mrb[21].mxu1  ;;  %v1912_v18 = vadd.f32 %v7074_v30, %v1911_v31 }
 0x489   : > { %v1914_v1 = vpop.f32.mrb[22].mxu1 }
 0x48a   : > { %v1915_v19 = vadd.f32 %v7074_v30, %v1914_v1  ;;  %v7703_v60 = vpop.f32.mrb[23].mxu1 }
 0x48c   : > { %v9899_v48 = vpack.c.bf16 %v1915_v19, %v1912_v18 }
 0x48e   : > { %1960 = vrot.lane.b32.xlu0 %v9899_v48, %s9273_s23 }
 0x48f   : > { %v1919_v43 = vpop.f32.mrb[24].mxu1 }
 0x490   : > { %v7706_v6 = vpop.f32.mrb[25].mxu1  ;;  %v1920_v9 = vadd.f32 %v7074_v30, %v1919_v43 }
 0x491   : > { %v1922_v22 = vpop.f32.mrb[26].mxu1 }
 0x492   : > { %v1923_v23 = vadd.f32 %v7074_v30, %v1922_v22  ;;  %v7707_v26 = vpop.f32.mrb[27].mxu1 }
 0x494   : > { %v9903_v27 = vpack.c.bf16 %v1923_v23, %v1920_v9 }
 0x496   : > { %1962 = vrot.lane.b32.xlu1 %v9903_v27, %s9273_s23 }
 0x497   : > { %v1927_v3 = vpop.f32.mrb[28].mxu1 }
 0x498   : > { %v7710_v33 = vpop.f32.mrb[29].mxu1  ;;  %v1928_v36 = vadd.f32 %v7074_v30, %v1927_v3 }
 0x499   : > { %v1930_v58 = vpop.f32.mrb[30].mxu1 }
 0x49a   : > { %v1931_v29 = vadd.f32 %v7074_v30, %v1930_v58  ;;  %v7711_v38 = vpop.f32.mrb[31].mxu1 }
 0x49c   : > { %v9907_v40 = vpack.c.bf16 %v1931_v29, %v1928_v36 }
 0x49e   : > { %1964 = vrot.lane.b32.xlu1 %v9907_v40, %s9273_s23 }
 0x49f   : > { %v1935_v13 = vpop.f32.mrb[32].mxu1 }
 0x4a0   : > { %v7714_v63 = vpop.f32.mrb[33].mxu1  ;;  %v1936_v25 = vadd.f32 %v7074_v30, %v1935_v13 }
 0x4a1   : > { %v1938_v14 = vpop.f32.mrb[34].mxu1 }
 0x4a2   : > { %v1939_v37 = vadd.f32 %v7074_v30, %v1938_v14  ;;  %v7715_v46 = vpop.f32.mrb[35].mxu1 }
 0x4a4   : > { %v9911_v34 = vpack.c.bf16 %v1939_v37, %v1936_v25 }
 0x4a6   : > { %1966 = vrot.lane.b32.xlu1 %v9911_v34, %s9273_s23 }
 0x4a7   : > { %v1943_v47 = vpop.f32.mrb[36].mxu1 }
 0x4a8   : > { %v7718_v50 = vpop.f32.mrb[37].mxu1  ;;  %v1944_v5 = vadd.f32 %v7074_v30, %v1943_v47 }
 0x4a9   : > { %v1946_v52 = vpop.f32.mrb[38].mxu1 }
 0x4aa   : > { %v1947_v54 = vadd.f32 %v7074_v30, %v1946_v52  ;;  %2323 = vrot.lane.b32.xlu1 %v9899_v48, %s9274_s1  ;;  %v7719_v56 = vpop.f32.mrb[39].mxu1 }
 0x4ac   : > { %v9917_v11 = vpack.c.bf16 %v1947_v54, %v1944_v5 }
 0x4ae   : > { %2327 = vrot.lane.b32.xlu1 %v9907_v40, %s9274_s1  ;;  %1968 = vrot.lane.b32.xlu0 %v9917_v11, %s9273_s23 }
 0x4b2   : > { %2331 = vrot.lane.b32.xlu1 %v9917_v11, %s9274_s1  ;;  %2325 = vrot.lane.b32.xlu0 %v9903_v27, %s9274_s1 }
 0x4b6   : > { %2684 = vrot.lane.b32.xlu1 %v9899_v48, %s9275_s6  ;;  %2329 = vrot.lane.b32.xlu0 %v9911_v34, %s9274_s1 }
 0x4ba   : > { %2686 = vrot.lane.b32.xlu1 %v9903_v27, %s9275_s6  ;;  %2313 = vrot.lane.b32.xlu0 %v9899_v48, %s9276_s25 }
 0x4be   : > { %2688 = vrot.lane.b32.xlu1 %v9907_v40, %s9275_s6  ;;  %2315 = vrot.lane.b32.xlu0 %v9903_v27, %s9276_s25 }
 0x4c2   : > { %2690 = vrot.lane.b32.xlu1 %v9911_v34, %s9275_s6  ;;  %2317 = vrot.lane.b32.xlu0 %v9907_v40, %s9276_s25 }
 0x4c6   : > { %2692 = vrot.lane.b32.xlu1 %v9917_v11, %s9275_s6  ;;  %2319 = vrot.lane.b32.xlu0 %v9911_v34, %s9276_s25 }
 0x4ca   : > { %3045 = vrot.lane.b32.xlu1 %v9899_v48, %s12784_s26  ;;  %2321 = vrot.lane.b32.xlu0 %v9917_v11, %s9276_s25 }
 0x4ce   : > { %3047 = vrot.lane.b32.xlu1 %v9903_v27, %s12784_s26  ;;  %2674 = vrot.lane.b32.xlu0 %v9899_v48, %s12782_s2 }
 0x4d2   : > { %3049 = vrot.lane.b32.xlu1 %v9907_v40, %s12784_s26  ;;  %2676 = vrot.lane.b32.xlu0 %v9903_v27, %s12782_s2 }
 0x4d6   : > { %3051 = vrot.lane.b32.xlu1 %v9911_v34, %s12784_s26  ;;  %2678 = vrot.lane.b32.xlu0 %v9907_v40, %s12782_s2 }
 0x4da   : > { %3053 = vrot.lane.b32.xlu1 %v9917_v11, %s12784_s26  ;;  %2680 = vrot.lane.b32.xlu0 %v9911_v34, %s12782_s2 }
 0x4de   : > { %3037 = vrot.lane.b32.xlu1 %v9903_v27, %s12774_s5  ;;  %2682 = vrot.lane.b32.xlu0 %v9917_v11, %s12782_s2  ;;  %s12878_s2 = smov 40  }
 0x4e2   : > { %3041 = vrot.lane.b32.xlu1 %v9911_v34, %s12774_s5  ;;  %3035 = vrot.lane.b32.xlu0 %v9899_v48, %s12774_s5 }
 0x4e6   : > { %2210 = vrot.lane.b32.xlu1 %v9899_v48, %s12753_s27  ;;  %3039 = vrot.lane.b32.xlu0 %v9907_v40, %s12774_s5 }
 0x4ea   : > { %2214 = vrot.lane.b32.xlu1 %v9907_v40, %s12753_s27  ;;  %3043 = vrot.lane.b32.xlu0 %v9917_v11, %s12774_s5  ;;  %s12776_s5 = smov 24  }
 0x4ee   : > { %2573 = vrot.lane.b32.xlu1 %v9903_v27, %s12751_s29  ;;  %2212 = vrot.lane.b32.xlu0 %v9903_v27, %s12753_s27 }
 0x4f2   : > { %2575 = vrot.lane.b32.xlu1 %v9907_v40, %s12751_s29  ;;  %2216 = vrot.lane.b32.xlu0 %v9911_v34, %s12753_s27 }
 0x4f6   : > { %2936 = vrot.lane.b32.xlu1 %v9907_v40, %s12749_s0  ;;  %2571 = vrot.lane.b32.xlu0 %v9899_v48, %s12751_s29 }
 0x4fa   : > { %2938 = vrot.lane.b32.xlu1 %v9911_v34, %s12749_s0  ;;  %2577 = vrot.lane.b32.xlu0 %v9911_v34, %s12751_s29 }
 0x4fe   : > { %2218 = vrot.lane.b32.xlu1 %v9917_v11, %s12753_s27  ;;  %2932 = vrot.lane.b32.xlu0 %v9899_v48, %s12749_s0  ;;  %s12780_s27 = smov 8  }
 0x500   : > { %v1961_v39 = vpop.permute.xlu0 %1960 }
 0x501   : > { %v1987_v59 = vsel %vm1970_vm2, %v1961_v39, 0 }
 0x502   : > { %2579 = vrot.lane.b32.xlu1 %v9917_v11, %s12751_s29  ;;  %2934 = vrot.lane.b32.xlu0 %v9903_v27, %s12749_s0  ;;  %s12778_s29 = smov 16  }
 0x503   : > { %7721 = vmatpush3.bf16.xpose.msra.mxu0 %v1987_v59 }
 0x504   : > { %7722 = vmatprep.subr.bf16.mxu0 %v12755_v42 }
 0x506   : > { %2940 = vrot.lane.b32.xlu0 %v9917_v11, %s12749_s0  ;;  %s12826_s0 = sld [smem:[#allocation25_spill]] }
 0x508   : > { %v1963_v61 = vpop.permute.xlu1 %1962 }
 0x509   : > { %v1990_v62 = vsel %vm1970_vm2, %v1963_v61, 0 }
 0x50b   : > { %7723 = vmatpush3.bf16.xpose.msra.mxu0 %v1990_v62 }
 0x50c   : > { %7724 = vmatprep.subr.bf16.mxu0 %v12755_v42 }
 0x510   : > { %v1965_v2 = vpop.permute.xlu1 %1964 }
 0x511   : > { %v1993_v44 = vsel %vm1970_vm2, %v1965_v2, 0 }
 0x513   : > { %7725 = vmatpush3.bf16.xpose.msra.mxu0 %v1993_v44 }
 0x514   : > { %7726 = vmatprep.subr.bf16.mxu0 %v12755_v42 }
 0x518   : > { %v1967_v32 = vpop.permute.xlu1 %1966 }
 0x519   : > { %v1996_v4 = vsel %vm1970_vm2, %v1967_v32, 0 }
 0x51b   : > { %7727 = vmatpush3.bf16.xpose.msra.mxu0 %v1996_v4 }
 0x51c   : > { %v2324_v57 = vpop.permute.xlu1 %2323  ;;  %7728 = vmatprep.subr.bf16.mxu0 %v12755_v42 }
 0x51d   : > { %v2349_v15 = vsel %vm1970_vm2, %v2324_v57, 0 }
 0x520   : > { %v2328_v8 = vpop.permute.xlu1 %2327  ;;  %v1969_v10 = vpop.permute.xlu0 %1968 }
 0x521   : > { %v1999_v21 = vsel %vm1970_vm2, %v1969_v10, 0  ;;  %v2355_v22 = vsel %vm1970_vm2, %v2328_v8, 0 }
 0x523   : > { %7729 = vmatpush3.bf16.xpose.msra.mxu0 %v1999_v21 }
 0x524   : > { %v2332_v12 = vpop.permute.xlu1 %2331  ;;  %v2326_v49 = vpop.permute.xlu0 %2325  ;;  %7780 = vmatprep.subr.bf16.mxu0 %v12755_v42 }
 0x525   : > { %v2352_v18 = vsel %vm1970_vm2, %v2326_v49, 0  ;;  %v2361_v13 = vsel %vm1970_vm2, %v2332_v12, 0 }
 0x528   : > { %v2685_v51 = vpop.permute.xlu1 %2684  ;;  %v2330_v55 = vpop.permute.xlu0 %2329 }
 0x529   : > { %v2358_v33 = vsel %vm1970_vm2, %v2330_v55, 0  ;;  %v2710_v46 = vsel %vm1970_vm2, %v2685_v51, 0 }
 0x52a   : > { %7731 = vmatmul.mubr.msk.bf16.vlgmr.msra.gmra.mrb[40].mxu0 %vm1970_vm2, %v9899_v48 }
 0x52b   : > { %7781 = vmatpush3.bf16.xpose.msra.mxu0 %v2349_v15  ;;  %7734 = vmatprep.mubr.msk.bf16.mxu0 %vm9272_vm1, %v12755_v42 }
 0x52c   : > { %v2687_v30 = vpop.permute.xlu1 %2686  ;;  %v2314_v31 = vpop.permute.xlu0 %2313  ;;  %7782 = vmatprep.subr.bf16.mxu0 %v12755_v42 }
 0x52d   : > { %v2713_v54 = vsel %vm1970_vm2, %v2687_v30, 0  ;;  %v10184_v30 = vld [vmem:[%s12826_s0] sm:$0xff] }
 0x530   : > { %v2689_v16 = vpop.permute.xlu1 %2688  ;;  %v2316_v1 = vpop.permute.xlu0 %2315 }
 0x531   : > { %v2716_v62 = vsel %vm1970_vm2, %v2689_v16, 0 }
 0x532   : > { %7735 = vmatmul.mubr.msk.bf16.gmra.mrb[44].mxu0 %vm1970_vm2, %v9903_v27 }
 0x533   : > { %7783 = vmatpush3.bf16.xpose.msra.mxu0 %v2352_v18  ;;  %7738 = vmatprep.mubr.msk.bf16.mxu0 %vm9272_vm1, %v12755_v42  ;;  %v10189_v18 = vld [vmem:[%s12826_s0 + $0x8] sm:$0xff] }
 0x534   : > { %v10030_v19 = vpop.permute.xlu1 %2690  ;;  %v2318_v60 = vpop.permute.xlu0 %2317  ;;  %7784 = vmatprep.subr.bf16.mxu0 %v12755_v42 }
 0x535   : > { %v2719_v4 = vsel %vm1970_vm2, %v10030_v19, 0 }
 0x538   : > { %v10033_v43 = vpop.permute.xlu1 %2692  ;;  %v2320_v6 = vpop.permute.xlu0 %2319 }
 0x539   : > { %v2722_v10 = vsel %vm1970_vm2, %v10033_v43, 0 }
 0x53a   : > { %7739 = vmatmul.mubr.msk.bf16.gmra.mrb[48].mxu0 %vm1970_vm2, %v9907_v40 }
 0x53b   : > { %7785 = vmatpush3.bf16.xpose.msra.mxu0 %v2355_v22  ;;  %7742 = vmatprep.mubr.msk.bf16.mxu0 %vm9272_vm1, %v12755_v42 }
 0x53c   : > { %v10040_v9 = vpop.permute.xlu1 %3045  ;;  %v10042_v23 = vpop.permute.xlu0 %2321  ;;  %7786 = vmatprep.subr.bf16.mxu0 %v12755_v42 }
 0x53d   : > { %v3071_v21 = vsel %vm1970_vm2, %v10040_v9, 0 }
 0x540   : > { %v10045_v26 = vpop.permute.xlu1 %3047  ;;  %v10047_v3 = vpop.permute.xlu0 %2674 }
 0x541   : > { %v3074_v12 = vsel %vm1970_vm2, %v10045_v26, 0  ;;  %v10204_v26 = vld [vmem:[%s12826_s0 + $0x10] sm:$0xff] }
 0x542   : > { %7743 = vmatmul.mubr.msk.bf16.gmra.mrb[52].mxu0 %vm1970_vm2, %v9911_v34 }
 0x543   : > { %7787 = vmatpush3.bf16.xpose.msra.mxu0 %v2358_v33  ;;  %7746 = vmatprep.mubr.msk.bf16.mxu0 %vm9272_vm1, %v12755_v42 }
 0x544   : > { %v10054_v58 = vpop.permute.xlu1 %3049  ;;  %v10056_v36 = vpop.permute.xlu0 %2676  ;;  %7788 = vmatprep.subr.bf16.mxu0 %v12755_v42 }
 0x545   : > { %v3077_v49 = vsel %vm1970_vm2, %v10054_v58, 0 }
 0x548   : > { %v10059_v29 = vpop.permute.xlu1 %3051  ;;  %v10061_v38 = vpop.permute.xlu0 %2678 }
 0x549   : > { %v3080_v51 = vsel %vm1970_vm2, %v10059_v29, 0 }
 0x54a   : > { %7747 = vmatmul.mubr.msk.bf16.gmra.mrb[56].mxu0 %vm1970_vm2, %v9917_v11 }
 0x54b   : > { %7789 = vmatpush3.bf16.xpose.msra.mxu0 %v2361_v13  ;;  %7790 = vmatprep.mubr.msk.bf16.mxu0 %vm9272_vm1, %v12755_v42 }
 0x54c   : > { %v10068_v63 = vpop.permute.xlu1 %3053  ;;  %v10070_v14 = vpop.permute.xlu0 %2680  ;;  %7840 = vmatprep.subr.bf16.mxu0 %v12755_v42 }
 0x54d   : > { %v3083_v55 = vsel %vm1970_vm2, %v10068_v63, 0 }
 0x550   : > { %v10073_v25 = vpop.permute.xlu1 %3037  ;;  %v10075_v37 = vpop.permute.xlu0 %2682 }
 0x552   : > { %7791 = vmatmul.mubr.msk.bf16.vlgmr.msra.gmra.mrb[60].mxu0 %vm1970_vm2, %v2314_v31 }
 0x553   : > { %7841 = vmatpush3.bf16.xpose.msra.mxu0 %v2710_v46  ;;  %7794 = vmatprep.mubr.msk.bf16.mxu0 %vm9272_vm1, %v12755_v42 }
 0x554   : > { %v10081_v47 = vpop.permute.xlu1 %3041  ;;  %v10083_v50 = vpop.permute.xlu0 %3035  ;;  %7842 = vmatprep.subr.bf16.mxu0 %v12755_v42 }
 0x558   : > { %v2211_v52 = vpop.permute.xlu1 %2210  ;;  %v10086_v5 = vpop.permute.xlu0 %3039 }
 0x559   : > { %7751 = vmatpush3.bf16.msra.mxu1 %v2211_v52 }
 0x55a   : > { %7795 = vmatmul.mubr.msk.bf16.gmra.mrb[64].mxu0 %vm1970_vm2, %v2316_v1  ;;  %7752 = vmatprep.subr.bf16.mxu1 %v12755_v42 }
 0x55b   : > { %7843 = vmatpush3.bf16.xpose.msra.mxu0 %v2713_v54  ;;  %7798 = vmatprep.mubr.msk.bf16.mxu0 %vm9272_vm1, %v12755_v42 }
 0x55c   : > { %v2215_v56 = vpop.permute.xlu1 %2214  ;;  %v10093_v39 = vpop.permute.xlu0 %3043  ;;  %7844 = vmatprep.subr.bf16.mxu0 %v12755_v42 }
 0x560   : > { %v10096_v59 = vpop.permute.xlu1 %2573  ;;  %v2213_v61 = vpop.permute.xlu0 %2212 }
 0x561   : > { %7753 = vmatpush3.bf16.msra.mxu1 %v2213_v61 }
 0x562   : > { %7799 = vmatmul.mubr.msk.bf16.gmra.mrb[68].mxu0 %vm1970_vm2, %v2318_v60  ;;  %7754 = vmatprep.subr.bf16.mxu1 %v12755_v42 }
 0x563   : > { %7845 = vmatpush3.bf16.xpose.msra.mxu0 %v2716_v62  ;;  %7802 = vmatprep.mubr.msk.bf16.mxu0 %vm9272_vm1, %v12755_v42 }
 0x564   : > { %v10103_v2 = vpop.permute.xlu1 %2575  ;;  %7846 = vmatprep.subr.bf16.mxu0 %v12755_v42  ;;  %v2217_v44 = vpop.permute.xlu0 %2216 }
 0x565   : > { %7755 = vmatpush3.bf16.msra.mxu1 %v2215_v56 }
 0x566   : > { %7756 = vmatprep.subr.bf16.mxu1 %v12755_v42 }
 0x568   : > { %v10107_v32 = vpop.permute.xlu1 %2936  ;;  %v10371_v24 = vpop.permute.xlu0 %2571 }
 0x569   : > { %12824 = vst [vmem:[#allocation12_spill] sm:$0xff] %v10107_v32  ;;  %7757 = vmatpush3.bf16.msra.mxu1 %v2217_v44 }
 0x56a   : > { %7803 = vmatmul.mubr.msk.bf16.gmra.mrb[72].mxu0 %vm1970_vm2, %v2320_v6  ;;  %7758 = vmatprep.subr.bf16.mxu1 %v12755_v42 }
 0x56b   : > { %7847 = vmatpush3.bf16.xpose.msra.mxu0 %v2719_v4  ;;  %7806 = vmatprep.mubr.msk.bf16.mxu0 %vm9272_vm1, %v12755_v42 }
 0x56c   : > { %v10115_v57 = vpop.permute.xlu1 %2938  ;;  %7848 = vmatprep.subr.bf16.mxu0 %v12755_v42 }
 0x56d   : > { %12825 = vst [vmem:[#allocation13_spill] sm:$0xff] %v10115_v57 }
 0x570   : > { %v2219_v8 = vpop.permute.xlu1 %2218 }
 0x571   : > { %7759 = vmatpush3.bf16.msra.mxu1 %v2219_v8  ;;  %v10244_v8 = vld [vmem:[%s12826_s0 + $0x30] sm:$0xff] }
 0x572   : > { %7807 = vmatmul.mubr.msk.bf16.gmra.mrb[76].mxu0 %vm1970_vm2, %v10042_v23  ;;  %7810 = vmatprep.subr.bf16.mxu1 %v12755_v42 }
 0x573   : > { %7849 = vmatpush3.bf16.xpose.msra.mxu0 %v2722_v10  ;;  %7850 = vmatprep.mubr.msk.bf16.mxu0 %vm9272_vm1, %v12755_v42 }
 0x574   : > { %7900 = vmatprep.subr.bf16.mxu0 %v12755_v42 }
 0x57a   : > { %7851 = vmatmul.mubr.msk.bf16.vlgmr.msra.gmra.mrb[80].mxu0 %vm1970_vm2, %v10047_v3 }
 0x57b   : > { %7901 = vmatpush3.bf16.xpose.msra.mxu0 %v3071_v21  ;;  %7854 = vmatprep.mubr.msk.bf16.mxu0 %vm9272_vm1, %v12755_v42 }
 0x57c   : > { %7902 = vmatprep.subr.bf16.mxu0 %v12755_v42 }
 0x582   : > { %7855 = vmatmul.mubr.msk.bf16.gmra.mrb[84].mxu0 %vm1970_vm2, %v10056_v36  ;;  %v10209_v36 = vld [vmem:[%s12826_s0 + $0x18] sm:$0xff] }
 0x583   : > { %7903 = vmatpush3.bf16.xpose.msra.mxu0 %v3074_v12  ;;  %7858 = vmatprep.mubr.msk.bf16.mxu0 %vm9272_vm1, %v12755_v42 }
 0x584   : > { %7904 = vmatprep.subr.bf16.mxu0 %v12755_v42 }
 0x58a   : > { %7859 = vmatmul.mubr.msk.bf16.gmra.mrb[88].mxu0 %vm1970_vm2, %v10061_v38 }
 0x58b   : > { %7905 = vmatpush3.bf16.xpose.msra.mxu0 %v3077_v49  ;;  %7862 = vmatprep.mubr.msk.bf16.mxu0 %vm9272_vm1, %v12755_v42  ;;  %v10249_v49 = vld [vmem:[%s12826_s0 + $0x38] sm:$0xff] }
 0x58c   : > { %7906 = vmatprep.subr.bf16.mxu0 %v12755_v42 }
 0x592   : > { %7863 = vmatmul.mubr.msk.bf16.gmra.mrb[92].mxu0 %vm1970_vm2, %v10070_v14 }
 0x593   : > { %7907 = vmatpush3.bf16.xpose.msra.mxu0 %v3080_v51  ;;  %7866 = vmatprep.mubr.msk.bf16.mxu0 %vm9272_vm1, %v12755_v42 }
 0x594   : > { %7908 = vmatprep.subr.bf16.mxu0 %v12755_v42 }
 0x59a   : > { %7867 = vmatmul.mubr.msk.bf16.gmra.mrb[96].mxu0 %vm1970_vm2, %v10075_v37  ;;  %v10222_v37 = vld [vmem:[%s12826_s0 + $0x20] sm:$0xff] }
 0x59b   : > { %7909 = vmatpush3.bf16.xpose.msra.mxu0 %v3083_v55  ;;  %7910 = vmatprep.mubr.msk.bf16.mxu0 %vm9272_vm1, %v12755_v42 }
 0x59c   : > { %7960 = vmatprep.subr.bf16.mxu0 %v12755_v42 }
 0x5a2   : > { %7911 = vmatmul.mubr.msk.bf16.vlgmr.msra.gmra.mrb[100].mxu0 %vm1970_vm2, %v10083_v50 }
 0x5a3   : > { %7914 = vmatprep.mubr.msk.bf16.mxu0 %vm9272_vm1, %v12755_v42 }
 0x5aa   : > { %7915 = vmatmul.mubr.msk.bf16.gmra.mrb[104].mxu0 %vm1970_vm2, %v10073_v25 }
 0x5ab   : > { %7918 = vmatprep.mubr.msk.bf16.mxu0 %vm9272_vm1, %v12755_v42 }
 0x5b2   : > { %7919 = vmatmul.mubr.msk.bf16.gmra.mrb[108].mxu0 %vm1970_vm2, %v10086_v5  ;;  %v10229_v5 = vld [vmem:[%s12826_s0 + $0x28] sm:$0xff] }
 0x5b3   : > { %7922 = vmatprep.mubr.msk.bf16.mxu0 %vm9272_vm1, %v12755_v42 }
 0x5ba   : > { %7923 = vmatmul.mubr.msk.bf16.gmra.mrb[112].mxu0 %vm1970_vm2, %v10081_v47 }
 0x5bb   : > { %7926 = vmatprep.mubr.msk.bf16.mxu0 %vm9272_vm1, %v12755_v42 }
 0x5c2   : > { %7927 = vmatmul.mubr.msk.bf16.gmra.mrb[116].mxu0 %vm1970_vm2, %v10093_v39 }
 0x5c3   : > { %7964 = vmatprep.mubr.msk.bf16.mxu0 %vm9272_vm1, %v12755_v42 }
 0x5fd   : > { %v2035_v15 = vpop.f32.mrb[40].mxu0 }
 0x5fe   : > { %v2074_v31 = vmul.f32 0.35355338, %v2035_v15  ;;  %v7732_v16 = vpop.f32.mrb[41].mxu0 }
 0x5ff   : > { %v2038_v1 = vpop.f32.mrb[42].mxu0 }
 0x600   : > { %v2075_v19 = vmul.f32 0.35355338, %v2038_v1  ;;  %v7733_v60 = vpop.f32.mrb[43].mxu0  ;;  %v10192_v43 = vadd.f32 %v2074_v31, %v10184_v30 }
 0x602   : > { %v2095_v6 = vsel %vm2094_vm3, %v10192_v43, -inf  ;;  %v10197_v22 = vadd.f32 %v2075_v19, %v10189_v18  ;;  %v10264_v19 = vld [vmem:[%s12826_s0 + $0x40] sm:$0xff] }
 0x603   : > { %2096 = vmax.xlane.f32.xlu1 %v2095_v6 }
 0x604   : > { %v2098_v9 = vsel %vm2094_vm3, %v10197_v22, -inf }
 0x605   : > { %2099 = vmax.xlane.f32.xlu0 %v2098_v9  ;;  %v2043_v23 = vpop.f32.mrb[44].mxu0 }
 0x606   : > { %v2076_v3 = vmul.f32 0.35355338, %v2043_v23  ;;  %v7736_v33 = vpop.f32.mrb[45].mxu0  ;;  %v10269_v23 = vld [vmem:[%s12826_s0 + $0x48] sm:$0xff] }
 0x607   : > { %v2046_v58 = vpop.f32.mrb[46].mxu0 }
 0x608   : > { %v2077_v29 = vmul.f32 0.35355338, %v2046_v58  ;;  %v7737_v38 = vpop.f32.mrb[47].mxu0  ;;  %v10212_v13 = vadd.f32 %v2076_v3, %v10204_v26 }
 0x60a   : > { %v2101_v63 = vsel %vm2094_vm3, %v10212_v13, -inf  ;;  %v10217_v14 = vadd.f32 %v2077_v29, %v10209_v36 }
 0x60b   : > { %2102 = vmax.xlane.f32.xlu0 %v2101_v63 }
 0x60c   : > { %v2104_v50 = vsel %vm2094_vm3, %v10217_v14, -inf }
 0x60d   : > { %v2051_v25 = vpop.f32.mrb[48].mxu0 }
 0x60e   : > { %v2078_v46 = vmul.f32 0.35355338, %v2051_v25  ;;  %v7740_v47 = vpop.f32.mrb[49].mxu0 }
 0x60f   : > { %2105 = vmax.xlane.f32.xlu0 %v2104_v50  ;;  %v2054_v52 = vpop.f32.mrb[50].mxu0 }
 0x610   : > { %v2079_v54 = vmul.f32 0.35355338, %v2054_v52  ;;  %v7741_v56 = vpop.f32.mrb[51].mxu0  ;;  %v10232_v39 = vadd.f32 %v2078_v46, %v10222_v37 }
 0x612   : > { %v2107_v61 = vsel %vm2094_vm3, %v10232_v39, -inf  ;;  %v10237_v62 = vadd.f32 %v2079_v54, %v10229_v5 }
 0x613   : > { %2108 = vmax.xlane.f32.xlu1 %v2107_v61 }
 0x614   : > { %v2110_v44 = vsel %vm2094_vm3, %v10237_v62, -inf }
 0x615   : > { %2111 = vmax.xlane.f32.xlu0 %v2110_v44  ;;  %v2059_v4 = vpop.f32.mrb[52].mxu0 }
 0x616   : > { %v2080_v10 = vmul.f32 0.35355338, %v2059_v4  ;;  %v7744_v21 = vpop.f32.mrb[53].mxu0 }
 0x617   : > { %v2062_v12 = vpop.f32.mrb[54].mxu0 }
 0x618   : > { %v2081_v51 = vmul.f32 0.35355338, %v2062_v12  ;;  %v7745_v55 = vpop.f32.mrb[55].mxu0  ;;  %v10252_v15 = vadd.f32 %v2080_v10, %v10244_v8 }
 0x61a   : > { %v2113_v31 = vsel %vm2094_vm3, %v10252_v15, -inf  ;;  %v10257_v16 = vadd.f32 %v2081_v51, %v10249_v49 }
 0x61b   : > { %2114 = vmax.xlane.f32.xlu1 %v2113_v31 }
 0x61c   : > { %v2116_v1 = vsel %vm2094_vm3, %v10257_v16, -inf }
 0x61d   : > { %2117 = vmax.xlane.f32.xlu0 %v2116_v1  ;;  %v2067_v60 = vpop.f32.mrb[56].mxu0 }
 0x61e   : > { %v2082_v6 = vmul.f32 0.35355338, %v2067_v60  ;;  %v7748_v9 = vpop.f32.mrb[57].mxu0 }
 0x61f   : > { %v2070_v3 = vpop.f32.mrb[58].mxu0 }
 0x620   : > { %v10272_v33 = vadd.f32 %v2082_v6, %v10264_v19  ;;  %v2083_v58 = vmul.f32 0.35355338, %v2070_v3  ;;  %v7749_v29 = vpop.f32.mrb[59].mxu0 }
 0x622   : > { %v10275_v38 = vadd.f32 %v2083_v58, %v10269_v23  ;;  %v2119_v63 = vsel %vm2094_vm3, %v10272_v33, -inf }
 0x623   : > { %2120 = vmax.xlane.f32.xlu1 %v2119_v63 }
 0x624   : > { %v2122_v25 = vsel %vm2094_vm3, %v10275_v38, -inf }
 0x625   : > { %2123 = vmax.xlane.f32.xlu0 %v2122_v25  ;;  %v2397_v46 = vpop.f32.mrb[60].mxu0 }
 0x626   : > { %v2436_v47 = vmul.f32 0.35355338, %v2397_v46  ;;  %v7792_v50 = vpop.f32.mrb[61].mxu0 }
 0x627   : > { %v2400_v52 = vpop.f32.mrb[62].mxu0 }
 0x628   : > { %v10282_v54 = vadd.f32 %v2436_v47, %v10184_v30  ;;  %v2437_v56 = vmul.f32 0.35355338, %v2400_v52  ;;  %v7793_v61 = vpop.f32.mrb[63].mxu0 }
 0x62a   : > { %v10285_v44 = vadd.f32 %v2437_v56, %v10189_v18  ;;  %v2456_v4 = vsel %vm2094_vm3, %v10282_v54, -inf }
 0x62b   : > { %2457 = vmax.xlane.f32.xlu1 %v2456_v4 }
 0x62c   : > { %v2459_v10 = vsel %vm2094_vm3, %v10285_v44, -inf }
 0x62d   : > { %2460 = vmax.xlane.f32.xlu0 %v2459_v10  ;;  %v2405_v21 = vpop.f32.mrb[64].mxu0 }
 0x62e   : > { %v7796_v12 = vpop.f32.mrb[65].mxu0 }
 0x62f   : > { %v2408_v51 = vpop.f32.mrb[66].mxu0 }
 0x630   : > { %v2439_v55 = vmul.f32 0.35355338, %v2408_v51  ;;  %v7797_v31 = vpop.f32.mrb[67].mxu0 }
 0x632   : > { %v10292_v1 = vadd.f32 %v2439_v55, %v10209_v36 }
 0x634   : > { %v2465_v60 = vsel %vm2094_vm3, %v10292_v1, -inf }
 0x635   : > { %2466 = vmax.xlane.f32.xlu0 %v2465_v60  ;;  %v2413_v6 = vpop.f32.mrb[68].mxu0 }
 0x636   : > { %v7800_v9 = vpop.f32.mrb[69].mxu0 }
 0x637   : > { %v2416_v3 = vpop.f32.mrb[70].mxu0 }
 0x638   : > { %v2441_v58 = vmul.f32 0.35355338, %v2416_v3  ;;  %v7801_v29 = vpop.f32.mrb[71].mxu0 }
 0x63a   : > { %v10297_v63 = vadd.f32 %v2441_v58, %v10229_v5 }
 0x63c   : > { %3293 = vrot.lane.b32.xlu1 %v9899_v48, %s12772_s28  ;;  %v2471_v25 = vsel %vm2094_vm3, %v10297_v63, -inf }
 0x63d   : > { %2472 = vmax.xlane.f32.xlu0 %v2471_v25  ;;  %v2421_v46 = vpop.f32.mrb[72].mxu0 }
 0x63e   : > { %v7804_v47 = vpop.f32.mrb[73].mxu0 }
 0x63f   : > { %v2424_v50 = vpop.f32.mrb[74].mxu0 }
 0x640   : > { %v2443_v52 = vmul.f32 0.35355338, %v2424_v50  ;;  %v7805_v56 = vpop.f32.mrb[75].mxu0 }
 0x642   : > { %v10304_v61 = vadd.f32 %v2443_v52, %v10249_v49 }
 0x644   : > { %v2477_v4 = vsel %vm2094_vm3, %v10304_v61, -inf }
 0x645   : > { %2478 = vmax.xlane.f32.xlu0 %v2477_v4  ;;  %v2429_v10 = vpop.f32.mrb[76].mxu0  ;;  %v2438_v4 = vmul.f32 0.35355338, %v2405_v21  ;;  %v2442_v21 = vmul.f32 0.35355338, %v2421_v46 }
 0x646   : > { %v7808_v12 = vpop.f32.mrb[77].mxu0 }
 0x647   : > { %v2432_v51 = vpop.f32.mrb[78].mxu0 }
 0x648   : > { %v2445_v48 = vmul.f32 0.35355338, %v2432_v51  ;;  %v7809_v55 = vpop.f32.mrb[79].mxu0 }
 0x64a   : > { %v10309_v31 = vadd.f32 %v2445_v48, %v10269_v23 }
 0x64c   : > { %v2483_v60 = vsel %vm2094_vm3, %v10309_v31, -inf }
 0x64d   : > { %2484 = vmax.xlane.f32.xlu0 %v2483_v60  ;;  %v2758_v9 = vpop.f32.mrb[80].mxu0  ;;  %v10322_v60 = vadd.f32 %v2438_v4, %v10204_v26 }
 0x64e   : > { %v7852_v3 = vpop.f32.mrb[81].mxu0 }
 0x64f   : > { %v2761_v58 = vpop.f32.mrb[82].mxu0  ;;  %v2440_v3 = vmul.f32 0.35355338, %v2413_v6  ;;  %v10335_v6 = vadd.f32 %v2442_v21, %v10244_v8 }
 0x650   : > { %v2798_v29 = vmul.f32 0.35355338, %v2761_v58  ;;  %v7853_v25 = vpop.f32.mrb[83].mxu0 }
 0x651   : > { %v2474_v21 = vsel %vm2094_vm3, %v10335_v6, -inf }
 0x652   : > { %v10314_v47 = vadd.f32 %v2798_v29, %v10189_v18 }
 0x654   : > { %v2820_v50 = vsel %vm2094_vm3, %v10314_v47, -inf }
 0x655   : > { %2821 = vmax.xlane.f32.xlu0 %v2820_v50  ;;  %v2766_v52 = vpop.f32.mrb[84].mxu0  ;;  %v10327_v50 = vadd.f32 %v2440_v3, %v10222_v37 }
 0x656   : > { %v7856_v56 = vpop.f32.mrb[85].mxu0 }
 0x657   : > { %v2769_v12 = vpop.f32.mrb[86].mxu0 }
 0x658   : > { %v2800_v51 = vmul.f32 0.35355338, %v2769_v12  ;;  %v7857_v48 = vpop.f32.mrb[87].mxu0  ;;  %v2462_v12 = vsel %vm2094_vm3, %v10322_v60, -inf }
 0x65a   : > { %v10319_v55 = vadd.f32 %v2800_v51, %v10209_v36 }
 0x65c   : > { %v2826_v58 = vsel %vm2094_vm3, %v10319_v55, -inf }
 0x65d   : > { %2827 = vmax.xlane.f32.xlu0 %v2826_v58  ;;  %v2774_v29 = vpop.f32.mrb[88].mxu0  ;;  %v2444_v58 = vmul.f32 0.35355338, %v2429_v10 }
 0x65e   : > { %v7860_v25 = vpop.f32.mrb[89].mxu0 }
 0x65f   : > { %v2777_v56 = vpop.f32.mrb[90].mxu0  ;;  %v2468_v25 = vsel %vm2094_vm3, %v10327_v50, -inf }
 0x660   : > { %v2802_v51 = vmul.f32 0.35355338, %v2777_v56  ;;  %2463 = vmax.xlane.f32.xlu1 %v2462_v12  ;;  %v7861_v48 = vpop.f32.mrb[91].mxu0  ;;  %v10342_v56 = vadd.f32 %v2444_v58, %v10264_v19  ;;  %v2797_v12 = vmul.f32 0.35355338, %v2758_v9 }
 0x662   : > { %v10332_v4 = vadd.f32 %v2802_v51, %v10229_v5 }
 0x664   : > { %2469 = vmax.xlane.f32.xlu1 %v2468_v25  ;;  %v2832_v46 = vsel %vm2094_vm3, %v10332_v4, -inf  ;;  %v10350_v25 = vadd.f32 %v2797_v12, %v10184_v30 }
 0x665   : > { %2833 = vmax.xlane.f32.xlu0 %v2832_v46  ;;  %v2782_v3 = vpop.f32.mrb[92].mxu0  ;;  %v2799_v46 = vmul.f32 0.35355338, %v2766_v52 }
 0x666   : > { %v7864_v42 = vpop.f32.mrb[93].mxu0  ;;  %v2817_v12 = vsel %vm2094_vm3, %v10350_v25, -inf }
 0x667   : > { %v2785_v51 = vpop.f32.mrb[94].mxu0  ;;  %v2480_v42 = vsel %vm2094_vm3, %v10342_v56, -inf }
 0x668   : > { %v2804_v48 = vmul.f32 0.35355338, %v2785_v51  ;;  %2475 = vmax.xlane.f32.xlu1 %v2474_v21  ;;  %v7865_v10 = vpop.f32.mrb[95].mxu0  ;;  %v10357_v51 = vadd.f32 %v2799_v46, %v10204_v26  ;;  %v2801_v21 = vmul.f32 0.35355338, %v2774_v29 }
 0x66a   : > { %v10347_v41 = vadd.f32 %v2804_v48, %v10249_v49 }
 0x66c   : > { %2481 = vmax.xlane.f32.xlu1 %v2480_v42  ;;  %v2838_v9 = vsel %vm2094_vm3, %v10347_v41, -inf  ;;  %v10365_v42 = vadd.f32 %v2801_v21, %v10222_v37 }
 0x66d   : > { %2839 = vmax.xlane.f32.xlu0 %v2838_v9  ;;  %v2790_v58 = vpop.f32.mrb[96].mxu0  ;;  %v2803_v9 = vmul.f32 0.35355338, %v2782_v3 }
 0x66e   : > { %v7868_v35 = vpop.f32.mrb[97].mxu0  ;;  %v2829_v3 = vsel %vm2094_vm3, %v10365_v42, -inf }
 0x66f   : > { %v2793_v48 = vpop.f32.mrb[98].mxu0  ;;  %v2823_v35 = vsel %vm2094_vm3, %v10357_v51, -inf }
 0x670   : > { %v2806_v10 = vmul.f32 0.35355338, %v2793_v48  ;;  %2818 = vmax.xlane.f32.xlu1 %v2817_v12  ;;  %v7869_v52 = vpop.f32.mrb[99].mxu0 }
 0x671   : > { %v2805_v52 = vmul.f32 0.35355338, %v2790_v58 }
 0x672   : > { %v10362_v28 = vadd.f32 %v2806_v10, %v10269_v23  ;;  %v10374_v10 = vadd.f32 %v2803_v9, %v10244_v8 }
 0x673   : > { %v10387_v9 = vadd.f32 %v2805_v52, %v10264_v19 }
 0x674   : > { %2824 = vmax.xlane.f32.xlu1 %v2823_v35  ;;  %v2844_v29 = vsel %vm2094_vm3, %v10362_v28, -inf  ;;  %v2835_v58 = vsel %vm2094_vm3, %v10374_v10, -inf }
 0x675   : > { %2845 = vmax.xlane.f32.xlu0 %v2844_v29  ;;  %v3119_v46 = vpop.f32.mrb[100].mxu0 }
 0x676   : > { %v3158_v48 = vmul.f32 0.35355338, %v3119_v46  ;;  %v7912_v12 = vpop.f32.mrb[101].mxu0 }
 0x677   : > { %v3122_v21 = vpop.f32.mrb[102].mxu0  ;;  %v10391_v12 = vpop.permute.xlu0 %2577 }
 0x678   : > { %v10379_v20 = vadd.f32 %v3158_v48, %v10184_v30  ;;  %v3159_v35 = vmul.f32 0.35355338, %v3122_v21  ;;  %2830 = vmax.xlane.f32.xlu1 %v2829_v3  ;;  %v7913_v17 = vpop.f32.mrb[103].mxu0  ;;  %v2841_v3 = vsel %vm2094_vm3, %v10387_v9, -inf }
 0x67a   : > { %v10382_v29 = vadd.f32 %v3159_v35, %v10189_v18  ;;  %v3178_v46 = vsel %vm2094_vm3, %v10379_v20, -inf }
 0x67b   : > { %3179 = vmax.xlane.f32.xlu0 %v3178_v46  ;;  %v10400_v7 = vpop.permute.xlu0 %2932 }
 0x67c   : > { %2836 = vmax.xlane.f32.xlu1 %v2835_v58  ;;  %v3181_v17 = vsel %vm2094_vm3, %v10382_v29, -inf }
 0x67d   : > { %v3127_v30 = vpop.f32.mrb[104].mxu0 }
 0x67e   : > { %v3160_v48 = vmul.f32 0.35355338, %v3127_v30  ;;  %v7916_v21 = vpop.f32.mrb[105].mxu0 }
 0x67f   : > { %3182 = vmax.xlane.f32.xlu0 %v3181_v17  ;;  %v3130_v18 = vpop.f32.mrb[106].mxu0 }
 0x680   : > { %v10398_v52 = vadd.f32 %v3160_v48, %v10204_v26  ;;  %v3161_v35 = vmul.f32 0.35355338, %v3130_v18  ;;  %2842 = vmax.xlane.f32.xlu1 %v2841_v3  ;;  %v7917_v46 = vpop.f32.mrb[107].mxu0  ;;  %v10409_v48 = vpop.permute.xlu0 %2934 }
 0x682   : > { %v10403_v58 = vadd.f32 %v3161_v35, %v10209_v36  ;;  %v3184_v30 = vsel %vm2094_vm3, %v10398_v52, -inf }
 0x683   : > { %3185 = vmax.xlane.f32.xlu0 %v3184_v30 }
 0x684   : > { %v3187_v53 = vsel %vm2094_vm3, %v10403_v58, -inf }
 0x685   : > { %v3135_v21 = vpop.f32.mrb[108].mxu0 }
 0x686   : > { %v3162_v17 = vmul.f32 0.35355338, %v3135_v21  ;;  %v7920_v0 = vpop.f32.mrb[109].mxu0  ;;  %v10421_v21 = vpop.permute.xlu0 %2940 }
 0x687   : > { %3188 = vmax.xlane.f32.xlu0 %v3187_v53  ;;  %v3138_v26 = vpop.f32.mrb[110].mxu0  ;;  %v10419_v0 = vpop.permute.xlu1 %2579  ;;  %12827 = vst [vmem:[#allocation14_spill] sm:$0xff] %v10421_v21 }
 0x688   : > { %v10412_v18 = vadd.f32 %v3162_v17, %v10222_v37  ;;  %v3163_v3 = vmul.f32 0.35355338, %v3138_v26  ;;  %v7921_v36 = vpop.f32.mrb[111].mxu0 }
 0x68a   : > { %v10415_v35 = vadd.f32 %v3163_v3, %v10229_v5  ;;  %v3190_v46 = vsel %vm2094_vm3, %v10412_v18, -inf }
 0x68b   : > { %3191 = vmax.xlane.f32.xlu0 %v3190_v46 }
 0x68c   : > { %v3193_v37 = vsel %vm2094_vm3, %v10415_v35, -inf }
 0x68d   : > { %v3143_v30 = vpop.f32.mrb[112].mxu0 }
 0x68e   : > { %v3164_v53 = vmul.f32 0.35355338, %v3143_v30  ;;  %v7924_v45 = vpop.f32.mrb[113].mxu0 }
 0x68f   : > { %3194 = vmax.xlane.f32.xlu0 %v3193_v37  ;;  %v3146_v17 = vpop.f32.mrb[114].mxu0 }
 0x690   : > { %v10426_v26 = vadd.f32 %v3164_v53, %v10244_v8  ;;  %v3165_v5 = vmul.f32 0.35355338, %v3146_v17  ;;  %v2097_v3 = vpop.xlane.xlu1 %2096  ;;  %v7925_v36 = vpop.f32.mrb[115].mxu0 }
 0x691   : > { %v2125_v46 = vsub.f32 %v10192_v43, %v2097_v3 }
 0x692   : > { %v10430_v57 = vadd.f32 %v3165_v5, %v10249_v49  ;;  %v2100_v32 = vpop.xlane.xlu0 %2099  ;;  %v3196_v45 = vsel %vm2094_vm3, %v10426_v26, -inf }
 0x693   : > { %v2135_v30 = vmul.f32 1.442695, %v2125_v46  ;;  %v2126_v21 = vsub.f32 %v10197_v22, %v2100_v32  ;;  %3197 = vmax.xlane.f32.xlu0 %v3196_v45 }
 0x694   : > { %v3199_v36 = vsel %vm2094_vm3, %v10430_v57, -inf }
 0x695   : > { %8785 = vpow2.f32 %v2135_v30  ;;  %v2137_v37 = vmul.f32 1.442695, %v2126_v21  ;;  %v3151_v8 = vpop.f32.mrb[116].mxu0 }
 0x696   : > { %v3166_v53 = vmul.f32 0.35355338, %v3151_v8  ;;  %v7928_v17 = vpop.f32.mrb[117].mxu0 }
 0x697   : > { %8787 = vpow2.f32 %v2137_v37  ;;  %3200 = vmax.xlane.f32.xlu0 %v3199_v36  ;;  %v3154_v43 = vpop.f32.mrb[118].mxu0 }
 0x698   : > { %v10438_v49 = vadd.f32 %v3166_v53, %v10264_v19  ;;  %v3167_v5 = vmul.f32 0.35355338, %v3154_v43  ;;  %v7929_v3 = vpop.f32.mrb[119].mxu0  ;;  %v2103_v46 = vpop.xlane.xlu0 %2102 }
 0x699   : > { %v2127_v32 = vsub.f32 %v10212_v13, %v2103_v46 }
 0x69a   : > { %v10442_v22 = vadd.f32 %v3167_v5, %v10269_v23  ;;  %v3202_v21 = vsel %vm2094_vm3, %v10438_v49, -inf }
 0x69b   : > { %v2139_v45 = vmul.f32 1.442695, %v2127_v32  ;;  %3203 = vmax.xlane.f32.xlu1 %v3202_v21 }
 0x69c   : > { %v2106_v30 = vpop.xlane.xlu0 %2105  ;;  %v3205_v37 = vsel %vm2094_vm3, %v10442_v22, -inf }
 0x69d   : > { %8789 = vpow2.f32 %v2139_v45  ;;  %v2128_v19 = vsub.f32 %v10217_v14, %v2106_v30  ;;  %3206 = vmax.xlane.f32.xlu0 %v3205_v37 }
 0x69f   : > { %v10449_v8 = vpop.eup %8785  ;;  %v2141_v53 = vmul.f32 1.442695, %v2128_v19 }
 0x6a0   : > { %v2109_v13 = vpop.xlane.xlu1 %2108  ;;  %v2155_v23 = vsel %vm2094_vm3, %v10449_v8, 0.0 }
 0x6a1   : > { %v10453_v17 = vpop.eup %8787  ;;  %8791 = vpow2.f32 %v2141_v53  ;;  %v2129_v36 = vsub.f32 %v10232_v39, %v2109_v13  ;;  %2156 = vadd.xlane.f32.xlu1 %v2155_v23 }
 0x6a2   : > { %v2112_v43 = vpop.xlane.xlu0 %2111  ;;  %v2158_v5 = vsel %vm2094_vm3, %v10453_v17, 0.0 }
 0x6a3   : > { %v2143_v3 = vmul.f32 1.442695, %v2129_v36  ;;  %v2130_v14 = vsub.f32 %v10237_v62, %v2112_v43  ;;  %2159 = vadd.xlane.f32.xlu0 %v2158_v5 }
 0x6a5   : > { %8793 = vpow2.f32 %v2143_v3  ;;  %v2145_v46 = vmul.f32 1.442695, %v2130_v14 }
 0x6a7   : > { %v10459_v32 = vpop.eup %8789  ;;  %8795 = vpow2.f32 %v2145_v46 }
 0x6a8   : > { %v2115_v21 = vpop.xlane.xlu1 %2114  ;;  %v2161_v45 = vsel %vm2094_vm3, %v10459_v32, 0.0 }
 0x6a9   : > { %v2131_v39 = vsub.f32 %v10252_v15, %v2115_v21  ;;  %2162 = vadd.xlane.f32.xlu1 %v2161_v45 }
 0x6aa   : > { %v2118_v30 = vpop.xlane.xlu0 %2117 }
 0x6ab   : > { %v10464_v37 = vpop.eup %8791  ;;  %v2147_v19 = vmul.f32 1.442695, %v2131_v39  ;;  %v2132_v53 = vsub.f32 %v10257_v16, %v2118_v30 }
 0x6ac   : > { %v2164_v62 = vsel %vm2094_vm3, %v10464_v37, 0.0 }
 0x6ad   : > { %8797 = vpow2.f32 %v2147_v19  ;;  %v2149_v13 = vmul.f32 1.442695, %v2132_v53  ;;  %2165 = vadd.xlane.f32.xlu0 %v2164_v62 }
 0x6af   : > { %v10469_v23 = vpop.eup %8793  ;;  %8799 = vpow2.f32 %v2149_v13 }
 0x6b0   : > { %v2121_v36 = vpop.xlane.xlu1 %2120  ;;  %v2167_v15 = vsel %vm2094_vm3, %v10469_v23, 0.0 }
 0x6b1   : > { %v10473_v43 = vpop.eup %8795  ;;  %v2133_v5 = vsub.f32 %v10272_v33, %v2121_v36  ;;  %2168 = vadd.xlane.f32.xlu1 %v2167_v15 }
 0x6b2   : > { %v2124_v3 = vpop.xlane.xlu0 %2123  ;;  %v2170_v16 = vsel %vm2094_vm3, %v10473_v43, 0.0 }
 0x6b3   : > { %v2151_v14 = vmul.f32 1.442695, %v2133_v5  ;;  %v2134_v46 = vsub.f32 %v10275_v38, %v2124_v3  ;;  %2171 = vadd.xlane.f32.xlu0 %v2170_v16 }
 0x6b5   : > { %8801 = vpow2.f32 %v2151_v14  ;;  %v2153_v21 = vmul.f32 1.442695, %v2134_v46 }
 0x6b7   : > { %v10479_v45 = vpop.eup %8797  ;;  %8803 = vpow2.f32 %v2153_v21 }
 0x6b8   : > { %v2458_v39 = vpop.xlane.xlu1 %2457  ;;  %v2173_v30 = vsel %vm2094_vm3, %v10479_v45, 0.0 }
 0x6b9   : > { %v10483_v19 = vpop.eup %8799  ;;  %v2486_v33 = vsub.f32 %v10282_v54, %v2458_v39  ;;  %2174 = vadd.xlane.f32.xlu1 %v2173_v30 }
 0x6ba   : > { %v2176_v53 = vsel %vm2094_vm3, %v10483_v19, 0.0  ;;  %v2461_v15 = vpop.xlane.xlu0 %2460 }
 0x6bb   : > { %v2496_v62 = vmul.f32 1.442695, %v2486_v33  ;;  %2177 = vadd.xlane.f32.xlu0 %v2176_v53  ;;  %v2487_v33 = vsub.f32 %v10285_v44, %v2461_v15 }
 0x6bd   : > { %8805 = vpow2.f32 %v2496_v62  ;;  %v2498_v53 = vmul.f32 1.442695, %v2487_v33  ;;  %v10508_v62 = vpop.permute.xlu1 %3293 }
 0x6be   : > { %12829 = vst [vmem:[#allocation16_spill] sm:$0xff] %v10508_v62 }
 0x6bf   : > { %v10488_v38 = vpop.eup %8801 }
 0x6c0   : > { %v2179_v13 = vsel %vm2094_vm3, %v10488_v38, 0.0 }
 0x6c1   : > { %v10492_v36 = vpop.eup %8803  ;;  %2180 = vadd.xlane.f32.xlu0 %v2179_v13 }
 0x6c2   : > { %v2182_v5 = vsel %vm2094_vm3, %v10492_v36, 0.0  ;;  %v2467_v54 = vpop.xlane.xlu0 %2466 }
 0x6c3   : > { %v2489_v13 = vsub.f32 %v10292_v1, %v2467_v54 }
 0x6c5   : > { %2183 = vadd.xlane.f32.xlu0 %v2182_v5 }
 0x6c7   : > { %v10496_v3 = vpop.eup %8805 }
 0x6c8   : > { %v2516_v16 = vsel %vm2094_vm3, %v10496_v3, 0.0 }
 0x6c9   : > { %2517 = vadd.xlane.f32.xlu1 %v2516_v16 }
 0x6ca   : > { %v2473_v14 = vpop.xlane.xlu0 %2472 }
 0x6cb   : > { %v2491_v46 = vsub.f32 %v10297_v63, %v2473_v14  ;;  %v2502_v14 = vmul.f32 1.442695, %v2489_v13 }
 0x6cd   : > { %v2506_v21 = vmul.f32 1.442695, %v2491_v46 }
 0x6cf   : > { %8807 = vpow2.f32 %v2506_v21 }
 0x6d0   : > { %8809 = vpow2.f32 %v2498_v53 }
 0x6d2   : > { %v2479_v63 = vpop.xlane.xlu0 %2478 }
 0x6d3   : > { %v2493_v44 = vsub.f32 %v10304_v61, %v2479_v63 }
 0x6d5   : > { %v2510_v54 = vmul.f32 1.442695, %v2493_v44 }
 0x6d9   : > { %v10501_v39 = vpop.eup %8807 }
 0x6da   : > { %12828 = vst [vmem:[#allocation15_spill] sm:$0xff] %v10501_v39  ;;  %v2531_v30 = vsel %vm2094_vm3, %v10501_v39, 0.0  ;;  %v2485_v46 = vpop.xlane.xlu0 %2484  ;;  %v10514_v53 = vpop.eup %8809 }
 0x6db   : > { %3295 = vrot.lane.b32.xlu0 %v9903_v27, %s12772_s28  ;;  %2532 = vadd.xlane.f32.xlu1 %v2531_v30 }
 0x6e2   : > { %v2822_v15 = vpop.xlane.xlu0 %2821 }
 0x6ea   : > { %v2828_v62 = vpop.xlane.xlu0 %2827 }
 0x6ed   : > { %v2464_v5 = vpop.xlane.xlu1 %2463 }
 0x6ee   : > { %v2488_v16 = vsub.f32 %v10322_v60, %v2464_v5  ;;  %v2519_v5 = vsel %vm2094_vm3, %v10514_v53, 0.0 }
 0x6f0   : > { %v2500_v21 = vmul.f32 1.442695, %v2488_v16 }
 0x6f1   : > { %v2470_v39 = vpop.xlane.xlu1 %2469 }
 0x6f2   : > { %8811 = vpow2.f32 %v2500_v21  ;;  %v2490_v27 = vsub.f32 %v10327_v50, %v2470_v39  ;;  %v2495_v39 = vsub.f32 %v10309_v31, %v2485_v46  ;;  %v10523_v63 = vpop.xlane.xlu0 %2833 }
 0x6f3   : > { %8813 = vpow2.f32 %v2502_v14 }
 0x6f4   : > { %v2504_v30 = vmul.f32 1.442695, %v2490_v27  ;;  %v2514_v27 = vmul.f32 1.442695, %v2495_v39 }
 0x6f5   : > { %v2476_v33 = vpop.xlane.xlu1 %2475 }
 0x6f6   : > { %v2492_v1 = vsub.f32 %v10335_v6, %v2476_v33  ;;  %8815 = vpow2.f32 %v2504_v30 }
 0x6f8   : > { %v2508_v60 = vmul.f32 1.442695, %v2492_v1  ;;  %v2848_v1 = vsub.f32 %v10314_v47, %v2822_v15 }
 0x6f9   : > { %v2482_v13 = vpop.xlane.xlu1 %2481 }
 0x6fa   : > { %8817 = vpow2.f32 %v2508_v60  ;;  %v2494_v50 = vsub.f32 %v10342_v56, %v2482_v13  ;;  %2520 = vadd.xlane.f32.xlu0 %v2519_v5  ;;  %v2840_v44 = vpop.xlane.xlu0 %2839  ;;  %v2859_v39 = vmul.f32 1.442695, %v2848_v1 }
 0x6fb   : > { %8819 = vpow2.f32 %v2510_v54  ;;  %v2854_v1 = vsub.f32 %v10347_v41, %v2840_v44 }
 0x6fc   : > { %v10520_v61 = vpop.eup %8811  ;;  %v2512_v6 = vmul.f32 1.442695, %v2494_v50 }
 0x6fd   : > { %v2819_v16 = vpop.xlane.xlu1 %2818  ;;  %v2522_v14 = vsel %vm2094_vm3, %v10520_v61, 0.0  ;;  %v10527_v21 = vpop.eup %8813 }
 0x6fe   : > { %2523 = vadd.xlane.f32.xlu0 %v2522_v14  ;;  %8821 = vpow2.f32 %v2512_v6  ;;  %v2847_v56 = vsub.f32 %v10350_v25, %v2819_v16  ;;  %v2525_v31 = vsel %vm2094_vm3, %v10527_v21, 0.0  ;;  %v2850_v6 = vsub.f32 %v10319_v55, %v2828_v62 }
 0x6ff   : > { %8823 = vpow2.f32 %v2514_v27 }
 0x700   : > { %v10534_v46 = vpop.eup %8815  ;;  %v2857_v54 = vmul.f32 1.442695, %v2847_v56  ;;  %v2863_v27 = vmul.f32 1.442695, %v2850_v6 }
 0x701   : > { %v10530_v30 = vpop.xlane.xlu1 %2824  ;;  %v2528_v25 = vsel %vm2094_vm3, %v10534_v46, 0.0 }
 0x702   : > { %2526 = vadd.xlane.f32.xlu0 %v2525_v31  ;;  %v10539_v60 = vpop.xlane.xlu0 %2845  ;;  %8825 = vpow2.f32 %v2857_v54 }
 0x703   : > { %8827 = vpow2.f32 %v2859_v39 }
 0x704   : > { %v10536_v33 = vpop.eup %8817  ;;  %8829 = vpow2.f32 %v2863_v27 }
 0x705   : > { %v2831_v13 = vpop.xlane.xlu1 %2830  ;;  %v2534_v5 = vsel %vm2094_vm3, %v10536_v33, 0.0  ;;  %v10545_v50 = vpop.eup %8819 }
 0x706   : > { %2529 = vadd.xlane.f32.xlu0 %v2528_v25  ;;  %2535 = vadd.xlane.f32.xlu1 %v2534_v5  ;;  %v2537_v47 = vsel %vm2094_vm3, %v10545_v50, 0.0  ;;  %v2851_v56 = vsub.f32 %v10365_v42, %v2831_v13  ;;  %v2871_v42 = vmul.f32 1.442695, %v2854_v1 }
 0x708   : > { %v10548_v16 = vpop.xlane.xlu0 %3179  ;;  %v10552_v15 = vpop.eup %8821  ;;  %v2865_v54 = vmul.f32 1.442695, %v2851_v56 }
 0x709   : > { %v10554_v14 = vpop.xlane.xlu1 %2836  ;;  %v2540_v55 = vsel %vm2094_vm3, %v10552_v15, 0.0  ;;  %v10561_v62 = vpop.eup %8823 }
 0x70a   : > { %2538 = vadd.xlane.f32.xlu0 %v2537_v47  ;;  %v2543_v39 = vsel %vm2094_vm3, %v10561_v62, 0.0  ;;  %8831 = vpow2.f32 %v2865_v54 }
 0x70b   : > { %8833 = vpow2.f32 %v2871_v42 }
 0x70c   : > { %v10557_v31 = vpop.xlane.xlu0 %3182  ;;  %v10568_v6 = vpop.eup %8825 }
 0x70d   : > { %v2843_v5 = vpop.xlane.xlu1 %2842  ;;  %v2877_v27 = vsel %vm2094_vm3, %v10568_v6, 0.0  ;;  %v10575_v41 = vpop.eup %8827 }
 0x70e   : > { %2541 = vadd.xlane.f32.xlu0 %v2540_v55  ;;  %v2855_v13 = vsub.f32 %v10387_v9, %v2843_v5  ;;  %v2880_v55 = vsel %vm2094_vm3, %v10575_v41, 0.0  ;;  %v10583_v1 = vpop.eup %8829 }
 0x70f   : > { %v2886_v5 = vsel %vm2094_vm3, %v10583_v1, 0.0 }
 0x710   : > { %v10564_v25 = vpop.xlane.xlu0 %3185  ;;  %v2873_v44 = vmul.f32 1.442695, %v2855_v13 }
 0x712   : > { %2544 = vadd.xlane.f32.xlu0 %v2543_v39  ;;  %8835 = vpow2.f32 %v2873_v44  ;;  %v2849_v44 = vsub.f32 %v10357_v51, %v10530_v30 }
 0x714   : > { %v10571_v47 = vpop.xlane.xlu0 %3188  ;;  %v10588_v39 = vpop.eup %8831 }
 0x715   : > { %12830 = vst [vmem:[#allocation17_spill] sm:$0xff] %v10588_v39  ;;  %v2889_v42 = vsel %vm2094_vm3, %v10588_v39, 0.0  ;;  %v10592_v13 = vpop.eup %8833 }
 0x716   : > { %2878 = vadd.xlane.f32.xlu0 %v2877_v27  ;;  %12831 = vst [vmem:[#allocation18_spill] sm:$0xff] %v10592_v13 }
 0x717   : > { %3297 = vrot.lane.b32.xlu1 %v9907_v40, %s12772_s28 }
 0x718   : > { %v10579_v56 = vpop.xlane.xlu0 %3191 }
 0x71a   : > { %2881 = vadd.xlane.f32.xlu0 %v2880_v55 }
 0x71c   : > { %v3195_v9 = vpop.xlane.xlu0 %3194  ;;  %v10600_v55 = vpop.eup %8835 }
 0x71d   : > { %v3213_v54 = vsub.f32 %v10415_v35, %v3195_v9  ;;  %v2898_v35 = vsel %vm2094_vm3, %v10592_v13, 0.0  ;;  %12832 = vst [vmem:[#allocation19_spill] sm:$0xff] %v10600_v55  ;;  %v2852_v9 = vsub.f32 %v10332_v4, %v10523_v63  ;;  %v2853_v4 = vsub.f32 %v10374_v10, %v10554_v14 }
 0x71e   : > { %2887 = vadd.xlane.f32.xlu0 %v2886_v5  ;;  %v2861_v5 = vmul.f32 1.442695, %v2849_v44  ;;  %v2856_v44 = vsub.f32 %v10362_v28, %v10539_v60  ;;  %v3208_v13 = vsub.f32 %v10379_v20, %v10548_v16  ;;  %v3209_v10 = vsub.f32 %v10382_v29, %v10557_v31 }
 0x71f   : > { %v3228_v40 = vmul.f32 1.442695, %v3213_v54  ;;  %v2867_v51 = vmul.f32 1.442695, %v2852_v9  ;;  %v3210_v29 = vsub.f32 %v10398_v52, %v10564_v25  ;;  %v12834_v52 = vmov 0.0  }
 0x720   : > { %v10594_v27 = vpop.xlane.xlu0 %3197  ;;  %v2875_v9 = vmul.f32 1.442695, %v2856_v44  ;;  %v3211_v44 = vsub.f32 %v10403_v58, %v10571_v47 }
 0x721   : > { %8837 = vpow2.f32 %v3228_v40  ;;  %v2901_v40 = vsel %vm2094_vm3, %v10600_v55, 0.0  ;;  %v2869_v55 = vmul.f32 1.442695, %v2853_v4 }
 0x722   : > { %2890 = vadd.xlane.f32.xlu0 %v2889_v42  ;;  %8839 = vpow2.f32 %v2861_v5  ;;  %v3224_v47 = vmul.f32 1.442695, %v3211_v44 }
 0x723   : > { %8841 = vpow2.f32 %v2867_v51  ;;  %v3218_v51 = vmul.f32 1.442695, %v3208_v13 }
 0x724   : > { %v10604_v54 = vpop.xlane.xlu0 %3200 }
 0x726   : > { %2899 = vadd.xlane.f32.xlu0 %v2898_v35 }
 0x728   : > { %v10608_v39 = vpop.xlane.xlu1 %3203 }
 0x72a   : > { %2902 = vadd.xlane.f32.xlu0 %v2901_v40  ;;  %v10612_v30 = vpop.xlane.xlu0 %3206 }
 0x72b   : > { %v10610_v42 = vpop.eup %8837 }
 0x72c   : > { %12833 = vst [vmem:[#allocation20_spill] sm:$0xff] %v10610_v42  ;;  %v3253_v35 = vsel %vm2094_vm3, %v10610_v42, 0.0  ;;  %v10622_v5 = vpop.eup %8839 }
 0x72d   : > { %v10626_v14 = vpop.eup %8841 }
 0x72e   : > { %v2157_v63 = vpop.xlane.xlu1 %2156  ;;  %3254 = vadd.xlane.f32.xlu0 %v3253_v35  ;;  %v2883_v35 = vsel %vm2094_vm3, %v10622_v5, 0.0 }
 0x72f   : > { %8843 = vrcp.f32 %v2157_v63  ;;  %v3220_v63 = vmul.f32 1.442695, %v3209_v10 }
 0x730   : > { %v2160_v40 = vpop.xlane.xlu0 %2159 }
 0x731   : > { %8845 = vrcp.f32 %v2160_v40 }
 0x732   : > { %8847 = vpow2.f32 %v2869_v55  ;;  %v2892_v55 = vsel %vm2094_vm3, %v10626_v14, 0.0 }
 0x733   : > { %8849 = vpow2.f32 %v2875_v9 }
 0x736   : > { %v2163_v42 = vpop.xlane.xlu1 %2162 }
 0x737   : > { %8851 = vrcp.f32 %v2163_v42 }
 0x739   : > { %v8844_v28 = vpop.eup %8843 }
 0x73a   : > { %v2166_v60 = vpop.xlane.xlu0 %2165  ;;  %v2195_v20 = vmul.f32 %v8844_v28, %v10449_v8 }
 0x73b   : > { %v8846_v4 = vpop.eup %8845  ;;  %8853 = vrcp.f32 %v2166_v60  ;;  %2884 = vadd.xlane.f32.xlu1 %v2883_v35 }
 0x73c   : > { %v2196_v16 = vmul.f32 %v8846_v4, %v10453_v17  ;;  %8855 = vpow2.f32 %v3218_v51  ;;  %v10636_v42 = vpop.eup %8847  ;;  %v3222_v17 = vmul.f32 1.442695, %v3210_v29 }
 0x73d   : > { %8857 = vpow2.f32 %v3220_v63  ;;  %v10644_v25 = vpop.eup %8849  ;;  %v2895_v40 = vsel %vm2094_vm3, %v10636_v42, 0.0 }
 0x73e   : > { %v2205_v31 = vpack.c.bf16 %v2196_v16, %v2195_v20  ;;  %v2169_v13 = vpop.xlane.xlu1 %2168  ;;  %v2904_v51 = vsel %vm2094_vm3, %v10644_v25, 0.0 }
 0x73f   : > { %2893 = vadd.xlane.f32.xlu1 %v2892_v55  ;;  %8859 = vrcp.f32 %v2169_v13 }
 0x740   : > { %7761 = vmatmul.mubr.msk.bf16.vlgmr.msra.gmra.mrb[40].mxu1 %vm2094_vm3, %v2205_v31  ;;  %v2172_v8 = vpop.xlane.xlu0 %2171 }
 0x741   : > { %7811 = vmatpush3.bf16.msra.mxu1 %v10371_v24  ;;  %8861 = vrcp.f32 %v2172_v8  ;;  %7764 = vmatprep.mubr.msk.bf16.mxu1 %vm9272_vm1, %v12834_v52  ;;  %v8852_v58 = vpop.eup %8851  ;;  %v3212_v24 = vsub.f32 %v10412_v18, %v10579_v56 }
 0x742   : > { %7812 = vmatprep.subr.bf16.mxu1 %v12834_v52  ;;  %8863 = vpow2.f32 %v3222_v17  ;;  %v2197_v28 = vmul.f32 %v8852_v58, %v10459_v32 }
 0x743   : > { %2896 = vadd.xlane.f32.xlu1 %v2895_v40  ;;  %8865 = vpow2.f32 %v3224_v47  ;;  %v3226_v4 = vmul.f32 1.442695, %v3212_v24 }
 0x744   : > { %3299 = vrot.lane.b32.xlu0 %v9911_v34, %s12772_s28  ;;  %v3214_v34 = vsub.f32 %v10426_v26, %v10594_v27 }
 0x745   : > { %v8854_v9 = vpop.eup %8853  ;;  %7813 = vmatpush3.bf16.msra.mxu1 %v10096_v59 }
 0x746   : > { %v2175_v10 = vpop.xlane.xlu1 %2174  ;;  %7814 = vmatprep.subr.bf16.mxu1 %v12834_v52  ;;  %v2198_v60 = vmul.f32 %v8854_v9, %v10464_v37  ;;  %v10659_v35 = vpop.eup %8855  ;;  %v3230_v26 = vmul.f32 1.442695, %v3214_v34 }
 0x747   : > { %2905 = vadd.xlane.f32.xlu1 %v2904_v51  ;;  %8867 = vrcp.f32 %v2175_v10  ;;  %v10663_v56 = vpop.eup %8857  ;;  %v3238_v32 = vsel %vm2094_vm3, %v10659_v35, 0.0 }
 0x748   : > { %v2178_v18 = vpop.xlane.xlu0 %2177  ;;  %v2206_v59 = vpack.c.bf16 %v2198_v60, %v2197_v28  ;;  %v3241_v16 = vsel %vm2094_vm3, %v10663_v56, 0.0 }
 0x749   : > { %7815 = vmatpush3.bf16.msra.mxu1 %v10103_v2  ;;  %8869 = vrcp.f32 %v2178_v18  ;;  %v8860_v63 = vpop.eup %8859  ;;  %v3215_v2 = vsub.f32 %v10430_v57, %v10604_v54  ;;  %v3216_v57 = vsub.f32 %v10438_v49, %v10608_v39 }
 0x74a   : > { %7765 = vmatmul.mubr.msk.bf16.gmra.mrb[44].mxu1 %vm2094_vm3, %v2206_v59  ;;  %7816 = vmatprep.subr.bf16.mxu1 %v12834_v52  ;;  %8871 = vpow2.f32 %v3226_v4  ;;  %v2199_v29 = vmul.f32 %v8860_v63, %v10469_v23 }
 0x74b   : > { %v8862_v37 = vpop.eup %8861  ;;  %3239 = vadd.xlane.f32.xlu1 %v3238_v32  ;;  %7768 = vmatprep.mubr.msk.bf16.mxu1 %vm9272_vm1, %v12834_v52  ;;  %8873 = vpow2.f32 %v3230_v26  ;;  %v3232_v55 = vmul.f32 1.442695, %v3215_v2  ;;  %v3234_v39 = vmul.f32 1.442695, %v3216_v57 }
 0x74c   : > { %v2200_v27 = vmul.f32 %v8862_v37, %v10473_v43  ;;  %v10680_v31 = vpop.eup %8863 }
 0x74d   : > { %7817 = vmatpush3.bf16.msra.mxu1 %v10391_v12  ;;  %v10682_v43 = vpop.eup %8865  ;;  %v3244_v23 = vsel %vm2094_vm3, %v10680_v31, 0.0 }
 0x74e   : > { %v2181_v20 = vpop.xlane.xlu0 %2180  ;;  %7818 = vmatprep.subr.bf16.mxu1 %v12834_v52  ;;  %v2207_v13 = vpack.c.bf16 %v2200_v27, %v2199_v29  ;;  %v3247_v8 = vsel %vm2094_vm3, %v10682_v43, 0.0 }
 0x74f   : > { %3242 = vadd.xlane.f32.xlu1 %v3241_v16  ;;  %8875 = vrcp.f32 %v2181_v20 }
 0x751   : > { %7819 = vmatpush3.bf16.msra.mxu1 %v10419_v0  ;;  %v8868_v12 = vpop.eup %8867  ;;  %v3217_v0 = vsub.f32 %v10442_v22, %v10612_v30 }
 0x752   : > { %7769 = vmatmul.mubr.msk.bf16.gmra.mrb[48].mxu1 %vm2094_vm3, %v2207_v13  ;;  %v2184_v54 = vpop.xlane.xlu0 %2183  ;;  %7870 = vmatprep.subr.bf16.mxu1 %v12834_v52  ;;  %v2201_v17 = vmul.f32 %v8868_v12, %v10479_v45 }
 0x753   : > { %v8870_v44 = vpop.eup %8869  ;;  %8877 = vrcp.f32 %v2184_v54  ;;  %3245 = vadd.xlane.f32.xlu1 %v3244_v23  ;;  %7772 = vmatprep.mubr.msk.bf16.mxu1 %vm9272_vm1, %v12834_v52  ;;  %v3236_v47 = vmul.f32 1.442695, %v3217_v0 }
 0x754   : > { %v2202_v49 = vmul.f32 %v8870_v44, %v10483_v19  ;;  %8879 = vpow2.f32 %v3232_v55  ;;  %v10699_v40 = vpop.eup %8871 }
 0x755   : > { %8881 = vpow2.f32 %v3234_v39  ;;  %v10701_v9 = vpop.eup %8873  ;;  %v3250_v19 = vsel %vm2094_vm3, %v10699_v40, 0.0  ;;  %v12835_v39 = vld [vmem:[#allocation12_spill] sm:$0xff] }
 0x756   : > { %v2208_v58 = vpack.c.bf16 %v2202_v49, %v2201_v17  ;;  %8883 = vpow2.f32 %v3236_v47  ;;  %v3256_v45 = vsel %vm2094_vm3, %v10701_v9, 0.0  ;;  %v2518_v59 = vpop.xlane.xlu1 %2517  ;;  %v10729_v4 = vpop.permute.xlu0 %3295 }
 0x757   : > { %3248 = vadd.xlane.f32.xlu1 %v3247_v8  ;;  %8885 = vrcp.f32 %v2518_v59  ;;  %v12837_v8 = vld [vmem:[#allocation13_spill] sm:$0xff] }
 0x759   : > { %v8876_v24 = vpop.eup %8875 }
 0x75a   : > { %7773 = vmatmul.mubr.msk.bf16.gmra.mrb[52].mxu1 %vm2094_vm3, %v2208_v58  ;;  %v2203_v30 = vmul.f32 %v8876_v24, %v10488_v38  ;;  %v12838_v24 = vld [vmem:[#allocation14_spill] sm:$0xff] }
 0x75b   : > { %3251 = vadd.xlane.f32.xlu1 %v3250_v19  ;;  %7776 = vmatprep.mubr.msk.bf16.mxu1 %vm9272_vm1, %v12834_v52 }
 0x75d   : > { %v8878_v22 = vpop.eup %8877 }
 0x75e   : > { %v2204_v10 = vmul.f32 %v8878_v22, %v10492_v36  ;;  %v10712_v51 = vpop.eup %8879 }
 0x75f   : > { %3257 = vadd.xlane.f32.xlu1 %v3256_v45  ;;  %v3259_v60 = vsel %vm2094_vm3, %v10712_v51, 0.0  ;;  %v10717_v34 = vpop.eup %8881 }
 0x760   : > { %v2209_v28 = vpack.c.bf16 %v2204_v10, %v2203_v30  ;;  %v3262_v38 = vsel %vm2094_vm3, %v10717_v34, 0.0  ;;  %v10723_v18 = vpop.eup %8883 }
 0x761   : > { %v3265_v36 = vsel %vm2094_vm3, %v10723_v18, 0.0  ;;  %v8886_v26 = vpop.eup %8885 }
 0x762   : > { %7777 = vmatmul.mubr.msk.bf16.gmra.mrb[56].mxu1 %vm2094_vm3, %v2209_v28  ;;  %v2556_v2 = vmul.f32 %v8886_v26, %v10496_v3 }
 0x763   : > { %3260 = vadd.xlane.f32.xlu0 %v3259_v60  ;;  %7820 = vmatprep.mubr.msk.bf16.mxu1 %vm9272_vm1, %v12834_v52 }
 0x767   : > { %3263 = vadd.xlane.f32.xlu0 %v3262_v38 }
 0x768   : > { %v2533_v20 = vpop.xlane.xlu1 %2532 }
 0x76b   : > { %3266 = vadd.xlane.f32.xlu0 %v3265_v36 }
 0x770   : > { %3301 = vrot.lane.b32.xlu1 %v9917_v11, %s12772_s28 }
 0x787   : > { %v2521_v63 = vpop.xlane.xlu0 %2520 }
 0x788   : > { %8887 = vrcp.f32 %v2521_v63 }
 0x78b   : > { %v2524_v32 = vpop.xlane.xlu0 %2523 }
 0x78c   : > { %8889 = vrcp.f32 %v2524_v32 }
 0x78f   : > { %v2527_v37 = vpop.xlane.xlu0 %2526 }
 0x790   : > { %8891 = vrcp.f32 %v2527_v37 }
 0x792   : > { %v8888_v27 = vpop.eup %8887 }
 0x793   : > { %v2557_v16 = vmul.f32 %v8888_v27, %v10514_v53  ;;  %v2530_v29 = vpop.xlane.xlu0 %2529  ;;  %v2536_v3 = vpop.xlane.xlu1 %2535 }
 0x794   : > { %8893 = vrcp.f32 %v2530_v29 }
 0x795   : > { %v2566_v13 = vpack.c.bf16 %v2557_v16, %v2556_v2  ;;  %8895 = vrcp.f32 %v2533_v20 }
 0x796   : > { %v8890_v55 = vpop.eup %8889 }
 0x797   : > { %7821 = vmatmul.mubr.msk.bf16.vlgmr.msra.gmra.mrb[60].mxu1 %vm2094_vm3, %v2566_v13  ;;  %v2539_v11 = vpop.xlane.xlu0 %2538  ;;  %v2558_v53 = vmul.f32 %v8890_v55, %v10520_v61 }
 0x798   : > { %7871 = vmatpush3.bf16.msra.mxu1 %v10400_v7  ;;  %7824 = vmatprep.mubr.msk.bf16.mxu1 %vm9272_vm1, %v12834_v52  ;;  %8897 = vrcp.f32 %v2539_v11 }
 0x799   : > { %7872 = vmatprep.subr.bf16.mxu1 %v12834_v52  ;;  %8899 = vrcp.f32 %v2536_v3 }
 0x79a   : > { %v8892_v57 = vpop.eup %8891 }
 0x79b   : > { %v2542_v12 = vpop.xlane.xlu0 %2541  ;;  %v2559_v54 = vmul.f32 %v8892_v57, %v10527_v21 }
 0x79c   : > { %7873 = vmatpush3.bf16.msra.mxu1 %v10409_v48  ;;  %v12836_v48 = vld [vmem:[#allocation15_spill] sm:$0xff] }
 0x79d   : > { %7874 = vmatprep.subr.bf16.mxu1 %v12834_v52  ;;  %v2567_v23 = vpack.c.bf16 %v2559_v54, %v2558_v53 }
 0x79e   : > { %v8894_v7 = vpop.eup %8893 }
 0x79f   : > { %7825 = vmatmul.mubr.msk.bf16.gmra.mrb[64].mxu1 %vm2094_vm3, %v2567_v23  ;;  %v2545_v44 = vpop.xlane.xlu0 %2544  ;;  %v8896_v49 = vpop.eup %8895  ;;  %v2560_v61 = vmul.f32 %v8894_v7, %v10534_v46  ;;  %v12840_v7 = vld [vmem:[#allocation17_spill] sm:$0xff] }
 0x7a0   : > { %7875 = vmatpush3.bf16.msra.mxu1 %v12835_v39  ;;  %7828 = vmatprep.mubr.msk.bf16.mxu1 %vm9272_vm1, %v12834_v52  ;;  %v2561_v0 = vmul.f32 %v8896_v49, %v12836_v48  ;;  %8901 = vrcp.f32 %v2545_v44  ;;  %v12841_v48 = vld [vmem:[#allocation18_spill] sm:$0xff] }
 0x7a1   : > { %7876 = vmatprep.subr.bf16.mxu1 %v12834_v52  ;;  %8903 = vrcp.f32 %v2542_v12 }
 0x7a2   : > { %v2568_v17 = vpack.c.bf16 %v2561_v0, %v2560_v61  ;;  %v8898_v58 = vpop.eup %8897 }
 0x7a3   : > { %v2879_v21 = vpop.xlane.xlu0 %2878  ;;  %v8900_v19 = vpop.eup %8899  ;;  %v2563_v46 = vmul.f32 %v8898_v58, %v10545_v50 }
 0x7a4   : > { %7877 = vmatpush3.bf16.msra.mxu1 %v12837_v8  ;;  %v2562_v22 = vmul.f32 %v8900_v19, %v10536_v33 }
 0x7a5   : > { %7878 = vmatprep.subr.bf16.mxu1 %v12834_v52 }
 0x7a6   : > { %v2569_v30 = vpack.c.bf16 %v2563_v46, %v2562_v22 }
 0x7a7   : > { %7829 = vmatmul.mubr.msk.bf16.gmra.mrb[68].mxu1 %vm2094_vm3, %v2568_v17  ;;  %v2882_v47 = vpop.xlane.xlu0 %2881 }
 0x7a8   : > { %7879 = vmatpush3.bf16.msra.mxu1 %v12838_v24  ;;  %7832 = vmatprep.mubr.msk.bf16.mxu1 %vm9272_vm1, %v12834_v52  ;;  %8905 = vrcp.f32 %v2882_v47  ;;  %v12842_v24 = vld [vmem:[#allocation19_spill] sm:$0xff] }
 0x7a9   : > { %7930 = vmatprep.subr.bf16.mxu1 %v12834_v52  ;;  %8907 = vrcp.f32 %v2879_v21 }
 0x7aa   : > { %v8902_v10 = vpop.eup %8901 }
 0x7ab   : > { %v2888_v45 = vpop.xlane.xlu0 %2887  ;;  %v8904_v28 = vpop.eup %8903  ;;  %v2565_v60 = vmul.f32 %v8902_v10, %v10561_v62  ;;  %v12839_v62 = vld [vmem:[#allocation16_spill] sm:$0xff] }
 0x7ac   : > { %v2564_v50 = vmul.f32 %v8904_v28, %v10552_v15  ;;  %v3298_v15 = vpop.permute.xlu1 %3297  ;;  %8909 = vrcp.f32 %v2888_v45 }
 0x7ae   : > { %v2570_v36 = vpack.c.bf16 %v2565_v60, %v2564_v50 }
 0x7af   : > { %7833 = vmatmul.mubr.msk.bf16.gmra.mrb[72].mxu1 %vm2094_vm3, %v2569_v30  ;;  %v2891_v38 = vpop.xlane.xlu0 %2890 }
 0x7b0   : > { %7836 = vmatprep.mubr.msk.bf16.mxu1 %vm9272_vm1, %v12834_v52 }
 0x7b2   : > { %v8906_v59 = vpop.eup %8905 }
 0x7b3   : > { %v8908_v33 = vpop.eup %8907  ;;  %v2918_v63 = vmul.f32 %v8906_v59, %v10575_v41  ;;  %v2900_v32 = vpop.xlane.xlu0 %2899 }
 0x7b4   : > { %v2917_v37 = vmul.f32 %v8908_v33, %v10568_v6 }
 0x7b6   : > { %v2927_v26 = vpack.c.bf16 %v2918_v63, %v2917_v37  ;;  %v8910_v29 = vpop.eup %8909 }
 0x7b7   : > { %7837 = vmatmul.mubr.msk.bf16.gmra.mrb[76].mxu1 %vm2094_vm3, %v2570_v36  ;;  %v2903_v27 = vpop.xlane.xlu0 %2902  ;;  %v2920_v55 = vmul.f32 %v8910_v29, %v10583_v1 }
 0x7b8   : > { %7880 = vmatprep.mubr.msk.bf16.mxu1 %vm9272_vm1, %v12834_v52 }
 0x7bb   : > { %v10774_v2 = vpop.xlane.xlu0 %3254 }
 0x7bf   : > { %7881 = vmatmul.mubr.msk.bf16.vlgmr.msra.gmra.mrb[80].mxu1 %vm2094_vm3, %v2927_v26  ;;  %v3300_v41 = vpop.permute.xlu0 %3299  ;;  %v12843_v26 = vld [vmem:[#allocation20_spill] sm:$0xff] }
 0x7c0   : > { %7931 = vmatpush3.bf16.msra.mxu1 %v12839_v62  ;;  %7884 = vmatprep.mubr.msk.bf16.mxu1 %vm9272_vm1, %v12834_v52 }
 0x7c1   : > { %7932 = vmatprep.subr.bf16.mxu1 %v12834_v52 }
 0x7c4   : > { %7933 = vmatpush3.bf16.msra.mxu1 %v10729_v4 }
 0x7c5   : > { %7934 = vmatprep.subr.bf16.mxu1 %v12834_v52 }
 0x7c8   : > { %7935 = vmatpush3.bf16.msra.mxu1 %v3298_v15  ;;  %v2885_v6 = vpop.xlane.xlu1 %2884 }
 0x7c9   : > { %8911 = vrcp.f32 %v2885_v6  ;;  %7936 = vmatprep.subr.bf16.mxu1 %v12834_v52 }
 0x7cc   : > { %7937 = vmatpush3.bf16.msra.mxu1 %v3300_v41  ;;  %v2894_v20 = vpop.xlane.xlu1 %2893 }
 0x7cd   : > { %8913 = vrcp.f32 %v2894_v20  ;;  %7938 = vmatprep.subr.bf16.mxu1 %v12834_v52 }
 0x7ce   : > { %8915 = vrcp.f32 %v2891_v38 }
 0x7d0   : > { %v2897_v16 = vpop.xlane.xlu1 %2896 }
 0x7d1   : > { %8917 = vrcp.f32 %v2897_v16 }
 0x7d2   : > { %8919 = vrcp.f32 %v2900_v32 }
 0x7d3   : > { %v8912_v4 = vpop.eup %8911 }
 0x7d4   : > { %v2906_v13 = vpop.xlane.xlu1 %2905  ;;  %v2919_v11 = vmul.f32 %v8912_v4, %v10622_v5 }
 0x7d5   : > { %8921 = vrcp.f32 %v2906_v13 }
 0x7d6   : > { %v2928_v57 = vpack.c.bf16 %v2920_v55, %v2919_v11  ;;  %8923 = vrcp.f32 %v2903_v27 }
 0x7d7   : > { %v8914_v3 = vpop.eup %8913 }
 0x7d8   : > { %v3240_v12 = vpop.xlane.xlu1 %3239  ;;  %7885 = vmatmul.mubr.msk.bf16.gmra.mrb[84].mxu1 %vm2094_vm3, %v2928_v57  ;;  %v8916_v53 = vpop.eup %8915  ;;  %v2922_v54 = vmul.f32 %v8914_v3, %v10626_v14 }
 0x7d9   : > { %7888 = vmatprep.mubr.msk.bf16.mxu1 %vm9272_vm1, %v12834_v52  ;;  %v2921_v44 = vmul.f32 %v8916_v53, %v12840_v7 }
 0x7db   : > { %v2929_v5 = vpack.c.bf16 %v2922_v54, %v2921_v44  ;;  %v8918_v49 = vpop.eup %8917 }
 0x7dc   : > { %v3243_v23 = vpop.xlane.xlu1 %3242  ;;  %v8920_v39 = vpop.eup %8919  ;;  %v2923_v61 = vmul.f32 %v8918_v49, %v10636_v42 }
 0x7dd   : > { %v2924_v0 = vmul.f32 %v8920_v39, %v12841_v48  ;;  %8925 = vrcp.f32 %v3243_v23 }
 0x7de   : > { %8927 = vrcp.f32 %v3240_v12 }
 0x7df   : > { %v2930_v14 = vpack.c.bf16 %v2924_v0, %v2923_v61  ;;  %v8922_v8 = vpop.eup %8921 }
 0x7e0   : > { %v3246_v1 = vpop.xlane.xlu1 %3245  ;;  %7889 = vmatmul.mubr.msk.bf16.gmra.mrb[88].mxu1 %vm2094_vm3, %v2929_v5  ;;  %v8924_v58 = vpop.eup %8923  ;;  %v2926_v47 = vmul.f32 %v8922_v8, %v10644_v25 }
 0x7e1   : > { %7892 = vmatprep.mubr.msk.bf16.mxu1 %vm9272_vm1, %v12834_v52  ;;  %v2925_v46 = vmul.f32 %v8924_v58, %v12842_v24 }
 0x7e3   : > { %v2931_v42 = vpack.c.bf16 %v2926_v47, %v2925_v46 }
 0x7e4   : > { %v3249_v21 = vpop.xlane.xlu1 %3248 }
 0x7e5   : > { %8929 = vrcp.f32 %v3249_v21 }
 0x7e6   : > { %8931 = vrcp.f32 %v3246_v1 }
 0x7e7   : > { %v8926_v22 = vpop.eup %8925 }
 0x7e8   : > { %v3252_v17 = vpop.xlane.xlu1 %3251  ;;  %7893 = vmatmul.mubr.msk.bf16.gmra.mrb[92].mxu1 %vm2094_vm3, %v2930_v14  ;;  %v8928_v30 = vpop.eup %8927  ;;  %v3279_v10 = vmul.f32 %v8926_v22, %v10663_v56 }
 0x7e9   : > { %7896 = vmatprep.mubr.msk.bf16.mxu1 %vm9272_vm1, %v12834_v52  ;;  %v3278_v25 = vmul.f32 %v8928_v30, %v10659_v35  ;;  %8933 = vrcp.f32 %v3252_v17 }
 0x7ea   : > { %8935 = vrcp.f32 %v10774_v2 }
 0x7eb   : > { %v3288_v28 = vpack.c.bf16 %v3279_v10, %v3278_v25 }
 0x7ec   : > { %v3258_v19 = vpop.xlane.xlu1 %3257 }
 0x7ef   : > { %v8930_v38 = vpop.eup %8929 }
 0x7f0   : > { %v3302_v45 = vpop.permute.xlu1 %3301  ;;  %7897 = vmatmul.mubr.msk.bf16.gmra.mrb[96].mxu1 %vm2094_vm3, %v2931_v42  ;;  %v3261_v60 = vpop.xlane.xlu0 %3260  ;;  %v3281_v36 = vmul.f32 %v8930_v38, %v10682_v43 }
 0x7f1   : > { %7939 = vmatpush3.bf16.msra.mxu1 %v3302_v45  ;;  %7940 = vmatprep.mubr.msk.bf16.mxu1 %vm9272_vm1, %v12834_v52  ;;  %v8932_v50 = vpop.eup %8931  ;;  %8937 = vrcp.f32 %v3261_v60 }
 0x7f2   : > { %8443 = vmatprep.subr.bf16.mxu1 %v12834_v52  ;;  %v3280_v56 = vmul.f32 %v8932_v50, %v10680_v31  ;;  %8939 = vrcp.f32 %v3258_v19 }
 0x7f3   : > { %v8934_v35 = vpop.eup %8933 }
 0x7f4   : > { %v3264_v59 = vpop.xlane.xlu0 %3263  ;;  %v3289_v33 = vpack.c.bf16 %v3281_v36, %v3280_v56  ;;  %v8936_v63 = vpop.eup %8935  ;;  %v3282_v37 = vmul.f32 %v8934_v35, %v10699_v40  ;;  %v8718_v35 = vld [vmem:[%s12732_s11 + $0x8] sm:$0xff]  }
 0x7f5   : > { %v3283_v27 = vmul.f32 %v8936_v63, %v12843_v26 }
 0x7f7   : > { %v3290_v43 = vpack.c.bf16 %v3283_v27, %v3282_v37 }
 0x7f8   : > { %7941 = vmatmul.mubr.msk.bf16.vlgmr.msra.gmra.mrb[100].mxu1 %vm2094_vm3, %v3288_v28  ;;  %v3267_v32 = vpop.xlane.xlu0 %3266 }
 0x7f9   : > { %7944 = vmatprep.mubr.msk.bf16.mxu1 %vm9272_vm1, %v12834_v52  ;;  %8941 = vrcp.f32 %v3267_v32 }
 0x7fa   : > { %8943 = vrcp.f32 %v3264_v59  ;;  %v8717_v59 = vld [vmem:[%s12732_s11] sm:$0xff]  }
 0x7fb   : > { %v8938_v62 = vpop.eup %8937  ;;  %7961 = vmatpush3.bf16.msra.mxu0 %v8717_v59  ;;  %8445 = vmatpush3.bf16.msra.mxu1 %v8717_v59 }
 0x7fc   : > { %v8940_v31 = vpop.eup %8939  ;;  %v3285_v15 = vmul.f32 %v8938_v62, %v10712_v51  ;;  %7962 = vmatprep.subr.bf16.mxu0 %v12834_v52  ;;  %8444 = vmatprep.subr.bf16.mxu1 %v12834_v52 }
 0x7fd   : > { %v3284_v2 = vmul.f32 %v8940_v31, %v10701_v9 }
 0x7ff   : > { %v3291_v6 = vpack.c.bf16 %v3285_v15, %v3284_v2  ;;  %7963 = vmatpush3.bf16.msra.mxu0 %v8718_v35  ;;  %8446 = vmatpush3.bf16.msra.mxu1 %v8718_v35 }
 0x800   : > { %7945 = vmatmul.mubr.msk.bf16.gmra.mrb[104].mxu1 %vm2094_vm3, %v3289_v33  ;;  %7984 = vmatprep.subr.bf16.mxu1 %v12834_v52 }
 0x801   : > { %7948 = vmatprep.mubr.msk.bf16.mxu1 %vm9272_vm1, %v12834_v52  ;;  %8008 = vmatprep.subr.bf16.mxu0 %v12834_v52 }
 0x803   : > { %v8942_v41 = vpop.eup %8941 }
 0x804   : > { %v8944_v40 = vpop.eup %8943  ;;  %v3287_v20 = vmul.f32 %v8942_v41, %v10723_v18 }
 0x805   : > { %v3286_v4 = vmul.f32 %v8944_v40, %v10717_v34 }
 0x807   : > { %v3292_v11 = vpack.c.bf16 %v3287_v20, %v3286_v4 }
 0x808   : > { %7949 = vmatmul.mubr.msk.bf16.gmra.mrb[108].mxu1 %vm2094_vm3, %v3290_v43 }
 0x809   : > { %7952 = vmatprep.mubr.msk.bf16.mxu1 %vm9272_vm1, %v12834_v52 }
 0x810   : > { %7953 = vmatmul.mubr.msk.bf16.gmra.mrb[112].mxu1 %vm2094_vm3, %v3291_v6 }
 0x811   : > { %7956 = vmatprep.mubr.msk.bf16.mxu1 %vm9272_vm1, %v12834_v52 }
 0x813   : > { %v10822_v16 = vpop.f32.mrb[40].mxu1 }
 0x814   : > { %v7762_v29 = vpop.f32.mrb[41].mxu1 }
 0x815   : > { %v10825_v13 = vpop.f32.mrb[42].mxu1 }
 0x816   : > { %v7763_v51 = vpop.f32.mrb[43].mxu1 }
 0x818   : > { %7957 = vmatmul.mubr.msk.bf16.gmra.mrb[116].mxu1 %vm2094_vm3, %v3292_v11 }
 0x819   : > { %7980 = vmatprep.mubr.msk.bf16.mxu1 %vm9272_vm1, %v12834_v52 }
 0x81d   : > { %v10830_v9 = vpop.f32.mrb[44].mxu1 }
 0x81e   : > { %v7766_v55 = vpop.f32.mrb[45].mxu1 }
 0x81f   : > { %v10832_v57 = vpop.f32.mrb[46].mxu1 }
 0x820   : > { %v7767_v18 = vpop.f32.mrb[47].mxu1 }
 0x825   : > { %v10834_v3 = vpop.f32.mrb[48].mxu1 }
 0x826   : > { %v7770_v12 = vpop.f32.mrb[49].mxu1 }
 0x827   : > { %v10836_v53 = vpop.f32.mrb[50].mxu1 }
 0x828   : > { %v7771_v34 = vpop.f32.mrb[51].mxu1 }
 0x82d   : > { %v10838_v54 = vpop.f32.mrb[52].mxu1 }
 0x82e   : > { %v7774_v23 = vpop.f32.mrb[53].mxu1 }
 0x82f   : > { %v10840_v7 = vpop.f32.mrb[54].mxu1 }
 0x830   : > { %v7775_v44 = vpop.f32.mrb[55].mxu1 }
 0x835   : > { %v10842_v5 = vpop.f32.mrb[56].mxu1 }
 0x836   : > { %v7778_v49 = vpop.f32.mrb[57].mxu1 }
 0x837   : > { %v10844_v1 = vpop.f32.mrb[58].mxu1 }
 0x838   : > { %v7779_v39 = vpop.f32.mrb[59].mxu1 }
 0x86a   : > { %v2635_v61 = vpop.f32.mrb[60].mxu1 }
 0x86b   : > { %v7822_v21 = vpop.f32.mrb[61].mxu1 }
 0x86c   : > { %v2638_v48 = vpop.f32.mrb[62].mxu1 }
 0x86d   : > { %v8472_v0 = vpack.i.bf16 %v2638_v48, %v2635_v61  ;;  %v7823_v14 = vpop.f32.mrb[63].mxu1 }
 0x86f   : > { %8473 = vrot.lane.b32.xlu0 %v8472_v0, %s12780_s27 }
 0x872   : > { %v10847_v8 = vpop.f32.mrb[64].mxu1 }
 0x873   : > { %v7826_v17 = vpop.f32.mrb[65].mxu1 }
 0x874   : > { %v10849_v58 = vpop.f32.mrb[66].mxu1 }
 0x875   : > { %v8487_v47 = vpack.i.bf16 %v10849_v58, %v10847_v8  ;;  %v7827_v19 = vpop.f32.mrb[67].mxu1 }
 0x87a   : > { %v10853_v24 = vpop.f32.mrb[68].mxu1 }
 0x87b   : > { %v7830_v46 = vpop.f32.mrb[69].mxu1 }
 0x87c   : > { %v10855_v42 = vpop.f32.mrb[70].mxu1 }
 0x87d   : > { %v8502_v22 = vpack.i.bf16 %v10855_v42, %v10853_v24  ;;  %v7831_v45 = vpop.f32.mrb[71].mxu1 }
 0x882   : > { %v10859_v30 = vpop.f32.mrb[72].mxu1 }
 0x883   : > { %v7834_v10 = vpop.f32.mrb[73].mxu1 }
 0x884   : > { %v10861_v25 = vpop.f32.mrb[74].mxu1 }
 0x885   : > { %v8517_v28 = vpack.i.bf16 %v10861_v25, %v10859_v30  ;;  %v7835_v60 = vpop.f32.mrb[75].mxu1 }
 0x88a   : > { %v10865_v38 = vpop.f32.mrb[76].mxu1 }
 0x88b   : > { %v7838_v50 = vpop.f32.mrb[77].mxu1 }
 0x88c   : > { %v10867_v36 = vpop.f32.mrb[78].mxu1 }
 0x88d   : > { %v8532_v56 = vpack.i.bf16 %v10867_v36, %v10865_v38  ;;  %v7839_v33 = vpop.f32.mrb[79].mxu1 }
 0x892   : > { %v2996_v63 = vpop.f32.mrb[80].mxu1 }
 0x893   : > { %v7882_v32 = vpop.f32.mrb[81].mxu1 }
 0x894   : > { %v2999_v37 = vpop.f32.mrb[82].mxu1 }
 0x895   : > { %v8477_v26 = vpack.i.bf16 %v2999_v37, %v2996_v63  ;;  %v7883_v27 = vpop.f32.mrb[83].mxu1 }
 0x897   : > { %8478 = vrot.lane.b32.xlu1 %v8477_v26, %s12778_s29 }
 0x8ab   : > { %v3004_v43 = vpop.f32.mrb[84].mxu1 }
 0x8ac   : > { %v7886_v62 = vpop.f32.mrb[85].mxu1 }
 0x8ad   : > { %v3007_v31 = vpop.f32.mrb[86].mxu1 }
 0x8ae   : > { %v8492_v15 = vpack.i.bf16 %v3007_v31, %v3004_v43  ;;  %v7887_v2 = vpop.f32.mrb[87].mxu1 }
 0x8b3   : > { %v3012_v6 = vpop.f32.mrb[88].mxu1 }
 0x8b4   : > { %v7890_v41 = vpop.f32.mrb[89].mxu1 }
 0x8b5   : > { %v3015_v40 = vpop.f32.mrb[90].mxu1 }
 0x8b6   : > { %v8507_v20 = vpack.i.bf16 %v3015_v40, %v3012_v6  ;;  %v7891_v29 = vpop.f32.mrb[91].mxu1 }
 0x8bb   : > { %v3020_v4 = vpop.f32.mrb[92].mxu1 }
 0x8bc   : > { %v7894_v51 = vpop.f32.mrb[93].mxu1 }
 0x8bd   : > { %v3023_v11 = vpop.f32.mrb[94].mxu1 }
 0x8be   : > { %v8522_v55 = vpack.i.bf16 %v3023_v11, %v3020_v4  ;;  %v7895_v18 = vpop.f32.mrb[95].mxu1 }
 0x8c3   : > { %v3028_v12 = vpop.f32.mrb[96].mxu1 }
 0x8c4   : > { %v7898_v34 = vpop.f32.mrb[97].mxu1 }
 0x8c5   : > { %v3031_v23 = vpop.f32.mrb[98].mxu1 }
 0x8c6   : > { %v8537_v44 = vpack.i.bf16 %v3031_v23, %v3028_v12  ;;  %v7899_v49 = vpop.f32.mrb[99].mxu1 }
 0x8cb   : > { %v3357_v39 = vpop.f32.mrb[100].mxu1 }
 0x8cc   : > { %v7942_v61 = vpop.f32.mrb[101].mxu1 }
 0x8cd   : > { %v3360_v21 = vpop.f32.mrb[102].mxu1 }
 0x8ce   : > { %v8482_v48 = vpack.i.bf16 %v3360_v21, %v3357_v39  ;;  %v7943_v0 = vpop.f32.mrb[103].mxu1 }
 0x8d0   : > { %8483 = vrot.lane.b32.xlu1 %v8482_v48, %s12776_s5 }
 0x8d3   : > { %v3365_v14 = vpop.f32.mrb[104].mxu1 }
 0x8d4   : > { %8488 = vrot.lane.b32.xlu1 %v8487_v47, %s12780_s27  ;;  %v7946_v8 = vpop.f32.mrb[105].mxu1 }
 0x8d5   : > { %v3368_v17 = vpop.f32.mrb[106].mxu1 }
 0x8d6   : > { %v8497_v58 = vpack.i.bf16 %v3368_v17, %v3365_v14  ;;  %v7947_v19 = vpop.f32.mrb[107].mxu1 }
 0x8d8   : > { %8493 = vrot.lane.b32.xlu1 %v8492_v15, %s12778_s29  ;;  %8498 = vrot.lane.b32.xlu0 %v8497_v58, %s12776_s5 }
 0x8db   : > { %v3373_v46 = vpop.f32.mrb[108].mxu1 }
 0x8dc   : > { %8503 = vrot.lane.b32.xlu1 %v8502_v22, %s12780_s27  ;;  %8508 = vrot.lane.b32.xlu0 %v8507_v20, %s12778_s29  ;;  %v7950_v45 = vpop.f32.mrb[109].mxu1 }
 0x8dd   : > { %v3376_v10 = vpop.f32.mrb[110].mxu1 }
 0x8de   : > { %v8512_v60 = vpack.i.bf16 %v3376_v10, %v3373_v46  ;;  %v7951_v47 = vpop.f32.mrb[111].mxu1 }
 0x8e0   : > { %8518 = vrot.lane.b32.xlu0 %v8517_v28, %s12780_s27  ;;  %8513 = vrot.lane.b32.xlu1 %v8512_v60, %s12776_s5 }
 0x8e1   : > { %v8474_v63 = vpop.permute.xlu0 %8473 }
 0x8e2   : > { %v8476_v37 = vunpack.i.h.bf16 %v8474_v63  ;;  %v8475_v26 = vunpack.i.l.bf16 %v8474_v63 }
 0x8e3   : > { %v3381_v50 = vpop.f32.mrb[112].mxu1 }
 0x8e4   : > { %8523 = vrot.lane.b32.xlu1 %v8522_v55, %s12778_s29  ;;  %v7954_v59 = vpop.f32.mrb[113].mxu1  ;;  %v3517_v36 = vsel %vm1970_vm2, %v10825_v13, %v8476_v37 }
 0x8e5   : > { %v3384_v33 = vpop.f32.mrb[114].mxu1 }
 0x8e6   : > { %v8527_v24 = vpack.i.bf16 %v3384_v33, %v3381_v50  ;;  %v7955_v42 = vpop.f32.mrb[115].mxu1 }
 0x8e8   : > { %8533 = vrot.lane.b32.xlu1 %v8532_v56, %s12780_s27  ;;  %8528 = vrot.lane.b32.xlu0 %v8527_v24, %s12776_s5  ;;  %v3516_v56 = vsel %vm1970_vm2, %v10822_v16, %v8475_v26 }
 0x8eb   : > { %v3389_v22 = vpop.f32.mrb[116].mxu1 }
 0x8ec   : > { %8538 = vrot.lane.b32.xlu0 %v8537_v44, %s12778_s29  ;;  %v7958_v30 = vpop.f32.mrb[117].mxu1  ;;  %s12869_s29 = smov 56  }
 0x8ed   : > { %v3392_v25 = vpop.f32.mrb[118].mxu1 }
 0x8ee   : > { %v8542_v28 = vpack.i.bf16 %v3392_v25, %v3389_v22  ;;  %v7959_v35 = vpop.f32.mrb[119].mxu1 }
 0x8f0   : > { %8543 = vrot.lane.b32.xlu1 %v8542_v28, %s12776_s5  ;;  %s12870_s5 = smov 48  }
 0x909   : > { %v8479_v32 = vpop.permute.xlu1 %8478 }
 0x90a   : > { %v8481_v27 = vunpack.i.h.bf16 %v8479_v32  ;;  %v8480_v43 = vunpack.i.l.bf16 %v8479_v32 }
 0x90c   : > { %v3527_v15 = vsel %vm3526_vm4, %v3516_v56, %v8480_v43  ;;  %v3528_v2 = vsel %vm3526_vm4, %v3517_v36, %v8481_v27 }
 0x942   : > { %v8484_v38 = vpop.permute.xlu1 %8483 }
 0x943   : > { %v8486_v62 = vunpack.i.h.bf16 %v8484_v38  ;;  %v8485_v31 = vunpack.i.l.bf16 %v8484_v38 }
 0x945   : > { %v3538_v6 = vsel %vm3537_vm5, %v3527_v15, %v8485_v31  ;;  %v3539_v41 = vsel %vm3537_vm5, %v3528_v2, %v8486_v62 }
 0x946   : > { %v3553_v40 = vpack.c.bf16 %v3539_v41, %v3538_v6  ;;  %v8489_v20 = vpop.permute.xlu1 %8488 }
 0x947   : > { %v8491_v29 = vunpack.i.h.bf16 %v8489_v20  ;;  %v8490_v4 = vunpack.i.l.bf16 %v8489_v20 }
 0x948   : > { %7965 = vmatmul.mubr.msk.bf16.vlgmr.msra.gmra.mrb[120].mxu0 %vm1496_vm0, %v3553_v40 }
 0x949   : > { %7968 = vmatprep.mubr.msk.bf16.mxu0 %vm9272_vm1, %v12834_v52  ;;  %v3519_v12 = vsel %vm1970_vm2, %v10832_v57, %v8491_v29  ;;  %v3518_v34 = vsel %vm1970_vm2, %v10830_v9, %v8490_v4 }
 0x94a   : > { %v8494_v16 = vpop.permute.xlu1 %8493  ;;  %v8499_v13 = vpop.permute.xlu0 %8498 }
 0x94b   : > { %v8496_v51 = vunpack.i.h.bf16 %v8494_v16  ;;  %v8495_v11 = vunpack.i.l.bf16 %v8494_v16  ;;  %v8501_v55 = vunpack.i.h.bf16 %v8499_v13  ;;  %v8500_v18 = vunpack.i.l.bf16 %v8499_v13 }
 0x94d   : > { %v3529_v23 = vsel %vm3526_vm4, %v3518_v34, %v8495_v11  ;;  %v3530_v44 = vsel %vm3526_vm4, %v3519_v12, %v8496_v51  ;;  %v12844_v11 = vld [vmem:[#allocation2_spill] sm:$0xff]  ;;  %v12845_v34 = vld [vmem:[#allocation3_spill] sm:$0xff] }
 0x94e   : > { %v3541_v49 = vsel %vm3537_vm5, %v3530_v44, %v8501_v55  ;;  %v3540_v39 = vsel %vm3537_vm5, %v3529_v23, %v8500_v18  ;;  %v8504_v61 = vpop.permute.xlu1 %8503  ;;  %v8509_v21 = vpop.permute.xlu0 %8508 }
 0x94f   : > { %v8506_v48 = vunpack.i.h.bf16 %v8504_v61  ;;  %v8505_v0 = vunpack.i.l.bf16 %v8504_v61  ;;  %v8511_v14 = vunpack.i.h.bf16 %v8509_v21  ;;  %v8510_v8 = vunpack.i.l.bf16 %v8509_v21 }
 0x950   : > { %v3554_v17 = vpack.c.bf16 %v3541_v49, %v3540_v39 }
 0x951   : > { %v3521_v57 = vsel %vm1970_vm2, %v10836_v53, %v8506_v48  ;;  %v3520_v9 = vsel %vm1970_vm2, %v10834_v3, %v8505_v0  ;;  %v12846_v0 = vld [vmem:[#allocation4_spill] sm:$0xff] }
 0x952   : > { %7969 = vmatmul.mubr.msk.bf16.gmra.mrb[124].mxu0 %vm1496_vm0, %v3554_v17  ;;  %v8514_v58 = vpop.permute.xlu1 %8513  ;;  %v3532_v45 = vsel %vm3526_vm4, %v3521_v57, %v8511_v14  ;;  %v3531_v10 = vsel %vm3526_vm4, %v3520_v9, %v8510_v8  ;;  %v8519_v60 = vpop.permute.xlu0 %8518  ;;  %v12847_v57 = vld [vmem:[#allocation5_spill] sm:$0xff] }
 0x953   : > { %v8516_v19 = vunpack.i.h.bf16 %v8514_v58  ;;  %v8515_v46 = vunpack.i.l.bf16 %v8514_v58  ;;  %7972 = vmatprep.mubr.msk.bf16.mxu0 %vm9272_vm1, %v12834_v52  ;;  %v8521_v3 = vunpack.i.h.bf16 %v8519_v60  ;;  %v8520_v33 = vunpack.i.l.bf16 %v8519_v60 }
 0x955   : > { %v3542_v47 = vsel %vm3537_vm5, %v3531_v10, %v8515_v46  ;;  %v3543_v53 = vsel %vm3537_vm5, %v3532_v45, %v8516_v19  ;;  %v3523_v30 = vsel %vm1970_vm2, %v10840_v7, %v8521_v3  ;;  %v3522_v25 = vsel %vm1970_vm2, %v10838_v54, %v8520_v33  ;;  %v12849_v3 = vld [vmem:[#allocation7_spill] sm:$0xff] }
 0x956   : > { %v8524_v50 = vpop.permute.xlu1 %8523  ;;  %v3555_v59 = vpack.c.bf16 %v3543_v53, %v3542_v47  ;;  %v12848_v47 = vld [vmem:[#allocation6_spill] sm:$0xff] }
 0x957   : > { %v8526_v24 = vunpack.i.h.bf16 %v8524_v50  ;;  %v8525_v42 = vunpack.i.l.bf16 %v8524_v50 }
 0x959   : > { %v3533_v63 = vsel %vm3526_vm4, %v3522_v25, %v8525_v42  ;;  %v3534_v32 = vsel %vm3526_vm4, %v3523_v30, %v8526_v24 }
 0x95a   : > { %7973 = vmatmul.mubr.msk.bf16.gmra.mrb[128].mxu0 %vm1496_vm0, %v3555_v59  ;;  %v8529_v22 = vpop.permute.xlu0 %8528  ;;  %v8534_v37 = vpop.permute.xlu1 %8533 }
 0x95b   : > { %v8531_v28 = vunpack.i.h.bf16 %v8529_v22  ;;  %v8530_v35 = vunpack.i.l.bf16 %v8529_v22  ;;  %7976 = vmatprep.mubr.msk.bf16.mxu0 %vm9272_vm1, %v12834_v52  ;;  %v8536_v7 = vunpack.i.h.bf16 %v8534_v37  ;;  %v8535_v36 = vunpack.i.l.bf16 %v8534_v37 }
 0x95d   : > { %v3544_v26 = vsel %vm3537_vm5, %v3533_v63, %v8530_v35  ;;  %v3545_v27 = vsel %vm3537_vm5, %v3534_v32, %v8531_v28  ;;  %v3525_v31 = vsel %vm1970_vm2, %v10844_v1, %v8536_v7  ;;  %v3524_v15 = vsel %vm1970_vm2, %v10842_v5, %v8535_v36  ;;  %v7122_v5 = vld [vmem:[%s12733_s12] ss:$0 sm:$0xff]  ;;  %v12850_v35 = vld [vmem:[#allocation8_spill] sm:$0xff] }
 0x95e   : > { %v8539_v43 = vpop.permute.xlu0 %8538  ;;  %v3556_v38 = vpack.c.bf16 %v3545_v27, %v3544_v26  ;;  %v12851_v26 = vld [vmem:[#allocation9_spill] sm:$0xff] }
 0x95f   : > { %v8541_v56 = vunpack.i.h.bf16 %v8539_v43  ;;  %v8540_v54 = vunpack.i.l.bf16 %v8539_v43 }
 0x961   : > { %v3536_v41 = vsel %vm3526_vm4, %v3525_v31, %v8541_v56  ;;  %v3535_v40 = vsel %vm3526_vm4, %v3524_v15, %v8540_v54 }
 0x962   : > { %7977 = vmatmul.mubr.msk.bf16.gmra.mrb[132].mxu0 %vm1496_vm0, %v3556_v38  ;;  %v8544_v62 = vpop.permute.xlu1 %8543 }
 0x963   : > { %v8546_v2 = vunpack.i.h.bf16 %v8544_v62  ;;  %v8545_v6 = vunpack.i.l.bf16 %v8544_v62  ;;  %8024 = vmatprep.mubr.msk.bf16.mxu0 %vm9272_vm1, %v12834_v52  ;;  %v12852_v62 = vld [vmem:[#allocation10_spill] sm:$0xff] }
 0x965   : > { %v3546_v20 = vsel %vm3537_vm5, %v3535_v40, %v8545_v6  ;;  %v3547_v29 = vsel %vm3537_vm5, %v3536_v41, %v8546_v2  ;;  %v12853_v6 = vld [vmem:[#allocation11_spill] sm:$0xff] }
 0x966   : > { %v3557_v4 = vpack.c.bf16 %v3547_v29, %v3546_v20 }
 0x968   : > { %7981 = vmatmul.mubr.msk.bf16.vlgmr.msra.gmra.mrb[120].mxu1 %vm1496_vm0, %v3557_v4 }
 0x969   : > { %7988 = vmatprep.mubr.msk.bf16.mxu1 %vm9272_vm1, %v12834_v52 }
 0xa1b   : > { %v3625_v1 = vpop.f32.mrb[120].mxu0 }
 0xa1c   : > { %v3626_v16 = vadd.f32 %v7122_v5, %v3625_v1  ;;  %v7966_v13 = vpop.f32.mrb[121].mxu0 }
 0xa1d   : > { %v3628_v51 = vpop.f32.mrb[122].mxu0 }
 0xa1e   : > { %v10963_v55 = vadd.f32 %v3626_v16, %v12844_v11  ;;  %v3629_v18 = vadd.f32 %v7122_v5, %v3628_v51  ;;  %v7967_v12 = vpop.f32.mrb[123].mxu0 }
 0xa20   : > { %v10966_v23 = vadd.f32 %v3629_v18, %v12845_v34  ;;  %v3676_v44 = vsel %vm1496_vm0, %v10963_v55, 0.0 }
 0xa21   : > { %3677 = vadd.xlane.f32.xlu0 %v3676_v44 }
 0xa22   : > { %v3679_v49 = vsel %vm1496_vm0, %v10966_v23, 0.0 }
 0xa23   : > { %3680 = vadd.xlane.f32.xlu1 %v3679_v49 }
 0xa25   : > { %v3633_v39 = vpop.f32.mrb[124].mxu0 }
 0xa26   : > { %v3634_v61 = vadd.f32 %v7122_v5, %v3633_v39  ;;  %v7970_v21 = vpop.f32.mrb[125].mxu0 }
 0xa27   : > { %v3636_v48 = vpop.f32.mrb[126].mxu0 }
 0xa28   : > { %v10973_v14 = vadd.f32 %v3634_v61, %v12846_v0  ;;  %v3637_v8 = vadd.f32 %v7122_v5, %v3636_v48  ;;  %v7971_v17 = vpop.f32.mrb[127].mxu0 }
 0xa2a   : > { %v10976_v9 = vadd.f32 %v3637_v8, %v12847_v57  ;;  %v3682_v58 = vsel %vm1496_vm0, %v10973_v14, 0.0 }
 0xa2b   : > { %3683 = vadd.xlane.f32.xlu0 %v3682_v58 }
 0xa2c   : > { %v3685_v10 = vsel %vm1496_vm0, %v10976_v9, 0.0 }
 0xa2d   : > { %v3641_v19 = vpop.f32.mrb[128].mxu0 }
 0xa2e   : > { %v3642_v46 = vadd.f32 %v7122_v5, %v3641_v19  ;;  %v7974_v45 = vpop.f32.mrb[129].mxu0 }
 0xa2f   : > { %3686 = vadd.xlane.f32.xlu0 %v3685_v10  ;;  %v3644_v60 = vpop.f32.mrb[130].mxu0 }
 0xa30   : > { %v10983_v53 = vadd.f32 %v3642_v46, %v12848_v47  ;;  %v3645_v50 = vadd.f32 %v7122_v5, %v3644_v60  ;;  %v7975_v59 = vpop.f32.mrb[131].mxu0 }
 0xa32   : > { %v10986_v33 = vadd.f32 %v3645_v50, %v12849_v3  ;;  %v3688_v24 = vsel %vm1496_vm0, %v10983_v53, 0.0 }
 0xa33   : > { %3689 = vadd.xlane.f32.xlu1 %v3688_v24 }
 0xa34   : > { %v3691_v42 = vsel %vm1496_vm0, %v10986_v33, 0.0 }
 0xa35   : > { %3692 = vadd.xlane.f32.xlu0 %v3691_v42  ;;  %v3649_v22 = vpop.f32.mrb[132].mxu0 }
 0xa36   : > { %v3650_v30 = vadd.f32 %v7122_v5, %v3649_v22  ;;  %v7978_v25 = vpop.f32.mrb[133].mxu0 }
 0xa37   : > { %v3652_v28 = vpop.f32.mrb[134].mxu0 }
 0xa38   : > { %v10993_v63 = vadd.f32 %v3650_v30, %v12850_v35  ;;  %v3653_v32 = vadd.f32 %v7122_v5, %v3652_v28  ;;  %v7979_v37 = vpop.f32.mrb[135].mxu0 }
 0xa3a   : > { %v10996_v27 = vadd.f32 %v3653_v32, %v12851_v26  ;;  %v3694_v43 = vsel %vm1496_vm0, %v10993_v63, 0.0 }
 0xa3b   : > { %3695 = vadd.xlane.f32.xlu1 %v3694_v43  ;;  %v3657_v38 = vpop.f32.mrb[120].mxu1 }
 0xa3c   : > { %v3658_v7 = vadd.f32 %v7122_v5, %v3657_v38  ;;  %v7982_v36 = vpop.f32.mrb[121].mxu1  ;;  %v3697_v56 = vsel %vm1496_vm0, %v10996_v27, 0.0 }
 0xa3d   : > { %3698 = vadd.xlane.f32.xlu0 %v3697_v56  ;;  %v3660_v54 = vpop.f32.mrb[122].mxu1 }
 0xa3e   : > { %v11003_v31 = vadd.f32 %v3658_v7, %v12852_v62  ;;  %v3661_v15 = vadd.f32 %v7122_v5, %v3660_v54  ;;  %v7983_v2 = vpop.f32.mrb[123].mxu1 }
 0xa3f   : > { %v8719_v2 = vld [vmem:[%s12736_s15] sm:$0xff]  }
 0xa40   : > { %v11006_v41 = vadd.f32 %v3661_v15, %v12853_v6  ;;  %v3700_v40 = vsel %vm1496_vm0, %v11003_v31, 0.0  ;;  %7985 = vmatpush3.bf16.msra.mxu1 %v8719_v2 }
 0xa41   : > { %3701 = vadd.xlane.f32.xlu1 %v3700_v40  ;;  %7986 = vmatprep.subr.bf16.mxu1 %v12834_v52  ;;  %v8720_v40 = vld [vmem:[%s12736_s15 + $0x8] sm:$0xff]  }
 0xa42   : > { %v3703_v20 = vsel %vm1496_vm0, %v11006_v41, 0.0 }
 0xa43   : > { %3704 = vadd.xlane.f32.xlu0 %v3703_v20 }
 0xa44   : > { %7987 = vmatpush3.bf16.msra.mxu1 %v8720_v40 }
 0xa45   : > { %8044 = vmatprep.subr.bf16.mxu1 %v12834_v52 }
 0xaae   : > { %v3678_v29 = vpop.xlane.xlu0 %3677 }
 0xaaf   : > { %v3706_v4 = vmul.f32 0.03125, %v3678_v29 }
 0xab0   : > { %v3681_v1 = vpop.xlane.xlu1 %3680 }
 0xab1   : > { %v11013_v16 = vsub.f32 %v10963_v55, %v3706_v4  ;;  %v3707_v13 = vmul.f32 0.03125, %v3681_v1 }
 0xab3   : > { %v11016_v5 = vsub.f32 %v10966_v23, %v3707_v13  ;;  %v3726_v51 = vmul.f32 %v11013_v16, %v11013_v16 }
 0xab5   : > { %v3736_v11 = vsel %vm1496_vm0, %v3726_v51, 0.0  ;;  %v3727_v18 = vmul.f32 %v11016_v5, %v11016_v5 }
 0xab6   : > { %3737 = vadd.xlane.f32.xlu1 %v3736_v11 }
 0xab7   : > { %v3739_v12 = vsel %vm1496_vm0, %v3727_v18, 0.0 }
 0xab8   : > { %v3684_v34 = vpop.xlane.xlu0 %3683  ;;  %3740 = vadd.xlane.f32.xlu0 %v3739_v12 }
 0xab9   : > { %v3708_v44 = vmul.f32 0.03125, %v3684_v34 }
 0xabb   : > { %v11025_v49 = vsub.f32 %v10973_v14, %v3708_v44 }
 0xabc   : > { %v3687_v39 = vpop.xlane.xlu0 %3686 }
 0xabd   : > { %v3709_v61 = vmul.f32 0.03125, %v3687_v39  ;;  %v3728_v21 = vmul.f32 %v11025_v49, %v11025_v49  ;;  %v11083_v39 = vld [vmem:[%s12734_s13] ss:$0 sm:$0xff] }
 0xabf   : > { %v11030_v48 = vsub.f32 %v10976_v9, %v3709_v61  ;;  %v3742_v0 = vsel %vm1496_vm0, %v3728_v21, 0.0 }
 0xac0   : > { %v3690_v8 = vpop.xlane.xlu1 %3689  ;;  %3743 = vadd.xlane.f32.xlu1 %v3742_v0 }
 0xac1   : > { %v3710_v17 = vmul.f32 0.03125, %v3690_v8  ;;  %v3729_v57 = vmul.f32 %v11030_v48, %v11030_v48 }
 0xac2   : > { %v3693_v58 = vpop.xlane.xlu0 %3692 }
 0xac3   : > { %v11036_v19 = vsub.f32 %v10983_v53, %v3710_v17  ;;  %v3711_v46 = vmul.f32 0.03125, %v3693_v58  ;;  %v3745_v45 = vsel %vm1496_vm0, %v3729_v57, 0.0 }
 0xac4   : > { %3746 = vadd.xlane.f32.xlu0 %v3745_v45  ;;  %v11091_v45 = vld [vmem:[%s12735_s14] ss:$0 sm:$0xff] }
 0xac5   : > { %v11040_v10 = vsub.f32 %v10986_v33, %v3711_v46  ;;  %v3730_v60 = vmul.f32 %v11036_v19, %v11036_v19 }
 0xac7   : > { %v3748_v47 = vsel %vm1496_vm0, %v3730_v60, 0.0  ;;  %v3731_v50 = vmul.f32 %v11040_v10, %v11040_v10 }
 0xac8   : > { %3749 = vadd.xlane.f32.xlu1 %v3748_v47  ;;  %v3696_v59 = vpop.xlane.xlu1 %3695 }
 0xac9   : > { %v3712_v3 = vmul.f32 0.03125, %v3696_v59  ;;  %v3751_v24 = vsel %vm1496_vm0, %v3731_v50, 0.0 }
 0xaca   : > { %3752 = vadd.xlane.f32.xlu0 %v3751_v24  ;;  %v3699_v42 = vpop.xlane.xlu0 %3698 }
 0xacb   : > { %v11049_v22 = vsub.f32 %v10993_v63, %v3712_v3  ;;  %v3713_v30 = vmul.f32 0.03125, %v3699_v42 }
 0xacd   : > { %v11052_v25 = vsub.f32 %v10996_v27, %v3713_v30  ;;  %v3732_v28 = vmul.f32 %v11049_v22, %v11049_v22 }
 0xace   : > { %v3702_v35 = vpop.xlane.xlu1 %3701 }
 0xacf   : > { %v3714_v32 = vmul.f32 0.03125, %v3702_v35  ;;  %v3754_v37 = vsel %vm1496_vm0, %v3732_v28, 0.0  ;;  %v3733_v26 = vmul.f32 %v11052_v25, %v11052_v25 }
 0xad0   : > { %3755 = vadd.xlane.f32.xlu1 %v3754_v37  ;;  %v3705_v43 = vpop.xlane.xlu0 %3704 }
 0xad1   : > { %v11060_v38 = vsub.f32 %v11003_v31, %v3714_v32  ;;  %v3715_v7 = vmul.f32 0.03125, %v3705_v43  ;;  %v3757_v36 = vsel %vm1496_vm0, %v3733_v26, 0.0 }
 0xad2   : > { %3758 = vadd.xlane.f32.xlu0 %v3757_v36 }
 0xad3   : > { %v11064_v56 = vsub.f32 %v11006_v41, %v3715_v7  ;;  %v3734_v54 = vmul.f32 %v11060_v38, %v11060_v38 }
 0xad5   : > { %v3760_v62 = vsel %vm1496_vm0, %v3734_v54, 0.0  ;;  %v3735_v15 = vmul.f32 %v11064_v56, %v11064_v56 }
 0xad6   : > { %3761 = vadd.xlane.f32.xlu1 %v3760_v62 }
 0xad7   : > { %v3763_v6 = vsel %vm1496_vm0, %v3735_v15, 0.0 }
 0xad8   : > { %3764 = vadd.xlane.f32.xlu0 %v3763_v6 }
 0xb43   : > { %v3738_v20 = vpop.xlane.xlu1 %3737 }
 0xb44   : > { %v3766_v29 = vmul.f32 0.03125, %v3738_v20 }
 0xb45   : > { %v3741_v4 = vpop.xlane.xlu0 %3740 }
 0xb46   : > { %v3776_v1 = vadd.f32 1e-05, %v3766_v29  ;;  %v3767_v13 = vmul.f32 0.03125, %v3741_v4 }
 0xb48   : > { %8945 = vrsqrt.f32 %v3776_v1  ;;  %v3777_v51 = vadd.f32 1e-05, %v3767_v13 }
 0xb4a   : > { %8947 = vrsqrt.f32 %v3777_v51 }
 0xb4d   : > { %v3744_v11 = vpop.xlane.xlu1 %3743 }
 0xb4e   : > { %v3768_v18 = vmul.f32 0.03125, %v3744_v11 }
 0xb50   : > { %v3778_v12 = vadd.f32 1e-05, %v3768_v18 }
 0xb51   : > { %v3747_v34 = vpop.xlane.xlu0 %3746 }
 0xb52   : > { %v8946_v44 = vpop.eup %8945  ;;  %8949 = vrsqrt.f32 %v3778_v12  ;;  %v3769_v61 = vmul.f32 0.03125, %v3747_v34 }
 0xb53   : > { %v3796_v21 = vmul.f32 %v8946_v44, %v11013_v16 }
 0xb54   : > { %v8948_v0 = vpop.eup %8947  ;;  %v3779_v8 = vadd.f32 1e-05, %v3769_v61 }
 0xb55   : > { %v3812_v17 = vmul.f32 %v11083_v39, %v3796_v21  ;;  %v3797_v57 = vmul.f32 %v8948_v0, %v11016_v5  ;;  %v3750_v58 = vpop.xlane.xlu1 %3749 }
 0xb56   : > { %8951 = vrsqrt.f32 %v3779_v8  ;;  %v3770_v46 = vmul.f32 0.03125, %v3750_v58 }
 0xb57   : > { %v3813_v60 = vmul.f32 %v11083_v39, %v3797_v57  ;;  %v3753_v47 = vpop.xlane.xlu0 %3752  ;;  %v3828_v16 = vadd.f32 %v11091_v45, %v3812_v17 }
 0xb58   : > { %v3780_v50 = vadd.f32 1e-05, %v3770_v46  ;;  %v3771_v59 = vmul.f32 0.03125, %v3753_v47 }
 0xb59   : > { %v3829_v3 = vadd.f32 %v11091_v45, %v3813_v60 }
 0xb5a   : > { %8953 = vrsqrt.f32 %v3780_v50  ;;  %v3781_v24 = vadd.f32 1e-05, %v3771_v59 }
 0xb5b   : > { %v3843_v5 = vpack.c.bf16 %v3829_v3, %v3828_v16 }
 0xb5c   : > { %v8950_v42 = vpop.eup %8949  ;;  %8955 = vrsqrt.f32 %v3781_v24 }
 0xb5d   : > { %v3756_v30 = vpop.xlane.xlu1 %3755  ;;  %7989 = vmatmul.mubr.msk.bf16.vlgmr.msra.gmra.mrb[124].mxu1 %vm1496_vm0, %v3843_v5  ;;  %v3798_v28 = vmul.f32 %v8950_v42, %v11025_v49  ;;  %v8725_v5 = vld [vmem:[%s12738_s17 + $0x20] sm:$0xff]   ;;  %v8726_v42 = vld [vmem:[%s12738_s17 + $0x28] sm:$0xff]  }
 0xb5e   : > { %v3772_v35 = vmul.f32 0.03125, %v3756_v30  ;;  %7992 = vmatprep.mubr.msk.bf16.mxu1 %vm9272_vm1, %v12834_v52  ;;  %v8727_v30 = vld [vmem:[%s12738_s17 + $0x30] sm:$0xff]  }
 0xb5f   : > { %v3759_v32 = vpop.xlane.xlu0 %3758  ;;  %v3814_v36 = vmul.f32 %v11083_v39, %v3798_v28  ;;  %v8728_v28 = vld [vmem:[%s12738_s17 + $0x38] sm:$0xff]  }
 0xb60   : > { %v8952_v37 = vpop.eup %8951  ;;  %v3782_v26 = vadd.f32 1e-05, %v3772_v35  ;;  %v3773_v43 = vmul.f32 0.03125, %v3759_v32  ;;  %v11170_v35 = vld [vmem:[%s12737_s16] ss:$0 sm:$0xff] }
 0xb61   : > { %v3799_v7 = vmul.f32 %v8952_v37, %v11030_v48  ;;  %v3830_v40 = vadd.f32 %v11091_v45, %v3814_v36 }
 0xb62   : > { %8957 = vrsqrt.f32 %v3782_v26  ;;  %v3783_v54 = vadd.f32 1e-05, %v3773_v43 }
 0xb63   : > { %v3762_v62 = vpop.xlane.xlu1 %3761  ;;  %v3815_v15 = vmul.f32 %v11083_v39, %v3799_v7 }
 0xb64   : > { %v8954_v2 = vpop.eup %8953  ;;  %8959 = vrsqrt.f32 %v3783_v54  ;;  %v3774_v49 = vmul.f32 0.03125, %v3762_v62 }
 0xb65   : > { %v3765_v6 = vpop.xlane.xlu0 %3764  ;;  %v3831_v20 = vadd.f32 %v11091_v45, %v3815_v15  ;;  %v3800_v29 = vmul.f32 %v8954_v2, %v11036_v19 }
 0xb66   : > { %v8956_v4 = vpop.eup %8955  ;;  %v3784_v1 = vadd.f32 1e-05, %v3774_v49  ;;  %v3775_v48 = vmul.f32 0.03125, %v3765_v6 }
 0xb67   : > { %v3844_v13 = vpack.c.bf16 %v3831_v20, %v3830_v40  ;;  %v3801_v51 = vmul.f32 %v8956_v4, %v11040_v10  ;;  %v3816_v18 = vmul.f32 %v11083_v39, %v3800_v29 }
 0xb68   : > { %8961 = vrsqrt.f32 %v3784_v1  ;;  %v3785_v11 = vadd.f32 1e-05, %v3775_v48 }
 0xb69   : > { %7993 = vmatmul.mubr.msk.bf16.gmra.mrb[128].mxu1 %vm1496_vm0, %v3844_v13  ;;  %v3817_v12 = vmul.f32 %v11083_v39, %v3801_v51  ;;  %v3832_v44 = vadd.f32 %v11091_v45, %v3816_v18 }
 0xb6a   : > { %8963 = vrsqrt.f32 %v3785_v11  ;;  %7996 = vmatprep.mubr.msk.bf16.mxu1 %vm9272_vm1, %v12834_v52 }
 0xb6b   : > { %v3833_v19 = vadd.f32 %v11091_v45, %v3817_v12 }
 0xb6c   : > { %v8958_v34 = vpop.eup %8957 }
 0xb6d   : > { %v3802_v61 = vmul.f32 %v8958_v34, %v11049_v22  ;;  %v3845_v21 = vpack.c.bf16 %v3833_v19, %v3832_v44 }
 0xb6e   : > { %v8960_v10 = vpop.eup %8959 }
 0xb6f   : > { %v3803_v0 = vmul.f32 %v8960_v10, %v11052_v25  ;;  %v3818_v8 = vmul.f32 %v11083_v39, %v3802_v61 }
 0xb71   : > { %7997 = vmatmul.mubr.msk.bf16.gmra.mrb[132].mxu1 %vm1496_vm0, %v3845_v21  ;;  %v3819_v17 = vmul.f32 %v11083_v39, %v3803_v0  ;;  %v3834_v60 = vadd.f32 %v11091_v45, %v3818_v8 }
 0xb72   : > { %v8962_v57 = vpop.eup %8961  ;;  %8000 = vmatprep.mubr.msk.bf16.mxu1 %vm9272_vm1, %v12834_v52 }
 0xb73   : > { %v3835_v58 = vadd.f32 %v11091_v45, %v3819_v17  ;;  %v3804_v22 = vmul.f32 %v8962_v57, %v11060_v38  ;;  %v8721_v38 = vld [vmem:[%s12738_s17] sm:$0xff]  }
 0xb74   : > { %v8964_v46 = vpop.eup %8963  ;;  %8009 = vmatpush3.bf16.msra.mxu0 %v8721_v38 }
 0xb75   : > { %v3805_v47 = vmul.f32 %v8964_v46, %v11064_v56  ;;  %v3846_v25 = vpack.c.bf16 %v3835_v58, %v3834_v60  ;;  %v3820_v59 = vmul.f32 %v11083_v39, %v3804_v22  ;;  %8010 = vmatprep.subr.bf16.mxu0 %v12834_v52  ;;  %v8722_v56 = vld [vmem:[%s12738_s17 + $0x8] sm:$0xff]  }
 0xb77   : > { %v3821_v50 = vmul.f32 %v11083_v39, %v3805_v47  ;;  %v3836_v3 = vadd.f32 %v11091_v45, %v3820_v59  ;;  %v8723_v39 = vld [vmem:[%s12738_s17 + $0x10] sm:$0xff]  }
 0xb78   : > { %8011 = vmatpush3.bf16.msra.mxu0 %v8722_v56 }
 0xb79   : > { %8001 = vmatmul.mubr.msk.bf16.gmra.mrb[136].mxu1 %vm1496_vm0, %v3846_v25  ;;  %v3837_v16 = vadd.f32 %v11091_v45, %v3821_v50  ;;  %8012 = vmatprep.subr.bf16.mxu0 %v12834_v52  ;;  %v8724_v45 = vld [vmem:[%s12738_s17 + $0x18] sm:$0xff]  }
 0xb7a   : > { %8004 = vmatprep.mubr.msk.bf16.mxu1 %vm9272_vm1, %v12834_v52 }
 0xb7b   : > { %v3847_v24 = vpack.c.bf16 %v3837_v16, %v3836_v3 }
 0xb7c   : > { %8013 = vmatpush3.bf16.msra.mxu0 %v8723_v39 }
 0xb7d   : > { %8014 = vmatprep.subr.bf16.mxu0 %v12834_v52 }
 0xb80   : > { %8015 = vmatpush3.bf16.msra.mxu0 %v8724_v45 }
 0xb81   : > { %8005 = vmatmul.mubr.msk.bf16.gmra.mrb[140].mxu1 %vm1496_vm0, %v3847_v24  ;;  %8016 = vmatprep.subr.bf16.mxu0 %v12834_v52 }
 0xb82   : > { %8048 = vmatprep.mubr.msk.bf16.mxu1 %vm9272_vm1, %v12834_v52 }
 0xb84   : > { %8017 = vmatpush3.bf16.msra.mxu0 %v8725_v5 }
 0xb85   : > { %8018 = vmatprep.subr.bf16.mxu0 %v12834_v52 }
 0xb88   : > { %8019 = vmatpush3.bf16.msra.mxu0 %v8726_v42 }
 0xb89   : > { %8020 = vmatprep.subr.bf16.mxu0 %v12834_v52 }
 0xb8c   : > { %8021 = vmatpush3.bf16.msra.mxu0 %v8727_v30 }
 0xb8d   : > { %8022 = vmatprep.subr.bf16.mxu0 %v12834_v52 }
 0xb90   : > { %8023 = vmatpush3.bf16.msra.mxu0 %v8728_v28 }
 0xb91   : > { %8068 = vmatprep.subr.bf16.mxu0 %v12834_v52 }
 0xc30   : > { %v3915_v32 = vpop.f32.mrb[124].mxu1 }
 0xc31   : > { %v3916_v37 = vadd.f32 %v11170_v35, %v3915_v32  ;;  %v7990_v26 = vpop.f32.mrb[125].mxu1 }
 0xc32   : > { %v3918_v43 = vpop.f32.mrb[126].mxu1 }
 0xc33   : > { %v7140_v7 = vmul.f32 -1.702, %v3916_v37  ;;  %v3919_v36 = vadd.f32 %v11170_v35, %v3918_v43  ;;  %v7991_v54 = vpop.f32.mrb[127].mxu1 }
 0xc35   : > { %v3974_v62 = vmul.f32 1.442695, %v7140_v7  ;;  %v7141_v15 = vmul.f32 -1.702, %v3919_v36 }
 0xc37   : > { %8965 = vpow2.f32 %v3974_v62  ;;  %v3976_v2 = vmul.f32 1.442695, %v7141_v15 }
 0xc39   : > { %8967 = vpow2.f32 %v3976_v2 }
 0xc3c   : > { %v3923_v49 = vpop.f32.mrb[128].mxu1 }
 0xc3d   : > { %v11175_v6 = vadd.f32 %v11170_v35, %v3923_v49  ;;  %v7994_v40 = vpop.f32.mrb[129].mxu1 }
 0xc3e   : > { %v3926_v20 = vpop.f32.mrb[130].mxu1 }
 0xc3f   : > { %v7142_v29 = vmul.f32 -1.702, %v11175_v6  ;;  %v11179_v4 = vadd.f32 %v11170_v35, %v3926_v20  ;;  %v7995_v1 = vpop.f32.mrb[131].mxu1 }
 0xc41   : > { %v8966_v48 = vpop.eup %8965  ;;  %v3978_v13 = vmul.f32 1.442695, %v7142_v29  ;;  %v7143_v51 = vmul.f32 -1.702, %v11179_v4 }
 0xc42   : > { %v3994_v11 = vadd.f32 1.0, %v8966_v48 }
 0xc43   : > { %v8968_v18 = vpop.eup %8967  ;;  %8969 = vpow2.f32 %v3978_v13  ;;  %v3980_v12 = vmul.f32 1.442695, %v7143_v51 }
 0xc44   : > { %8971 = vrcp.f32 %v3994_v11  ;;  %v3995_v19 = vadd.f32 1.0, %v8968_v18  ;;  %v3931_v34 = vpop.f32.mrb[132].mxu1 }
 0xc45   : > { %8973 = vpow2.f32 %v3980_v12  ;;  %v11183_v44 = vadd.f32 %v11170_v35, %v3931_v34  ;;  %v7998_v61 = vpop.f32.mrb[133].mxu1 }
 0xc46   : > { %8975 = vrcp.f32 %v3995_v19  ;;  %v3934_v10 = vpop.f32.mrb[134].mxu1 }
 0xc47   : > { %v7144_v21 = vmul.f32 -1.702, %v11183_v44  ;;  %v11187_v0 = vadd.f32 %v11170_v35, %v3934_v10  ;;  %v7999_v8 = vpop.f32.mrb[135].mxu1 }
 0xc49   : > { %v3982_v17 = vmul.f32 1.442695, %v7144_v21  ;;  %v7145_v57 = vmul.f32 -1.702, %v11187_v0 }
 0xc4b   : > { %8977 = vpow2.f32 %v3982_v17  ;;  %v3984_v58 = vmul.f32 1.442695, %v7145_v57 }
 0xc4c   : > { %v3939_v46 = vpop.f32.mrb[136].mxu1 }
 0xc4d   : > { %v8970_v60 = vpop.eup %8969  ;;  %8979 = vpow2.f32 %v3984_v58  ;;  %v11191_v22 = vadd.f32 %v11170_v35, %v3939_v46  ;;  %v8002_v47 = vpop.f32.mrb[137].mxu1 }
 0xc4e   : > { %v8972_v25 = vpop.eup %8971  ;;  %v3996_v50 = vadd.f32 1.0, %v8970_v60  ;;  %v3942_v59 = vpop.f32.mrb[138].mxu1 }
 0xc4f   : > { %v8974_v16 = vpop.eup %8973  ;;  %v7146_v3 = vmul.f32 -1.702, %v11191_v22  ;;  %v11195_v24 = vadd.f32 %v11170_v35, %v3942_v59  ;;  %v8003_v38 = vpop.f32.mrb[139].mxu1  ;;  %v4024_v45 = vmul.f32 %v8972_v25, %v3916_v37 }
 0xc50   : > { %v8976_v56 = vpop.eup %8975  ;;  %8981 = vrcp.f32 %v3996_v50  ;;  %v3997_v39 = vadd.f32 1.0, %v8974_v16 }
 0xc51   : > { %v4025_v5 = vmul.f32 %v8976_v56, %v3919_v36  ;;  %v3986_v42 = vmul.f32 1.442695, %v7146_v3  ;;  %v7147_v30 = vmul.f32 -1.702, %v11195_v24 }
 0xc52   : > { %8983 = vrcp.f32 %v3997_v39 }
 0xc53   : > { %v4051_v28 = vpack.c.bf16 %v4025_v5, %v4024_v45  ;;  %8985 = vpow2.f32 %v3986_v42  ;;  %v3988_v32 = vmul.f32 1.442695, %v7147_v30 }
 0xc54   : > { %v3947_v26 = vpop.f32.mrb[140].mxu1 }
 0xc55   : > { %v8978_v43 = vpop.eup %8977  ;;  %8987 = vpow2.f32 %v3988_v32  ;;  %v3948_v7 = vadd.f32 %v11170_v35, %v3947_v26  ;;  %v8006_v54 = vpop.f32.mrb[141].mxu1  ;;  %8025 = vmatmul.mubr.bf16.vlgmr.msra.gmra.mrb[136].mxu0 %v4051_v28 }
 0xc56   : > { %v3998_v62 = vadd.f32 1.0, %v8978_v43  ;;  %v3950_v15 = vpop.f32.mrb[142].mxu1  ;;  %8028 = vmatprep.mubr.msk.bf16.mxu0 %vm9272_vm1, %v12834_v52 }
 0xc57   : > { %v8980_v37 = vpop.eup %8979  ;;  %v7148_v36 = vmul.f32 -1.702, %v3948_v7  ;;  %v3951_v2 = vadd.f32 %v11170_v35, %v3950_v15  ;;  %v8007_v49 = vpop.f32.mrb[143].mxu1 }
 0xc58   : > { %8989 = vrcp.f32 %v3998_v62  ;;  %v3999_v40 = vadd.f32 1.0, %v8980_v37 }
 0xc59   : > { %v3990_v20 = vmul.f32 1.442695, %v7148_v36  ;;  %v7149_v29 = vmul.f32 -1.702, %v3951_v2 }
 0xc5a   : > { %v8982_v1 = vpop.eup %8981  ;;  %8991 = vrcp.f32 %v3999_v40 }
 0xc5b   : > { %8993 = vpow2.f32 %v3990_v20  ;;  %v3992_v48 = vmul.f32 1.442695, %v7149_v29  ;;  %v4026_v11 = vmul.f32 %v8982_v1, %v11175_v6 }
 0xc5c   : > { %v8984_v13 = vpop.eup %8983 }
 0xc5d   : > { %v8986_v51 = vpop.eup %8985  ;;  %v4027_v18 = vmul.f32 %v8984_v13, %v11179_v4  ;;  %8995 = vpow2.f32 %v3992_v48 }
 0xc5e   : > { %v4000_v12 = vadd.f32 1.0, %v8986_v51 }
 0xc5f   : > { %v8988_v19 = vpop.eup %8987  ;;  %v4052_v34 = vpack.c.bf16 %v4027_v18, %v4026_v11 }
 0xc60   : > { %8997 = vrcp.f32 %v4000_v12  ;;  %v4001_v35 = vadd.f32 1.0, %v8988_v19 }
 0xc61   : > { %8029 = vmatmul.mubr.bf16.gmra.mrb[140].mxu0 %v4052_v34 }
 0xc62   : > { %v8990_v61 = vpop.eup %8989  ;;  %8999 = vrcp.f32 %v4001_v35  ;;  %8032 = vmatprep.mubr.msk.bf16.mxu0 %vm9272_vm1, %v12834_v52 }
 0xc63   : > { %v4028_v8 = vmul.f32 %v8990_v61, %v11183_v44 }
 0xc64   : > { %v8992_v10 = vpop.eup %8991 }
 0xc65   : > { %v8994_v21 = vpop.eup %8993  ;;  %v4029_v6 = vmul.f32 %v8992_v10, %v11187_v0 }
 0xc66   : > { %v4002_v17 = vadd.f32 1.0, %v8994_v21 }
 0xc67   : > { %v8996_v4 = vpop.eup %8995  ;;  %v4053_v57 = vpack.c.bf16 %v4029_v6, %v4028_v8 }
 0xc68   : > { %9001 = vrcp.f32 %v4002_v17  ;;  %v4003_v58 = vadd.f32 1.0, %v8996_v4 }
 0xc69   : > { %8033 = vmatmul.mubr.bf16.gmra.mrb[144].mxu0 %v4053_v57 }
 0xc6a   : > { %v8998_v46 = vpop.eup %8997  ;;  %9003 = vrcp.f32 %v4003_v58  ;;  %8036 = vmatprep.mubr.msk.bf16.mxu0 %vm9272_vm1, %v12834_v52 }
 0xc6b   : > { %v4030_v47 = vmul.f32 %v8998_v46, %v11191_v22  ;;  %v7150_v22 = vld [vmem:[%s12739_s18] ss:$0 sm:$0xff]  ;;  %v8729_v46 = vld [vmem:[%s12730_s9 + $0x10] sm:$0xff]  }
 0xc6c   : > { %v9000_v60 = vpop.eup %8999  ;;  %8045 = vmatpush3.bf16.msra.mxu1 %v8729_v46 }
 0xc6d   : > { %v4031_v25 = vmul.f32 %v9000_v60, %v11195_v24  ;;  %8046 = vmatprep.subr.bf16.mxu1 %v12834_v52 }
 0xc6f   : > { %v4054_v50 = vpack.c.bf16 %v4031_v25, %v4030_v47 }
 0xc71   : > { %8037 = vmatmul.mubr.bf16.gmra.mrb[148].mxu0 %v4054_v50 }
 0xc72   : > { %v9002_v44 = vpop.eup %9001  ;;  %8040 = vmatprep.mubr.msk.bf16.mxu0 %vm9272_vm1, %v12834_v52 }
 0xc73   : > { %v4032_v59 = vmul.f32 %v9002_v44, %v3948_v7 }
 0xc74   : > { %v9004_v0 = vpop.eup %9003 }
 0xc75   : > { %v4033_v16 = vmul.f32 %v9004_v0, %v3951_v2 }
 0xc77   : > { %v4055_v3 = vpack.c.bf16 %v4033_v16, %v4032_v59 }
 0xc79   : > { %8041 = vmatmul.mubr.bf16.gmra.mrb[152].mxu0 %v4055_v3 }
 0xc7a   : > { %8078 = vmatprep.mubr.msk.bf16.mxu0 %vm9272_vm1, %v12834_v52 }
 0xd28   : > { %v4144_v38 = vpop.f32.mrb[136].mxu0 }
 0xd29   : > { %v4145_v24 = vadd.f32 %v7150_v22, %v4144_v38  ;;  %v8026_v56 = vpop.f32.mrb[137].mxu0 }
 0xd2a   : > { %v4147_v39 = vpop.f32.mrb[138].mxu0 }
 0xd2b   : > { %v11220_v45 = vadd.f32 %v4145_v24, %v10963_v55  ;;  %v4148_v5 = vadd.f32 %v7150_v22, %v4147_v39  ;;  %v8027_v42 = vpop.f32.mrb[139].mxu0 }
 0xd2d   : > { %12854 = vst [vmem:[#allocation12_spill] sm:$0xff] %v11220_v45  ;;  %v11223_v30 = vadd.f32 %v4148_v5, %v10966_v23  ;;  %v4197_v28 = vsel %vm1496_vm0, %v11220_v45, 0.0 }
 0xd2e   : > { %4198 = vadd.xlane.f32.xlu1 %v4197_v28 }
 0xd2f   : > { %12855 = vst [vmem:[#allocation15_spill] sm:$0xff] %v11223_v30  ;;  %v4200_v32 = vsel %vm1496_vm0, %v11223_v30, 0.0 }
 0xd30   : > { %4201 = vadd.xlane.f32.xlu0 %v4200_v32 }
 0xd34   : > { %v4152_v26 = vpop.f32.mrb[140].mxu0 }
 0xd35   : > { %v4153_v43 = vadd.f32 %v7150_v22, %v4152_v26  ;;  %v8030_v7 = vpop.f32.mrb[141].mxu0 }
 0xd36   : > { %v4155_v54 = vpop.f32.mrb[142].mxu0 }
 0xd37   : > { %v11230_v55 = vadd.f32 %v4153_v43, %v10973_v14  ;;  %v4156_v62 = vadd.f32 %v7150_v22, %v4155_v54  ;;  %v8031_v15 = vpop.f32.mrb[143].mxu0 }
 0xd39   : > { %12856 = vst [vmem:[#allocation13_spill] sm:$0xff] %v11230_v55  ;;  %v11233_v23 = vadd.f32 %v4156_v62, %v10976_v9  ;;  %v4203_v37 = vsel %vm1496_vm0, %v11230_v55, 0.0 }
 0xd3a   : > { %4204 = vadd.xlane.f32.xlu1 %v4203_v37 }
 0xd3b   : > { %12857 = vst [vmem:[#allocation14_spill] sm:$0xff] %v11233_v23  ;;  %v4206_v36 = vsel %vm1496_vm0, %v11233_v23, 0.0 }
 0xd3c   : > { %4207 = vadd.xlane.f32.xlu0 %v4206_v36  ;;  %v4160_v2 = vpop.f32.mrb[144].mxu0 }
 0xd3d   : > { %v4161_v49 = vadd.f32 %v7150_v22, %v4160_v2  ;;  %v8034_v40 = vpop.f32.mrb[145].mxu0 }
 0xd3e   : > { %v4163_v20 = vpop.f32.mrb[146].mxu0 }
 0xd3f   : > { %v11240_v14 = vadd.f32 %v4161_v49, %v10983_v53  ;;  %v4164_v29 = vadd.f32 %v7150_v22, %v4163_v20  ;;  %v8035_v1 = vpop.f32.mrb[147].mxu0 }
 0xd41   : > { %12858 = vst [vmem:[#allocation16_spill] sm:$0xff] %v11240_v14  ;;  %v11243_v9 = vadd.f32 %v4164_v29, %v10986_v33  ;;  %v4209_v48 = vsel %vm1496_vm0, %v11240_v14, 0.0 }
 0xd42   : > { %4210 = vadd.xlane.f32.xlu1 %v4209_v48 }
 0xd43   : > { %12859 = vst [vmem:[#allocation17_spill] sm:$0xff] %v11243_v9  ;;  %v4212_v13 = vsel %vm1496_vm0, %v11243_v9, 0.0 }
 0xd44   : > { %4213 = vadd.xlane.f32.xlu0 %v4212_v13  ;;  %v4168_v51 = vpop.f32.mrb[148].mxu0 }
 0xd45   : > { %v4169_v11 = vadd.f32 %v7150_v22, %v4168_v51  ;;  %v8038_v18 = vpop.f32.mrb[149].mxu0 }
 0xd46   : > { %v4171_v12 = vpop.f32.mrb[150].mxu0 }
 0xd47   : > { %v11250_v53 = vadd.f32 %v4169_v11, %v10993_v63  ;;  %v4172_v19 = vadd.f32 %v7150_v22, %v4171_v12  ;;  %v8039_v34 = vpop.f32.mrb[151].mxu0 }
 0xd49   : > { %12860 = vst [vmem:[#allocation18_spill] sm:$0xff] %v11250_v53  ;;  %v11253_v33 = vadd.f32 %v4172_v19, %v10996_v27  ;;  %v4215_v35 = vsel %vm1496_vm0, %v11250_v53, 0.0 }
 0xd4a   : > { %4216 = vadd.xlane.f32.xlu1 %v4215_v35 }
 0xd4b   : > { %12861 = vst [vmem:[#allocation19_spill] sm:$0xff] %v11253_v33  ;;  %v4218_v61 = vsel %vm1496_vm0, %v11253_v33, 0.0 }
 0xd4c   : > { %4219 = vadd.xlane.f32.xlu0 %v4218_v61  ;;  %v4176_v10 = vpop.f32.mrb[152].mxu0 }
 0xd4d   : > { %v4177_v21 = vadd.f32 %v7150_v22, %v4176_v10  ;;  %v8042_v8 = vpop.f32.mrb[153].mxu0 }
 0xd4e   : > { %v4179_v6 = vpop.f32.mrb[154].mxu0 }
 0xd4f   : > { %v11260_v63 = vadd.f32 %v4177_v21, %v11003_v31  ;;  %v4180_v17 = vadd.f32 %v7150_v22, %v4179_v6  ;;  %v8043_v4 = vpop.f32.mrb[155].mxu0 }
 0xd50   : > { %v8730_v4 = vld [vmem:[%s12730_s9 + $0x18] sm:$0xff]  }
 0xd51   : > { %12862 = vst [vmem:[#allocation20_spill] sm:$0xff] %v11260_v63  ;;  %v11263_v27 = vadd.f32 %v4180_v17, %v11006_v41  ;;  %v4221_v57 = vsel %vm1496_vm0, %v11260_v63, 0.0  ;;  %8047 = vmatpush3.bf16.msra.mxu1 %v8730_v4 }
 0xd52   : > { %4222 = vadd.xlane.f32.xlu1 %v4221_v57  ;;  %8098 = vmatprep.subr.bf16.mxu1 %v12834_v52 }
 0xd53   : > { %12863 = vst [vmem:[#allocation2_spill] sm:$0xff] %v11263_v27  ;;  %v4224_v58 = vsel %vm1496_vm0, %v11263_v27, 0.0 }
 0xd54   : > { %4225 = vadd.xlane.f32.xlu0 %v4224_v58 }
 0xdbb   : > { %v4199_v31 = vpop.xlane.xlu1 %4198 }
 0xdbc   : > { %v4227_v60 = vmul.f32 0.03125, %v4199_v31 }
 0xdbd   : > { %v4202_v47 = vpop.xlane.xlu0 %4201 }
 0xdbe   : > { %v11274_v41 = vsub.f32 %v11220_v45, %v4227_v60  ;;  %v4228_v25 = vmul.f32 0.03125, %v4202_v47 }
 0xdc0   : > { %v11277_v50 = vsub.f32 %v11223_v30, %v4228_v25  ;;  %v4247_v44 = vmul.f32 %v11274_v41, %v11274_v41 }
 0xdc2   : > { %v4257_v0 = vsel %vm1496_vm0, %v4247_v44, 0.0  ;;  %v4248_v59 = vmul.f32 %v11277_v50, %v11277_v50 }
 0xdc3   : > { %4258 = vadd.xlane.f32.xlu1 %v4257_v0 }
 0xdc4   : > { %v4260_v16 = vsel %vm1496_vm0, %v4248_v59, 0.0 }
 0xdc5   : > { %4261 = vadd.xlane.f32.xlu0 %v4260_v16 }
 0xdc7   : > { %v4205_v3 = vpop.xlane.xlu1 %4204 }
 0xdc8   : > { %v4229_v22 = vmul.f32 0.03125, %v4205_v3  ;;  %v11340_v3 = vld [vmem:[%s12728_s7 + $0x1] ss:$0 sm:$0xff] }
 0xdc9   : > { %v4208_v38 = vpop.xlane.xlu0 %4207 }
 0xdca   : > { %v11286_v24 = vsub.f32 %v11230_v55, %v4229_v22  ;;  %v4230_v56 = vmul.f32 0.03125, %v4208_v38 }
 0xdcc   : > { %v11289_v39 = vsub.f32 %v11233_v23, %v4230_v56  ;;  %v4249_v5 = vmul.f32 %v11286_v24, %v11286_v24 }
 0xdce   : > { %v4263_v42 = vsel %vm1496_vm0, %v4249_v5, 0.0  ;;  %v4250_v28 = vmul.f32 %v11289_v39, %v11289_v39 }
 0xdcf   : > { %v4211_v32 = vpop.xlane.xlu1 %4210  ;;  %4264 = vadd.xlane.f32.xlu1 %v4263_v42 }
 0xdd0   : > { %v4231_v26 = vmul.f32 0.03125, %v4211_v32  ;;  %v4266_v43 = vsel %vm1496_vm0, %v4250_v28, 0.0 }
 0xdd1   : > { %v4214_v7 = vpop.xlane.xlu0 %4213  ;;  %4267 = vadd.xlane.f32.xlu0 %v4266_v43 }
 0xdd2   : > { %v11298_v54 = vsub.f32 %v11240_v14, %v4231_v26  ;;  %v4232_v62 = vmul.f32 0.03125, %v4214_v7  ;;  %v11348_v26 = vld [vmem:[%s12729_s8 + $0x1] ss:$0 sm:$0xff] }
 0xdd4   : > { %v11301_v15 = vsub.f32 %v11243_v9, %v4232_v62  ;;  %v4251_v37 = vmul.f32 %v11298_v54, %v11298_v54 }
 0xdd6   : > { %v4269_v36 = vsel %vm1496_vm0, %v4251_v37, 0.0  ;;  %v4252_v2 = vmul.f32 %v11301_v15, %v11301_v15 }
 0xdd7   : > { %v4217_v49 = vpop.xlane.xlu1 %4216  ;;  %4270 = vadd.xlane.f32.xlu1 %v4269_v36 }
 0xdd8   : > { %v4233_v40 = vmul.f32 0.03125, %v4217_v49  ;;  %v4272_v20 = vsel %vm1496_vm0, %v4252_v2, 0.0 }
 0xdd9   : > { %v4220_v29 = vpop.xlane.xlu0 %4219  ;;  %4273 = vadd.xlane.f32.xlu0 %v4272_v20 }
 0xdda   : > { %v11310_v1 = vsub.f32 %v11250_v53, %v4233_v40  ;;  %v4234_v48 = vmul.f32 0.03125, %v4220_v29 }
 0xddc   : > { %v11313_v13 = vsub.f32 %v11253_v33, %v4234_v48  ;;  %v4253_v51 = vmul.f32 %v11310_v1, %v11310_v1 }
 0xdde   : > { %v4275_v11 = vsel %vm1496_vm0, %v4253_v51, 0.0  ;;  %v4254_v18 = vmul.f32 %v11313_v13, %v11313_v13 }
 0xddf   : > { %4276 = vadd.xlane.f32.xlu1 %v4275_v11  ;;  %v4223_v12 = vpop.xlane.xlu1 %4222 }
 0xde0   : > { %v4235_v19 = vmul.f32 0.03125, %v4223_v12  ;;  %v4278_v34 = vsel %vm1496_vm0, %v4254_v18, 0.0 }
 0xde1   : > { %4279 = vadd.xlane.f32.xlu0 %v4278_v34  ;;  %v4226_v35 = vpop.xlane.xlu0 %4225 }
 0xde2   : > { %v11322_v61 = vsub.f32 %v11260_v63, %v4235_v19  ;;  %v4236_v10 = vmul.f32 0.03125, %v4226_v35 }
 0xde4   : > { %v11325_v21 = vsub.f32 %v11263_v27, %v4236_v10  ;;  %v4255_v8 = vmul.f32 %v11322_v61, %v11322_v61 }
 0xde6   : > { %v4281_v6 = vsel %vm1496_vm0, %v4255_v8, 0.0  ;;  %v4256_v17 = vmul.f32 %v11325_v21, %v11325_v21 }
 0xde7   : > { %4282 = vadd.xlane.f32.xlu1 %v4281_v6 }
 0xde8   : > { %v4284_v57 = vsel %vm1496_vm0, %v4256_v17, 0.0 }
 0xde9   : > { %4285 = vadd.xlane.f32.xlu0 %v4284_v57 }
 0xe50   : > { %v4259_v58 = vpop.xlane.xlu1 %4258 }
 0xe51   : > { %v4287_v46 = vmul.f32 0.03125, %v4259_v58 }
 0xe52   : > { %v4262_v31 = vpop.xlane.xlu0 %4261 }
 0xe53   : > { %v4297_v60 = vadd.f32 1e-05, %v4287_v46  ;;  %v4288_v47 = vmul.f32 0.03125, %v4262_v31 }
 0xe55   : > { %9005 = vrsqrt.f32 %v4297_v60  ;;  %v4298_v25 = vadd.f32 1e-05, %v4288_v47 }
 0xe57   : > { %9007 = vrsqrt.f32 %v4298_v25 }
 0xe5c   : > { %v4265_v44 = vpop.xlane.xlu1 %4264 }
 0xe5d   : > { %v4289_v0 = vmul.f32 0.03125, %v4265_v44 }
 0xe5e   : > { %v4268_v59 = vpop.xlane.xlu0 %4267 }
 0xe5f   : > { %v9006_v16 = vpop.eup %9005  ;;  %v4299_v22 = vadd.f32 1e-05, %v4289_v0  ;;  %v4290_v38 = vmul.f32 0.03125, %v4268_v59 }
 0xe60   : > { %v4317_v56 = vmul.f32 %v9006_v16, %v11274_v41 }
 0xe61   : > { %v9008_v5 = vpop.eup %9007  ;;  %9009 = vrsqrt.f32 %v4299_v22  ;;  %v4300_v42 = vadd.f32 1e-05, %v4290_v38 }
 0xe62   : > { %v4333_v28 = vmul.f32 %v11340_v3, %v4317_v56  ;;  %v4318_v32 = vmul.f32 %v9008_v5, %v11277_v50 }
 0xe63   : > { %9011 = vrsqrt.f32 %v4300_v42 }
 0xe64   : > { %v4334_v43 = vmul.f32 %v11340_v3, %v4318_v32  ;;  %v4271_v7 = vpop.xlane.xlu1 %4270  ;;  %v4349_v37 = vadd.f32 %v11348_v26, %v4333_v28 }
 0xe65   : > { %v4291_v62 = vmul.f32 0.03125, %v4271_v7 }
 0xe66   : > { %v4350_v41 = vadd.f32 %v11348_v26, %v4334_v43  ;;  %v4274_v36 = vpop.xlane.xlu0 %4273 }
 0xe67   : > { %v4301_v2 = vadd.f32 1e-05, %v4291_v62  ;;  %v4292_v49 = vmul.f32 0.03125, %v4274_v36 }
 0xe68   : > { %v4366_v40 = vpack.c.bf16 %v4350_v41, %v4349_v37 }
 0xe69   : > { %9013 = vrsqrt.f32 %v4301_v2  ;;  %v4302_v50 = vadd.f32 1e-05, %v4292_v49 }
 0xe6a   : > { %8049 = vmatmul.mubr.msk.bf16.vlgmr.msra.gmra.mrb[144].mxu1 %vm1496_vm0, %v4366_v40 }
 0xe6b   : > { %v9010_v20 = vpop.eup %9009  ;;  %9015 = vrsqrt.f32 %v4302_v50  ;;  %8052 = vmatprep.mubr.msk.bf16.mxu1 %vm9272_vm1, %v12834_v52 }
 0xe6c   : > { %v4277_v29 = vpop.xlane.xlu1 %4276  ;;  %v4319_v48 = vmul.f32 %v9010_v20, %v11286_v24 }
 0xe6d   : > { %v9012_v51 = vpop.eup %9011  ;;  %v4293_v11 = vmul.f32 0.03125, %v4277_v29 }
 0xe6e   : > { %v4280_v18 = vpop.xlane.xlu0 %4279  ;;  %v4320_v12 = vmul.f32 %v9012_v51, %v11289_v39  ;;  %v4335_v19 = vmul.f32 %v11340_v3, %v4319_v48 }
 0xe6f   : > { %v4303_v34 = vadd.f32 1e-05, %v4293_v11  ;;  %v4294_v35 = vmul.f32 0.03125, %v4280_v18 }
 0xe70   : > { %v4336_v10 = vmul.f32 %v11340_v3, %v4320_v12  ;;  %v4351_v6 = vadd.f32 %v11348_v26, %v4335_v19 }
 0xe71   : > { %9017 = vrsqrt.f32 %v4303_v34  ;;  %v4304_v8 = vadd.f32 1e-05, %v4294_v35 }
 0xe72   : > { %v4352_v17 = vadd.f32 %v11348_v26, %v4336_v10 }
 0xe73   : > { %v9014_v4 = vpop.eup %9013  ;;  %9019 = vrsqrt.f32 %v4304_v8 }
 0xe74   : > { %v4283_v24 = vpop.xlane.xlu1 %4282  ;;  %v4367_v57 = vpack.c.bf16 %v4352_v17, %v4351_v6  ;;  %v4321_v58 = vmul.f32 %v9014_v4, %v11298_v54 }
 0xe75   : > { %v9016_v46 = vpop.eup %9015  ;;  %v4295_v39 = vmul.f32 0.03125, %v4283_v24 }
 0xe76   : > { %8053 = vmatmul.mubr.msk.bf16.gmra.mrb[148].mxu1 %vm1496_vm0, %v4367_v57  ;;  %v4286_v31 = vpop.xlane.xlu0 %4285  ;;  %v4322_v60 = vmul.f32 %v9016_v46, %v11301_v15  ;;  %v4337_v47 = vmul.f32 %v11340_v3, %v4321_v58 }
 0xe77   : > { %v4305_v25 = vadd.f32 1e-05, %v4295_v39  ;;  %v4296_v44 = vmul.f32 0.03125, %v4286_v31  ;;  %8056 = vmatprep.mubr.msk.bf16.mxu1 %vm9272_vm1, %v12834_v52 }
 0xe78   : > { %v4338_v0 = vmul.f32 %v11340_v3, %v4322_v60  ;;  %v4353_v54 = vadd.f32 %v11348_v26, %v4337_v47 }
 0xe79   : > { %9021 = vrsqrt.f32 %v4305_v25  ;;  %v4306_v59 = vadd.f32 1e-05, %v4296_v44 }
 0xe7a   : > { %v4354_v16 = vadd.f32 %v11348_v26, %v4338_v0 }
 0xe7b   : > { %v9018_v22 = vpop.eup %9017  ;;  %9023 = vrsqrt.f32 %v4306_v59 }
 0xe7c   : > { %v4368_v38 = vpack.c.bf16 %v4354_v16, %v4353_v54  ;;  %v4323_v15 = vmul.f32 %v9018_v22, %v11310_v1 }
 0xe7d   : > { %v9020_v56 = vpop.eup %9019 }
 0xe7e   : > { %8057 = vmatmul.mubr.msk.bf16.gmra.mrb[152].mxu1 %vm1496_vm0, %v4368_v38  ;;  %v4324_v5 = vmul.f32 %v9020_v56, %v11313_v13  ;;  %v4339_v42 = vmul.f32 %v11340_v3, %v4323_v15 }
 0xe7f   : > { %8060 = vmatprep.mubr.msk.bf16.mxu1 %vm9272_vm1, %v12834_v52 }
 0xe80   : > { %v4340_v28 = vmul.f32 %v11340_v3, %v4324_v5  ;;  %v4355_v32 = vadd.f32 %v11348_v26, %v4339_v42 }
 0xe82   : > { %v4356_v43 = vadd.f32 %v11348_v26, %v4340_v28 }
 0xe83   : > { %v9022_v7 = vpop.eup %9021 }
 0xe84   : > { %v4369_v62 = vpack.c.bf16 %v4356_v43, %v4355_v32  ;;  %v4325_v1 = vmul.f32 %v9022_v7, %v11322_v61  ;;  %v7168_v61 = vld [vmem:[%s12731_s10 + $0x1] ss:$0 sm:$0xff] }
 0xe85   : > { %v9024_v37 = vpop.eup %9023 }
 0xe86   : > { %8061 = vmatmul.mubr.msk.bf16.gmra.mrb[156].mxu1 %vm1496_vm0, %v4369_v62  ;;  %v4326_v13 = vmul.f32 %v9024_v37, %v11325_v21  ;;  %v4341_v41 = vmul.f32 %v11340_v3, %v4325_v1 }
 0xe87   : > { %8064 = vmatprep.mubr.msk.bf16.mxu1 %vm9272_vm1, %v12834_v52 }
 0xe88   : > { %v4342_v36 = vmul.f32 %v11340_v3, %v4326_v13  ;;  %v4357_v2 = vadd.f32 %v11348_v26, %v4341_v41 }
 0xe8a   : > { %v4358_v49 = vadd.f32 %v11348_v26, %v4342_v36 }
 0xe8c   : > { %v4370_v40 = vpack.c.bf16 %v4358_v49, %v4357_v2 }
 0xe8e   : > { %8065 = vmatmul.mubr.msk.bf16.gmra.mrb[160].mxu1 %vm1496_vm0, %v4370_v40 }
 0xe8f   : > { %8108 = vmatprep.mubr.msk.bf16.mxu1 %vm9272_vm1, %v12834_v52 }
 0xf3d   : > { %v4438_v21 = vpop.f32.mrb[144].mxu1 }
 0xf3e   : > { %v8050_v50 = vpop.f32.mrb[145].mxu1  ;;  %v4439_v29 = vadd.f32 %v7168_v61, %v4438_v21 }
 0xf3f   : > { %v4441_v20 = vpop.f32.mrb[146].mxu1 }
 0xf40   : > { %v4442_v48 = vadd.f32 %v7168_v61, %v4441_v20  ;;  %v8051_v3 = vpop.f32.mrb[147].mxu1 }
 0xf42   : > { %v11395_v51 = vpack.c.bf16 %v4442_v48, %v4439_v29 }
 0xf44   : > { %4487 = vrot.lane.b32.xlu1 %v11395_v51, %s9273_s23 }
 0xf49   : > { %v4446_v26 = vpop.f32.mrb[148].mxu1 }
 0xf4a   : > { %v8054_v11 = vpop.f32.mrb[149].mxu1  ;;  %v4447_v12 = vadd.f32 %v7168_v61, %v4446_v26 }
 0xf4b   : > { %v4449_v18 = vpop.f32.mrb[150].mxu1 }
 0xf4c   : > { %v4450_v19 = vadd.f32 %v7168_v61, %v4449_v18  ;;  %v8055_v34 = vpop.f32.mrb[151].mxu1 }
 0xf4e   : > { %v11399_v35 = vpack.c.bf16 %v4450_v19, %v4447_v12 }
 0xf50   : > { %4489 = vrot.lane.b32.xlu0 %v11399_v35, %s9273_s23 }
 0xf51   : > { %v4454_v10 = vpop.f32.mrb[152].mxu1 }
 0xf52   : > { %v8058_v8 = vpop.f32.mrb[153].mxu1  ;;  %v4455_v17 = vadd.f32 %v7168_v61, %v4454_v10 }
 0xf53   : > { %v4457_v6 = vpop.f32.mrb[154].mxu1 }
 0xf54   : > { %v4458_v4 = vadd.f32 %v7168_v61, %v4457_v6  ;;  %v8059_v24 = vpop.f32.mrb[155].mxu1 }
 0xf56   : > { %v11403_v57 = vpack.c.bf16 %v4458_v4, %v4455_v17 }
 0xf58   : > { %4491 = vrot.lane.b32.xlu1 %v11403_v57, %s9273_s23 }
 0xf59   : > { %v4462_v58 = vpop.f32.mrb[156].mxu1 }
 0xf5a   : > { %v8062_v46 = vpop.f32.mrb[157].mxu1  ;;  %v4463_v31 = vadd.f32 %v7168_v61, %v4462_v58 }
 0xf5b   : > { %v4465_v39 = vpop.f32.mrb[158].mxu1 }
 0xf5c   : > { %v4466_v60 = vadd.f32 %v7168_v61, %v4465_v39  ;;  %v8063_v47 = vpop.f32.mrb[159].mxu1 }
 0xf5e   : > { %v11407_v25 = vpack.c.bf16 %v4466_v60, %v4463_v31 }
 0xf60   : > { %4493 = vrot.lane.b32.xlu1 %v11407_v25, %s9273_s23 }
 0xf61   : > { %v4470_v44 = vpop.f32.mrb[160].mxu1 }
 0xf62   : > { %v8066_v0 = vpop.f32.mrb[161].mxu1  ;;  %v4471_v54 = vadd.f32 %v7168_v61, %v4470_v44 }
 0xf63   : > { %v4473_v59 = vpop.f32.mrb[162].mxu1 }
 0xf64   : > { %v4474_v16 = vadd.f32 %v7168_v61, %v4473_v59  ;;  %4848 = vrot.lane.b32.xlu1 %v11395_v51, %s9274_s1  ;;  %v8067_v22 = vpop.f32.mrb[163].mxu1 }
 0xf66   : > { %v11413_v38 = vpack.c.bf16 %v4474_v16, %v4471_v54 }
 0xf68   : > { %12864 = vst [vmem:[#allocation3_spill] sm:$0xff] %v11413_v38  ;;  %4852 = vrot.lane.b32.xlu1 %v11403_v57, %s9274_s1  ;;  %4495 = vrot.lane.b32.xlu0 %v11413_v38, %s9273_s23  ;;  %s12865_s23 = smov 72  }
 0xf6c   : > { %4856 = vrot.lane.b32.xlu1 %v11413_v38, %s9274_s1  ;;  %4850 = vrot.lane.b32.xlu0 %v11399_v35, %s9274_s1 }
 0xf70   : > { %5209 = vrot.lane.b32.xlu1 %v11395_v51, %s9275_s6  ;;  %4854 = vrot.lane.b32.xlu0 %v11407_v25, %s9274_s1  ;;  %s12866_s1 = smov 112  }
 0xf74   : > { %5211 = vrot.lane.b32.xlu1 %v11399_v35, %s9275_s6  ;;  %4838 = vrot.lane.b32.xlu0 %v11395_v51, %s9276_s25 }
 0xf78   : > { %5213 = vrot.lane.b32.xlu1 %v11403_v57, %s9275_s6  ;;  %4840 = vrot.lane.b32.xlu0 %v11399_v35, %s9276_s25 }
 0xf7c   : > { %5215 = vrot.lane.b32.xlu1 %v11407_v25, %s9275_s6  ;;  %4842 = vrot.lane.b32.xlu0 %v11403_v57, %s9276_s25 }
 0xf80   : > { %5217 = vrot.lane.b32.xlu1 %v11413_v38, %s9275_s6  ;;  %4844 = vrot.lane.b32.xlu0 %v11407_v25, %s9276_s25  ;;  %s12867_s6 = smov 104  }
 0xf84   : > { %5570 = vrot.lane.b32.xlu1 %v11395_v51, %s12865_s23  ;;  %4846 = vrot.lane.b32.xlu0 %v11413_v38, %s9276_s25  ;;  %s12868_s25 = smov 64  }
 0xf88   : > { %5572 = vrot.lane.b32.xlu1 %v11399_v35, %s12865_s23  ;;  %5199 = vrot.lane.b32.xlu0 %v11395_v51, %s12866_s1 }
 0xf8c   : > { %5574 = vrot.lane.b32.xlu1 %v11403_v57, %s12865_s23  ;;  %5201 = vrot.lane.b32.xlu0 %v11399_v35, %s12866_s1 }
 0xf90   : > { %5576 = vrot.lane.b32.xlu1 %v11407_v25, %s12865_s23  ;;  %5203 = vrot.lane.b32.xlu0 %v11403_v57, %s12866_s1 }
 0xf94   : > { %5578 = vrot.lane.b32.xlu1 %v11413_v38, %s12865_s23  ;;  %5205 = vrot.lane.b32.xlu0 %v11407_v25, %s12866_s1  ;;  %s12892_s23 = smov 16  }
 0xf98   : > { %5562 = vrot.lane.b32.xlu1 %v11399_v35, %s12867_s6  ;;  %5207 = vrot.lane.b32.xlu0 %v11413_v38, %s12866_s1  ;;  %s12893_s1 = smov 24  }
 0xf9c   : > { %5566 = vrot.lane.b32.xlu1 %v11407_v25, %s12867_s6  ;;  %5560 = vrot.lane.b32.xlu0 %v11395_v51, %s12867_s6 }
 0xfa0   : > { %4737 = vrot.lane.b32.xlu1 %v11399_v35, %s12868_s25  ;;  %5564 = vrot.lane.b32.xlu0 %v11403_v57, %s12867_s6 }
 0xfa4   : > { %4741 = vrot.lane.b32.xlu1 %v11407_v25, %s12868_s25  ;;  %5568 = vrot.lane.b32.xlu0 %v11413_v38, %s12867_s6  ;;  %s12905_s6 = sadd.s32 4294967295, %s9269_s3  }
 0xfa8   : > { %5096 = vrot.lane.b32.xlu1 %v11395_v51, %s12869_s29  ;;  %4735 = vrot.lane.b32.xlu0 %v11395_v51, %s12868_s25 }
 0xfac   : > { %5102 = vrot.lane.b32.xlu1 %v11407_v25, %s12869_s29  ;;  %4739 = vrot.lane.b32.xlu0 %v11403_v57, %s12868_s25 }
 0xfb0   : > { %5459 = vrot.lane.b32.xlu1 %v11399_v35, %s12870_s5  ;;  %5098 = vrot.lane.b32.xlu0 %v11399_v35, %s12869_s29 }
 0xfb4   : > { %5463 = vrot.lane.b32.xlu1 %v11407_v25, %s12870_s5  ;;  %5100 = vrot.lane.b32.xlu0 %v11403_v57, %s12869_s29 }
 0xfb6   : > { %v4488_v15 = vpop.permute.xlu1 %4487 }
 0xfb7   : > { %v4513_v56 = vsel %vm1970_vm2, %v4488_v15, 0 }
 0xfb8   : > { %5457 = vrot.lane.b32.xlu0 %v11395_v51, %s12870_s5  ;;  %8069 = vmatpush3.bf16.xpose.msra.mxu0 %v4513_v56 }
 0xfb9   : > { %8070 = vmatprep.subr.bf16.mxu0 %v12834_v52 }
 0xfbc   : > { %5461 = vrot.lane.b32.xlu0 %v11403_v57, %s12870_s5 }
 0xfc0   : > { %4743 = vrot.lane.b32.xlu0 %v11413_v38, %s12868_s25  ;;  %s6990_s25 = sshll.u32 %s12905_s6, 1 }
 0xfc1   : > { %p685_p4 = scmp.lt.s32.totalorder %s6990_s25, 3 }
 0xfc2   : > { %v4490_v5 = vpop.permute.xlu0 %4489 }
 0xfc3   : > { %v4516_v42 = vsel %vm1970_vm2, %v4490_v5, 0  ;;  %s12909_s25 = smov (!%p685_p4, %s6990_s25), 3 }
 0xfc4   : > { %5104 = vrot.lane.b32.xlu0 %v11413_v38, %s12869_s29  ;;  %8071 = vmatpush3.bf16.xpose.msra.mxu0 %v4516_v42  ;;  %s6991_s29 = sshll.u32 %s12909_s25, 3 }
 0xfc5   : > { %8072 = vmatprep.subr.bf16.mxu0 %v12834_v52  ;;  %s688_s27 = scalar_lea.vmem %s12743_s22, %s6991_s29 }
 0xfca   : > { %v4492_v28 = vpop.permute.xlu1 %4491 }
 0xfcb   : > { %v4519_v32 = vsel %vm1970_vm2, %v4492_v28, 0 }
 0xfcc   : > { %8073 = vmatpush3.bf16.xpose.msra.mxu0 %v4519_v32 }
 0xfcd   : > { %8074 = vmatprep.subr.bf16.mxu0 %v12834_v52 }
 0xfd2   : > { %v4494_v43 = vpop.permute.xlu1 %4493 }
 0xfd3   : > { %v4522_v7 = vsel %vm1970_vm2, %v4494_v43, 0 }
 0xfd4   : > { %8075 = vmatpush3.bf16.xpose.msra.mxu0 %v4522_v7 }
 0xfd5   : > { %8076 = vmatprep.subr.bf16.mxu0 %v12834_v52 }
 0xfd6   : > { %v4849_v62 = vpop.permute.xlu1 %4848 }
 0xfd7   : > { %v4874_v40 = vsel %vm1970_vm2, %v4849_v62, 0 }
 0xfda   : > { %v4853_v1 = vpop.permute.xlu1 %4852  ;;  %v4496_v37 = vpop.permute.xlu0 %4495 }
 0xfdb   : > { %v4525_v13 = vsel %vm1970_vm2, %v4496_v37, 0  ;;  %v4880_v18 = vsel %vm1970_vm2, %v4853_v1, 0 }
 0xfdc   : > { %8077 = vmatpush3.bf16.xpose.msra.mxu0 %v4525_v13 }
 0xfdd   : > { %8128 = vmatprep.subr.bf16.mxu0 %v12834_v52 }
 0xfde   : > { %v4857_v41 = vpop.permute.xlu1 %4856  ;;  %v4851_v36 = vpop.permute.xlu0 %4850 }
 0xfdf   : > { %v4877_v29 = vsel %vm1970_vm2, %v4851_v36, 0  ;;  %v4886_v24 = vsel %vm1970_vm2, %v4857_v41, 0 }
 0xfe2   : > { %v5210_v2 = vpop.permute.xlu1 %5209  ;;  %v4855_v49 = vpop.permute.xlu0 %4854 }
 0xfe3   : > { %8079 = vmatmul.mubr.msk.bf16.vlgmr.msra.gmra.mrb[156].mxu0 %vm1970_vm2, %v11395_v51  ;;  %v4883_v8 = vsel %vm1970_vm2, %v4855_v49, 0  ;;  %v5235_v31 = vsel %vm1970_vm2, %v5210_v2, 0 }
 0xfe4   : > { %8129 = vmatpush3.bf16.xpose.msra.mxu0 %v4874_v40  ;;  %8082 = vmatprep.mubr.msk.bf16.mxu0 %vm9272_vm1, %v12834_v52 }
 0xfe5   : > { %8130 = vmatprep.subr.bf16.mxu0 %v12834_v52 }
 0xfe6   : > { %v5212_v61 = vpop.permute.xlu1 %5211  ;;  %v4839_v21 = vpop.permute.xlu0 %4838 }
 0xfe7   : > { %v5238_v59 = vsel %vm1970_vm2, %v5212_v61, 0 }
 0xfea   : > { %v5214_v50 = vpop.permute.xlu1 %5213  ;;  %v4841_v20 = vpop.permute.xlu0 %4840 }
 0xfeb   : > { %8083 = vmatmul.mubr.msk.bf16.gmra.mrb[160].mxu0 %vm1970_vm2, %v11399_v35  ;;  %v5241_v15 = vsel %vm1970_vm2, %v5214_v50, 0 }
 0xfec   : > { %8131 = vmatpush3.bf16.xpose.msra.mxu0 %v4877_v29  ;;  %8086 = vmatprep.mubr.msk.bf16.mxu0 %vm9272_vm1, %v12834_v52 }
 0xfed   : > { %8132 = vmatprep.subr.bf16.mxu0 %v12834_v52 }
 0xfee   : > { %v5216_v48 = vpop.permute.xlu1 %5215  ;;  %v4843_v3 = vpop.permute.xlu0 %4842 }
 0xfef   : > { %v5244_v28 = vsel %vm1970_vm2, %v5216_v48, 0 }
 0xff2   : > { %v11525_v26 = vpop.permute.xlu1 %5217  ;;  %v4845_v11 = vpop.permute.xlu0 %4844 }
 0xff3   : > { %8087 = vmatmul.mubr.msk.bf16.gmra.mrb[164].mxu0 %vm1970_vm2, %v11403_v57  ;;  %v5247_v62 = vsel %vm1970_vm2, %v11525_v26, 0  ;;  %v11680_v26 = vld [vmem:[%s12826_s0 + $0x8] sm:$0xff] }
 0xff4   : > { %8133 = vmatpush3.bf16.xpose.msra.mxu0 %v4880_v18  ;;  %8090 = vmatprep.mubr.msk.bf16.mxu0 %vm9272_vm1, %v12834_v52 }
 0xff5   : > { %8134 = vmatprep.subr.bf16.mxu0 %v12834_v52 }
 0xff6   : > { %v11533_v12 = vpop.permute.xlu1 %5570  ;;  %v4847_v19 = vpop.permute.xlu0 %4846 }
 0xff7   : > { %v5596_v13 = vsel %vm1970_vm2, %v11533_v12, 0 }
 0xffa   : > { %v11535_v34 = vpop.permute.xlu1 %5572  ;;  %v11537_v10 = vpop.permute.xlu0 %5199 }
 0xffb   : > { %8091 = vmatmul.mubr.msk.bf16.gmra.mrb[168].mxu0 %vm1970_vm2, %v11407_v25  ;;  %v5599_v41 = vsel %vm1970_vm2, %v11535_v34, 0 }
 0xffc   : > { %8135 = vmatpush3.bf16.xpose.msra.mxu0 %v4883_v8  ;;  %8094 = vmatprep.mubr.msk.bf16.mxu0 %vm9272_vm1, %v12834_v52 }
 0xffd   : > { %8136 = vmatprep.subr.bf16.mxu0 %v12834_v52 }
 0xffe   : > { %v11545_v6 = vpop.permute.xlu0 %5201  ;;  %v11547_v17 = vpop.permute.xlu1 %5574 }
 0xfff   : > { %v5602_v36 = vsel %vm1970_vm2, %v11547_v17, 0 }
0x1002   : > { %v11549_v4 = vpop.permute.xlu0 %5203  ;;  %v11557_v58 = vpop.permute.xlu1 %5576 }
0x1003   : > { %8095 = vmatmul.mubr.msk.bf16.gmra.mrb[172].mxu0 %vm1970_vm2, %v11413_v38  ;;  %v5605_v2 = vsel %vm1970_vm2, %v11557_v58, 0  ;;  %v11700_v58 = vld [vmem:[%s12826_s0 + $0x18] sm:$0xff] }
0x1004   : > { %8137 = vmatpush3.bf16.xpose.msra.mxu0 %v4886_v24  ;;  %8138 = vmatprep.mubr.msk.bf16.mxu0 %vm9272_vm1, %v12834_v52 }
0x1005   : > { %8188 = vmatprep.subr.bf16.mxu0 %v12834_v52 }
0x1006   : > { %v11559_v46 = vpop.permute.xlu0 %5205  ;;  %v11565_v60 = vpop.permute.xlu1 %5578 }
0x1007   : > { %v5608_v49 = vsel %vm1970_vm2, %v11565_v60, 0 }
0x100a   : > { %v11561_v39 = vpop.permute.xlu0 %5207  ;;  %v11572_v44 = vpop.permute.xlu1 %5562 }
0x100b   : > { %8139 = vmatmul.mubr.msk.bf16.vlgmr.msra.gmra.mrb[176].mxu0 %vm1970_vm2, %v4839_v21 }
0x100c   : > { %8189 = vmatpush3.bf16.xpose.msra.mxu0 %v5235_v31  ;;  %8142 = vmatprep.mubr.msk.bf16.mxu0 %vm9272_vm1, %v12834_v52 }
0x100d   : > { %8190 = vmatprep.subr.bf16.mxu0 %v12834_v52 }
0x100e   : > { %v11570_v47 = vpop.permute.xlu0 %5560  ;;  %v11583_v16 = vpop.permute.xlu1 %5566 }
0x1012   : > { %v11574_v0 = vpop.permute.xlu0 %5564  ;;  %v4738_v56 = vpop.permute.xlu1 %4737 }
0x1013   : > { %8143 = vmatmul.mubr.msk.bf16.gmra.mrb[180].mxu0 %vm1970_vm2, %v4841_v20  ;;  %v11672_v20 = vld [vmem:[%s12826_s0] sm:$0xff] }
0x1014   : > { %8191 = vmatpush3.bf16.xpose.msra.mxu0 %v5238_v59  ;;  %8146 = vmatprep.mubr.msk.bf16.mxu0 %vm9272_vm1, %v12834_v52  ;;  %v11712_v59 = vld [vmem:[%s12826_s0 + $0x20] sm:$0xff] }
0x1015   : > { %8192 = vmatprep.subr.bf16.mxu0 %v12834_v52 }
0x1016   : > { %v11581_v54 = vpop.permute.xlu0 %5568  ;;  %v4742_v32 = vpop.permute.xlu1 %4741 }
0x101a   : > { %v4736_v22 = vpop.permute.xlu0 %4735  ;;  %v11872_v23 = vpop.permute.xlu1 %5096 }
0x101b   : > { %8099 = vmatpush3.bf16.msra.mxu1 %v4736_v22  ;;  %8147 = vmatmul.mubr.msk.bf16.gmra.mrb[184].mxu0 %vm1970_vm2, %v4843_v3 }
0x101c   : > { %8193 = vmatpush3.bf16.xpose.msra.mxu0 %v5241_v15  ;;  %8100 = vmatprep.subr.bf16.mxu1 %v12834_v52  ;;  %v11720_v15 = vld [vmem:[%s12826_s0 + $0x28] sm:$0xff] }
0x101d   : > { %8150 = vmatprep.mubr.msk.bf16.mxu0 %vm9272_vm1, %v12834_v52  ;;  %8194 = vmatprep.subr.bf16.mxu0 %v12834_v52 }
0x101e   : > { %v4740_v5 = vpop.permute.xlu0 %4739 }
0x101f   : > { %8101 = vmatpush3.bf16.msra.mxu1 %v4738_v56 }
0x1020   : > { %8102 = vmatprep.subr.bf16.mxu1 %v12834_v52 }
0x1022   : > { %v11592_v42 = vpop.permute.xlu0 %5098 }
0x1023   : > { %8103 = vmatpush3.bf16.msra.mxu1 %v4740_v5  ;;  %8151 = vmatmul.mubr.msk.bf16.gmra.mrb[188].mxu0 %vm1970_vm2, %v4845_v11 }
0x1024   : > { %8195 = vmatpush3.bf16.xpose.msra.mxu0 %v5244_v28  ;;  %8104 = vmatprep.subr.bf16.mxu1 %v12834_v52 }
0x1025   : > { %8154 = vmatprep.mubr.msk.bf16.mxu0 %vm9272_vm1, %v12834_v52  ;;  %8196 = vmatprep.subr.bf16.mxu0 %v12834_v52 }
0x1026   : > { %v11600_v43 = vpop.permute.xlu0 %5100 }
0x1027   : > { %8105 = vmatpush3.bf16.msra.mxu1 %v4742_v32 }
0x1028   : > { %8106 = vmatprep.subr.bf16.mxu1 %v12834_v52 }
0x102a   : > { %v11603_v7 = vpop.permute.xlu0 %5457 }
0x102b   : > { %12871 = vst [vmem:[#allocation4_spill] sm:$0xff] %v11603_v7  ;;  %8155 = vmatmul.mubr.msk.bf16.gmra.mrb[192].mxu0 %vm1970_vm2, %v4847_v19 }
0x102c   : > { %8197 = vmatpush3.bf16.xpose.msra.mxu0 %v5247_v62  ;;  %8198 = vmatprep.mubr.msk.bf16.mxu0 %vm9272_vm1, %v12834_v52 }
0x102d   : > { %8248 = vmatprep.subr.bf16.mxu0 %v12834_v52 }
0x102e   : > { %v11611_v1 = vpop.permute.xlu0 %5461 }
0x102f   : > { %12872 = vst [vmem:[#allocation5_spill] sm:$0xff] %v11611_v1 }
0x1032   : > { %v4744_v37 = vpop.permute.xlu0 %4743 }
0x1033   : > { %8107 = vmatpush3.bf16.msra.mxu1 %v4744_v37  ;;  %8199 = vmatmul.mubr.msk.bf16.vlgmr.msra.gmra.mrb[196].mxu0 %vm1970_vm2, %v11537_v10 }
0x1034   : > { %8249 = vmatpush3.bf16.xpose.msra.mxu0 %v5596_v13  ;;  %8202 = vmatprep.mubr.msk.bf16.mxu0 %vm9272_vm1, %v12834_v52 }
0x1035   : > { %8250 = vmatprep.subr.bf16.mxu0 %v12834_v52  ;;  %8158 = vmatprep.subr.bf16.mxu1 %v12834_v52 }
0x1036   : > { %v11905_v1 = vpop.permute.xlu0 %5104 }
0x103b   : > { %8203 = vmatmul.mubr.msk.bf16.gmra.mrb[200].mxu0 %vm1970_vm2, %v11545_v6  ;;  %v11692_v6 = vld [vmem:[%s12826_s0 + $0x10] sm:$0xff] }
0x103c   : > { %8251 = vmatpush3.bf16.xpose.msra.mxu0 %v5599_v41  ;;  %8206 = vmatprep.mubr.msk.bf16.mxu0 %vm9272_vm1, %v12834_v52  ;;  %v11732_v41 = vld [vmem:[%s12826_s0 + $0x30] sm:$0xff] }
0x103d   : > { %8252 = vmatprep.subr.bf16.mxu0 %v12834_v52 }
0x1043   : > { %8207 = vmatmul.mubr.msk.bf16.gmra.mrb[204].mxu0 %vm1970_vm2, %v11549_v4 }
0x1044   : > { %8253 = vmatpush3.bf16.xpose.msra.mxu0 %v5602_v36  ;;  %8210 = vmatprep.mubr.msk.bf16.mxu0 %vm9272_vm1, %v12834_v52 }
0x1045   : > { %8254 = vmatprep.subr.bf16.mxu0 %v12834_v52 }
0x104b   : > { %8211 = vmatmul.mubr.msk.bf16.gmra.mrb[208].mxu0 %vm1970_vm2, %v11559_v46 }
0x104c   : > { %8255 = vmatpush3.bf16.xpose.msra.mxu0 %v5605_v2  ;;  %8214 = vmatprep.mubr.msk.bf16.mxu0 %vm9272_vm1, %v12834_v52 }
0x104d   : > { %8256 = vmatprep.subr.bf16.mxu0 %v12834_v52 }
0x1053   : > { %8215 = vmatmul.mubr.msk.bf16.gmra.mrb[212].mxu0 %vm1970_vm2, %v11561_v39 }
0x1054   : > { %8257 = vmatpush3.bf16.xpose.msra.mxu0 %v5608_v49  ;;  %8258 = vmatprep.mubr.msk.bf16.mxu0 %vm9272_vm1, %v12834_v52 }
0x1055   : > { %8308 = vmatprep.subr.bf16.mxu0 %v12834_v52 }
0x105b   : > { %8259 = vmatmul.mubr.msk.bf16.vlgmr.msra.gmra.mrb[216].mxu0 %vm1970_vm2, %v11570_v47 }
0x105c   : > { %8262 = vmatprep.mubr.msk.bf16.mxu0 %vm9272_vm1, %v12834_v52 }
0x1063   : > { %8263 = vmatmul.mubr.msk.bf16.gmra.mrb[220].mxu0 %vm1970_vm2, %v11572_v44 }
0x1064   : > { %8266 = vmatprep.mubr.msk.bf16.mxu0 %vm9272_vm1, %v12834_v52 }
0x106b   : > { %8267 = vmatmul.mubr.msk.bf16.gmra.mrb[224].mxu0 %vm1970_vm2, %v11574_v0 }
0x106c   : > { %8270 = vmatprep.mubr.msk.bf16.mxu0 %vm9272_vm1, %v12834_v52 }
0x1073   : > { %8271 = vmatmul.mubr.msk.bf16.gmra.mrb[228].mxu0 %vm1970_vm2, %v11583_v16 }
0x1074   : > { %8274 = vmatprep.mubr.msk.bf16.mxu0 %vm9272_vm1, %v12834_v52 }
0x107b   : > { %8275 = vmatmul.mubr.msk.bf16.gmra.mrb[232].mxu0 %vm1970_vm2, %v11581_v54 }
0x107c   : > { %8312 = vmatprep.mubr.msk.bf16.mxu0 %vm9272_vm1, %v12834_v52 }
0x10b6   : > { %v4561_v40 = vpop.f32.mrb[156].mxu0 }
0x10b7   : > { %v4600_v61 = vmul.f32 0.35355338, %v4561_v40  ;;  %v8080_v21 = vpop.f32.mrb[157].mxu0  ;;  %v11740_v40 = vld [vmem:[%s12826_s0 + $0x38] sm:$0xff] }
0x10b8   : > { %v4564_v50 = vpop.f32.mrb[158].mxu0 }
0x10b9   : > { %v11675_v29 = vadd.f32 %v11672_v20, %v4600_v61  ;;  %v4601_v48 = vmul.f32 0.35355338, %v4564_v50  ;;  %v8081_v3 = vpop.f32.mrb[159].mxu0 }
0x10bb   : > { %v11683_v11 = vadd.f32 %v11680_v26, %v4601_v48  ;;  %v4620_v18 = vsel %vm2094_vm3, %v11675_v29, -inf }
0x10bc   : > { %4621 = vmax.xlane.f32.xlu1 %v4620_v18 }
0x10bd   : > { %v4623_v12 = vsel %vm2094_vm3, %v11683_v11, -inf }
0x10be   : > { %4624 = vmax.xlane.f32.xlu0 %v4623_v12  ;;  %v4569_v19 = vpop.f32.mrb[160].mxu0 }
0x10bf   : > { %v4602_v34 = vmul.f32 0.35355338, %v4569_v19  ;;  %v8084_v10 = vpop.f32.mrb[161].mxu0  ;;  %v11752_v19 = vld [vmem:[%s12826_s0 + $0x40] sm:$0xff] }
0x10c0   : > { %v4572_v8 = vpop.f32.mrb[162].mxu0 }
0x10c1   : > { %v11695_v17 = vadd.f32 %v11692_v6, %v4602_v34  ;;  %v4603_v4 = vmul.f32 0.35355338, %v4572_v8  ;;  %v8085_v24 = vpop.f32.mrb[163].mxu0 }
0x10c3   : > { %v11703_v46 = vadd.f32 %v11700_v58, %v4603_v4  ;;  %v4626_v39 = vsel %vm2094_vm3, %v11695_v17, -inf  ;;  %v11760_v4 = vld [vmem:[%s12826_s0 + $0x48] sm:$0xff] }
0x10c4   : > { %4627 = vmax.xlane.f32.xlu0 %v4626_v39 }
0x10c5   : > { %v4629_v31 = vsel %vm2094_vm3, %v11703_v46, -inf }
0x10c6   : > { %4630 = vmax.xlane.f32.xlu1 %v4629_v31  ;;  %v4577_v60 = vpop.f32.mrb[164].mxu0 }
0x10c7   : > { %v4604_v47 = vmul.f32 0.35355338, %v4577_v60  ;;  %v8088_v44 = vpop.f32.mrb[165].mxu0 }
0x10c8   : > { %v4580_v0 = vpop.f32.mrb[166].mxu0 }
0x10c9   : > { %v11715_v54 = vadd.f32 %v11712_v59, %v4604_v47  ;;  %v4605_v16 = vmul.f32 0.35355338, %v4580_v0  ;;  %v8089_v22 = vpop.f32.mrb[167].mxu0 }
0x10cb   : > { %v11723_v56 = vadd.f32 %v11720_v15, %v4605_v16  ;;  %v4632_v5 = vsel %vm2094_vm3, %v11715_v54, -inf }
0x10cc   : > { %4633 = vmax.xlane.f32.xlu0 %v4632_v5 }
0x10cd   : > { %v4635_v28 = vsel %vm2094_vm3, %v11723_v56, -inf }
0x10ce   : > { %4636 = vmax.xlane.f32.xlu1 %v4635_v28  ;;  %v4585_v32 = vpop.f32.mrb[168].mxu0 }
0x10cf   : > { %v4606_v62 = vmul.f32 0.35355338, %v4585_v32  ;;  %v8092_v37 = vpop.f32.mrb[169].mxu0 }
0x10d0   : > { %v4588_v13 = vpop.f32.mrb[170].mxu0 }
0x10d1   : > { %v11735_v36 = vadd.f32 %v11732_v41, %v4606_v62  ;;  %v4607_v2 = vmul.f32 0.35355338, %v4588_v13  ;;  %v8093_v49 = vpop.f32.mrb[171].mxu0 }
0x10d3   : > { %v11743_v61 = vadd.f32 %v11740_v40, %v4607_v2  ;;  %v4638_v21 = vsel %vm2094_vm3, %v11735_v36, -inf }
0x10d4   : > { %4639 = vmax.xlane.f32.xlu0 %v4638_v21 }
0x10d5   : > { %v4641_v50 = vsel %vm2094_vm3, %v11743_v61, -inf }
0x10d6   : > { %4642 = vmax.xlane.f32.xlu1 %v4641_v50  ;;  %v4593_v48 = vpop.f32.mrb[172].mxu0 }
0x10d7   : > { %v4608_v3 = vmul.f32 0.35355338, %v4593_v48  ;;  %v8096_v18 = vpop.f32.mrb[173].mxu0 }
0x10d8   : > { %v4596_v12 = vpop.f32.mrb[174].mxu0 }
0x10d9   : > { %v11755_v34 = vadd.f32 %v11752_v19, %v4608_v3  ;;  %v4609_v10 = vmul.f32 0.35355338, %v4596_v12  ;;  %v8097_v8 = vpop.f32.mrb[175].mxu0 }
0x10db   : > { %v11763_v24 = vadd.f32 %v11760_v4, %v4609_v10  ;;  %v4644_v39 = vsel %vm2094_vm3, %v11755_v34, -inf }
0x10dc   : > { %4645 = vmax.xlane.f32.xlu0 %v4644_v39 }
0x10dd   : > { %v4647_v31 = vsel %vm2094_vm3, %v11763_v24, -inf }
0x10de   : > { %4648 = vmax.xlane.f32.xlu1 %v4647_v31  ;;  %v4922_v60 = vpop.f32.mrb[176].mxu0 }
0x10df   : > { %v4961_v47 = vmul.f32 0.35355338, %v4922_v60  ;;  %v8140_v44 = vpop.f32.mrb[177].mxu0 }
0x10e0   : > { %v4925_v0 = vpop.f32.mrb[178].mxu0 }
0x10e1   : > { %v11770_v16 = vadd.f32 %v11672_v20, %v4961_v47  ;;  %v4962_v22 = vmul.f32 0.35355338, %v4925_v0  ;;  %v8141_v5 = vpop.f32.mrb[179].mxu0 }
0x10e3   : > { %v11773_v28 = vadd.f32 %v11680_v26, %v4962_v22  ;;  %v4981_v32 = vsel %vm2094_vm3, %v11770_v16, -inf }
0x10e4   : > { %4982 = vmax.xlane.f32.xlu0 %v4981_v32 }
0x10e5   : > { %v4984_v62 = vsel %vm2094_vm3, %v11773_v28, -inf }
0x10e6   : > { %4985 = vmax.xlane.f32.xlu1 %v4984_v62  ;;  %v4930_v37 = vpop.f32.mrb[180].mxu0 }
0x10e7   : > { %v4963_v13 = vmul.f32 0.35355338, %v4930_v37  ;;  %v8144_v2 = vpop.f32.mrb[181].mxu0 }
0x10e8   : > { %v4933_v49 = vpop.f32.mrb[182].mxu0 }
0x10e9   : > { %v11780_v21 = vadd.f32 %v11692_v6, %v4963_v13  ;;  %v4964_v50 = vmul.f32 0.35355338, %v4933_v49  ;;  %v8145_v48 = vpop.f32.mrb[183].mxu0 }
0x10eb   : > { %v11783_v3 = vadd.f32 %v11700_v58, %v4964_v50  ;;  %v4987_v18 = vsel %vm2094_vm3, %v11780_v21, -inf }
0x10ec   : > { %4988 = vmax.xlane.f32.xlu0 %v4987_v18 }
0x10ed   : > { %v4990_v12 = vsel %vm2094_vm3, %v11783_v3, -inf }
0x10ee   : > { %4991 = vmax.xlane.f32.xlu1 %v4990_v12  ;;  %v4938_v10 = vpop.f32.mrb[184].mxu0 }
0x10ef   : > { %v4965_v8 = vmul.f32 0.35355338, %v4938_v10  ;;  %v8148_v39 = vpop.f32.mrb[185].mxu0 }
0x10f0   : > { %v4941_v31 = vpop.f32.mrb[186].mxu0 }
0x10f1   : > { %v11790_v60 = vadd.f32 %v11712_v59, %v4965_v8  ;;  %v4966_v47 = vmul.f32 0.35355338, %v4941_v31  ;;  %v8149_v44 = vpop.f32.mrb[187].mxu0 }
0x10f3   : > { %v11793_v0 = vadd.f32 %v11720_v15, %v4966_v47  ;;  %v4993_v22 = vsel %vm2094_vm3, %v11790_v60, -inf }
0x10f4   : > { %4994 = vmax.xlane.f32.xlu0 %v4993_v22 }
0x10f5   : > { %v4996_v5 = vsel %vm2094_vm3, %v11793_v0, -inf }
0x10f6   : > { %4997 = vmax.xlane.f32.xlu1 %v4996_v5  ;;  %v4946_v32 = vpop.f32.mrb[188].mxu0 }
0x10f7   : > { %v4967_v62 = vmul.f32 0.35355338, %v4946_v32  ;;  %v8152_v37 = vpop.f32.mrb[189].mxu0 }
0x10f8   : > { %v4949_v13 = vpop.f32.mrb[190].mxu0 }
0x10f9   : > { %v11800_v2 = vadd.f32 %v11732_v41, %v4967_v62  ;;  %v4968_v49 = vmul.f32 0.35355338, %v4949_v13  ;;  %v8153_v50 = vpop.f32.mrb[191].mxu0 }
0x10fb   : > { %v11803_v48 = vadd.f32 %v11740_v40, %v4968_v49  ;;  %v4999_v18 = vsel %vm2094_vm3, %v11800_v2, -inf }
0x10fc   : > { %5000 = vmax.xlane.f32.xlu0 %v4999_v18 }
0x10fd   : > { %v5002_v12 = vsel %vm2094_vm3, %v11803_v48, -inf }
0x10fe   : > { %5003 = vmax.xlane.f32.xlu1 %v5002_v12  ;;  %v4954_v10 = vpop.f32.mrb[192].mxu0 }
0x10ff   : > { %v4969_v8 = vmul.f32 0.35355338, %v4954_v10  ;;  %v8156_v39 = vpop.f32.mrb[193].mxu0 }
0x1100   : > { %v4957_v31 = vpop.f32.mrb[194].mxu0 }
0x1101   : > { %v11810_v47 = vadd.f32 %v11752_v19, %v4969_v8  ;;  %v4970_v44 = vmul.f32 0.35355338, %v4957_v31  ;;  %v8157_v22 = vpop.f32.mrb[195].mxu0 }
0x1103   : > { %v11813_v5 = vadd.f32 %v11760_v4, %v4970_v44  ;;  %v5005_v32 = vsel %vm2094_vm3, %v11810_v47, -inf }
0x1104   : > { %5006 = vmax.xlane.f32.xlu0 %v5005_v32 }
0x1105   : > { %v5008_v62 = vsel %vm2094_vm3, %v11813_v5, -inf }
0x1106   : > { %5009 = vmax.xlane.f32.xlu1 %v5008_v62  ;;  %v5283_v37 = vpop.f32.mrb[196].mxu0 }
0x1107   : > { %v5322_v13 = vmul.f32 0.35355338, %v5283_v37  ;;  %v8200_v49 = vpop.f32.mrb[197].mxu0 }
0x1108   : > { %v5286_v50 = vpop.f32.mrb[198].mxu0 }
0x1109   : > { %v11820_v18 = vadd.f32 %v11672_v20, %v5322_v13  ;;  %v5323_v12 = vmul.f32 0.35355338, %v5286_v50  ;;  %v8201_v10 = vpop.f32.mrb[199].mxu0 }
0x110b   : > { %v11823_v8 = vadd.f32 %v11680_v26, %v5323_v12  ;;  %v5342_v39 = vsel %vm2094_vm3, %v11820_v18, -inf }
0x110c   : > { %5343 = vmax.xlane.f32.xlu0 %v5342_v39 }
0x110d   : > { %v5345_v31 = vsel %vm2094_vm3, %v11823_v8, -inf }
0x110e   : > { %5346 = vmax.xlane.f32.xlu1 %v5345_v31  ;;  %v5291_v44 = vpop.f32.mrb[200].mxu0 }
0x110f   : > { %v5324_v22 = vmul.f32 0.35355338, %v5291_v44  ;;  %v8204_v32 = vpop.f32.mrb[201].mxu0 }
0x1110   : > { %v5294_v62 = vpop.f32.mrb[202].mxu0 }
0x1111   : > { %v11830_v37 = vadd.f32 %v11692_v6, %v5324_v22  ;;  %v5325_v13 = vmul.f32 0.35355338, %v5294_v62  ;;  %v8205_v49 = vpop.f32.mrb[203].mxu0 }
0x1113   : > { %v11833_v50 = vadd.f32 %v11700_v58, %v5325_v13  ;;  %v5348_v12 = vsel %vm2094_vm3, %v11830_v37, -inf }
0x1114   : > { %5349 = vmax.xlane.f32.xlu0 %v5348_v12 }
0x1115   : > { %v5351_v10 = vsel %vm2094_vm3, %v11833_v50, -inf }
0x1116   : > { %5352 = vmax.xlane.f32.xlu1 %v5351_v10  ;;  %v5299_v39 = vpop.f32.mrb[204].mxu0 }
0x1117   : > { %v5326_v31 = vmul.f32 0.35355338, %v5299_v39  ;;  %v8208_v44 = vpop.f32.mrb[205].mxu0 }
0x1118   : > { %v5302_v32 = vpop.f32.mrb[206].mxu0 }
0x1119   : > { %v11840_v22 = vadd.f32 %v11712_v59, %v5326_v31  ;;  %v5327_v62 = vmul.f32 0.35355338, %v5302_v32  ;;  %v8209_v49 = vpop.f32.mrb[207].mxu0 }
0x111b   : > { %v11843_v13 = vadd.f32 %v11720_v15, %v5327_v62  ;;  %v5354_v27 = vsel %vm2094_vm3, %v11840_v22, -inf }
0x111c   : > { %5355 = vmax.xlane.f32.xlu0 %v5354_v27 }
0x111d   : > { %v5357_v12 = vsel %vm2094_vm3, %v11843_v13, -inf }
0x111e   : > { %5358 = vmax.xlane.f32.xlu1 %v5357_v12  ;;  %v5307_v10 = vpop.f32.mrb[208].mxu0 }
0x111f   : > { %v5328_v39 = vmul.f32 0.35355338, %v5307_v10  ;;  %v8212_v44 = vpop.f32.mrb[209].mxu0 }
0x1120   : > { %v5310_v63 = vpop.f32.mrb[210].mxu0 }
0x1121   : > { %v11850_v31 = vadd.f32 %v11732_v41, %v5328_v39  ;;  %v5329_v32 = vmul.f32 0.35355338, %v5310_v63  ;;  %v8213_v49 = vpop.f32.mrb[211].mxu0 }
0x1123   : > { %v11853_v62 = vadd.f32 %v11740_v40, %v5329_v32  ;;  %v5360_v33 = vsel %vm2094_vm3, %v11850_v31, -inf }
0x1124   : > { %5361 = vmax.xlane.f32.xlu0 %v5360_v33 }
0x1125   : > { %v5363_v27 = vsel %vm2094_vm3, %v11853_v62, -inf }
0x1126   : > { %5364 = vmax.xlane.f32.xlu1 %v5363_v27  ;;  %v5315_v12 = vpop.f32.mrb[212].mxu0 }
0x1127   : > { %v5330_v10 = vmul.f32 0.35355338, %v5315_v12  ;;  %v8216_v44 = vpop.f32.mrb[213].mxu0 }
0x1128   : > { %v5318_v53 = vpop.f32.mrb[214].mxu0 }
0x1129   : > { %v11860_v39 = vadd.f32 %v11752_v19, %v5330_v10  ;;  %v5331_v63 = vmul.f32 0.35355338, %v5318_v53  ;;  %v8217_v49 = vpop.f32.mrb[215].mxu0 }
0x112b   : > { %v11863_v32 = vadd.f32 %v11760_v4, %v5331_v63  ;;  %v5366_v9 = vsel %vm2094_vm3, %v11860_v39, -inf }
0x112c   : > { %5367 = vmax.xlane.f32.xlu0 %v5366_v9 }
0x112d   : > { %v5369_v33 = vsel %vm2094_vm3, %v11863_v32, -inf }
0x112e   : > { %5370 = vmax.xlane.f32.xlu1 %v5369_v33  ;;  %v5644_v27 = vpop.f32.mrb[216].mxu0 }
0x112f   : > { %v5683_v12 = vmul.f32 0.35355338, %v5644_v27  ;;  %v8260_v44 = vpop.f32.mrb[217].mxu0 }
0x1130   : > { %v5647_v14 = vpop.f32.mrb[218].mxu0 }
0x1131   : > { %v11870_v10 = vadd.f32 %v11672_v20, %v5683_v12  ;;  %v5684_v53 = vmul.f32 0.35355338, %v5647_v14  ;;  %v8261_v49 = vpop.f32.mrb[219].mxu0  ;;  %v11881_v12 = vpop.permute.xlu1 %5102 }
0x1133   : > { %v11875_v63 = vadd.f32 %v11680_v26, %v5684_v53  ;;  %v5703_v9 = vsel %vm2094_vm3, %v11870_v10, -inf }
0x1134   : > { %5704 = vmax.xlane.f32.xlu1 %v5703_v9 }
0x1135   : > { %v5706_v27 = vsel %vm2094_vm3, %v11875_v63, -inf  ;;  %v11893_v9 = vpop.permute.xlu1 %5459 }
0x1136   : > { %v5652_v55 = vpop.f32.mrb[220].mxu0  ;;  %12873 = vst [vmem:[#allocation6_spill] sm:$0xff] %v11893_v9 }
0x1137   : > { %v5685_v33 = vmul.f32 0.35355338, %v5652_v55  ;;  %v8264_v30 = vpop.f32.mrb[221].mxu0 }
0x1138   : > { %5707 = vmax.xlane.f32.xlu1 %v5706_v27  ;;  %v5655_v20 = vpop.f32.mrb[222].mxu0 }
0x1139   : > { %v11884_v14 = vadd.f32 %v11692_v6, %v5685_v33  ;;  %v5686_v44 = vmul.f32 0.35355338, %v5655_v20  ;;  %v8265_v26 = vpop.f32.mrb[223].mxu0 }
0x113b   : > { %v11887_v53 = vadd.f32 %v11700_v58, %v5686_v44  ;;  %v5709_v49 = vsel %vm2094_vm3, %v11884_v14, -inf }
0x113c   : > { %5710 = vmax.xlane.f32.xlu0 %v5709_v49  ;;  %v11903_v49 = vpop.permute.xlu1 %5463 }
0x113d   : > { %v5712_v30 = vsel %vm2094_vm3, %v11887_v53, -inf  ;;  %12874 = vst [vmem:[#allocation7_spill] sm:$0xff] %v11903_v49 }
0x113e   : > { %5713 = vmax.xlane.f32.xlu1 %v5712_v30  ;;  %v5660_v55 = vpop.f32.mrb[224].mxu0 }
0x113f   : > { %v5687_v27 = vmul.f32 0.35355338, %v5660_v55  ;;  %v8268_v45 = vpop.f32.mrb[225].mxu0 }
0x1140   : > { %v5663_v6 = vpop.f32.mrb[226].mxu0 }
0x1141   : > { %v11896_v33 = vadd.f32 %v11712_v59, %v5687_v27  ;;  %v5688_v20 = vmul.f32 0.35355338, %v5663_v6  ;;  %v8269_v58 = vpop.f32.mrb[227].mxu0 }
0x1143   : > { %v11899_v44 = vadd.f32 %v11720_v15, %v5688_v20  ;;  %v5715_v26 = vsel %vm2094_vm3, %v11896_v33, -inf }
0x1144   : > { %5716 = vmax.xlane.f32.xlu1 %v5715_v26 }
0x1145   : > { %v5718_v59 = vsel %vm2094_vm3, %v11899_v44, -inf }
0x1146   : > { %v5668_v30 = vpop.f32.mrb[228].mxu0 }
0x1147   : > { %v5689_v55 = vmul.f32 0.35355338, %v5668_v30  ;;  %v8272_v45 = vpop.f32.mrb[229].mxu0 }
0x1148   : > { %5719 = vmax.xlane.f32.xlu1 %v5718_v59  ;;  %v5671_v27 = vpop.f32.mrb[230].mxu0 }
0x1149   : > { %v11910_v6 = vadd.f32 %v11732_v41, %v5689_v55  ;;  %v5690_v15 = vmul.f32 0.35355338, %v5671_v27  ;;  %v4622_v20 = vpop.xlane.xlu1 %4621  ;;  %v8273_v58 = vpop.f32.mrb[231].mxu0 }
0x114a   : > { %v4650_v26 = vsub.f32 %v11675_v29, %v4622_v20 }
0x114b   : > { %12875 = vst [vmem:[#allocation8_spill] sm:$0xff] %v11910_v6  ;;  %v11914_v49 = vadd.f32 %v11740_v40, %v5690_v15  ;;  %v4625_v9 = vpop.xlane.xlu0 %4624  ;;  %v5721_v30 = vsel %vm2094_vm3, %v11910_v6, -inf }
0x114c   : > { %v4660_v45 = vmul.f32 1.442695, %v4650_v26  ;;  %v4651_v7 = vsub.f32 %v11683_v11, %v4625_v9  ;;  %5722 = vmax.xlane.f32.xlu1 %v5721_v30 }
0x114d   : > { %v5724_v58 = vsel %vm2094_vm3, %v11914_v49, -inf }
0x114e   : > { %9025 = vpow2.f32 %v4660_v45  ;;  %v4662_v59 = vmul.f32 1.442695, %v4651_v7  ;;  %v5676_v41 = vpop.f32.mrb[232].mxu0 }
0x114f   : > { %v5691_v55 = vmul.f32 0.35355338, %v5676_v41  ;;  %v8276_v27 = vpop.f32.mrb[233].mxu0 }
0x1150   : > { %9027 = vpow2.f32 %v4662_v59  ;;  %5725 = vmax.xlane.f32.xlu1 %v5724_v58  ;;  %v5679_v29 = vpop.f32.mrb[234].mxu0 }
0x1151   : > { %v11922_v40 = vadd.f32 %v11752_v19, %v5691_v55  ;;  %v5692_v15 = vmul.f32 0.35355338, %v5679_v29  ;;  %v4628_v20 = vpop.xlane.xlu0 %4627  ;;  %v8277_v26 = vpop.f32.mrb[235].mxu0 }
0x1152   : > { %v4652_v11 = vsub.f32 %v11695_v17, %v4628_v20 }
0x1153   : > { %v11926_v9 = vadd.f32 %v11760_v4, %v5692_v15  ;;  %v5727_v7 = vsel %vm2094_vm3, %v11922_v40, -inf  ;;  %v4631_v27 = vpop.xlane.xlu1 %4630 }
0x1154   : > { %v4664_v30 = vmul.f32 1.442695, %v4652_v11  ;;  %5728 = vmax.xlane.f32.xlu0 %v5727_v7  ;;  %v4653_v20 = vsub.f32 %v11703_v46, %v4631_v27 }
0x1155   : > { %12876 = vst [vmem:[#allocation9_spill] sm:$0xff] %v11926_v9  ;;  %v5730_v45 = vsel %vm2094_vm3, %v11926_v9, -inf }
0x1156   : > { %9029 = vpow2.f32 %v4664_v30  ;;  %5731 = vmax.xlane.f32.xlu1 %v5730_v45  ;;  %v4666_v7 = vmul.f32 1.442695, %v4653_v20 }
0x1158   : > { %v11932_v19 = vpop.eup %9025  ;;  %9031 = vpow2.f32 %v4666_v7 }
0x1159   : > { %v4680_v59 = vsel %vm2094_vm3, %v11932_v19, 0.0  ;;  %v4634_v26 = vpop.xlane.xlu0 %4633 }
0x115a   : > { %v11936_v41 = vpop.eup %9027  ;;  %4681 = vadd.xlane.f32.xlu0 %v4680_v59  ;;  %v4654_v30 = vsub.f32 %v11715_v54, %v4634_v26 }
0x115b   : > { %v4683_v17 = vsel %vm2094_vm3, %v11936_v41, 0.0  ;;  %v4637_v58 = vpop.xlane.xlu1 %4636 }
0x115c   : > { %4684 = vadd.xlane.f32.xlu1 %v4683_v17  ;;  %v4655_v59 = vsub.f32 %v11723_v56, %v4637_v58 }
0x115e   : > { %v4670_v6 = vmul.f32 1.442695, %v4655_v59 }
0x1160   : > { %v11940_v4 = vpop.eup %9029 }
0x1161   : > { %12877 = vst [vmem:[#allocation10_spill] sm:$0xff] %v11940_v4  ;;  %v4686_v55 = vsel %vm2094_vm3, %v11940_v4, 0.0  ;;  %v4640_v45 = vpop.xlane.xlu0 %4639 }
0x1162   : > { %4687 = vadd.xlane.f32.xlu0 %v4686_v55  ;;  %v4656_v55 = vsub.f32 %v11735_v36, %v4640_v45  ;;  %v11956_v36 = vpop.eup %9031 }
0x1163   : > { %v4643_v29 = vpop.xlane.xlu1 %4642 }
0x1164   : > { %v4672_v46 = vmul.f32 1.442695, %v4656_v55 }
0x1169   : > { %v4646_v4 = vpop.xlane.xlu0 %4645 }
0x116a   : > { %v4658_v27 = vsub.f32 %v11755_v34, %v4646_v4 }
0x116b   : > { %v4649_v15 = vpop.xlane.xlu1 %4648 }
0x116c   : > { %v4676_v56 = vmul.f32 1.442695, %v4658_v27  ;;  %v4659_v58 = vsub.f32 %v11763_v24, %v4649_v15 }
0x116d   : > { %5818 = vrot.lane.b32.xlu1 %v11395_v51, %s12878_s2  ;;  %v4668_v51 = vmul.f32 1.442695, %v4654_v30 }
0x116f   : > { %9033 = vpow2.f32 %v4668_v51 }
0x1170   : > { %9035 = vpow2.f32 %v4670_v6 }
0x1171   : > { %9037 = vpow2.f32 %v4672_v46  ;;  %v4983_v7 = vpop.xlane.xlu0 %4982 }
0x1172   : > { %v5011_v34 = vsub.f32 %v11770_v16, %v4983_v7 }
0x1173   : > { %v4986_v11 = vpop.xlane.xlu1 %4985 }
0x1174   : > { %v5012_v4 = vsub.f32 %v11773_v28, %v4986_v11 }
0x1176   : > { %v5023_v51 = vmul.f32 1.442695, %v5012_v4 }
0x1178   : > { %5465 = vrot.lane.b32.xlu0 %v11413_v38, %s12870_s5  ;;  %v4657_v38 = vsub.f32 %v11743_v61, %v4643_v29  ;;  %v4678_v29 = vmul.f32 1.442695, %v4659_v58  ;;  %s12891_s5 = smov 8  }
0x1179   : > { %v4989_v15 = vpop.xlane.xlu0 %4988 }
0x117a   : > { %v4674_v20 = vmul.f32 1.442695, %v4657_v38  ;;  %v4689_v38 = vsel %vm2094_vm3, %v11956_v36, 0.0  ;;  %v5013_v55 = vsub.f32 %v11780_v21, %v4989_v15 }
0x117b   : > { %v4992_v17 = vpop.xlane.xlu1 %4991 }
0x117c   : > { %9039 = vpow2.f32 %v4674_v20  ;;  %v5025_v20 = vmul.f32 1.442695, %v5013_v55 }
0x117d   : > { %9041 = vpow2.f32 %v4676_v56 }
0x1181   : > { %v4995_v56 = vpop.xlane.xlu0 %4994 }
0x1183   : > { %v4998_v9 = vpop.xlane.xlu1 %4997 }
0x1184   : > { %v5016_v54 = vsub.f32 %v11793_v0, %v4998_v9  ;;  %v11962_v0 = vpop.eup %9033  ;;  %v5021_v9 = vmul.f32 1.442695, %v5011_v34 }
0x1185   : > { %v11964_v24 = vpop.eup %9035 }
0x1186   : > { %v5031_v30 = vmul.f32 1.442695, %v5016_v54  ;;  %v11969_v45 = vpop.eup %9037  ;;  %v4695_v16 = vsel %vm2094_vm3, %v11964_v24, 0.0  ;;  %v5014_v54 = vsub.f32 %v11783_v3, %v4992_v17 }
0x1187   : > { %v11973_v59 = vpop.eup %9039  ;;  %v4698_v28 = vsel %vm2094_vm3, %v11969_v45, 0.0 }
0x1188   : > { %9043 = vpow2.f32 %v5031_v30  ;;  %v11978_v11 = vpop.eup %9041  ;;  %v4701_v46 = vsel %vm2094_vm3, %v11973_v59, 0.0  ;;  %v5027_v30 = vmul.f32 1.442695, %v5014_v54 }
0x1189   : > { %9045 = vpow2.f32 %v4678_v29  ;;  %v4704_v21 = vsel %vm2094_vm3, %v11978_v11, 0.0  ;;  %v5001_v29 = vpop.xlane.xlu0 %5000 }
0x118b   : > { %v5004_v26 = vpop.xlane.xlu1 %5003 }
0x118c   : > { %v5018_v61 = vsub.f32 %v11803_v48, %v5004_v26  ;;  %v4692_v48 = vsel %vm2094_vm3, %v11962_v0, 0.0 }
0x118e   : > { %v5035_v6 = vmul.f32 1.442695, %v5018_v61  ;;  %v5015_v61 = vsub.f32 %v11790_v60, %v4995_v56 }
0x1190   : > { %9047 = vpow2.f32 %v5035_v6  ;;  %v5017_v6 = vsub.f32 %v11800_v2, %v5001_v29 }
0x1191   : > { %4690 = vadd.xlane.f32.xlu1 %v4689_v38  ;;  %9049 = vpow2.f32 %v5021_v9  ;;  %v5029_v38 = vmul.f32 1.442695, %v5015_v61 }
0x1192   : > { %v11982_v27 = vpop.eup %9043  ;;  %9051 = vpow2.f32 %v5023_v51  ;;  %v5033_v4 = vmul.f32 1.442695, %v5017_v6 }
0x1193   : > { %v11987_v58 = vpop.eup %9045  ;;  %v5056_v26 = vsel %vm2094_vm3, %v11982_v27, 0.0  ;;  %9053 = vpow2.f32 %v5025_v20  ;;  %v5007_v20 = vpop.xlane.xlu0 %5006 }
0x1194   : > { %v4707_v3 = vsel %vm2094_vm3, %v11987_v58, 0.0  ;;  %9055 = vpow2.f32 %v5027_v30 }
0x1195   : > { %4693 = vadd.xlane.f32.xlu1 %v4692_v48  ;;  %9057 = vpow2.f32 %v5029_v38 }
0x1196   : > { %9059 = vpow2.f32 %v5033_v4 }
0x1197   : > { %4696 = vadd.xlane.f32.xlu0 %v4695_v16  ;;  %v5010_v16 = vpop.xlane.xlu1 %5009 }
0x1199   : > { %4699 = vadd.xlane.f32.xlu1 %v4698_v28 }
0x119a   : > { %v11991_v7 = vpop.eup %9047 }
0x119b   : > { %4702 = vadd.xlane.f32.xlu0 %v4701_v46  ;;  %12879 = vst [vmem:[#allocation11_spill] sm:$0xff] %v11991_v7  ;;  %v11996_v17 = vpop.eup %9049  ;;  %v5062_v34 = vsel %vm2094_vm3, %v11991_v7, 0.0  ;;  %v12013_v55 = vpop.xlane.xlu1 %5346 }
0x119c   : > { %v5041_v9 = vsel %vm2094_vm3, %v11996_v17, 0.0  ;;  %v12003_v60 = vpop.eup %9051 }
0x119d   : > { %4705 = vadd.xlane.f32.xlu1 %v4704_v21  ;;  %v5044_v15 = vsel %vm2094_vm3, %v12003_v60, 0.0  ;;  %v12007_v48 = vpop.eup %9053 }
0x119e   : > { %v5047_v2 = vsel %vm2094_vm3, %v12007_v48, 0.0  ;;  %v12011_v51 = vpop.eup %9055 }
0x119f   : > { %5057 = vadd.xlane.f32.xlu0 %v5056_v26  ;;  %v5050_v28 = vsel %vm2094_vm3, %v12011_v51, 0.0  ;;  %v12017_v46 = vpop.eup %9057  ;;  %v5344_v26 = vpop.xlane.xlu0 %5343 }
0x11a0   : > { %v5053_v56 = vsel %vm2094_vm3, %v12017_v46, 0.0  ;;  %v12023_v21 = vpop.eup %9059 }
0x11a1   : > { %4708 = vadd.xlane.f32.xlu1 %v4707_v3  ;;  %v5059_v61 = vsel %vm2094_vm3, %v12023_v21, 0.0 }
0x11a3   : > { %5063 = vadd.xlane.f32.xlu0 %v5062_v34  ;;  %v12019_v54 = vpop.xlane.xlu1 %5352  ;;  %v5350_v29 = vpop.xlane.xlu0 %5349 }
0x11a5   : > { %5042 = vadd.xlane.f32.xlu1 %v5041_v9 }
0x11a9   : > { %5045 = vadd.xlane.f32.xlu1 %v5044_v15  ;;  %v5356_v34 = vpop.xlane.xlu0 %5355 }
0x11aa   : > { %v5376_v6 = vsub.f32 %v11840_v22, %v5356_v34 }
0x11ab   : > { %v12025_v30 = vpop.xlane.xlu1 %5358 }
0x11ac   : > { %v5390_v15 = vmul.f32 1.442695, %v5376_v6 }
0x11ad   : > { %5048 = vadd.xlane.f32.xlu1 %v5047_v2 }
0x11ae   : > { %9061 = vpow2.f32 %v5390_v15 }
0x11b1   : > { %5051 = vadd.xlane.f32.xlu1 %v5050_v28  ;;  %v5362_v9 = vpop.xlane.xlu0 %5361 }
0x11b2   : > { %v5378_v2 = vsub.f32 %v11850_v31, %v5362_v9 }
0x11b3   : > { %v12031_v3 = vpop.xlane.xlu1 %5364 }
0x11b5   : > { %5054 = vadd.xlane.f32.xlu1 %v5053_v56  ;;  %v5394_v56 = vmul.f32 1.442695, %v5378_v2 }
0x11b7   : > { %9063 = vpow2.f32 %v5394_v56 }
0x11b8   : > { %v12046_v34 = vpop.eup %9061 }
0x11b9   : > { %5820 = vrot.lane.b32.xlu0 %v11399_v35, %s12878_s2  ;;  %5060 = vadd.xlane.f32.xlu1 %v5059_v61  ;;  %v5414_v9 = vsel %vm2094_vm3, %v12046_v34, 0.0 }
0x11bb   : > { %v5371_v38 = vpop.xlane.xlu1 %5370 }
0x11bc   : > { %v5381_v35 = vsub.f32 %v11863_v32, %v5371_v38  ;;  %v5019_v32 = vsub.f32 %v11810_v47, %v5007_v20  ;;  %v12054_v38 = vpop.xlane.xlu0 %5367 }
0x11be   : > { %v5400_v7 = vmul.f32 1.442695, %v5381_v35  ;;  %v5020_v35 = vsub.f32 %v11813_v5, %v5010_v16  ;;  %v5373_v5 = vsub.f32 %v11823_v8, %v12013_v55  ;;  %v5375_v8 = vsub.f32 %v11833_v50, %v12019_v54 }
0x11bf   : > { %v5379_v54 = vsub.f32 %v11853_v62, %v12031_v3 }
0x11c0   : > { %9065 = vpow2.f32 %v5400_v7  ;;  %v5039_v20 = vmul.f32 1.442695, %v5020_v35 }
0x11c1   : > { %v12034_v4 = vpop.xlane.xlu1 %5704  ;;  %v12051_v15 = vpop.eup %9063 }
0x11c2   : > { %12880 = vst [vmem:[#allocation21_spill] sm:$0xff] %v12051_v15  ;;  %v5420_v7 = vsel %vm2094_vm3, %v12051_v15, 0.0 }
0x11c5   : > { %v12037_v28 = vpop.xlane.xlu1 %5707 }
0x11ca   : > { %5822 = vrot.lane.b32.xlu1 %v11403_v57, %s12878_s2  ;;  %v12060_v56 = vpop.eup %9065 }
0x11cb   : > { %v12042_v61 = vpop.xlane.xlu1 %5713  ;;  %v5429_v47 = vsel %vm2094_vm3, %v12060_v56, 0.0 }
0x11d1   : > { %v12044_v22 = vpop.xlane.xlu1 %5716 }
0x11d5   : > { %v5720_v6 = vpop.xlane.xlu1 %5719 }
0x11d6   : > { %v5738_v31 = vsub.f32 %v11899_v44, %v5720_v6  ;;  %v5037_v44 = vmul.f32 1.442695, %v5019_v32  ;;  %v12063_v6 = vpop.xlane.xlu0 %5710 }
0x11d8   : > { %v5753_v57 = vmul.f32 1.442695, %v5738_v31  ;;  %5415 = vadd.xlane.f32.xlu0 %v5414_v9  ;;  %v5372_v31 = vsub.f32 %v11820_v18, %v5344_v26  ;;  %v5384_v18 = vmul.f32 1.442695, %v5373_v5  ;;  %v5374_v26 = vsub.f32 %v11830_v37, %v5350_v29 }
0x11d9   : > { %v12056_v2 = vpop.xlane.xlu1 %5722  ;;  %v5377_v37 = vsub.f32 %v11843_v13, %v12025_v30 }
0x11da   : > { %9067 = vpow2.f32 %v5753_v57  ;;  %v5382_v32 = vmul.f32 1.442695, %v5372_v31 }
0x11db   : > { %9069 = vpow2.f32 %v5037_v44  ;;  %v5392_v50 = vmul.f32 1.442695, %v5377_v37  ;;  %v5736_v37 = vsub.f32 %v11887_v53, %v12042_v61  ;;  %v12881_v61 = vld [vmem:[#allocation9_spill] sm:$0xff] }
0x11dc   : > { %5421 = vadd.xlane.f32.xlu0 %v5420_v7  ;;  %9071 = vpow2.f32 %v5039_v20  ;;  %v5386_v20 = vmul.f32 1.442695, %v5374_v26 }
0x11dd   : > { %v12068_v9 = vpop.xlane.xlu1 %5725  ;;  %9073 = vpow2.f32 %v5382_v32  ;;  %v5388_v32 = vmul.f32 1.442695, %v5375_v8  ;;  %v5380_v8 = vsub.f32 %v11860_v39, %v12054_v38  ;;  %v5733_v39 = vsub.f32 %v11870_v10, %v12034_v4 }
0x11e0   : > { %5430 = vadd.xlane.f32.xlu0 %v5429_v47 }
0x11e1   : > { %v12070_v57 = vpop.xlane.xlu0 %5728 }
0x11e3   : > { %v12076_v16 = vpop.xlane.xlu1 %5731 }
0x11e4   : > { %v12072_v15 = vpop.eup %9067 }
0x11e5   : > { %v5778_v7 = vsel %vm2094_vm3, %v12072_v15, 0.0  ;;  %v12081_v47 = vpop.eup %9069 }
0x11e6   : > { %5779 = vadd.xlane.f32.xlu0 %v5778_v7  ;;  %v5065_v55 = vsel %vm2094_vm3, %v12081_v47, 0.0  ;;  %v12087_v31 = vpop.eup %9071 }
0x11e7   : > { %v4682_v44 = vpop.xlane.xlu0 %4681  ;;  %v5068_v29 = vsel %vm2094_vm3, %v12087_v31, 0.0  ;;  %v12093_v5 = vpop.eup %9073 }
0x11e8   : > { %9075 = vrcp.f32 %v4682_v44  ;;  %v5402_v13 = vsel %vm2094_vm3, %v12093_v5, 0.0 }
0x11e9   : > { %v4685_v35 = vpop.xlane.xlu1 %4684 }
0x11ea   : > { %9077 = vrcp.f32 %v4685_v35 }
0x11eb   : > { %9079 = vpow2.f32 %v5384_v18 }
0x11ec   : > { %9081 = vpow2.f32 %v5386_v20  ;;  %v5396_v20 = vmul.f32 1.442695, %v5379_v54 }
0x11ed   : > { %9083 = vpow2.f32 %v5388_v32  ;;  %v5740_v32 = vsub.f32 %v11914_v49, %v12068_v9  ;;  %v5737_v9 = vsub.f32 %v11896_v33, %v12044_v22 }
0x11ee   : > { %5066 = vadd.xlane.f32.xlu1 %v5065_v55  ;;  %9085 = vpow2.f32 %v5392_v50  ;;  %v5734_v55 = vsub.f32 %v11875_v63, %v12037_v28 }
0x11ef   : > { %9087 = vpow2.f32 %v5396_v20  ;;  %v12176_v20 = vpop.permute.xlu1 %5818 }
0x11f2   : > { %5069 = vadd.xlane.f32.xlu1 %v5068_v29  ;;  %v9076_v7 = vpop.eup %9075  ;;  %v5757_v29 = vmul.f32 1.442695, %v5740_v32 }
0x11f3   : > { %v4720_v18 = vmul.f32 %v9076_v7, %v11932_v19 }
0x11f4   : > { %v9078_v44 = vpop.eup %9077 }
0x11f5   : > { %v4721_v26 = vmul.f32 %v9078_v44, %v11936_v41  ;;  %v12101_v30 = vpop.eup %9079  ;;  %v5398_v41 = vmul.f32 1.442695, %v5380_v8  ;;  %v12882_v44 = vld [vmem:[#allocation8_spill] sm:$0xff]  ;;  %v4688_v8 = vpop.xlane.xlu0 %4687 }
0x11f6   : > { %5403 = vadd.xlane.f32.xlu1 %v5402_v13  ;;  %v5405_v62 = vsel %vm2094_vm3, %v12101_v30, 0.0  ;;  %v12108_v19 = vpop.eup %9081  ;;  %v5739_v50 = vsub.f32 %v12882_v44, %v12056_v2 }
0x11f7   : > { %v4730_v35 = vpack.c.bf16 %v4721_v26, %v4720_v18  ;;  %v5408_v3 = vsel %vm2094_vm3, %v12108_v19, 0.0  ;;  %v12120_v38 = vpop.eup %9083  ;;  %9089 = vpow2.f32 %v5398_v41 }
0x11f8   : > { %v5411_v10 = vsel %vm2094_vm3, %v12120_v38, 0.0  ;;  %v12128_v4 = vpop.eup %9085 }
0x11f9   : > { %8109 = vmatmul.mubr.msk.bf16.vlgmr.msra.gmra.mrb[164].mxu1 %vm2094_vm3, %v4730_v35  ;;  %v5417_v63 = vsel %vm2094_vm3, %v12128_v4, 0.0  ;;  %v12138_v28 = vpop.eup %9087 }
0x11fa   : > { %8159 = vmatpush3.bf16.msra.mxu1 %v11872_v23  ;;  %5406 = vadd.xlane.f32.xlu1 %v5405_v62  ;;  %v5743_v23 = vmul.f32 1.442695, %v5733_v39  ;;  %v5423_v49 = vsel %vm2094_vm3, %v12138_v28, 0.0 }
0x11fb   : > { %8160 = vmatprep.subr.bf16.mxu1 %v12834_v52  ;;  %8112 = vmatprep.mubr.msk.bf16.mxu1 %vm9272_vm1, %v12834_v52 }
0x11fc   : > { %5824 = vrot.lane.b32.xlu0 %v11407_v25, %s12878_s2  ;;  %9091 = vpow2.f32 %v5743_v23  ;;  %v5745_v25 = vmul.f32 1.442695, %v5734_v55 }
0x11fe   : > { %8161 = vmatpush3.bf16.msra.mxu1 %v11592_v42  ;;  %5409 = vadd.xlane.f32.xlu1 %v5408_v3  ;;  %v5735_v42 = vsub.f32 %v11884_v14, %v12063_v6  ;;  %9093 = vpow2.f32 %v5745_v25  ;;  %v5741_v14 = vsub.f32 %v11922_v40, %v12070_v57  ;;  %v5742_v40 = vsub.f32 %v12881_v61, %v12076_v16  ;;  %v12190_v25 = vpop.permute.xlu0 %5465  ;;  %v12883_v61 = vld [vmem:[#allocation10_spill] sm:$0xff] }
0x11ff   : > { %8162 = vmatprep.subr.bf16.mxu1 %v12834_v52  ;;  %v5755_v16 = vmul.f32 1.442695, %v5739_v50 }
0x1200   : > { %v5759_v53 = vmul.f32 1.442695, %v5741_v14  ;;  %v5761_v54 = vmul.f32 1.442695, %v5742_v40 }
0x1201   : > { %v12148_v6 = vpop.eup %9089 }
0x1202   : > { %8163 = vmatpush3.bf16.msra.mxu1 %v11600_v43  ;;  %5412 = vadd.xlane.f32.xlu1 %v5411_v10  ;;  %v5747_v43 = vmul.f32 1.442695, %v5735_v42  ;;  %v5426_v57 = vsel %vm2094_vm3, %v12148_v6, 0.0 }
0x1203   : > { %8164 = vmatprep.subr.bf16.mxu1 %v12834_v52 }
0x1204   : > { %9095 = vpow2.f32 %v5747_v43 }
0x1205   : > { %9097 = vpow2.f32 %v5757_v29 }
0x1206   : > { %8165 = vmatpush3.bf16.msra.mxu1 %v11881_v12  ;;  %5418 = vadd.xlane.f32.xlu1 %v5417_v63  ;;  %v5749_v12 = vmul.f32 1.442695, %v5736_v37  ;;  %v12158_v7 = vpop.eup %9091 }
0x1207   : > { %8166 = vmatprep.subr.bf16.mxu1 %v12834_v52  ;;  %v5763_v33 = vsel %vm2094_vm3, %v12158_v7, 0.0 }
0x1208   : > { %9099 = vpow2.f32 %v5749_v12  ;;  %v12164_v22 = vpop.eup %9093 }
0x1209   : > { %9101 = vpow2.f32 %v5759_v53  ;;  %v5766_v18 = vsel %vm2094_vm3, %v12164_v22, 0.0 }
0x120a   : > { %8167 = vmatpush3.bf16.msra.mxu1 %v11905_v1  ;;  %5424 = vadd.xlane.f32.xlu1 %v5423_v49  ;;  %v5751_v1 = vmul.f32 1.442695, %v5737_v9 }
0x120b   : > { %8218 = vmatprep.subr.bf16.mxu1 %v12834_v52 }
0x120c   : > { %9103 = vpow2.f32 %v5751_v1 }
0x120d   : > { %9105 = vpow2.f32 %v5761_v54 }
0x120e   : > { %5427 = vadd.xlane.f32.xlu1 %v5426_v57  ;;  %v12168_v26 = vpop.eup %9095  ;;  %9107 = vpow2.f32 %v5755_v16 }
0x120f   : > { %v12170_v13 = vpop.eup %9097  ;;  %v5769_v2 = vsel %vm2094_vm3, %v12168_v26, 0.0  ;;  %9109 = vrcp.f32 %v4688_v8 }
0x1210   : > { %v5784_v62 = vsel %vm2094_vm3, %v12170_v13, 0.0 }
0x1212   : > { %5764 = vadd.xlane.f32.xlu1 %v5763_v33  ;;  %v12174_v35 = vpop.eup %9099 }
0x1213   : > { %v12180_v41 = vpop.eup %9101  ;;  %v5772_v39 = vsel %vm2094_vm3, %v12174_v35, 0.0 }
0x1214   : > { %v5787_v55 = vsel %vm2094_vm3, %v12180_v41, 0.0 }
0x1216   : > { %5767 = vadd.xlane.f32.xlu1 %v5766_v18  ;;  %v12184_v3 = vpop.eup %9103 }
0x1217   : > { %v12188_v10 = vpop.eup %9105  ;;  %v5775_v42 = vsel %vm2094_vm3, %v12184_v3, 0.0 }
0x1218   : > { %v12194_v32 = vpop.eup %9107  ;;  %v5790_v43 = vsel %vm2094_vm3, %v12188_v10, 0.0 }
0x1219   : > { %v5781_v29 = vsel %vm2094_vm3, %v12194_v32, 0.0  ;;  %v9110_v49 = vpop.eup %9109 }
0x121a   : > { %5770 = vadd.xlane.f32.xlu1 %v5769_v2  ;;  %v4722_v40 = vmul.f32 %v9110_v49, %v12883_v61 }
0x121b   : > { %5785 = vadd.xlane.f32.xlu0 %v5784_v62 }
0x121e   : > { %5773 = vadd.xlane.f32.xlu1 %v5772_v39  ;;  %v4691_v23 = vpop.xlane.xlu1 %4690  ;;  %v12884_v39 = vld [vmem:[#allocation3_spill] sm:$0xff] }
0x121f   : > { %9111 = vrcp.f32 %v4691_v23  ;;  %5788 = vadd.xlane.f32.xlu0 %v5787_v55 }
0x1222   : > { %5776 = vadd.xlane.f32.xlu1 %v5775_v42  ;;  %v4694_v63 = vpop.xlane.xlu1 %4693 }
0x1223   : > { %5791 = vadd.xlane.f32.xlu0 %v5790_v43  ;;  %9113 = vrcp.f32 %v4694_v63 }
0x1224   : > { %v4697_v37 = vpop.xlane.xlu0 %4696 }
0x1225   : > { %9115 = vrcp.f32 %v4697_v37 }
0x1226   : > { %5782 = vadd.xlane.f32.xlu1 %v5781_v29  ;;  %v4700_v14 = vpop.xlane.xlu1 %4699 }
0x1228   : > { %v4703_v12 = vpop.xlane.xlu0 %4702 }
0x1229   : > { %v9112_v9 = vpop.eup %9111  ;;  %9117 = vrcp.f32 %v4703_v12 }
0x122a   : > { %v4706_v53 = vpop.xlane.xlu1 %4705  ;;  %v4723_v57 = vmul.f32 %v9112_v9, %v11956_v36  ;;  %9119 = vrcp.f32 %v4700_v14 }
0x122c   : > { %v4731_v1 = vpack.c.bf16 %v4723_v57, %v4722_v40  ;;  %v5058_v9 = vpop.xlane.xlu0 %5057  ;;  %v12885_v40 = vld [vmem:[#allocation4_spill] sm:$0xff] }
0x122d   : > { %v9114_v44 = vpop.eup %9113 }
0x122e   : > { %8113 = vmatmul.mubr.msk.bf16.gmra.mrb[168].mxu1 %vm2094_vm3, %v4731_v1  ;;  %v4709_v50 = vpop.xlane.xlu1 %4708  ;;  %v4724_v18 = vmul.f32 %v9114_v44, %v11962_v0  ;;  %v12886_v44 = vld [vmem:[#allocation6_spill] sm:$0xff] }
0x122f   : > { %v9116_v54 = vpop.eup %9115  ;;  %8116 = vmatprep.mubr.msk.bf16.mxu1 %vm9272_vm1, %v12834_v52  ;;  %9121 = vrcp.f32 %v4709_v50 }
0x1230   : > { %v4725_v33 = vmul.f32 %v9116_v54, %v11964_v24  ;;  %9123 = vrcp.f32 %v4706_v53  ;;  %v5064_v1 = vpop.xlane.xlu0 %5063 }
0x1232   : > { %v5043_v16 = vpop.xlane.xlu1 %5042  ;;  %v4732_v2 = vpack.c.bf16 %v4725_v33, %v4724_v18  ;;  %v12888_v18 = vld [vmem:[#allocation7_spill] sm:$0xff] }
0x1233   : > { %v9118_v8 = vpop.eup %9117 }
0x1234   : > { %v9120_v62 = vpop.eup %9119  ;;  %v4727_v23 = vmul.f32 %v9118_v8, %v11973_v59 }
0x1235   : > { %v4726_v55 = vmul.f32 %v9120_v62, %v11969_v45 }
0x1236   : > { %8117 = vmatmul.mubr.msk.bf16.gmra.mrb[172].mxu1 %vm2094_vm3, %v4732_v2  ;;  %v5046_v36 = vpop.xlane.xlu1 %5045 }
0x1237   : > { %5826 = vrot.lane.b32.xlu1 %v12884_v39, %s12878_s2  ;;  %8120 = vmatprep.mubr.msk.bf16.mxu1 %vm9272_vm1, %v12834_v52  ;;  %9125 = vrcp.f32 %v5046_v36  ;;  %v4733_v0 = vpack.c.bf16 %v4727_v23, %v4726_v55 }
0x1238   : > { %9127 = vrcp.f32 %v5043_v16  ;;  %v12887_v16 = vld [vmem:[#allocation5_spill] sm:$0xff] }
0x1239   : > { %v9122_v42 = vpop.eup %9121 }
0x123a   : > { %v5049_v24 = vpop.xlane.xlu1 %5048  ;;  %v9124_v63 = vpop.eup %9123  ;;  %v4729_v37 = vmul.f32 %v9122_v42, %v11987_v58 }
0x123b   : > { %v4728_v29 = vmul.f32 %v9124_v63, %v11978_v11 }
0x123d   : > { %v4734_v59 = vpack.c.bf16 %v4729_v37, %v4728_v29 }
0x123e   : > { %8121 = vmatmul.mubr.msk.bf16.gmra.mrb[176].mxu1 %vm2094_vm3, %v4733_v0  ;;  %v5052_v43 = vpop.xlane.xlu1 %5051 }
0x123f   : > { %8124 = vmatprep.mubr.msk.bf16.mxu1 %vm9272_vm1, %v12834_v52  ;;  %9129 = vrcp.f32 %v5052_v43 }
0x1240   : > { %9131 = vrcp.f32 %v5049_v24 }
0x1241   : > { %v9126_v14 = vpop.eup %9125 }
0x1242   : > { %v9128_v45 = vpop.eup %9127  ;;  %v5082_v49 = vmul.f32 %v9126_v14, %v12003_v60  ;;  %v5055_v12 = vpop.xlane.xlu1 %5054 }
0x1243   : > { %v5081_v53 = vmul.f32 %v9128_v45, %v11996_v17  ;;  %9133 = vrcp.f32 %v5055_v12 }
0x1244   : > { %9135 = vrcp.f32 %v5058_v9 }
0x1245   : > { %v5091_v58 = vpack.c.bf16 %v5082_v49, %v5081_v53 }
0x1246   : > { %8125 = vmatmul.mubr.msk.bf16.gmra.mrb[180].mxu1 %vm2094_vm3, %v4734_v59  ;;  %v5061_v57 = vpop.xlane.xlu1 %5060 }
0x1247   : > { %8168 = vmatprep.mubr.msk.bf16.mxu1 %vm9272_vm1, %v12834_v52  ;;  %9137 = vrcp.f32 %v5061_v57 }
0x1248   : > { %9139 = vrcp.f32 %v5064_v1 }
0x1249   : > { %v9130_v61 = vpop.eup %9129 }
0x124a   : > { %v9132_v11 = vpop.eup %9131  ;;  %v5084_v60 = vmul.f32 %v9130_v61, %v12011_v51  ;;  %v5823_v23 = vpop.permute.xlu1 %5822 }
0x124b   : > { %v5083_v17 = vmul.f32 %v9132_v11, %v12007_v48 }
0x124d   : > { %v5092_v50 = vpack.c.bf16 %v5084_v60, %v5083_v17  ;;  %v9134_v54 = vpop.eup %9133 }
0x124e   : > { %8169 = vmatmul.mubr.msk.bf16.vlgmr.msra.gmra.mrb[184].mxu1 %vm2094_vm3, %v5091_v58  ;;  %v9136_v33 = vpop.eup %9135  ;;  %v5085_v48 = vmul.f32 %v9134_v54, %v12017_v46  ;;  %v12889_v46 = vld [vmem:[#allocation11_spill] sm:$0xff] }
0x124f   : > { %8219 = vmatpush3.bf16.msra.mxu1 %v12885_v40  ;;  %8172 = vmatprep.mubr.msk.bf16.mxu1 %vm9272_vm1, %v12834_v52  ;;  %v5086_v51 = vmul.f32 %v9136_v33, %v11982_v27 }
0x1250   : > { %8220 = vmatprep.subr.bf16.mxu1 %v12834_v52 }
0x1251   : > { %v5093_v2 = vpack.c.bf16 %v5086_v51, %v5085_v48  ;;  %v9138_v8 = vpop.eup %9137 }
0x1252   : > { %v9140_v36 = vpop.eup %9139  ;;  %v5087_v62 = vmul.f32 %v9138_v8, %v12023_v21  ;;  %v5821_v21 = vpop.permute.xlu0 %5820  ;;  %v12890_v8 = vld [vmem:[#allocation21_spill] sm:$0xff] }
0x1253   : > { %8221 = vmatpush3.bf16.msra.mxu1 %v12886_v44  ;;  %v5088_v27 = vmul.f32 %v9140_v36, %v12889_v46 }
0x1254   : > { %8222 = vmatprep.subr.bf16.mxu1 %v12834_v52 }
0x1255   : > { %v5094_v39 = vpack.c.bf16 %v5088_v27, %v5087_v62 }
0x1256   : > { %8173 = vmatmul.mubr.msk.bf16.gmra.mrb[188].mxu1 %vm2094_vm3, %v5092_v50 }
0x1257   : > { %8223 = vmatpush3.bf16.msra.mxu1 %v12887_v16  ;;  %8176 = vmatprep.mubr.msk.bf16.mxu1 %vm9272_vm1, %v12834_v52 }
0x1258   : > { %8224 = vmatprep.subr.bf16.mxu1 %v12834_v52 }
0x125b   : > { %8225 = vmatpush3.bf16.msra.mxu1 %v12888_v18 }
0x125c   : > { %8226 = vmatprep.subr.bf16.mxu1 %v12834_v52 }
0x125e   : > { %8177 = vmatmul.mubr.msk.bf16.gmra.mrb[192].mxu1 %vm2094_vm3, %v5093_v2 }
0x125f   : > { %8227 = vmatpush3.bf16.msra.mxu1 %v12190_v25  ;;  %8180 = vmatprep.mubr.msk.bf16.mxu1 %vm9272_vm1, %v12834_v52 }
0x1260   : > { %8278 = vmatprep.subr.bf16.mxu1 %v12834_v52 }
0x1265   : > { %v5416_v59 = vpop.xlane.xlu0 %5415 }
0x1266   : > { %8181 = vmatmul.mubr.msk.bf16.gmra.mrb[196].mxu1 %vm2094_vm3, %v5094_v39 }
0x1267   : > { %8184 = vmatprep.mubr.msk.bf16.mxu1 %vm9272_vm1, %v12834_v52 }
0x1269   : > { %v5422_v9 = vpop.xlane.xlu0 %5421 }
0x126d   : > { %v5431_v40 = vpop.xlane.xlu0 %5430 }
0x1273   : > { %v5780_v1 = vpop.xlane.xlu0 %5779 }
0x127b   : > { %v5067_v24 = vpop.xlane.xlu1 %5066 }
0x127c   : > { %9141 = vrcp.f32 %v5067_v24 }
0x127f   : > { %v5070_v55 = vpop.xlane.xlu1 %5069 }
0x1280   : > { %9143 = vrcp.f32 %v5070_v55 }
0x1283   : > { %v5404_v25 = vpop.xlane.xlu1 %5403 }
0x1284   : > { %9145 = vrcp.f32 %v5404_v25 }
0x1286   : > { %v9142_v42 = vpop.eup %9141 }
0x1287   : > { %v5407_v0 = vpop.xlane.xlu1 %5406  ;;  %v5089_v37 = vmul.f32 %v9142_v42, %v12081_v47 }
0x1288   : > { %9147 = vrcp.f32 %v5407_v0 }
0x128a   : > { %v9144_v63 = vpop.eup %9143 }
0x128b   : > { %v5410_v43 = vpop.xlane.xlu1 %5409  ;;  %v5090_v29 = vmul.f32 %v9144_v63, %v12087_v31 }
0x128c   : > { %9149 = vrcp.f32 %v5410_v43 }
0x128d   : > { %v5095_v14 = vpack.c.bf16 %v5090_v29, %v5089_v37 }
0x128e   : > { %v9146_v49 = vpop.eup %9145 }
0x128f   : > { %8185 = vmatmul.mubr.msk.bf16.gmra.mrb[200].mxu1 %vm2094_vm3, %v5095_v14  ;;  %v5413_v45 = vpop.xlane.xlu1 %5412  ;;  %v5442_v53 = vmul.f32 %v9146_v49, %v12093_v5 }
0x1290   : > { %9151 = vrcp.f32 %v5413_v45  ;;  %8228 = vmatprep.mubr.msk.bf16.mxu1 %vm9272_vm1, %v12834_v52 }
0x1292   : > { %v9148_v12 = vpop.eup %9147 }
0x1293   : > { %v5443_v58 = vmul.f32 %v9148_v12, %v12101_v30  ;;  %v5419_v47 = vpop.xlane.xlu1 %5418 }
0x1294   : > { %9153 = vrcp.f32 %v5419_v47 }
0x1295   : > { %v5452_v31 = vpack.c.bf16 %v5443_v58, %v5442_v53  ;;  %9155 = vrcp.f32 %v5416_v59 }
0x1296   : > { %v9150_v11 = vpop.eup %9149 }
0x1297   : > { %8229 = vmatmul.mubr.msk.bf16.vlgmr.msra.gmra.mrb[204].mxu1 %vm2094_vm3, %v5452_v31  ;;  %v5425_v61 = vpop.xlane.xlu1 %5424  ;;  %v5444_v30 = vmul.f32 %v9150_v11, %v12108_v19 }
0x1298   : > { %8279 = vmatpush3.bf16.msra.mxu1 %v12176_v20  ;;  %8232 = vmatprep.mubr.msk.bf16.mxu1 %vm9272_vm1, %v12834_v52  ;;  %9157 = vrcp.f32 %v5425_v61 }
0x1299   : > { %8280 = vmatprep.subr.bf16.mxu1 %v12834_v52  ;;  %9159 = vrcp.f32 %v5422_v9 }
0x129a   : > { %v9152_v57 = vpop.eup %9151 }
0x129b   : > { %v5428_v5 = vpop.xlane.xlu1 %5427  ;;  %v5445_v60 = vmul.f32 %v9152_v57, %v12120_v38  ;;  %v5825_v38 = vpop.permute.xlu0 %5824 }
0x129c   : > { %8281 = vmatpush3.bf16.msra.mxu1 %v5821_v21  ;;  %9161 = vrcp.f32 %v5428_v5 }
0x129d   : > { %8282 = vmatprep.subr.bf16.mxu1 %v12834_v52  ;;  %v5453_v17 = vpack.c.bf16 %v5445_v60, %v5444_v30  ;;  %9163 = vrcp.f32 %v5431_v40 }
0x129e   : > { %v9154_v44 = vpop.eup %9153 }
0x129f   : > { %8233 = vmatmul.mubr.msk.bf16.gmra.mrb[208].mxu1 %vm2094_vm3, %v5453_v17  ;;  %v5765_v20 = vpop.xlane.xlu1 %5764  ;;  %v9156_v50 = vpop.eup %9155  ;;  %v5447_v19 = vmul.f32 %v9154_v44, %v12128_v4 }
0x12a0   : > { %8283 = vmatpush3.bf16.msra.mxu1 %v5823_v23  ;;  %8236 = vmatprep.mubr.msk.bf16.mxu1 %vm9272_vm1, %v12834_v52  ;;  %v5446_v33 = vmul.f32 %v9156_v50, %v12046_v34 }
0x12a1   : > { %8284 = vmatprep.subr.bf16.mxu1 %v12834_v52 }
0x12a2   : > { %v5454_v16 = vpack.c.bf16 %v5447_v19, %v5446_v33  ;;  %v9158_v48 = vpop.eup %9157 }
0x12a3   : > { %v5768_v54 = vpop.xlane.xlu1 %5767  ;;  %v9160_v18 = vpop.eup %9159  ;;  %v5449_v4 = vmul.f32 %v9158_v48, %v12138_v28 }
0x12a4   : > { %8285 = vmatpush3.bf16.msra.mxu1 %v5825_v38  ;;  %v5448_v36 = vmul.f32 %v9160_v18, %v12890_v8  ;;  %9165 = vrcp.f32 %v5768_v54 }
0x12a5   : > { %8286 = vmatprep.subr.bf16.mxu1 %v12834_v52  ;;  %9167 = vrcp.f32 %v5765_v20 }
0x12a6   : > { %v5455_v34 = vpack.c.bf16 %v5449_v4, %v5448_v36  ;;  %v9162_v62 = vpop.eup %9161 }
0x12a7   : > { %8237 = vmatmul.mubr.msk.bf16.gmra.mrb[212].mxu1 %vm2094_vm3, %v5454_v16  ;;  %v5771_v51 = vpop.xlane.xlu1 %5770  ;;  %v9164_v27 = vpop.eup %9163  ;;  %v5450_v39 = vmul.f32 %v9162_v62, %v12148_v6 }
0x12a8   : > { %8240 = vmatprep.mubr.msk.bf16.mxu1 %vm9272_vm1, %v12834_v52  ;;  %v5451_v24 = vmul.f32 %v9164_v27, %v12060_v56  ;;  %v5786_v21 = vpop.xlane.xlu0 %5785 }
0x12aa   : > { %v5456_v28 = vpack.c.bf16 %v5451_v24, %v5450_v39 }
0x12ab   : > { %v5774_v2 = vpop.xlane.xlu1 %5773 }
0x12ac   : > { %9169 = vrcp.f32 %v5774_v2  ;;  %v5789_v29 = vpop.xlane.xlu0 %5788 }
0x12ad   : > { %9171 = vrcp.f32 %v5771_v51 }
0x12ae   : > { %v9166_v55 = vpop.eup %9165 }
0x12af   : > { %8241 = vmatmul.mubr.msk.bf16.gmra.mrb[216].mxu1 %vm2094_vm3, %v5455_v34  ;;  %v5777_v46 = vpop.xlane.xlu1 %5776  ;;  %v9168_v0 = vpop.eup %9167  ;;  %v5804_v42 = vmul.f32 %v9166_v55, %v12164_v22 }
0x12b0   : > { %8244 = vmatprep.mubr.msk.bf16.mxu1 %vm9272_vm1, %v12834_v52  ;;  %v5803_v6 = vmul.f32 %v9168_v0, %v12158_v7  ;;  %9173 = vrcp.f32 %v5777_v46  ;;  %v5792_v45 = vpop.xlane.xlu0 %5791 }
0x12b1   : > { %9175 = vrcp.f32 %v5780_v1 }
0x12b2   : > { %v5813_v56 = vpack.c.bf16 %v5804_v42, %v5803_v6 }
0x12b3   : > { %v5783_v23 = vpop.xlane.xlu1 %5782 }
0x12b4   : > { %9177 = vrcp.f32 %v5783_v23 }
0x12b5   : > { %9179 = vrcp.f32 %v5786_v21 }
0x12b6   : > { %v9170_v63 = vpop.eup %9169  ;;  %9181 = vrcp.f32 %v5792_v45 }
0x12b7   : > { %8245 = vmatmul.mubr.msk.bf16.gmra.mrb[220].mxu1 %vm2094_vm3, %v5456_v28  ;;  %v5827_v25 = vpop.permute.xlu1 %5826  ;;  %v9172_v43 = vpop.eup %9171  ;;  %v5806_v37 = vmul.f32 %v9170_v63, %v12174_v35  ;;  %9183 = vrcp.f32 %v5789_v29 }
0x12b8   : > { %8287 = vmatpush3.bf16.msra.mxu1 %v5827_v25  ;;  %8288 = vmatprep.mubr.msk.bf16.mxu1 %vm9272_vm1, %v12834_v52  ;;  %v5805_v22 = vmul.f32 %v9172_v43, %v12168_v26 }
0x12b9   : > { %8332 = vmatprep.subr.bf16.mxu1 %v12834_v52 }
0x12ba   : > { %v5814_v59 = vpack.c.bf16 %v5806_v37, %v5805_v22  ;;  %v9174_v14 = vpop.eup %9173  ;;  %v8731_v37 = vld [vmem:[%s12732_s11 + $0x10] sm:$0xff]  }
0x12bb   : > { %v9176_v7 = vpop.eup %9175  ;;  %v5807_v49 = vmul.f32 %v9174_v14, %v12184_v3  ;;  %8309 = vmatpush3.bf16.msra.mxu0 %v8731_v37 }
0x12bc   : > { %v5808_v12 = vmul.f32 %v9176_v7, %v12072_v15  ;;  %8310 = vmatprep.subr.bf16.mxu0 %v12834_v52 }
0x12be   : > { %v5815_v26 = vpack.c.bf16 %v5808_v12, %v5807_v49  ;;  %v9178_v53 = vpop.eup %9177 }
0x12bf   : > { %8289 = vmatmul.mubr.msk.bf16.vlgmr.msra.gmra.mrb[224].mxu1 %vm2094_vm3, %v5813_v56  ;;  %v9180_v31 = vpop.eup %9179  ;;  %v5809_v3 = vmul.f32 %v9178_v53, %v12194_v32 }
0x12c0   : > { %8292 = vmatprep.mubr.msk.bf16.mxu1 %vm9272_vm1, %v12834_v52  ;;  %v5810_v15 = vmul.f32 %v9180_v31, %v12170_v13  ;;  %v9182_v11 = vpop.eup %9181 }
0x12c1   : > { %v9184_v40 = vpop.eup %9183  ;;  %v5812_v57 = vmul.f32 %v9182_v11, %v12188_v10 }
0x12c2   : > { %v5816_v61 = vpack.c.bf16 %v5810_v15, %v5809_v3  ;;  %v5811_v5 = vmul.f32 %v9184_v40, %v12180_v41 }
0x12c4   : > { %v5817_v30 = vpack.c.bf16 %v5812_v57, %v5811_v5 }
0x12c7   : > { %8293 = vmatmul.mubr.msk.bf16.gmra.mrb[228].mxu1 %vm2094_vm3, %v5814_v59  ;;  %v8732_v59 = vld [vmem:[%s12732_s11 + $0x18] sm:$0xff]  }
0x12c8   : > { %8296 = vmatprep.mubr.msk.bf16.mxu1 %vm9272_vm1, %v12834_v52  ;;  %8311 = vmatpush3.bf16.msra.mxu0 %v8732_v59 }
0x12c9   : > { %8356 = vmatprep.subr.bf16.mxu0 %v12834_v52 }
0x12cc   : > { %v12300_v35 = vpop.f32.mrb[164].mxu1 }
0x12cd   : > { %v8110_v9 = vpop.f32.mrb[165].mxu1 }
0x12ce   : > { %v12302_v58 = vpop.f32.mrb[166].mxu1 }
0x12cf   : > { %v8111_v47 = vpop.f32.mrb[167].mxu1  ;;  %8297 = vmatmul.mubr.msk.bf16.gmra.mrb[232].mxu1 %vm2094_vm3, %v5815_v26 }
0x12d0   : > { %8300 = vmatprep.mubr.msk.bf16.mxu1 %vm9272_vm1, %v12834_v52 }
0x12d7   : > { %8301 = vmatmul.mubr.msk.bf16.gmra.mrb[236].mxu1 %vm2094_vm3, %v5816_v61 }
0x12d8   : > { %8304 = vmatprep.mubr.msk.bf16.mxu1 %vm9272_vm1, %v12834_v52 }
0x12df   : > { %8305 = vmatmul.mubr.msk.bf16.gmra.mrb[240].mxu1 %vm2094_vm3, %v5817_v30 }
0x12e0   : > { %8336 = vmatprep.mubr.msk.bf16.mxu1 %vm9272_vm1, %v12834_v52 }
0x1301   : > { %v12317_v32 = vpop.f32.mrb[168].mxu1 }
0x1302   : > { %v8114_v13 = vpop.f32.mrb[169].mxu1 }
0x1303   : > { %v12319_v60 = vpop.f32.mrb[170].mxu1 }
0x1304   : > { %v8115_v1 = vpop.f32.mrb[171].mxu1 }
0x1309   : > { %v12321_v17 = vpop.f32.mrb[172].mxu1 }
0x130a   : > { %v8118_v44 = vpop.f32.mrb[173].mxu1 }
0x130b   : > { %v12323_v20 = vpop.f32.mrb[174].mxu1 }
0x130c   : > { %v8119_v10 = vpop.f32.mrb[175].mxu1 }
0x1311   : > { %v12325_v50 = vpop.f32.mrb[176].mxu1 }
0x1312   : > { %v8122_v41 = vpop.f32.mrb[177].mxu1 }
0x1313   : > { %v12327_v19 = vpop.f32.mrb[178].mxu1 }
0x1314   : > { %v8123_v38 = vpop.f32.mrb[179].mxu1 }
0x1319   : > { %v12329_v54 = vpop.f32.mrb[180].mxu1 }
0x131a   : > { %v8126_v33 = vpop.f32.mrb[181].mxu1 }
0x131b   : > { %v12331_v16 = vpop.f32.mrb[182].mxu1 }
0x131c   : > { %v8127_v48 = vpop.f32.mrb[183].mxu1 }
0x1321   : > { %v5160_v51 = vpop.f32.mrb[184].mxu1 }
0x1322   : > { %v8170_v18 = vpop.f32.mrb[185].mxu1 }
0x1323   : > { %v5163_v4 = vpop.f32.mrb[186].mxu1 }
0x1324   : > { %v8547_v2 = vpack.i.bf16 %v5163_v4, %v5160_v51  ;;  %v8171_v8 = vpop.f32.mrb[187].mxu1 }
0x1326   : > { %8548 = vrot.lane.b32.xlu1 %v8547_v2, %s12891_s5 }
0x1329   : > { %v5168_v36 = vpop.f32.mrb[188].mxu1 }
0x132a   : > { %v8174_v34 = vpop.f32.mrb[189].mxu1 }
0x132b   : > { %v5171_v62 = vpop.f32.mrb[190].mxu1 }
0x132c   : > { %v8557_v46 = vpack.i.bf16 %v5171_v62, %v5168_v36  ;;  %v8175_v27 = vpop.f32.mrb[191].mxu1 }
0x132e   : > { %8558 = vrot.lane.b32.xlu1 %v8557_v46, %s12891_s5 }
0x1331   : > { %v5176_v39 = vpop.f32.mrb[192].mxu1 }
0x1332   : > { %v8178_v23 = vpop.f32.mrb[193].mxu1 }
0x1333   : > { %v5179_v24 = vpop.f32.mrb[194].mxu1 }
0x1334   : > { %v8577_v28 = vpack.i.bf16 %v5179_v24, %v5176_v39  ;;  %v8179_v55 = vpop.f32.mrb[195].mxu1 }
0x1339   : > { %v12335_v25 = vpop.f32.mrb[196].mxu1 }
0x133a   : > { %v8182_v0 = vpop.f32.mrb[197].mxu1 }
0x133b   : > { %v5187_v42 = vpop.f32.mrb[198].mxu1 }
0x133c   : > { %v8592_v6 = vpack.i.bf16 %v5187_v42, %v12335_v25  ;;  %v8183_v56 = vpop.f32.mrb[199].mxu1 }
0x1362   : > { %v12338_v21 = vpop.f32.mrb[200].mxu1 }
0x1363   : > { %v8186_v63 = vpop.f32.mrb[201].mxu1 }
0x1364   : > { %v12340_v43 = vpop.f32.mrb[202].mxu1 }
0x1365   : > { %v8607_v29 = vpack.i.bf16 %v12340_v43, %v12338_v21  ;;  %v8187_v22 = vpop.f32.mrb[203].mxu1 }
0x136a   : > { %v5521_v14 = vpop.f32.mrb[204].mxu1 }
0x136b   : > { %v8230_v7 = vpop.f32.mrb[205].mxu1 }
0x136c   : > { %v5524_v45 = vpop.f32.mrb[206].mxu1 }
0x136d   : > { %v8552_v49 = vpack.i.bf16 %v5524_v45, %v5521_v14  ;;  %v8231_v12 = vpop.f32.mrb[207].mxu1 }
0x136f   : > { %8553 = vrot.lane.b32.xlu0 %v8552_v49, %s12892_s23 }
0x1372   : > { %v5529_v9 = vpop.f32.mrb[208].mxu1 }
0x1373   : > { %v8234_v26 = vpop.f32.mrb[209].mxu1 }
0x1374   : > { %v5532_v53 = vpop.f32.mrb[210].mxu1 }
0x1375   : > { %v8567_v47 = vpack.i.bf16 %v5532_v53, %v5529_v9  ;;  %v8235_v31 = vpop.f32.mrb[211].mxu1 }
0x137a   : > { %v5537_v3 = vpop.f32.mrb[212].mxu1 }
0x137b   : > { %v8238_v15 = vpop.f32.mrb[213].mxu1 }
0x137c   : > { %v5540_v61 = vpop.f32.mrb[214].mxu1 }
0x137d   : > { %v8582_v11 = vpack.i.bf16 %v5540_v61, %v5537_v3  ;;  %v8239_v40 = vpop.f32.mrb[215].mxu1 }
0x1382   : > { %v5545_v57 = vpop.f32.mrb[216].mxu1 }
0x1383   : > { %v8242_v5 = vpop.f32.mrb[217].mxu1 }
0x1384   : > { %v5548_v30 = vpop.f32.mrb[218].mxu1 }
0x1385   : > { %v8597_v13 = vpack.i.bf16 %v5548_v30, %v5545_v57  ;;  %v8243_v1 = vpop.f32.mrb[219].mxu1 }
0x138a   : > { %v5553_v44 = vpop.f32.mrb[220].mxu1 }
0x138b   : > { %v8246_v10 = vpop.f32.mrb[221].mxu1 }
0x138c   : > { %v5556_v41 = vpop.f32.mrb[222].mxu1 }
0x138d   : > { %v8612_v38 = vpack.i.bf16 %v5556_v41, %v5553_v44  ;;  %v8247_v33 = vpop.f32.mrb[223].mxu1 }
0x1392   : > { %v5882_v48 = vpop.f32.mrb[224].mxu1 }
0x1393   : > { %v8290_v51 = vpop.f32.mrb[225].mxu1 }
0x1394   : > { %v5885_v18 = vpop.f32.mrb[226].mxu1 }
0x1395   : > { %v8562_v4 = vpack.i.bf16 %v5885_v18, %v5882_v48  ;;  %v8291_v2 = vpop.f32.mrb[227].mxu1 }
0x1397   : > { %8563 = vrot.lane.b32.xlu1 %v8562_v4, %s12893_s1 }
0x139a   : > { %v5890_v8 = vpop.f32.mrb[228].mxu1 }
0x139b   : > { %8568 = vrot.lane.b32.xlu1 %v8567_v47, %s12892_s23  ;;  %v8294_v36 = vpop.f32.mrb[229].mxu1 }
0x139c   : > { %v5893_v34 = vpop.f32.mrb[230].mxu1 }
0x139d   : > { %v8572_v62 = vpack.i.bf16 %v5893_v34, %v5890_v8  ;;  %v8295_v46 = vpop.f32.mrb[231].mxu1 }
0x139f   : > { %8573 = vrot.lane.b32.xlu1 %v8572_v62, %s12893_s1 }
0x13a2   : > { %v5898_v27 = vpop.f32.mrb[232].mxu1 }
0x13a3   : > { %8578 = vrot.lane.b32.xlu1 %v8577_v28, %s12891_s5  ;;  %v8298_v39 = vpop.f32.mrb[233].mxu1 }
0x13a4   : > { %v5901_v23 = vpop.f32.mrb[234].mxu1 }
0x13a5   : > { %v8587_v24 = vpack.i.bf16 %v5901_v23, %v5898_v27  ;;  %v8299_v55 = vpop.f32.mrb[235].mxu1 }
0x13a7   : > { %8583 = vrot.lane.b32.xlu1 %v8582_v11, %s12892_s23  ;;  %8588 = vrot.lane.b32.xlu0 %v8587_v24, %s12893_s1 }
0x13aa   : > { %v5906_v25 = vpop.f32.mrb[236].mxu1 }
0x13ab   : > { %8593 = vrot.lane.b32.xlu1 %v8592_v6, %s12891_s5  ;;  %8598 = vrot.lane.b32.xlu0 %v8597_v13, %s12892_s23  ;;  %v8302_v0 = vpop.f32.mrb[237].mxu1  ;;  %v8549_v6 = vpop.permute.xlu1 %8548 }
0x13ac   : > { %v5909_v42 = vpop.f32.mrb[238].mxu1  ;;  %v8551_v7 = vunpack.i.h.bf16 %v8549_v6  ;;  %v8550_v45 = vunpack.i.l.bf16 %v8549_v6 }
0x13ad   : > { %v8602_v56 = vpack.i.bf16 %v5909_v42, %v5906_v25  ;;  %v8303_v21 = vpop.f32.mrb[239].mxu1 }
0x13ae   : > { %v6041_v26 = vsel %vm1970_vm2, %v12300_v35, %v8550_v45 }
0x13af   : > { %8608 = vrot.lane.b32.xlu0 %v8607_v29, %s12891_s5  ;;  %8603 = vrot.lane.b32.xlu1 %v8602_v56, %s12893_s1  ;;  %v8559_v14 = vpop.permute.xlu1 %8558  ;;  %v6042_v29 = vsel %vm1970_vm2, %v12302_v58, %v8551_v7 }
0x13b0   : > { %v8561_v57 = vunpack.i.h.bf16 %v8559_v14  ;;  %v8560_v5 = vunpack.i.l.bf16 %v8559_v14 }
0x13b2   : > { %v5914_v28 = vpop.f32.mrb[240].mxu1  ;;  %v6044_v58 = vsel %vm1970_vm2, %v12319_v60, %v8561_v57  ;;  %v6043_v1 = vsel %vm1970_vm2, %v12317_v32, %v8560_v5 }
0x13b3   : > { %8613 = vrot.lane.b32.xlu1 %v8612_v38, %s12892_s23  ;;  %v8306_v63 = vpop.f32.mrb[241].mxu1 }
0x13b4   : > { %v5917_v43 = vpop.f32.mrb[242].mxu1 }
0x13b5   : > { %v8617_v37 = vpack.i.bf16 %v5917_v43, %v5914_v28  ;;  %v8307_v22 = vpop.f32.mrb[243].mxu1 }
0x13b7   : > { %8618 = vrot.lane.b32.xlu0 %v8617_v37, %s12893_s1 }
0x13e1   : > { %v8554_v59 = vpop.permute.xlu0 %8553 }
0x13e2   : > { %v8556_v49 = vunpack.i.h.bf16 %v8554_v59  ;;  %v8555_v12 = vunpack.i.l.bf16 %v8554_v59 }
0x13e4   : > { %v6051_v31 = vsel %vm3526_vm4, %v6041_v26, %v8555_v12  ;;  %v6052_v3 = vsel %vm3526_vm4, %v6042_v29, %v8556_v49 }
0x1409   : > { %v8564_v9 = vpop.permute.xlu1 %8563 }
0x140a   : > { %v8566_v53 = vunpack.i.h.bf16 %v8564_v9  ;;  %v8565_v47 = vunpack.i.l.bf16 %v8564_v9 }
0x140c   : > { %v6061_v15 = vsel %vm3537_vm5, %v6051_v31, %v8565_v47  ;;  %v6062_v61 = vsel %vm3537_vm5, %v6052_v3, %v8566_v53 }
0x140d   : > { %v6078_v11 = vpack.c.bf16 %v6062_v61, %v6061_v15  ;;  %v8569_v40 = vpop.permute.xlu1 %8568 }
0x140e   : > { %v8571_v30 = vunpack.i.h.bf16 %v8569_v40  ;;  %v8570_v13 = vunpack.i.l.bf16 %v8569_v40 }
0x140f   : > { %8313 = vmatmul.mubr.msk.bf16.vlgmr.msra.gmra.mrb[236].mxu0 %vm1496_vm0, %v6078_v11 }
0x1410   : > { %8316 = vmatprep.mubr.msk.bf16.mxu0 %vm9272_vm1, %v12834_v52  ;;  %v6053_v41 = vsel %vm3526_vm4, %v6043_v1, %v8570_v13  ;;  %v6054_v38 = vsel %vm3526_vm4, %v6044_v58, %v8571_v30 }
0x1411   : > { %v8574_v35 = vpop.permute.xlu1 %8573 }
0x1412   : > { %v8576_v44 = vunpack.i.h.bf16 %v8574_v35  ;;  %v8575_v10 = vunpack.i.l.bf16 %v8574_v35  ;;  %v12894_v35 = vld [vmem:[#allocation12_spill] sm:$0xff] }
0x1414   : > { %v6063_v33 = vsel %vm3537_vm5, %v6053_v41, %v8575_v10  ;;  %v6064_v48 = vsel %vm3537_vm5, %v6054_v38, %v8576_v44  ;;  %v12895_v10 = vld [vmem:[#allocation15_spill] sm:$0xff] }
0x1415   : > { %v6079_v51 = vpack.c.bf16 %v6064_v48, %v6063_v33  ;;  %v8579_v18 = vpop.permute.xlu1 %8578 }
0x1416   : > { %v8581_v4 = vunpack.i.h.bf16 %v8579_v18  ;;  %v8580_v2 = vunpack.i.l.bf16 %v8579_v18 }
0x1417   : > { %8317 = vmatmul.mubr.msk.bf16.gmra.mrb[240].mxu0 %vm1496_vm0, %v6079_v51 }
0x1418   : > { %8320 = vmatprep.mubr.msk.bf16.mxu0 %vm9272_vm1, %v12834_v52  ;;  %v6046_v46 = vsel %vm1970_vm2, %v12323_v20, %v8581_v4  ;;  %v6045_v27 = vsel %vm1970_vm2, %v12321_v17, %v8580_v2  ;;  %v12896_v2 = vld [vmem:[#allocation13_spill] sm:$0xff] }
0x1419   : > { %v8589_v32 = vpop.permute.xlu0 %8588  ;;  %v8584_v60 = vpop.permute.xlu1 %8583 }
0x141a   : > { %v8591_v8 = vunpack.i.h.bf16 %v8589_v32  ;;  %v8590_v36 = vunpack.i.l.bf16 %v8589_v32  ;;  %v8586_v34 = vunpack.i.h.bf16 %v8584_v60  ;;  %v8585_v62 = vunpack.i.l.bf16 %v8584_v60 }
0x141c   : > { %v6055_v39 = vsel %vm3526_vm4, %v6045_v27, %v8585_v62  ;;  %v6056_v23 = vsel %vm3526_vm4, %v6046_v46, %v8586_v34 }
0x141d   : > { %v8599_v24 = vpop.permute.xlu0 %8598  ;;  %v8594_v55 = vpop.permute.xlu1 %8593  ;;  %v6065_v25 = vsel %vm3537_vm5, %v6055_v39, %v8590_v36  ;;  %v6066_v0 = vsel %vm3537_vm5, %v6056_v23, %v8591_v8  ;;  %v12897_v36 = vld [vmem:[#allocation14_spill] sm:$0xff] }
0x141e   : > { %v8596_v42 = vunpack.i.h.bf16 %v8594_v55  ;;  %v8595_v56 = vunpack.i.l.bf16 %v8594_v55  ;;  %v8601_v21 = vunpack.i.h.bf16 %v8599_v24  ;;  %v8600_v28 = vunpack.i.l.bf16 %v8599_v24  ;;  %v12898_v55 = vld [vmem:[#allocation16_spill] sm:$0xff] }
0x141f   : > { %v6080_v63 = vpack.c.bf16 %v6066_v0, %v6065_v25 }
0x1420   : > { %v6048_v20 = vsel %vm1970_vm2, %v12327_v19, %v8596_v42  ;;  %v6047_v17 = vsel %vm1970_vm2, %v12325_v50, %v8595_v56  ;;  %v12899_v56 = vld [vmem:[#allocation17_spill] sm:$0xff] }
0x1421   : > { %8321 = vmatmul.mubr.msk.bf16.gmra.mrb[244].mxu0 %vm1496_vm0, %v6080_v63  ;;  %v8604_v43 = vpop.permute.xlu1 %8603  ;;  %v8609_v6 = vpop.permute.xlu0 %8608  ;;  %v6057_v59 = vsel %vm3526_vm4, %v6047_v17, %v8600_v28  ;;  %v6058_v14 = vsel %vm3526_vm4, %v6048_v20, %v8601_v21 }
0x1422   : > { %v8606_v37 = vunpack.i.h.bf16 %v8604_v43  ;;  %v8605_v22 = vunpack.i.l.bf16 %v8604_v43  ;;  %8324 = vmatprep.mubr.msk.bf16.mxu0 %vm9272_vm1, %v12834_v52  ;;  %v8611_v50 = vunpack.i.h.bf16 %v8609_v6  ;;  %v8610_v12 = vunpack.i.l.bf16 %v8609_v6 }
0x1424   : > { %v6067_v7 = vsel %vm3537_vm5, %v6057_v59, %v8605_v22  ;;  %v6068_v19 = vsel %vm3537_vm5, %v6058_v14, %v8606_v37  ;;  %v6050_v53 = vsel %vm1970_vm2, %v12331_v16, %v8611_v50  ;;  %v6049_v47 = vsel %vm1970_vm2, %v12329_v54, %v8610_v12  ;;  %v7221_v54 = vld [vmem:[%s12733_s12 + $0x1] ss:$0 sm:$0xff] }
0x1425   : > { %v6081_v45 = vpack.c.bf16 %v6068_v19, %v6067_v7  ;;  %v8614_v49 = vpop.permute.xlu1 %8613  ;;  %v12900_v22 = vld [vmem:[#allocation18_spill] sm:$0xff]  ;;  %v12901_v7 = vld [vmem:[#allocation19_spill] sm:$0xff] }
0x1426   : > { %v8616_v9 = vunpack.i.h.bf16 %v8614_v49  ;;  %v8615_v29 = vunpack.i.l.bf16 %v8614_v49 }
0x1428   : > { %v6060_v15 = vsel %vm3526_vm4, %v6050_v53, %v8616_v9  ;;  %v6059_v61 = vsel %vm3526_vm4, %v6049_v47, %v8615_v29 }
0x1429   : > { %8325 = vmatmul.mubr.msk.bf16.gmra.mrb[248].mxu0 %vm1496_vm0, %v6081_v45  ;;  %v8619_v26 = vpop.permute.xlu0 %8618 }
0x142a   : > { %v8621_v31 = vunpack.i.h.bf16 %v8619_v26  ;;  %v8620_v3 = vunpack.i.l.bf16 %v8619_v26  ;;  %8328 = vmatprep.mubr.msk.bf16.mxu0 %vm9272_vm1, %v12834_v52  ;;  %v12902_v26 = vld [vmem:[#allocation20_spill] sm:$0xff] }
0x142c   : > { %v6069_v11 = vsel %vm3537_vm5, %v6059_v61, %v8620_v3  ;;  %v6070_v40 = vsel %vm3537_vm5, %v6060_v15, %v8621_v31  ;;  %v12903_v3 = vld [vmem:[#allocation2_spill] sm:$0xff] }
0x142d   : > { %v6082_v57 = vpack.c.bf16 %v6070_v40, %v6069_v11  ;;  %v8733_v40 = vld [vmem:[%s12736_s15 + $0x10] sm:$0xff]  }
0x142e   : > { %8333 = vmatpush3.bf16.msra.mxu1 %v8733_v40 }
0x142f   : > { %8334 = vmatprep.subr.bf16.mxu1 %v12834_v52 }
0x1431   : > { %8329 = vmatmul.mubr.msk.bf16.gmra.mrb[252].mxu0 %vm1496_vm0, %v6082_v57 }
0x1432   : > { %8372 = vmatprep.mubr.msk.bf16.mxu0 %vm9272_vm1, %v12834_v52 }
0x14e2   : > { %v6150_v16 = vpop.f32.mrb[236].mxu0 }
0x14e3   : > { %v6151_v5 = vadd.f32 %v7221_v54, %v6150_v16  ;;  %v8314_v30 = vpop.f32.mrb[237].mxu0 }
0x14e4   : > { %v6153_v13 = vpop.f32.mrb[238].mxu0 }
0x14e5   : > { %v12424_v58 = vadd.f32 %v6151_v5, %v12894_v35  ;;  %v6154_v1 = vadd.f32 %v7221_v54, %v6153_v13  ;;  %v8315_v44 = vpop.f32.mrb[239].mxu0 }
0x14e7   : > { %v12427_v41 = vadd.f32 %v6154_v1, %v12895_v10  ;;  %v6203_v38 = vsel %vm1496_vm0, %v12424_v58, 0.0 }
0x14e8   : > { %6204 = vadd.xlane.f32.xlu1 %v6203_v38 }
0x14e9   : > { %v6206_v33 = vsel %vm1496_vm0, %v12427_v41, 0.0 }
0x14ea   : > { %6207 = vadd.xlane.f32.xlu0 %v6206_v33  ;;  %v6158_v48 = vpop.f32.mrb[240].mxu0 }
0x14eb   : > { %v6159_v51 = vadd.f32 %v7221_v54, %v6158_v48  ;;  %v8318_v18 = vpop.f32.mrb[241].mxu0 }
0x14ec   : > { %v6161_v4 = vpop.f32.mrb[242].mxu0 }
0x14ed   : > { %v12434_v32 = vadd.f32 %v6159_v51, %v12896_v2  ;;  %v6162_v60 = vadd.f32 %v7221_v54, %v6161_v4  ;;  %v8319_v8 = vpop.f32.mrb[243].mxu0 }
0x14ef   : > { %v12437_v34 = vadd.f32 %v6162_v60, %v12897_v36  ;;  %v6209_v62 = vsel %vm1496_vm0, %v12434_v32, 0.0 }
0x14f0   : > { %6210 = vadd.xlane.f32.xlu0 %v6209_v62 }
0x14f1   : > { %v6212_v46 = vsel %vm1496_vm0, %v12437_v34, 0.0 }
0x14f2   : > { %6213 = vadd.xlane.f32.xlu1 %v6212_v46 }
0x14f4   : > { %v6166_v27 = vpop.f32.mrb[244].mxu0 }
0x14f5   : > { %v6167_v39 = vadd.f32 %v7221_v54, %v6166_v27  ;;  %v8322_v23 = vpop.f32.mrb[245].mxu0 }
0x14f6   : > { %v6169_v24 = vpop.f32.mrb[246].mxu0 }
0x14f7   : > { %v12444_v25 = vadd.f32 %v6167_v39, %v12898_v55  ;;  %v6170_v0 = vadd.f32 %v7221_v54, %v6169_v24  ;;  %v8323_v42 = vpop.f32.mrb[247].mxu0 }
0x14f9   : > { %v12447_v21 = vadd.f32 %v6170_v0, %v12899_v56  ;;  %v6215_v28 = vsel %vm1496_vm0, %v12444_v25, 0.0 }
0x14fa   : > { %6216 = vadd.xlane.f32.xlu0 %v6215_v28 }
0x14fb   : > { %v6218_v63 = vsel %vm1496_vm0, %v12447_v21, 0.0 }
0x14fc   : > { %6219 = vadd.xlane.f32.xlu1 %v6218_v63  ;;  %v6174_v20 = vpop.f32.mrb[248].mxu0 }
0x14fd   : > { %v6175_v17 = vadd.f32 %v7221_v54, %v6174_v20  ;;  %v8326_v43 = vpop.f32.mrb[249].mxu0 }
0x14fe   : > { %v6177_v37 = vpop.f32.mrb[250].mxu0 }
0x14ff   : > { %v12454_v6 = vadd.f32 %v6175_v17, %v12900_v22  ;;  %v6178_v59 = vadd.f32 %v7221_v54, %v6177_v37  ;;  %v8327_v14 = vpop.f32.mrb[251].mxu0 }
0x1501   : > { %v12457_v19 = vadd.f32 %v6178_v59, %v12901_v7  ;;  %v6221_v45 = vsel %vm1496_vm0, %v12454_v6, 0.0 }
0x1502   : > { %6222 = vadd.xlane.f32.xlu0 %v6221_v45 }
0x1503   : > { %v6224_v49 = vsel %vm1496_vm0, %v12457_v19, 0.0 }
0x1504   : > { %6225 = vadd.xlane.f32.xlu1 %v6224_v49  ;;  %v6182_v50 = vpop.f32.mrb[252].mxu0 }
0x1505   : > { %v6183_v12 = vadd.f32 %v7221_v54, %v6182_v50  ;;  %v8330_v9 = vpop.f32.mrb[253].mxu0 }
0x1506   : > { %v6185_v29 = vpop.f32.mrb[254].mxu0 }
0x1507   : > { %v12464_v53 = vadd.f32 %v6183_v12, %v12902_v26  ;;  %v6186_v47 = vadd.f32 %v7221_v54, %v6185_v29  ;;  %v8331_v31 = vpop.f32.mrb[255].mxu0 }
0x1509   : > { %v12467_v15 = vadd.f32 %v6186_v47, %v12903_v3  ;;  %v6227_v61 = vsel %vm1496_vm0, %v12464_v53, 0.0 }
0x150a   : > { %6228 = vadd.xlane.f32.xlu0 %v6227_v61  ;;  %v8734_v61 = vld [vmem:[%s12736_s15 + $0x18] sm:$0xff]  }
0x150b   : > { %v6230_v11 = vsel %vm1496_vm0, %v12467_v15, 0.0  ;;  %8335 = vmatpush3.bf16.msra.mxu1 %v8734_v61 }
0x150c   : > { %6231 = vadd.xlane.f32.xlu1 %v6230_v11 }
0x1575   : > { %v6205_v57 = vpop.xlane.xlu1 %6204 }
0x1576   : > { %v6233_v54 = vmul.f32 0.03125, %v6205_v57 }
0x1577   : > { %v6208_v16 = vpop.xlane.xlu0 %6207 }
0x1578   : > { %v12478_v5 = vsub.f32 %v12424_v58, %v6233_v54  ;;  %v6234_v30 = vmul.f32 0.03125, %v6208_v16 }
0x157a   : > { %v12481_v13 = vsub.f32 %v12427_v41, %v6234_v30  ;;  %v6253_v35 = vmul.f32 %v12478_v5, %v12478_v5 }
0x157c   : > { %v6263_v1 = vsel %vm1496_vm0, %v6253_v35, 0.0  ;;  %v6254_v44 = vmul.f32 %v12481_v13, %v12481_v13 }
0x157d   : > { %v6211_v10 = vpop.xlane.xlu0 %6210  ;;  %6264 = vadd.xlane.f32.xlu0 %v6263_v1 }
0x157e   : > { %v6235_v38 = vmul.f32 0.03125, %v6211_v10  ;;  %v6266_v33 = vsel %vm1496_vm0, %v6254_v44, 0.0 }
0x157f   : > { %v6214_v48 = vpop.xlane.xlu1 %6213  ;;  %6267 = vadd.xlane.f32.xlu1 %v6266_v33 }
0x1580   : > { %v12490_v51 = vsub.f32 %v12434_v32, %v6235_v38  ;;  %v6236_v18 = vmul.f32 0.03125, %v6214_v48 }
0x1582   : > { %v12493_v4 = vsub.f32 %v12437_v34, %v6236_v18  ;;  %v6255_v2 = vmul.f32 %v12490_v51, %v12490_v51  ;;  %v12543_v18 = vld [vmem:[%s12734_s13 + $0x1] ss:$0 sm:$0xff] }
0x1584   : > { %v6269_v60 = vsel %vm1496_vm0, %v6255_v2, 0.0  ;;  %v6256_v8 = vmul.f32 %v12493_v4, %v12493_v4 }
0x1585   : > { %6270 = vadd.xlane.f32.xlu0 %v6269_v60 }
0x1586   : > { %v6272_v36 = vsel %vm1496_vm0, %v6256_v8, 0.0 }
0x1587   : > { %v6217_v62 = vpop.xlane.xlu0 %6216  ;;  %6273 = vadd.xlane.f32.xlu1 %v6272_v36 }
0x1588   : > { %v6237_v46 = vmul.f32 0.03125, %v6217_v62 }
0x1589   : > { %v6220_v27 = vpop.xlane.xlu1 %6219 }
0x158a   : > { %v12502_v39 = vsub.f32 %v12444_v25, %v6237_v46  ;;  %v6238_v23 = vmul.f32 0.03125, %v6220_v27  ;;  %v12551_v46 = vld [vmem:[%s12735_s14 + $0x1] ss:$0 sm:$0xff] }
0x158c   : > { %v12505_v24 = vsub.f32 %v12447_v21, %v6238_v23  ;;  %v6257_v55 = vmul.f32 %v12502_v39, %v12502_v39 }
0x158e   : > { %v6275_v0 = vsel %vm1496_vm0, %v6257_v55, 0.0  ;;  %v6258_v42 = vmul.f32 %v12505_v24, %v12505_v24 }
0x158f   : > { %v6223_v56 = vpop.xlane.xlu0 %6222  ;;  %6276 = vadd.xlane.f32.xlu0 %v6275_v0 }
0x1590   : > { %v6239_v28 = vmul.f32 0.03125, %v6223_v56  ;;  %v6278_v63 = vsel %vm1496_vm0, %v6258_v42, 0.0 }
0x1591   : > { %v6226_v20 = vpop.xlane.xlu1 %6225  ;;  %6279 = vadd.xlane.f32.xlu1 %v6278_v63 }
0x1592   : > { %v12514_v17 = vsub.f32 %v12454_v6, %v6239_v28  ;;  %v6240_v43 = vmul.f32 0.03125, %v6226_v20 }
0x1594   : > { %v12517_v37 = vsub.f32 %v12457_v19, %v6240_v43  ;;  %v6259_v22 = vmul.f32 %v12514_v17, %v12514_v17 }
0x1596   : > { %v6281_v59 = vsel %vm1496_vm0, %v6259_v22, 0.0  ;;  %v6260_v14 = vmul.f32 %v12517_v37, %v12517_v37 }
0x1597   : > { %6282 = vadd.xlane.f32.xlu0 %v6281_v59  ;;  %v6229_v7 = vpop.xlane.xlu0 %6228 }
0x1598   : > { %v6241_v45 = vmul.f32 0.03125, %v6229_v7  ;;  %v6284_v49 = vsel %vm1496_vm0, %v6260_v14, 0.0 }
0x1599   : > { %6285 = vadd.xlane.f32.xlu1 %v6284_v49  ;;  %v6232_v50 = vpop.xlane.xlu1 %6231 }
0x159a   : > { %v12526_v12 = vsub.f32 %v12464_v53, %v6241_v45  ;;  %v6242_v9 = vmul.f32 0.03125, %v6232_v50 }
0x159c   : > { %v12529_v29 = vsub.f32 %v12467_v15, %v6242_v9  ;;  %v6261_v26 = vmul.f32 %v12526_v12, %v12526_v12 }
0x159e   : > { %v6287_v47 = vsel %vm1496_vm0, %v6261_v26, 0.0  ;;  %v6262_v31 = vmul.f32 %v12529_v29, %v12529_v29 }
0x159f   : > { %6288 = vadd.xlane.f32.xlu0 %v6287_v47 }
0x15a0   : > { %v6290_v3 = vsel %vm1496_vm0, %v6262_v31, 0.0 }
0x15a1   : > { %6291 = vadd.xlane.f32.xlu1 %v6290_v3 }
0x160a   : > { %v6265_v11 = vpop.xlane.xlu0 %6264 }
0x160b   : > { %v6293_v40 = vmul.f32 0.03125, %v6265_v11 }
0x160c   : > { %v6268_v57 = vpop.xlane.xlu1 %6267 }
0x160d   : > { %v6303_v54 = vadd.f32 1e-05, %v6293_v40  ;;  %v6294_v16 = vmul.f32 0.03125, %v6268_v57 }
0x160f   : > { %9185 = vrsqrt.f32 %v6303_v54  ;;  %v6304_v30 = vadd.f32 1e-05, %v6294_v16 }
0x1611   : > { %9187 = vrsqrt.f32 %v6304_v30 }
0x1612   : > { %v6271_v35 = vpop.xlane.xlu0 %6270 }
0x1613   : > { %v6295_v1 = vmul.f32 0.03125, %v6271_v35 }
0x1614   : > { %v6274_v44 = vpop.xlane.xlu1 %6273 }
0x1615   : > { %v6305_v10 = vadd.f32 1e-05, %v6295_v1  ;;  %v6296_v38 = vmul.f32 0.03125, %v6274_v44 }
0x1617   : > { %9189 = vrsqrt.f32 %v6305_v10  ;;  %v6306_v33 = vadd.f32 1e-05, %v6296_v38 }
0x1619   : > { %v9186_v48 = vpop.eup %9185  ;;  %9191 = vrsqrt.f32 %v6306_v33 }
0x161a   : > { %v6323_v2 = vmul.f32 %v9186_v48, %v12478_v5 }
0x161b   : > { %v9188_v60 = vpop.eup %9187 }
0x161c   : > { %v6339_v8 = vmul.f32 %v12543_v18, %v6323_v2  ;;  %v6324_v36 = vmul.f32 %v9188_v60, %v12481_v13  ;;  %v6277_v62 = vpop.xlane.xlu0 %6276 }
0x161d   : > { %v6297_v27 = vmul.f32 0.03125, %v6277_v62 }
0x161e   : > { %v6340_v23 = vmul.f32 %v12543_v18, %v6324_v36  ;;  %v6280_v55 = vpop.xlane.xlu1 %6279  ;;  %v6355_v56 = vadd.f32 %v12551_v46, %v6339_v8 }
0x161f   : > { %v6307_v0 = vadd.f32 1e-05, %v6297_v27  ;;  %v6298_v42 = vmul.f32 0.03125, %v6280_v55 }
0x1620   : > { %v6356_v5 = vadd.f32 %v12551_v46, %v6340_v23 }
0x1621   : > { %v9190_v28 = vpop.eup %9189  ;;  %9193 = vrsqrt.f32 %v6307_v0  ;;  %v6308_v63 = vadd.f32 1e-05, %v6298_v42 }
0x1622   : > { %v6325_v13 = vmul.f32 %v9190_v28, %v12490_v51  ;;  %v6372_v20 = vpack.c.bf16 %v6356_v5, %v6355_v56 }
0x1623   : > { %v9192_v43 = vpop.eup %9191  ;;  %9195 = vrsqrt.f32 %v6308_v63  ;;  %v8739_v63 = vld [vmem:[%s12738_s17 + $0x60] sm:$0xff]  }
0x1624   : > { %v6326_v22 = vmul.f32 %v9192_v43, %v12493_v4  ;;  %v6283_v59 = vpop.xlane.xlu0 %6282  ;;  %8337 = vmatmul.mubr.msk.bf16.vlgmr.msra.gmra.mrb[244].mxu1 %vm1496_vm0, %v6372_v20  ;;  %v6341_v14 = vmul.f32 %v12543_v18, %v6325_v13  ;;  %v8740_v13 = vld [vmem:[%s12738_s17 + $0x68] sm:$0xff]   ;;  %v8741_v20 = vld [vmem:[%s12738_s17 + $0x70] sm:$0xff]   ;;  %v8742_v43 = vld [vmem:[%s12738_s17 + $0x78] sm:$0xff]  }
0x1625   : > { %v6299_v7 = vmul.f32 0.03125, %v6283_v59  ;;  %8340 = vmatprep.mubr.msk.bf16.mxu1 %vm9272_vm1, %v12834_v52 }
0x1626   : > { %v6286_v45 = vpop.xlane.xlu1 %6285  ;;  %v6342_v49 = vmul.f32 %v12543_v18, %v6326_v22  ;;  %v6357_v51 = vadd.f32 %v12551_v46, %v6341_v14  ;;  %v12627_v22 = vld [vmem:[%s12737_s16 + $0x1] ss:$0 sm:$0xff] }
0x1627   : > { %v6309_v50 = vadd.f32 1e-05, %v6299_v7  ;;  %v6300_v9 = vmul.f32 0.03125, %v6286_v45 }
0x1628   : > { %v6358_v26 = vadd.f32 %v12551_v46, %v6342_v49 }
0x1629   : > { %9197 = vrsqrt.f32 %v6309_v50  ;;  %v6310_v4 = vadd.f32 1e-05, %v6300_v9 }
0x162a   : > { %v6373_v47 = vpack.c.bf16 %v6358_v26, %v6357_v51 }
0x162b   : > { %v9194_v31 = vpop.eup %9193  ;;  %9199 = vrsqrt.f32 %v6310_v4 }
0x162c   : > { %v6327_v3 = vmul.f32 %v9194_v31, %v12502_v39  ;;  %v6289_v61 = vpop.xlane.xlu0 %6288  ;;  %8341 = vmatmul.mubr.msk.bf16.gmra.mrb[248].mxu1 %vm1496_vm0, %v6373_v47 }
0x162d   : > { %v9196_v11 = vpop.eup %9195  ;;  %v6301_v40 = vmul.f32 0.03125, %v6289_v61  ;;  %8344 = vmatprep.mubr.msk.bf16.mxu1 %vm9272_vm1, %v12834_v52 }
0x162e   : > { %v6328_v57 = vmul.f32 %v9196_v11, %v12505_v24  ;;  %v6292_v54 = vpop.xlane.xlu1 %6291  ;;  %v6343_v16 = vmul.f32 %v12543_v18, %v6327_v3 }
0x162f   : > { %v6311_v30 = vadd.f32 1e-05, %v6301_v40  ;;  %v6302_v35 = vmul.f32 0.03125, %v6292_v54 }
0x1630   : > { %v6344_v1 = vmul.f32 %v12543_v18, %v6328_v57  ;;  %v6359_v39 = vadd.f32 %v12551_v46, %v6343_v16 }
0x1631   : > { %9201 = vrsqrt.f32 %v6311_v30  ;;  %v6312_v44 = vadd.f32 1e-05, %v6302_v35 }
0x1632   : > { %v6360_v10 = vadd.f32 %v12551_v46, %v6344_v1 }
0x1633   : > { %v9198_v38 = vpop.eup %9197  ;;  %9203 = vrsqrt.f32 %v6312_v44 }
0x1634   : > { %v6329_v33 = vmul.f32 %v9198_v38, %v12514_v17  ;;  %v6374_v48 = vpack.c.bf16 %v6360_v10, %v6359_v39 }
0x1635   : > { %v9200_v2 = vpop.eup %9199 }
0x1636   : > { %v6345_v24 = vmul.f32 %v12543_v18, %v6329_v33  ;;  %v6330_v60 = vmul.f32 %v9200_v2, %v12517_v37  ;;  %8345 = vmatmul.mubr.msk.bf16.gmra.mrb[252].mxu1 %vm1496_vm0, %v6374_v48 }
0x1637   : > { %8348 = vmatprep.mubr.msk.bf16.mxu1 %vm9272_vm1, %v12834_v52 }
0x1638   : > { %v6346_v8 = vmul.f32 %v12543_v18, %v6330_v60  ;;  %v6361_v36 = vadd.f32 %v12551_v46, %v6345_v24 }
0x163a   : > { %v6362_v62 = vadd.f32 %v12551_v46, %v6346_v8 }
0x163b   : > { %v9202_v27 = vpop.eup %9201 }
0x163c   : > { %v6375_v23 = vpack.c.bf16 %v6362_v62, %v6361_v36  ;;  %v6331_v17 = vmul.f32 %v9202_v27, %v12526_v12  ;;  %v8735_v12 = vld [vmem:[%s12738_s17 + $0x40] sm:$0xff]  }
0x163d   : > { %v9204_v55 = vpop.eup %9203  ;;  %8357 = vmatpush3.bf16.msra.mxu0 %v8735_v12 }
0x163e   : > { %v6347_v0 = vmul.f32 %v12543_v18, %v6331_v17  ;;  %v6332_v37 = vmul.f32 %v9204_v55, %v12529_v29  ;;  %8349 = vmatmul.mubr.msk.bf16.gmra.mrb[0].mxu1 %vm1496_vm0, %v6375_v23  ;;  %8358 = vmatprep.subr.bf16.mxu0 %v12834_v52  ;;  %v8736_v29 = vld [vmem:[%s12738_s17 + $0x48] sm:$0xff]  }
0x163f   : > { %8352 = vmatprep.mubr.msk.bf16.mxu1 %vm9272_vm1, %v12834_v52 }
0x1640   : > { %v6348_v42 = vmul.f32 %v12543_v18, %v6332_v37  ;;  %v6363_v56 = vadd.f32 %v12551_v46, %v6347_v0  ;;  %v8737_v18 = vld [vmem:[%s12738_s17 + $0x50] sm:$0xff]  }
0x1641   : > { %8359 = vmatpush3.bf16.msra.mxu0 %v8736_v29 }
0x1642   : > { %v6364_v5 = vadd.f32 %v12551_v46, %v6348_v42  ;;  %8360 = vmatprep.subr.bf16.mxu0 %v12834_v52  ;;  %v8738_v46 = vld [vmem:[%s12738_s17 + $0x58] sm:$0xff]  }
0x1644   : > { %v6376_v28 = vpack.c.bf16 %v6364_v5, %v6363_v56 }
0x1645   : > { %8361 = vmatpush3.bf16.msra.mxu0 %v8737_v18 }
0x1646   : > { %8353 = vmatmul.mubr.msk.bf16.gmra.mrb[4].mxu1 %vm1496_vm0, %v6376_v28  ;;  %8362 = vmatprep.subr.bf16.mxu0 %v12834_v52 }
0x1649   : > { %8363 = vmatpush3.bf16.msra.mxu0 %v8738_v46 }
0x164a   : > { %8364 = vmatprep.subr.bf16.mxu0 %v12834_v52 }
0x164d   : > { %8365 = vmatpush3.bf16.msra.mxu0 %v8739_v63 }
0x164e   : > { %8366 = vmatprep.subr.bf16.mxu0 %v12834_v52 }
0x1651   : > { %8367 = vmatpush3.bf16.msra.mxu0 %v8740_v13 }
0x1652   : > { %8368 = vmatprep.subr.bf16.mxu0 %v12834_v52 }
0x1655   : > { %8369 = vmatpush3.bf16.msra.mxu0 %v8741_v20 }
0x1656   : > { %8370 = vmatprep.subr.bf16.mxu0 %v12834_v52 }
0x1659   : > { %8371 = vmatpush3.bf16.msra.mxu0 %v8742_v43 }
0x16f7   : > { %v6444_v59 = vpop.f32.mrb[244].mxu1 }
0x16f8   : > { %v6445_v14 = vadd.f32 %v12627_v22, %v6444_v59  ;;  %v8338_v7 = vpop.f32.mrb[245].mxu1 }
0x16f9   : > { %v6447_v45 = vpop.f32.mrb[246].mxu1 }
0x16fa   : > { %v7246_v49 = vmul.f32 -1.702, %v6445_v14  ;;  %v6448_v50 = vadd.f32 %v12627_v22, %v6447_v45  ;;  %v8339_v9 = vpop.f32.mrb[247].mxu1 }
0x16fc   : > { %v6503_v51 = vmul.f32 1.442695, %v7246_v49  ;;  %v7247_v26 = vmul.f32 -1.702, %v6448_v50 }
0x16fe   : > { %9205 = vpow2.f32 %v6503_v51  ;;  %v6505_v4 = vmul.f32 1.442695, %v7247_v26 }
0x16ff   : > { %v6452_v47 = vpop.f32.mrb[248].mxu1 }
0x1700   : > { %9207 = vpow2.f32 %v6505_v4  ;;  %v12632_v31 = vadd.f32 %v12627_v22, %v6452_v47  ;;  %v8342_v3 = vpop.f32.mrb[249].mxu1 }
0x1701   : > { %v6455_v61 = vpop.f32.mrb[250].mxu1 }
0x1702   : > { %v7248_v11 = vmul.f32 -1.702, %v12632_v31  ;;  %v12636_v40 = vadd.f32 %v12627_v22, %v6455_v61  ;;  %v8343_v57 = vpop.f32.mrb[251].mxu1 }
0x1704   : > { %v6507_v54 = vmul.f32 1.442695, %v7248_v11  ;;  %v7249_v16 = vmul.f32 -1.702, %v12636_v40 }
0x1706   : > { %9209 = vpow2.f32 %v6507_v54  ;;  %v6509_v30 = vmul.f32 1.442695, %v7249_v16 }
0x1708   : > { %v9206_v35 = vpop.eup %9205  ;;  %9211 = vpow2.f32 %v6509_v30 }
0x1709   : > { %v6523_v1 = vadd.f32 1.0, %v9206_v35  ;;  %v6460_v44 = vpop.f32.mrb[252].mxu1 }
0x170a   : > { %v9208_v39 = vpop.eup %9207  ;;  %v12640_v10 = vadd.f32 %v12627_v22, %v6460_v44  ;;  %v8346_v38 = vpop.f32.mrb[253].mxu1 }
0x170b   : > { %9213 = vrcp.f32 %v6523_v1  ;;  %v6524_v33 = vadd.f32 1.0, %v9208_v39  ;;  %v6463_v48 = vpop.f32.mrb[254].mxu1 }
0x170c   : > { %v7250_v2 = vmul.f32 -1.702, %v12640_v10  ;;  %v12644_v24 = vadd.f32 %v12627_v22, %v6463_v48  ;;  %v8347_v60 = vpop.f32.mrb[255].mxu1 }
0x170d   : > { %9215 = vrcp.f32 %v6524_v33 }
0x170e   : > { %v6511_v8 = vmul.f32 1.442695, %v7250_v2  ;;  %v7251_v36 = vmul.f32 -1.702, %v12644_v24 }
0x1710   : > { %v9210_v62 = vpop.eup %9209  ;;  %9217 = vpow2.f32 %v6511_v8  ;;  %v6513_v27 = vmul.f32 1.442695, %v7251_v36 }
0x1711   : > { %v6525_v23 = vadd.f32 1.0, %v9210_v62  ;;  %v6468_v17 = vpop.f32.mrb[0].mxu1 }
0x1712   : > { %v9212_v55 = vpop.eup %9211  ;;  %9219 = vpow2.f32 %v6513_v27  ;;  %v12648_v0 = vadd.f32 %v12627_v22, %v6468_v17  ;;  %v8350_v37 = vpop.f32.mrb[1].mxu1 }
0x1713   : > { %9221 = vrcp.f32 %v6525_v23  ;;  %v6526_v42 = vadd.f32 1.0, %v9212_v55  ;;  %v6471_v56 = vpop.f32.mrb[2].mxu1 }
0x1714   : > { %v7252_v5 = vmul.f32 -1.702, %v12648_v0  ;;  %v6472_v28 = vadd.f32 %v12627_v22, %v6471_v56  ;;  %v8351_v12 = vpop.f32.mrb[3].mxu1 }
0x1715   : > { %v9214_v29 = vpop.eup %9213  ;;  %9223 = vrcp.f32 %v6526_v42  ;;  %v6724_v12 = vld [vmem:[%s12904_s24] sm:$0xff] }
0x1716   : > { %v6515_v18 = vmul.f32 1.442695, %v7252_v5  ;;  %v7253_v46 = vmul.f32 -1.702, %v6472_v28  ;;  %v6553_v13 = vmul.f32 %v9214_v29, %v6445_v14  ;;  %8412 = vmatprep.mubr.msk.f32.mxu1 %vm2094_vm3, %v6724_v12  ;;  %v8744_v12 = vld [vmem:[%s12742_s21 + $0x8] sm:$0xff]  }
0x1717   : > { %v9216_v63 = vpop.eup %9215 }
0x1718   : > { %v6554_v20 = vmul.f32 %v9216_v63, %v6448_v50  ;;  %9225 = vpow2.f32 %v6515_v18  ;;  %v6517_v43 = vmul.f32 1.442695, %v7253_v46 }
0x1719   : > { %v6476_v59 = vpop.f32.mrb[4].mxu1 }
0x171a   : > { %v9218_v7 = vpop.eup %9217  ;;  %v6582_v45 = vpack.c.bf16 %v6554_v20, %v6553_v13  ;;  %9227 = vpow2.f32 %v6517_v43  ;;  %v6477_v49 = vadd.f32 %v12627_v22, %v6476_v59  ;;  %v8354_v9 = vpop.f32.mrb[5].mxu1 }
0x171b   : > { %v6527_v51 = vadd.f32 1.0, %v9218_v7  ;;  %v6479_v26 = vpop.f32.mrb[6].mxu1 }
0x171c   : > { %v9220_v4 = vpop.eup %9219  ;;  %v7254_v47 = vmul.f32 -1.702, %v6477_v49  ;;  %v6480_v3 = vadd.f32 %v12627_v22, %v6479_v26  ;;  %v8355_v61 = vpop.f32.mrb[7].mxu1  ;;  %8373 = vmatmul.mubr.bf16.vlgmr.msra.gmra.mrb[0].mxu0 %v6582_v45 }
0x171d   : > { %v9222_v11 = vpop.eup %9221  ;;  %9229 = vrcp.f32 %v6527_v51  ;;  %v6528_v14 = vadd.f32 1.0, %v9220_v4  ;;  %8376 = vmatprep.mubr.msk.bf16.mxu0 %vm9272_vm1, %v12834_v52 }
0x171e   : > { %v6519_v50 = vmul.f32 1.442695, %v7254_v47  ;;  %v7255_v57 = vmul.f32 -1.702, %v6480_v3  ;;  %v6555_v16 = vmul.f32 %v9222_v11, %v12632_v31 }
0x171f   : > { %v9224_v54 = vpop.eup %9223  ;;  %9231 = vrcp.f32 %v6528_v14 }
0x1720   : > { %v6556_v30 = vmul.f32 %v9224_v54, %v12636_v40  ;;  %9233 = vpow2.f32 %v6519_v50  ;;  %v6521_v35 = vmul.f32 1.442695, %v7255_v57 }
0x1722   : > { %v9226_v1 = vpop.eup %9225  ;;  %v6583_v22 = vpack.c.bf16 %v6556_v30, %v6555_v16  ;;  %9235 = vpow2.f32 %v6521_v35 }
0x1723   : > { %v6529_v44 = vadd.f32 1.0, %v9226_v1 }
0x1724   : > { %v9228_v39 = vpop.eup %9227  ;;  %8377 = vmatmul.mubr.bf16.gmra.mrb[4].mxu0 %v6583_v22 }
0x1725   : > { %9237 = vrcp.f32 %v6529_v44  ;;  %v6530_v38 = vadd.f32 1.0, %v9228_v39  ;;  %8380 = vmatprep.mubr.msk.bf16.mxu0 %vm9272_vm1, %v12834_v52 }
0x1727   : > { %v9230_v33 = vpop.eup %9229  ;;  %9239 = vrcp.f32 %v6530_v38 }
0x1728   : > { %v6557_v31 = vmul.f32 %v9230_v33, %v12640_v10 }
0x1729   : > { %v9232_v48 = vpop.eup %9231 }
0x172a   : > { %v9234_v2 = vpop.eup %9233  ;;  %v6558_v40 = vmul.f32 %v9232_v48, %v12644_v24 }
0x172b   : > { %v6531_v60 = vadd.f32 1.0, %v9234_v2 }
0x172c   : > { %v9236_v8 = vpop.eup %9235  ;;  %v6584_v36 = vpack.c.bf16 %v6558_v40, %v6557_v31 }
0x172d   : > { %9241 = vrcp.f32 %v6531_v60  ;;  %v6532_v62 = vadd.f32 1.0, %v9236_v8 }
0x172e   : > { %8381 = vmatmul.mubr.bf16.gmra.mrb[8].mxu0 %v6584_v36 }
0x172f   : > { %v9238_v27 = vpop.eup %9237  ;;  %9243 = vrcp.f32 %v6532_v62  ;;  %8384 = vmatprep.mubr.msk.bf16.mxu0 %vm9272_vm1, %v12834_v52 }
0x1730   : > { %v6559_v17 = vmul.f32 %v9238_v27, %v12648_v0  ;;  %v7273_v0 = vld [vmem:[%s12739_s18 + $0x1] ss:$0 sm:$0xff] }
0x1731   : > { %v9240_v23 = vpop.eup %9239 }
0x1732   : > { %v6560_v55 = vmul.f32 %v9240_v23, %v6472_v28 }
0x1734   : > { %v6585_v37 = vpack.c.bf16 %v6560_v55, %v6559_v17 }
0x1736   : > { %8385 = vmatmul.mubr.bf16.gmra.mrb[12].mxu0 %v6585_v37 }
0x1737   : > { %v9242_v10 = vpop.eup %9241  ;;  %8388 = vmatprep.mubr.msk.bf16.mxu0 %vm9272_vm1, %v12834_v52 }
0x1738   : > { %v6561_v42 = vmul.f32 %v9242_v10, %v6477_v49 }
0x1739   : > { %v9244_v24 = vpop.eup %9243 }
0x173a   : > { %v6562_v56 = vmul.f32 %v9244_v24, %v6480_v3 }
0x173c   : > { %v6586_v5 = vpack.c.bf16 %v6562_v56, %v6561_v42 }
0x173e   : > { %8389 = vmatmul.mubr.bf16.gmra.mrb[16].mxu0 %v6586_v5  ;;  %v8743_v5 = vld [vmem:[%s12742_s21] sm:$0xff]  }
0x17ef   : > { %v6675_v28 = vpop.f32.mrb[0].mxu0 }
0x17f0   : > { %v6676_v29 = vadd.f32 %v7273_v0, %v6675_v28  ;;  %v8374_v18 = vpop.f32.mrb[1].mxu0 }
0x17f1   : > { %v6678_v46 = vpop.f32.mrb[2].mxu0 }
0x17f2   : > { %v6679_v63 = vadd.f32 %v7273_v0, %v6678_v46  ;;  %v8375_v13 = vpop.f32.mrb[3].mxu0  ;;  %v6714_v20 = vadd.f32 %v6676_v29, %v12424_v58 }
0x17f4   : > { %v6715_v43 = vadd.f32 %v6679_v63, %v12427_v41 }
0x17f6   : > { %v8423_v59 = vpack.c.bf16 %v6715_v43, %v6714_v20  ;;  %v7284_v20 = vld [vmem:[%s12740_s19] ss:$0 sm:$0xff] }
0x17f7   : > { %v6683_v7 = vpop.f32.mrb[4].mxu0 }
0x17f8   : > { %v6684_v45 = vadd.f32 %v7273_v0, %v6683_v7  ;;  %v8378_v49 = vpop.f32.mrb[5].mxu0  ;;  %8424 = vmatprep.subr.bf16.mxu1 %v8423_v59 }
0x17f9   : > { %v6686_v9 = vpop.f32.mrb[6].mxu0  ;;  %8426 = vmatpush3.bf16.msra.mxu1 %v8423_v59  ;;  %v7285_v59 = vld [vmem:[%s12741_s20] ss:$0 sm:$0xff] }
0x17fa   : > { %v6687_v51 = vadd.f32 %v7273_v0, %v6686_v9  ;;  %v8379_v26 = vpop.f32.mrb[7].mxu0  ;;  %v6716_v4 = vadd.f32 %v6684_v45, %v12434_v32 }
0x17fc   : > { %v6717_v47 = vadd.f32 %v6687_v51, %v12437_v34 }
0x17fe   : > { %v8427_v3 = vpack.c.bf16 %v6717_v47, %v6716_v4 }
0x1800   : > { %8428 = vmatprep.subr.bf16.mxu1 %v8427_v3 }
0x1801   : > { %v6691_v61 = vpop.f32.mrb[8].mxu0  ;;  %8430 = vmatpush3.bf16.msra.mxu1 %v8427_v3 }
0x1802   : > { %v6692_v58 = vadd.f32 %v7273_v0, %v6691_v61  ;;  %v8382_v11 = vpop.f32.mrb[9].mxu0 }
0x1803   : > { %v6694_v41 = vpop.f32.mrb[10].mxu0 }
0x1804   : > { %v6695_v14 = vadd.f32 %v7273_v0, %v6694_v41  ;;  %v8383_v50 = vpop.f32.mrb[11].mxu0  ;;  %v6718_v57 = vadd.f32 %v6692_v58, %v12444_v25 }
0x1806   : > { %v6719_v54 = vadd.f32 %v6695_v14, %v12447_v21 }
0x1808   : > { %v8431_v16 = vpack.c.bf16 %v6719_v54, %v6718_v57 }
0x1809   : > { %v6699_v30 = vpop.f32.mrb[12].mxu0 }
0x180a   : > { %v6700_v35 = vadd.f32 %v7273_v0, %v6699_v30  ;;  %v8386_v1 = vpop.f32.mrb[13].mxu0  ;;  %8432 = vmatprep.subr.bf16.mxu1 %v8431_v16 }
0x180b   : > { %v6702_v32 = vpop.f32.mrb[14].mxu0  ;;  %8434 = vmatpush3.bf16.msra.mxu1 %v8431_v16 }
0x180c   : > { %v6703_v34 = vadd.f32 %v7273_v0, %v6702_v32  ;;  %v8387_v22 = vpop.f32.mrb[15].mxu0  ;;  %v6720_v44 = vadd.f32 %v6700_v35, %v12454_v6  ;;  %v6725_v6 = vld [vmem:[%s12904_s24 + $0x8] sm:$0xff] }
0x180e   : > { %v6721_v39 = vadd.f32 %v6703_v34, %v12457_v19 }
0x1810   : > { %v8435_v38 = vpack.c.bf16 %v6721_v39, %v6720_v44 }
0x1811   : > { %v6707_v33 = vpop.f32.mrb[16].mxu0 }
0x1812   : > { %v6708_v48 = vadd.f32 %v7273_v0, %v6707_v33  ;;  %v8390_v2 = vpop.f32.mrb[17].mxu0  ;;  %8436 = vmatprep.subr.bf16.mxu1 %v8435_v38 }
0x1813   : > { %v6710_v25 = vpop.f32.mrb[18].mxu0  ;;  %8438 = vmatpush3.bf16.msra.mxu1 %v8435_v38 }
0x1814   : > { %v6711_v21 = vadd.f32 %v7273_v0, %v6710_v25  ;;  %v8391_v31 = vpop.f32.mrb[19].mxu0  ;;  %v6722_v40 = vadd.f32 %v6708_v48, %v12464_v53 }
0x1816   : > { %v6723_v60 = vadd.f32 %v6711_v21, %v12467_v15 }
0x1818   : > { %v8439_v8 = vpack.c.bf16 %v6723_v60, %v6722_v40 }
0x181a   : > { %8440 = vmatprep.subr.bf16.mxu1 %v8439_v8 }
0x181b   : > { %8442 = vmatpush3.bf16.msra.mxu1 %v8439_v8 }
0x181c   : > { %8415 = vmatprep.subr.bf16.mxu1 %v12834_v52 }
0x181e   : > { %8413 = vmatmul.mubr.msk.f32.vlgmr.msra.gmra.mrb[8].mxu1 %vm2094_vm3, %v6725_v6 }
0x181f   : > { %8419 = vmatprep.mubr.msk.bf16.mxu1 %vm9272_vm1, %v12834_v52  ;;  %8416 = vmatpush3.bf16.msra.mxu1 %v8743_v5 }
0x1820   : > { %8417 = vmatprep.subr.bf16.mxu1 %v12834_v52 }
0x1823   : > { %8418 = vmatpush3.bf16.msra.mxu1 %v8744_v12 }
0x18f1   : > { %v8414_v19 = vpop.f32.mrb[8].mxu1 }
0x18f2   : > { %v6798_v36 = vpop.f32.mrb[9].mxu1  ;;  %v6812_v53 = vsel %vm1496_vm0, %v8414_v19, 0.0 }
0x18f3   : > { %6813 = vadd.xlane.f32.xlu1 %v6812_v53  ;;  %v6809_v15 = vsel %vm1496_vm0, %v6798_v36, 0.0 }
0x18f4   : > { %6810 = vadd.xlane.f32.xlu0 %v6809_v15 }
0x1980   : > { %v6814_v62 = vpop.xlane.xlu1 %6813 }
0x1981   : > { %v6816_v27 = vmul.f32 0.03125, %v6814_v62  ;;  %v6811_v23 = vpop.xlane.xlu0 %6810 }
0x1982   : > { %v6815_v17 = vmul.f32 0.03125, %v6811_v23 }
0x1983   : > { %v6818_v55 = vsub.f32 %v8414_v19, %v6816_v27 }
0x1984   : > { %v6817_v37 = vsub.f32 %v6798_v36, %v6815_v17 }
0x1985   : > { %v6820_v10 = vmul.f32 %v6818_v55, %v6818_v55 }
0x1986   : > { %v6819_v24 = vmul.f32 %v6817_v37, %v6817_v37 }
0x1987   : > { %v6824_v42 = vsel %vm1496_vm0, %v6820_v10, 0.0 }
0x1988   : > { %6825 = vadd.xlane.f32.xlu1 %v6824_v42  ;;  %v6821_v56 = vsel %vm1496_vm0, %v6819_v24, 0.0 }
0x1989   : > { %6822 = vadd.xlane.f32.xlu0 %v6821_v56 }
0x1a15   : > { %v6826_v0 = vpop.xlane.xlu1 %6825 }
0x1a16   : > { %v6828_v28 = vmul.f32 0.03125, %v6826_v0  ;;  %v6823_v29 = vpop.xlane.xlu0 %6822 }
0x1a17   : > { %v6827_v18 = vmul.f32 0.03125, %v6823_v29 }
0x1a18   : > { %v6830_v46 = vadd.f32 1e-05, %v6828_v28 }
0x1a19   : > { %v6829_v63 = vadd.f32 1e-05, %v6827_v18 }
0x1a1a   : > { %9245 = vrsqrt.f32 %v6830_v46 }
0x1a1b   : > { %9247 = vrsqrt.f32 %v6829_v63 }
0x1a24   : > { %v9246_v13 = vpop.eup %9245 }
0x1a25   : > { %v9248_v43 = vpop.eup %9247  ;;  %v6834_v52 = vmul.f32 %v9246_v13, %v6818_v55 }
0x1a26   : > { %v6833_v7 = vmul.f32 %v9248_v43, %v6817_v37 }
0x1a27   : > { %v6842_v45 = vmul.f32 %v7284_v20, %v6834_v52 }
0x1a28   : > { %v6841_v49 = vmul.f32 %v7284_v20, %v6833_v7 }
0x1a29   : > { %v6850_v9 = vadd.f32 %v7285_v59, %v6842_v45 }
0x1a2a   : > { %v6849_v51 = vadd.f32 %v7285_v59, %v6841_v49 }
0x1a2c   : > { %v6855_v26 = vpack.c.bf16 %v6850_v9, %v6849_v51 }
0x1a2e   : > { %8420 = vmatmul.mubr.msk.bf16.vlgmr.msra.gmra.mrb[12].mxu1 %vm1496_vm0, %v6855_v26 }
0x1b01   : > { %v6905_v4 = vpop.f32.mrb[12].mxu1 }
0x1b02   : > { %v6912_v47 = vmul.f32 %v6905_v4, %v6905_v4  ;;  %v8421_v3 = vpop.f32.mrb[13].mxu1 }
0x1b03   : > { %v6908_v61 = vpop.f32.mrb[14].mxu1 }
0x1b04   : > { %v6913_v58 = vmul.f32 %v6908_v61, %v6908_v61  ;;  %v8422_v11 = vpop.f32.mrb[15].mxu1  ;;  %v6914_v41 = vsel %vm3526_vm4, %v6912_v47, 0.0 }
0x1b05   : > { %6915 = vadd.xlane.f32.xlu0 %v6914_v41 }
0x1b06   : > { %v6917_v14 = vsel %vm3526_vm4, %v6913_v58, 0.0 }
0x1b07   : > { %6918 = vadd.xlane.f32.xlu1 %v6917_v14 }
0x1b92   : > { %v6916_v50 = vpop.xlane.xlu0 %6915 }
0x1b93   : > { %v6920_v57 = vadd.f32 1e-12, %v6916_v50 }
0x1b94   : > { %v6919_v54 = vpop.xlane.xlu1 %6918 }
0x1b95   : > { %9249 = vrsqrt.f32 %v6920_v57  ;;  %v6921_v16 = vadd.f32 1e-12, %v6919_v54 }
0x1b97   : > { %9251 = vrsqrt.f32 %v6921_v16 }
0x1b9f   : > { %v9250_v30 = vpop.eup %9249 }
0x1ba0   : > { %v6924_v35 = vmul.f32 %v9250_v30, %v6905_v4 }
0x1ba1   : > { %v9252_v1 = vpop.eup %9251 }
0x1ba2   : > { %6926 = vst.msk [vmem:[%s688_s27] sm:$0xff] %vm3526_vm4, %v6924_v35  ;;  %v6925_v32 = vmul.f32 %v9252_v1, %v6908_v61 }
0x1ba4   : > { %6927 = vst.msk [vmem:[%s688_s27 + $0x8] sm:$0xff] %vm3526_vm4, %v6925_v32 }
0x1ba5 PF: > { %s32_s3 = sadd.s32 1, %s9269_s3  }
0x1ba6   : > { %p29_p5 = scmp.ge.s32.totalorder %s32_s3, 4  }
0x1ba8   :  { %31 = sbr.rel (!%p29_p5) target bundleno = 8 (0x8), region = 150 }

</bundles_post_ra>
